<compile_context>
chip_gen: v5e
topology: v5e:2x2
jax: 0.10.0
libtpu: 0.0.40
codegen_flags: <defaults>
</compile_context>

<pallas_src>
import functools
import math

import jax
import jax.numpy as jnp
from jax.experimental import pallas as pl
from jax.experimental.pallas import tpu as pltpu

_EPS = 1e-6
_NEG_INF = -1e30


# ------------------------------ small helpers ------------------------------

def _round_up(v, m):
    return ((v + m - 1) // m) * m


@functools.lru_cache(maxsize=None)
def _vmem_capacity_bytes():
    try:
        return int(pltpu.get_tpu_info().vmem_capacity_bytes)
    except Exception:
        return 64 * 1024 * 1024          # conservative fallback (v7x-sized)


def _vmem_limit():
    # ~3/4 of physical VMEM, capped at 100 MiB:
    # v5e/v6e (128 MiB physical) -> ~96-100 MiB;  v7x (64 MiB) -> ~48 MiB.
    return int(min(_vmem_capacity_bytes() * 3 // 4, 100 * 1024 * 1024))


def _max_row_tile():
    return 1024 if _vmem_capacity_bytes() >= (100 << 20) else 512


def _cparams(n_parallel=0):
    sem = ("parallel",) * n_parallel if n_parallel else None
    return pltpu.CompilerParams(dimension_semantics=sem,
                                vmem_limit_bytes=_vmem_limit())


def _probe_single_buffered():
    """Grid-invariant operands want pipeline_mode=pl.Buffered(1) (no double
    buffering, halves weight VMEM).  Probe once: support depends on jax."""
    try:
        def _k(x_ref, w_ref, o_ref):
            o_ref[...] = x_ref[...] + w_ref[...]

        fn = pl.pallas_call(
            _k,
            out_shape=jax.ShapeDtypeStruct((16, 128), jnp.float32),
            grid=(2,),
            in_specs=[pl.BlockSpec((8, 128), lambda i: (i, 0)),
                      pl.BlockSpec((8, 128), lambda i: (0, 0),
                                   pipeline_mode=pl.Buffered(1))],
            out_specs=pl.BlockSpec((8, 128), lambda i: (i, 0)),
        )
        jax.block_until_ready(fn(jnp.zeros((16, 128), jnp.float32),
                                 jnp.zeros((8, 128), jnp.float32)))
        return True
    except Exception:
        return False


_SINGLE_BUFFER_OK = _probe_single_buffered()


def _const_spec(shape):
    """BlockSpec for grid-invariant operands (weights / biases / LN params)."""
    index_map = lambda *_: tuple(0 for _ in shape)
    if _SINGLE_BUFFER_OK:
        return pl.BlockSpec(shape, index_map, pipeline_mode=pl.Buffered(1))
    return pl.BlockSpec(shape, index_map)


def _ln(x, g, b, eps=_EPS):
    """f32 layernorm over the last (lane) dim; used inside kernels."""
    mu = jnp.mean(x, axis=-1, keepdims=True)
    var = jnp.mean(jnp.square(x - mu), axis=-1, keepdims=True)
    return (x - mu) * jax.lax.rsqrt(var + eps) * g + b


def _pad_rows(x, tm):
    m = x.shape[0]
    mp = _round_up(m, tm)
    if mp == m:
        return x
    return jnp.pad(x, ((0, mp - m),) + ((0, 0),) * (x.ndim - 1))


# ----------------------------- Pallas kernels ------------------------------

def _linear_kernel(x_ref, w_ref, b_ref, o_ref):
    o_ref[...] = (jnp.dot(x_ref[...], w_ref[...],
                          preferred_element_type=jnp.float32)
                  + b_ref[...]).astype(o_ref.dtype)


def linear_rows(x_bf16, w_bf16, bias, out_dtype=jnp.bfloat16):
    """Row-tiled y = x @ W + b; rows padded to the tile, W single-buffered."""
    m, k = x_bf16.shape
    n = w_bf16.shape[1]
    tm = min(_max_row_tile(), _round_up(m, 8))
    xp = _pad_rows(x_bf16, tm)
    mp = xp.shape[0]
    out = pl.pallas_call(
        _linear_kernel,
        out_shape=jax.ShapeDtypeStruct((mp, n), out_dtype),
        grid=(mp // tm,),
        in_specs=[pl.BlockSpec((tm, k), lambda i: (i, 0)),
                  _const_spec((k, n)),
                  _const_spec((1, n))],
        out_specs=pl.BlockSpec((tm, n), lambda i: (i, 0)),
        compiler_params=_cparams(1),
    )(xp, w_bf16, bias.reshape(1, n))
    return out[:m] if mp != m else out


def _attn_block_kernel(x_ref, g_ref, b_ref, wqkv_ref, bqkv_ref, wproj_ref,
                       bproj_ref, o_ref, attn_ref, *, heads, valid_t):
    """Fused: LN1 -> qkv -> per-head softmax(QK^T)V (into VMEM scratch) ->
    single output-projection matmul -> residual add."""
    x = x_ref[0].astype(jnp.float32)               # (T_pad, D)
    t_pad, d = x.shape
    hd = d // heads
    scale = 1.0 / math.sqrt(hd)

    h = _ln(x, g_ref[...], b_ref[...])
    qkv = jnp.dot(h.astype(jnp.bfloat16), wqkv_ref[...],
                  preferred_element_type=jnp.float32) + bqkv_ref[...]

    # one split into q/k/v slabs; softmax scale folded into the whole q slab
    q_all = (qkv[:, :d] * scale).astype(jnp.bfloat16)
    k_all = qkv[:, d:2 * d].astype(jnp.bfloat16)
    v_all = qkv[:, 2 * d:].astype(jnp.bfloat16)

    # mask padded keys (token axis is padded to a multiple of 128)
    if valid_t < t_pad:
        key_ok = jax.lax.broadcasted_iota(jnp.int32, (t_pad, t_pad), 1) < valid_t
    else:
        key_ok = None

    for hh in range(heads):
        lo = hh * hd
        s = jax.lax.dot_general(q_all[:, lo:lo + hd], k_all[:, lo:lo + hd],
                                (((1,), (1,)), ((), ())),
                                preferred_element_type=jnp.float32)
        if key_ok is not None:
            s = jnp.where(key_ok, s, _NEG_INF)
        s = s - jnp.max(s, axis=-1, keepdims=True)
        p = jnp.exp(s)
        p = p * pl.reciprocal(jnp.sum(p, axis=-1, keepdims=True), approx=True)
        attn_ref[:, lo:lo + hd] = jnp.dot(p.astype(jnp.bfloat16),
                                          v_all[:, lo:lo + hd],
                                          preferred_element_type=jnp.float32)

    # single full-K (D x D) projection over the concatenated heads
    out = jnp.dot(attn_ref[...].astype(jnp.bfloat16), wproj_ref[...],
                  preferred_element_type=jnp.float32)
    o_ref[0] = (x + out + bproj_ref[...]).astype(o_ref.dtype)


def attn_block(x, blk, heads, valid_t):
    b, t_pad, d = x.shape
    # TODO(synk): on v7x at B==1 add a query-tile grid axis so both TensorCores
    # get work (requires splitting the LN/QKV from the attention loop).
    return pl.pallas_call(
        functools.partial(_attn_block_kernel, heads=heads, valid_t=valid_t),
        out_shape=jax.ShapeDtypeStruct((b, t_pad, d), x.dtype),
        grid=(b,),
        in_specs=[pl.BlockSpec((1, t_pad, d), lambda i: (i, 0, 0)),
                  _const_spec((1, d)),
                  _const_spec((1, d)),
                  _const_spec((d, 3 * d)),
                  _const_spec((1, 3 * d)),
                  _const_spec((d, d)),
                  _const_spec((1, d))],
        out_specs=pl.BlockSpec((1, t_pad, d), lambda i: (i, 0, 0)),
        scratch_shapes=[pltpu.VMEM((t_pad, d), jnp.float32)],
        compiler_params=_cparams(1),
    )(x, blk["ln1_g"].reshape(1, d), blk["ln1_b"].reshape(1, d),
      blk["qkv_w"], blk["qkv_b"].reshape(1, 3 * d),
      blk["proj_w"], blk["proj_b"].reshape(1, d))


def _mlp_block_kernel(x_ref, g_ref, b_ref, w1_ref, b1_ref, w2_ref, b2_ref, o_ref):
    """Fused: LN2 -> fc1 + GELU -> fc2 -> residual add."""
    x = x_ref[...].astype(jnp.float32)
    h = _ln(x, g_ref[...], b_ref[...])
    h = jnp.dot(h.astype(jnp.bfloat16), w1_ref[...],
                preferred_element_type=jnp.float32) + b1_ref[...]
    # TODO(synk): timm ViT uses exact-erf GELU; tanh approximation keeps it on the EUP.
    h = jax.nn.gelu(h, approximate=True)
    h = jnp.dot(h.astype(jnp.bfloat16), w2_ref[...],
                preferred_element_type=jnp.float32) + b2_ref[...]
    o_ref[...] = (x + h).astype(o_ref.dtype)


def mlp_block(x, blk):
    m, d = x.shape
    dh = blk["fc1_b"].shape[0]
    tm = min(_max_row_tile(), _round_up(m, 8))
    xp = _pad_rows(x, tm)
    mp = xp.shape[0]
    out = pl.pallas_call(
        _mlp_block_kernel,
        out_shape=jax.ShapeDtypeStruct((mp, d), x.dtype),
        grid=(mp // tm,),
        in_specs=[pl.BlockSpec((tm, d), lambda i: (i, 0)),
                  _const_spec((1, d)), _const_spec((1, d)),
                  _const_spec((d, dh)), _const_spec((1, dh)),
                  _const_spec((dh, d)), _const_spec((1, d))],
        out_specs=pl.BlockSpec((tm, d), lambda i: (i, 0)),
        compiler_params=_cparams(1),
    )(xp, blk["ln2_g"].reshape(1, d), blk["ln2_b"].reshape(1, d),
      blk["fc1_w"], blk["fc1_b"].reshape(1, dh),
      blk["fc2_w"], blk["fc2_b"].reshape(1, d))
    return out[:m] if mp != m else out


def _gauss_logprob_kernel(cls_ref, g_ref, b_ref, precflat_ref, precmu_ref,
                          const_ref, o_ref, *, pool):
    """Fused backbone.norm (cls rows only) + MultivariateNormal log_prob via the
    expanded quadratic form: q'Lq - 2 q'(L mu) + (mu'L mu + logdet + D ln 2pi)."""
    q = _ln(cls_ref[...].astype(jnp.float32), g_ref[...], b_ref[...])   # (B, D)
    d = q.shape[-1]
    qb = q.astype(jnp.bfloat16)
    qlam = jnp.dot(qb, precflat_ref[...],
                   preferred_element_type=jnp.float32)                  # (B, P*D)
    cross = jnp.dot(qb, precmu_ref[...],
                    preferred_element_type=jnp.float32)                 # (B, P)
    quad = jnp.concatenate(
        [jnp.sum(qlam[:, p * d:(p + 1) * d] * q, axis=-1, keepdims=True)
         for p in range(pool)], axis=-1)                                # (B, P)
    o_ref[...] = -0.5 * (quad - 2.0 * cross + const_ref[...])


def gauss_logprob(cls_raw, norm_g, norm_b, prec_flat, prec_mu_t, const):
    # NOTE: at real ViT sizes (D=768, large P) tile prec_flat over the pool axis
    # via a grid; at these shapes it is a few KB so a whole-array call is fine.
    b, d = cls_raw.shape
    p = prec_mu_t.shape[1]
    return pl.pallas_call(
        functools.partial(_gauss_logprob_kernel, pool=p),
        out_shape=jax.ShapeDtypeStruct((b, p), jnp.float32),
        compiler_params=_cparams(),
    )(cls_raw, norm_g.reshape(1, d), norm_b.reshape(1, d),
      prec_flat, prec_mu_t, const)


def _pooled_head_kernel(x_ref, g_ref, b_ref, w_ref, hb_ref, o_ref):
    """Fused backbone.norm (prompt rows) + mean-pool + classification head."""
    h = _ln(x_ref[...].astype(jnp.float32), g_ref[...], b_ref[...])   # (B, S*L, D)
    pooled = jnp.mean(h, axis=1)                                      # (B, D)
    o_ref[...] = jnp.dot(pooled.astype(jnp.bfloat16), w_ref[...],
                         preferred_element_type=jnp.float32) + hb_ref[...]


def pooled_head(x_prompt, norm_g, norm_b, w_pad, b_pad):
    b, _, d = x_prompt.shape
    c_pad = w_pad.shape[1]
    return pl.pallas_call(
        _pooled_head_kernel,
        out_shape=jax.ShapeDtypeStruct((b, c_pad), jnp.float32),
        compiler_params=_cparams(),
    )(x_prompt, norm_g.reshape(1, d), norm_b.reshape(1, d),
      w_pad, b_pad.reshape(1, c_pad))


# ------------------------------- JAX glue ----------------------------------

def patchify(x_nchw, p):
    """NCHW -> (B, num_patches, C*p*p), patch order matches timm PatchEmbed."""
    b, c, h, w = x_nchw.shape
    x = x_nchw.reshape(b, c, h // p, p, w // p, p)
    x = x.transpose(0, 2, 4, 1, 3, 5)
    return x.reshape(b, (h // p) * (w // p), c * p * p)


def _pad_tokens(x, t_pad):
    b, t, d = x.shape
    if t == t_pad:
        return x
    return jnp.pad(x, ((0, 0), (0, t_pad - t), (0, 0)))


def run_blocks(blocks, x, *, heads, valid_t):
    """Pre-norm ViT blocks; bf16 residual stream, two pallas_calls per block."""
    b, t_pad, d = x.shape
    for blk in blocks:
        x = attn_block(x, blk, heads, valid_t)
        x = mlp_block(x.reshape(b * t_pad, d), blk).reshape(b, t_pad, d)
    return x


def init_params(key, *, img_size, patch, in_ch, dim, depth, heads, mlp_ratio,
                class_num, pool_size, prompt_len):
    n_patches = (img_size // patch) ** 2
    keys = iter(jax.random.split(key, 64))
    bf = jnp.bfloat16

    def nrm(shape, scale=0.02, dtype=jnp.float32):
        return (scale * jax.random.normal(next(keys), shape)).astype(dtype)

    params = {
        "patch_w": nrm((in_ch * patch * patch, dim), dtype=bf),
        "patch_b": jnp.zeros((dim,), jnp.float32),
        "cls_token": nrm((1, 1, dim)),
        "pos_embed": nrm((1, 1 + n_patches, dim)),
        "norm_g": jnp.ones((dim,), jnp.float32),
        "norm_b": jnp.zeros((dim,), jnp.float32),
        "blocks": [],
        "prompt": jax.random.normal(next(keys),
                                    (pool_size, prompt_len, dim)).astype(jnp.float32),
    }

    # classification head, lane-padded to a multiple of 128 once at init
    head_w = nrm((dim, class_num))
    head_b = jnp.zeros((class_num,), jnp.float32)
    c_pad = _round_up(class_num, 128)
    params["head_w_pad"] = jnp.pad(head_w, ((0, 0), (0, c_pad - class_num))).astype(bf)
    params["head_b_pad"] = jnp.pad(head_b, (0, c_pad - class_num))

    # frozen Gaussian keys: MultivariateNormal(mean, |variance| + I).
    # Precision / logdet / mu terms are constant in eval mode -> hoisted here.
    mean = jax.random.normal(next(keys), (pool_size, dim)).astype(jnp.float32)
    mean = mean / jnp.linalg.norm(mean, axis=-1, keepdims=True)
    variance = jnp.broadcast_to(
        jnp.ones((dim, dim), jnp.float32) + jnp.eye(dim, dtype=jnp.float32),
        (pool_size, dim, dim))
    cov = jnp.abs(variance) + jnp.eye(dim, dtype=jnp.float32)[None]
    prec = jnp.linalg.inv(cov)                                  # (P, D, D)
    logdet = jnp.linalg.slogdet(cov)[1]                         # (P,)
    prec_mu = jnp.einsum("pij,pj->pi", prec, mean)              # (P, D)
    mu_prec_mu = jnp.einsum("pi,pi->p", mean, prec_mu)          # (P,)
    params["gauss_prec_flat"] = jnp.transpose(prec, (1, 0, 2)).reshape(
        dim, pool_size * dim).astype(bf)                        # (D, P*D)
    params["gauss_prec_mu"] = prec_mu.T.astype(bf)              # (D, P)
    params["gauss_const"] = (logdet + dim * math.log(2.0 * math.pi)
                             + mu_prec_mu).reshape(1, pool_size).astype(jnp.float32)

    for _ in range(depth):
        params["blocks"].append({
            "ln1_g": jnp.ones((dim,), jnp.float32),
            "ln1_b": jnp.zeros((dim,), jnp.float32),
            "qkv_w": nrm((dim, 3 * dim), dtype=bf),
            "qkv_b": jnp.zeros((3 * dim,), jnp.float32),
            "proj_w": nrm((dim, dim), dtype=bf),
            "proj_b": jnp.zeros((dim,), jnp.float32),
            "ln2_g": jnp.ones((dim,), jnp.float32),
            "ln2_b": jnp.zeros((dim,), jnp.float32),
            "fc1_w": nrm((dim, mlp_ratio * dim), dtype=bf),
            "fc1_b": jnp.zeros((mlp_ratio * dim,), jnp.float32),
            "fc2_w": nrm((mlp_ratio * dim, dim), dtype=bf),
            "fc2_b": jnp.zeros((dim,), jnp.float32),
        })
    return params


@functools.partial(jax.jit,
                   static_argnames=("patch", "heads", "selection_size",
                                    "prompt_len", "class_num"))
def gausskey_l2p_forward(params, inputs, *, patch, heads, selection_size,
                         prompt_len, class_num):
    """Eval-mode forward pass of GausskeyL2P."""
    b = inputs.shape[0]
    d = params["patch_b"].shape[0]

    # 1) patch_embed: conv(stride=patch) == patch extraction (glue) + row-tiled
    #    matmul with bf16 activations in and out.
    patches = patchify(inputs, patch).astype(jnp.bfloat16)     # (B, N, C*p*p)
    n = patches.shape[1]
    img = linear_rows(patches.reshape(b * n, -1),
                      params["patch_w"], params["patch_b"]).reshape(b, n, d)

    # 2) prepend cls token, add positional embedding (pos_drop == identity in eval);
    #    residual stream carried in bf16 between kernels.
    tok = jnp.concatenate([jnp.broadcast_to(params["cls_token"], (b, 1, d)),
                           img.astype(jnp.float32)], axis=1)   # (B, 1+N, D)
    x = (tok + params["pos_embed"]).astype(jnp.bfloat16)

    # 3) frozen query pass (token axis padded to a multiple of 128; padded keys
    #    are masked inside the attention kernel in every block)
    t1 = 1 + n
    xq = run_blocks(params["blocks"], _pad_tokens(x, _round_up(t1, 128)),
                    heads=heads, valid_t=t1)
    cls_raw = xq[:, 0, :]                                      # (B, D) pre-norm

    # 4) Gaussian key scoring (backbone.norm fused in; precision/logdet hoisted)
    logp = gauss_logprob(cls_raw, params["norm_g"], params["norm_b"],
                         params["gauss_prec_flat"], params["gauss_prec_mu"],
                         params["gauss_const"])                # (B, P)
    _, topk = jax.lax.top_k(logp, selection_size)              # (B, S), sorted desc
    # TODO(synk): counter/frequency buffer updates, query_buffer accumulation and
    # the training branch (KMeans refits, prob/var/distance losses, logit mask,
    # pseudo-sample buffer) are host-side stateful bookkeeping; eval path only.

    # 5) gather selected prompts, add the cls positional embedding
    prompts = jnp.take(params["prompt"], topk, axis=0)         # (B, S, L, D)
    prompts = prompts.reshape(b, selection_size * prompt_len, d)
    prompts = (prompts + params["pos_embed"][0, 0][None, None, :]).astype(jnp.bfloat16)

    # 6) second pass: [cls+pos, prompts, raw patch tokens (no pos)]
    x2 = jnp.concatenate([x[:, :1], prompts, img], axis=1)     # (B, 1+S*L+N, D)
    t2 = x2.shape[1]
    x2 = run_blocks(params["blocks"], _pad_tokens(x2, _round_up(t2, 128)),
                    heads=heads, valid_t=t2)

    # 7) fused backbone.norm + mean over prompt tokens + classification head
    #    (head output lane-padded to a multiple of 128 at init, sliced back here)
    x_prompt = x2[:, 1:1 + selection_size * prompt_len, :]
    out = pooled_head(x_prompt, params["norm_g"], params["norm_b"],
                      params["head_w_pad"], params["head_b_pad"])
    return out[:, :class_num]


# --------------------------------- main -------------------------------------

if __name__ == "__main__":
    # small, module-consistent shapes
    B, C, H, W = 2, 3, 16, 16
    PATCH, DIM, DEPTH, HEADS, MLP_RATIO = 8, 32, 2, 4, 2
    POOL, SEL, PLEN, CLASSES = 10, 5, 5, 100

    key = jax.random.PRNGKey(0)
    k_param, k_inp = jax.random.split(key)
    params = init_params(k_param, img_size=H, patch=PATCH, in_ch=C, dim=DIM,
                         depth=DEPTH, heads=HEADS, mlp_ratio=MLP_RATIO,
                         class_num=CLASSES, pool_size=POOL, prompt_len=PLEN)
    inputs = jax.random.normal(k_inp, (B, C, H, W), dtype=jnp.float32)

    out = gausskey_l2p_forward(params, inputs, patch=PATCH, heads=HEADS,
                               selection_size=SEL, prompt_len=PLEN,
                               class_num=CLASSES)
    out = jax.block_until_ready(out)
    assert out.shape == (B, CLASSES), out.shape
    assert bool(jnp.all(jnp.isfinite(out)))
    print("KERNEL_OK")
</pallas_src>

<mosaic_0001>
module attributes {stable_mosaic.version = 11 : i64} {
  func.func @_k(%arg0: i32, %arg1: memref<8x128xf32, #tpu.memory_space<vmem>>, %arg2: memref<8x128xf32, #tpu.memory_space<vmem>>, %arg3: memref<8x128xf32, #tpu.memory_space<vmem>>) attributes {dimension_semantics = [#tpu.dimension_semantics<arbitrary>], iteration_bounds = array<i64: 2>, scalar_prefetch = 0 : i64, scratch_operands = 0 : i64, tpu.core_type = #tpu.core_type<tc>, window_params = [{transform_indices = @transform_0, window_bounds = array<i64: 8, 128>}, {pipeline_mode = #tpu.pipeline_mode<synchronous>, transform_indices = @transform_1, window_bounds = array<i64: 8, 128>}, {transform_indices = @transform_2, window_bounds = array<i64: 8, 128>}]} {
    %c0 = arith.constant 0 : index
    %c0_0 = arith.constant 0 : index
    %0 = vector.load %arg1[%c0, %c0_0] : memref<8x128xf32, #tpu.memory_space<vmem>>, vector<8x128xf32>
    %c0_1 = arith.constant 0 : index
    %c0_2 = arith.constant 0 : index
    %1 = vector.load %arg2[%c0_1, %c0_2] : memref<8x128xf32, #tpu.memory_space<vmem>>, vector<8x128xf32>
    %2 = arith.addf %0, %1 : vector<8x128xf32>
    %c0_3 = arith.constant 0 : index
    %c0_4 = arith.constant 0 : index
    %3 = vector.load %arg3[%c0_3, %c0_4] : memref<8x128xf32, #tpu.memory_space<vmem>>, vector<8x128xf32>
    tpu.vector_store %arg3[%c0_3, %c0_4], %2 {strides = array<i32>} : memref<8x128xf32, #tpu.memory_space<vmem>>, vector<8x128xf32>,
    return
  }
  func.func @transform_0(%arg0: i32) -> (i32, i32) {
    %c0_i32 = arith.constant 0 : i32
    %c0_i32_0 = arith.constant 0 : i32
    return %arg0, %c0_i32 : i32, i32
  }
  func.func @transform_1(%arg0: i32) -> (i32, i32) {
    %c0_i32 = arith.constant 0 : i32
    %c0_i32_0 = arith.constant 0 : i32
    %c0_i32_1 = arith.constant 0 : i32
    return %c0_i32, %c0_i32_0 : i32, i32
  }
  func.func @transform_2(%arg0: i32) -> (i32, i32) {
    %c0_i32 = arith.constant 0 : i32
    %c0_i32_0 = arith.constant 0 : i32
    return %arg0, %c0_i32 : i32, i32
  }
}

module attributes {stable_mosaic.version = 11 : i64} {
  func.func @_linear_kernel(%arg0: i32, %arg1: memref<8x192xbf16, #tpu.memory_space<vmem>>, %arg2: memref<192x32xbf16, #tpu.memory_space<vmem>>, %arg3: memref<1x32xf32, #tpu.memory_space<vmem>>, %arg4: memref<8x32xbf16, #tpu.memory_space<vmem>>) attributes {dimension_semantics = [#tpu.dimension_semantics<parallel>], iteration_bounds = array<i64: 1>, scalar_prefetch = 0 : i64, scratch_operands = 0 : i64, tpu.core_type = #tpu.core_type<tc>, window_params = [{transform_indices = @transform_0, window_bounds = array<i64: 8, 192>}, {pipeline_mode = #tpu.pipeline_mode<synchronous>, transform_indices = @transform_1, window_bounds = array<i64: 192, 32>}, {pipeline_mode = #tpu.pipeline_mode<synchronous>, transform_indices = @transform_2, window_bounds = array<i64: 1, 32>}, {transform_indices = @transform_3, window_bounds = array<i64: 8, 32>}]} {
    %c0 = arith.constant 0 : index
    %c0_0 = arith.constant 0 : index
    %0 = vector.load %arg1[%c0, %c0_0] : memref<8x192xbf16, #tpu.memory_space<vmem>>, vector<8x192xbf16>
    %c0_1 = arith.constant 0 : index
    %c0_2 = arith.constant 0 : index
    %1 = vector.load %arg2[%c0_1, %c0_2] : memref<192x32xbf16, #tpu.memory_space<vmem>>, vector<192x32xbf16>
    %cst = arith.constant dense<0.000000e+00> : vector<8x32xf32>
    %2 = tpu.matmul %0, %1, %cst {dimension_numbers = #tpu.dot_dimension_numbers<[1], [0], [0], [1], [0, 0, 1, 1], [], []>} : vector<8x192xbf16>, vector<192x32xbf16>, vector<8x32xf32> -> vector<8x32xf32>
    %c0_3 = arith.constant 0 : index
    %c0_4 = arith.constant 0 : index
    %3 = vector.load %arg3[%c0_3, %c0_4] : memref<1x32xf32, #tpu.memory_space<vmem>>, vector<1x32xf32>
    %4 = vector.broadcast %3 : vector<1x32xf32> to vector<8x32xf32>
    %5 = arith.addf %2, %4 : vector<8x32xf32>
    %6 = arith.truncf %5 : vector<8x32xf32> to vector<8x32xbf16>
    %c0_5 = arith.constant 0 : index
    %c0_6 = arith.constant 0 : index
    %7 = vector.load %arg4[%c0_5, %c0_6] : memref<8x32xbf16, #tpu.memory_space<vmem>>, vector<8x32xbf16>
    tpu.vector_store %arg4[%c0_5, %c0_6], %6 {strides = array<i32>} : memref<8x32xbf16, #tpu.memory_space<vmem>>, vector<8x32xbf16>,
    return
  }
  func.func @transform_0(%arg0: i32) -> (i32, i32) {
    %c0_i32 = arith.constant 0 : i32
    %c0_i32_0 = arith.constant 0 : i32
    return %arg0, %c0_i32 : i32, i32
  }
  func.func @transform_1(%arg0: i32) -> (i32, i32) {
    %c0_i32 = arith.constant 0 : i32
    %c0_i32_0 = arith.constant 0 : i32
    %c0_i32_1 = arith.constant 0 : i32
    return %c0_i32, %c0_i32_0 : i32, i32
  }
  func.func @transform_2(%arg0: i32) -> (i32, i32) {
    %c0_i32 = arith.constant 0 : i32
    %c0_i32_0 = arith.constant 0 : i32
    %c0_i32_1 = arith.constant 0 : i32
    return %c0_i32, %c0_i32_0 : i32, i32
  }
  func.func @transform_3(%arg0: i32) -> (i32, i32) {
    %c0_i32 = arith.constant 0 : i32
    %c0_i32_0 = arith.constant 0 : i32
    return %arg0, %c0_i32 : i32, i32
  }
}

module attributes {stable_mosaic.version = 11 : i64} {
  func.func @_gauss_logprob_kernel(%arg0: memref<2x32xbf16, #tpu.memory_space<vmem>>, %arg1: memref<1x32xf32, #tpu.memory_space<vmem>>, %arg2: memref<1x32xf32, #tpu.memory_space<vmem>>, %arg3: memref<32x320xbf16, #tpu.memory_space<vmem>>, %arg4: memref<32x10xbf16, #tpu.memory_space<vmem>>, %arg5: memref<1x10xf32, #tpu.memory_space<vmem>>, %arg6: memref<2x10xf32, #tpu.memory_space<vmem>>) attributes {dimension_semantics = [], scalar_prefetch = 0 : i64, scratch_operands = 0 : i64, tpu.core_type = #tpu.core_type<tc>} {
    %c0 = arith.constant 0 : index
    %c0_0 = arith.constant 0 : index
    %0 = vector.load %arg0[%c0, %c0_0] : memref<2x32xbf16, #tpu.memory_space<vmem>>, vector<2x32xbf16>
    %1 = arith.extf %0 : vector<2x32xbf16> to vector<2x32xf32>
    %c0_1 = arith.constant 0 : index
    %c0_2 = arith.constant 0 : index
    %2 = vector.load %arg1[%c0_1, %c0_2] : memref<1x32xf32, #tpu.memory_space<vmem>>, vector<1x32xf32>
    %c0_3 = arith.constant 0 : index
    %c0_4 = arith.constant 0 : index
    %3 = vector.load %arg2[%c0_3, %c0_4] : memref<1x32xf32, #tpu.memory_space<vmem>>, vector<1x32xf32>
    %cst = arith.constant dense<0.000000e+00> : vector<2xf32>
    %4 = vector.multi_reduction <add>, %1, %cst [1] : vector<2x32xf32> to vector<2xf32>
    %5 = vector.shape_cast %4 : vector<2xf32> to vector<2x1xf32>
    %cst_5 = arith.constant 3.200000e+01 : f32
    %6 = vector.broadcast %cst_5 : f32 to vector<2x1xf32>
    %7 = arith.divf %5, %6 : vector<2x1xf32>
    %8 = vector.broadcast %7 : vector<2x1xf32> to vector<2x32xf32>
    %9 = arith.subf %1, %8 : vector<2x32xf32>
    %10 = arith.mulf %9, %9 : vector<2x32xf32>
    %cst_6 = arith.constant dense<0.000000e+00> : vector<2xf32>
    %11 = vector.multi_reduction <add>, %10, %cst_6 [1] : vector<2x32xf32> to vector<2xf32>
    %12 = vector.shape_cast %11 : vector<2xf32> to vector<2x1xf32>
    %cst_7 = arith.constant 3.200000e+01 : f32
    %13 = vector.broadcast %cst_7 : f32 to vector<2x1xf32>
    %14 = arith.divf %12, %13 : vector<2x1xf32>
    %15 = vector.broadcast %7 : vector<2x1xf32> to vector<2x32xf32>
    %16 = arith.subf %1, %15 : vector<2x32xf32>
    %cst_8 = arith.constant 9.99999997E-7 : f32
    %17 = vector.broadcast %cst_8 : f32 to vector<2x1xf32>
    %18 = arith.addf %14, %17 : vector<2x1xf32>
    %19 = math.rsqrt %18 : vector<2x1xf32>
    %20 = vector.broadcast %19 : vector<2x1xf32> to vector<2x32xf32>
    %21 = arith.mulf %16, %20 : vector<2x32xf32>
    %22 = vector.broadcast %2 : vector<1x32xf32> to vector<2x32xf32>
    %23 = arith.mulf %21, %22 : vector<2x32xf32>
    %24 = vector.broadcast %3 : vector<1x32xf32> to vector<2x32xf32>
    %25 = arith.addf %23, %24 : vector<2x32xf32>
    %26 = arith.truncf %25 : vector<2x32xf32> to vector<2x32xbf16>
    %c0_9 = arith.constant 0 : index
    %c0_10 = arith.constant 0 : index
    %27 = vector.load %arg3[%c0_9, %c0_10] : memref<32x320xbf16, #tpu.memory_space<vmem>>, vector<32x320xbf16>
    %cst_11 = arith.constant dense<0.000000e+00> : vector<2x320xf32>
    %28 = tpu.matmul %26, %27, %cst_11 {dimension_numbers = #tpu.dot_dimension_numbers<[1], [0], [0], [1], [0, 0, 1, 1], [], []>} : vector<2x32xbf16>, vector<32x320xbf16>, vector<2x320xf32> -> vector<2x320xf32>
    %c0_12 = arith.constant 0 : index
    %c0_13 = arith.constant 0 : index
    %29 = vector.load %arg4[%c0_12, %c0_13] : memref<32x10xbf16, #tpu.memory_space<vmem>>, vector<32x10xbf16>
    %cst_14 = arith.constant dense<0.000000e+00> : vector<2x10xf32>
    %30 = tpu.matmul %26, %29, %cst_14 {dimension_numbers = #tpu.dot_dimension_numbers<[1], [0], [0], [1], [0, 0, 1, 1], [], []>} : vector<2x32xbf16>, vector<32x10xbf16>, vector<2x10xf32> -> vector<2x10xf32>
    %31 = vector.extract_strided_slice %28 {offsets = [0, 0], sizes = [2, 32], strides = [1, 1]} : vector<2x320xf32> to vector<2x32xf32>
    %32 = arith.mulf %31, %25 : vector<2x32xf32>
    %cst_15 = arith.constant dense<0.000000e+00> : vector<2xf32>
    %33 = vector.multi_reduction <add>, %32, %cst_15 [1] : vector<2x32xf32> to vector<2xf32>
    %34 = vector.shape_cast %33 : vector<2xf32> to vector<2x1xf32>
    %35 = vector.extract_strided_slice %28 {offsets = [0, 32], sizes = [2, 32], strides = [1, 1]} : vector<2x320xf32> to vector<2x32xf32>
    %36 = arith.mulf %35, %25 : vector<2x32xf32>
    %cst_16 = arith.constant dense<0.000000e+00> : vector<2xf32>
    %37 = vector.multi_reduction <add>, %36, %cst_16 [1] : vector<2x32xf32> to vector<2xf32>
    %38 = vector.shape_cast %37 : vector<2xf32> to vector<2x1xf32>
    %39 = vector.extract_strided_slice %28 {offsets = [0, 64], sizes = [2, 32], strides = [1, 1]} : vector<2x320xf32> to vector<2x32xf32>
    %40 = arith.mulf %39, %25 : vector<2x32xf32>
    %cst_17 = arith.constant dense<0.000000e+00> : vector<2xf32>
    %41 = vector.multi_reduction <add>, %40, %cst_17 [1] : vector<2x32xf32> to vector<2xf32>
    %42 = vector.shape_cast %41 : vector<2xf32> to vector<2x1xf32>
    %43 = vector.extract_strided_slice %28 {offsets = [0, 96], sizes = [2, 32], strides = [1, 1]} : vector<2x320xf32> to vector<2x32xf32>
    %44 = arith.mulf %43, %25 : vector<2x32xf32>
    %cst_18 = arith.constant dense<0.000000e+00> : vector<2xf32>
    %45 = vector.multi_reduction <add>, %44, %cst_18 [1] : vector<2x32xf32> to vector<2xf32>
    %46 = vector.shape_cast %45 : vector<2xf32> to vector<2x1xf32>
    %47 = vector.extract_strided_slice %28 {offsets = [0, 128], sizes = [2, 32], strides = [1, 1]} : vector<2x320xf32> to vector<2x32xf32>
    %48 = arith.mulf %47, %25 : vector<2x32xf32>
    %cst_19 = arith.constant dense<0.000000e+00> : vector<2xf32>
    %49 = vector.multi_reduction <add>, %48, %cst_19 [1] : vector<2x32xf32> to vector<2xf32>
    %50 = vector.shape_cast %49 : vector<2xf32> to vector<2x1xf32>
    %51 = vector.extract_strided_slice %28 {offsets = [0, 160], sizes = [2, 32], strides = [1, 1]} : vector<2x320xf32> to vector<2x32xf32>
    %52 = arith.mulf %51, %25 : vector<2x32xf32>
    %cst_20 = arith.constant dense<0.000000e+00> : vector<2xf32>
    %53 = vector.multi_reduction <add>, %52, %cst_20 [1] : vector<2x32xf32> to vector<2xf32>
    %54 = vector.shape_cast %53 : vector<2xf32> to vector<2x1xf32>
    %55 = vector.extract_strided_slice %28 {offsets = [0, 192], sizes = [2, 32], strides = [1, 1]} : vector<2x320xf32> to vector<2x32xf32>
    %56 = arith.mulf %55, %25 : vector<2x32xf32>
    %cst_21 = arith.constant dense<0.000000e+00> : vector<2xf32>
    %57 = vector.multi_reduction <add>, %56, %cst_21 [1] : vector<2x32xf32> to vector<2xf32>
    %58 = vector.shape_cast %57 : vector<2xf32> to vector<2x1xf32>
    %59 = vector.extract_strided_slice %28 {offsets = [0, 224], sizes = [2, 32], strides = [1, 1]} : vector<2x320xf32> to vector<2x32xf32>
    %60 = arith.mulf %59, %25 : vector<2x32xf32>
    %cst_22 = arith.constant dense<0.000000e+00> : vector<2xf32>
    %61 = vector.multi_reduction <add>, %60, %cst_22 [1] : vector<2x32xf32> to vector<2xf32>
    %62 = vector.shape_cast %61 : vector<2xf32> to vector<2x1xf32>
    %63 = vector.extract_strided_slice %28 {offsets = [0, 256], sizes = [2, 32], strides = [1, 1]} : vector<2x320xf32> to vector<2x32xf32>
    %64 = arith.mulf %63, %25 : vector<2x32xf32>
    %cst_23 = arith.constant dense<0.000000e+00> : vector<2xf32>
    %65 = vector.multi_reduction <add>, %64, %cst_23 [1] : vector<2x32xf32> to vector<2xf32>
    %66 = vector.shape_cast %65 : vector<2xf32> to vector<2x1xf32>
    %67 = vector.extract_strided_slice %28 {offsets = [0, 288], sizes = [2, 32], strides = [1, 1]} : vector<2x320xf32> to vector<2x32xf32>
    %68 = arith.mulf %67, %25 : vector<2x32xf32>
    %cst_24 = arith.constant dense<0.000000e+00> : vector<2xf32>
    %69 = vector.multi_reduction <add>, %68, %cst_24 [1] : vector<2x32xf32> to vector<2xf32>
    %70 = vector.shape_cast %69 : vector<2xf32> to vector<2x1xf32>
    %71 = tpu.concatenate %34, %38, %42, %46, %50, %54, %58, %62, %66, %70 in 1 : vector<2x1xf32>, vector<2x1xf32>, vector<2x1xf32>, vector<2x1xf32>, vector<2x1xf32>, vector<2x1xf32>, vector<2x1xf32>, vector<2x1xf32>, vector<2x1xf32>, vector<2x1xf32> -> vector<2x10xf32>
    %cst_25 = arith.constant 2.000000e+00 : f32
    %72 = vector.broadcast %cst_25 : f32 to vector<2x10xf32>
    %73 = arith.mulf %72, %30 : vector<2x10xf32>
    %74 = arith.subf %71, %73 : vector<2x10xf32>
    %c0_26 = arith.constant 0 : index
    %c0_27 = arith.constant 0 : index
    %75 = vector.load %arg5[%c0_26, %c0_27] : memref<1x10xf32, #tpu.memory_space<vmem>>, vector<1x10xf32>
    %76 = vector.broadcast %75 : vector<1x10xf32> to vector<2x10xf32>
    %77 = arith.addf %74, %76 : vector<2x10xf32>
    %cst_28 = arith.constant -5.000000e-01 : f32
    %78 = vector.broadcast %cst_28 : f32 to vector<2x10xf32>
    %79 = arith.mulf %78, %77 : vector<2x10xf32>
    %c0_29 = arith.constant 0 : index
    %c0_30 = arith.constant 0 : index
    %80 = vector.load %arg6[%c0_29, %c0_30] : memref<2x10xf32, #tpu.memory_space<vmem>>, vector<2x10xf32>
    tpu.vector_store %arg6[%c0_29, %c0_30], %79 {strides = array<i32>} : memref<2x10xf32, #tpu.memory_space<vmem>>, vector<2x10xf32>,
    return
  }
}

module attributes {stable_mosaic.version = 11 : i64} {
  func.func @_mlp_block_kernel(%arg0: i32, %arg1: memref<256x32xbf16, #tpu.memory_space<vmem>>, %arg2: memref<1x32xf32, #tpu.memory_space<vmem>>, %arg3: memref<1x32xf32, #tpu.memory_space<vmem>>, %arg4: memref<32x64xbf16, #tpu.memory_space<vmem>>, %arg5: memref<1x64xf32, #tpu.memory_space<vmem>>, %arg6: memref<64x32xbf16, #tpu.memory_space<vmem>>, %arg7: memref<1x32xf32, #tpu.memory_space<vmem>>, %arg8: memref<256x32xbf16, #tpu.memory_space<vmem>>) attributes {dimension_semantics = [#tpu.dimension_semantics<parallel>], iteration_bounds = array<i64: 1>, scalar_prefetch = 0 : i64, scratch_operands = 0 : i64, tpu.core_type = #tpu.core_type<tc>, window_params = [{transform_indices = @transform_0, window_bounds = array<i64: 256, 32>}, {pipeline_mode = #tpu.pipeline_mode<synchronous>, transform_indices = @transform_1, window_bounds = array<i64: 1, 32>}, {pipeline_mode = #tpu.pipeline_mode<synchronous>, transform_indices = @transform_2, window_bounds = array<i64: 1, 32>}, {pipeline_mode = #tpu.pipeline_mode<synchronous>, transform_indices = @transform_3, window_bounds = array<i64: 32, 64>}, {pipeline_mode = #tpu.pipeline_mode<synchronous>, transform_indices = @transform_4, window_bounds = array<i64: 1, 64>}, {pipeline_mode = #tpu.pipeline_mode<synchronous>, transform_indices = @transform_5, window_bounds = array<i64: 64, 32>}, {pipeline_mode = #tpu.pipeline_mode<synchronous>, transform_indices = @transform_6, window_bounds = array<i64: 1, 32>}, {transform_indices = @transform_7, window_bounds = array<i64: 256, 32>}]} {
    %c0 = arith.constant 0 : index
    %c0_0 = arith.constant 0 : index
    %0 = vector.load %arg1[%c0, %c0_0] : memref<256x32xbf16, #tpu.memory_space<vmem>>, vector<256x32xbf16>
    %1 = arith.extf %0 : vector<256x32xbf16> to vector<256x32xf32>
    %c0_1 = arith.constant 0 : index
    %c0_2 = arith.constant 0 : index
    %2 = vector.load %arg2[%c0_1, %c0_2] : memref<1x32xf32, #tpu.memory_space<vmem>>, vector<1x32xf32>
    %c0_3 = arith.constant 0 : index
    %c0_4 = arith.constant 0 : index
    %3 = vector.load %arg3[%c0_3, %c0_4] : memref<1x32xf32, #tpu.memory_space<vmem>>, vector<1x32xf32>
    %cst = arith.constant dense<0.000000e+00> : vector<256xf32>
    %4 = vector.multi_reduction <add>, %1, %cst [1] : vector<256x32xf32> to vector<256xf32>
    %5 = vector.shape_cast %4 : vector<256xf32> to vector<256x1xf32>
    %cst_5 = arith.constant 3.200000e+01 : f32
    %6 = vector.broadcast %cst_5 : f32 to vector<256x1xf32>
    %7 = arith.divf %5, %6 : vector<256x1xf32>
    %8 = vector.broadcast %7 : vector<256x1xf32> to vector<256x32xf32>
    %9 = arith.subf %1, %8 : vector<256x32xf32>
    %10 = arith.mulf %9, %9 : vector<256x32xf32>
    %cst_6 = arith.constant dense<0.000000e+00> : vector<256xf32>
    %11 = vector.multi_reduction <add>, %10, %cst_6 [1] : vector<256x32xf32> to vector<256xf32>
    %12 = vector.shape_cast %11 : vector<256xf32> to vector<256x1xf32>
    %cst_7 = arith.constant 3.200000e+01 : f32
    %13 = vector.broadcast %cst_7 : f32 to vector<256x1xf32>
    %14 = arith.divf %12, %13 : vector<256x1xf32>
    %15 = vector.broadcast %7 : vector<256x1xf32> to vector<256x32xf32>
    %16 = arith.subf %1, %15 : vector<256x32xf32>
    %cst_8 = arith.constant 9.99999997E-7 : f32
    %17 = vector.broadcast %cst_8 : f32 to vector<256x1xf32>
    %18 = arith.addf %14, %17 : vector<256x1xf32>
    %19 = math.rsqrt %18 : vector<256x1xf32>
    %20 = vector.broadcast %19 : vector<256x1xf32> to vector<256x32xf32>
    %21 = arith.mulf %16, %20 : vector<256x32xf32>
    %22 = vector.broadcast %2 : vector<1x32xf32> to vector<256x32xf32>
    %23 = arith.mulf %21, %22 : vector<256x32xf32>
    %24 = vector.broadcast %3 : vector<1x32xf32> to vector<256x32xf32>
    %25 = arith.addf %23, %24 : vector<256x32xf32>
    %26 = arith.truncf %25 : vector<256x32xf32> to vector<256x32xbf16>
    %c0_9 = arith.constant 0 : index
    %c0_10 = arith.constant 0 : index
    %27 = vector.load %arg4[%c0_9, %c0_10] : memref<32x64xbf16, #tpu.memory_space<vmem>>, vector<32x64xbf16>
    %cst_11 = arith.constant dense<0.000000e+00> : vector<256x64xf32>
    %28 = tpu.matmul %26, %27, %cst_11 {dimension_numbers = #tpu.dot_dimension_numbers<[1], [0], [0], [1], [0, 0, 1, 1], [], []>} : vector<256x32xbf16>, vector<32x64xbf16>, vector<256x64xf32> -> vector<256x64xf32>
    %c0_12 = arith.constant 0 : index
    %c0_13 = arith.constant 0 : index
    %29 = vector.load %arg5[%c0_12, %c0_13] : memref<1x64xf32, #tpu.memory_space<vmem>>, vector<1x64xf32>
    %30 = vector.broadcast %29 : vector<1x64xf32> to vector<256x64xf32>
    %31 = arith.addf %28, %30 : vector<256x64xf32>
    %32 = arith.mulf %31, %31 : vector<256x64xf32>
    %33 = arith.mulf %31, %32 : vector<256x64xf32>
    %cst_14 = arith.constant 4.471500e-02 : f32
    %34 = vector.broadcast %cst_14 : f32 to vector<256x64xf32>
    %35 = arith.mulf %34, %33 : vector<256x64xf32>
    %36 = arith.addf %31, %35 : vector<256x64xf32>
    %cst_15 = arith.constant 0.797884583 : f32
    %37 = vector.broadcast %cst_15 : f32 to vector<256x64xf32>
    %38 = arith.mulf %37, %36 : vector<256x64xf32>
    %39 = math.tanh %38 : vector<256x64xf32>
    %cst_16 = arith.constant 1.000000e+00 : f32
    %40 = vector.broadcast %cst_16 : f32 to vector<256x64xf32>
    %41 = arith.addf %40, %39 : vector<256x64xf32>
    %cst_17 = arith.constant 5.000000e-01 : f32
    %42 = vector.broadcast %cst_17 : f32 to vector<256x64xf32>
    %43 = arith.mulf %42, %41 : vector<256x64xf32>
    %44 = arith.mulf %31, %43 : vector<256x64xf32>
    %45 = arith.truncf %44 : vector<256x64xf32> to vector<256x64xbf16>
    %c0_18 = arith.constant 0 : index
    %c0_19 = arith.constant 0 : index
    %46 = vector.load %arg6[%c0_18, %c0_19] : memref<64x32xbf16, #tpu.memory_space<vmem>>, vector<64x32xbf16>
    %cst_20 = arith.constant dense<0.000000e+00> : vector<256x32xf32>
    %47 = tpu.matmul %45, %46, %cst_20 {dimension_numbers = #tpu.dot_dimension_numbers<[1], [0], [0], [1], [0, 0, 1, 1], [], []>} : vector<256x64xbf16>, vector<64x32xbf16>, vector<256x32xf32> -> vector<256x32xf32>
    %c0_21 = arith.constant 0 : index
    %c0_22 = arith.constant 0 : index
    %48 = vector.load %arg7[%c0_21, %c0_22] : memref<1x32xf32, #tpu.memory_space<vmem>>, vector<1x32xf32>
    %49 = vector.broadcast %48 : vector<1x32xf32> to vector<256x32xf32>
    %50 = arith.addf %47, %49 : vector<256x32xf32>
    %51 = arith.addf %1, %50 : vector<256x32xf32>
    %52 = arith.truncf %51 : vector<256x32xf32> to vector<256x32xbf16>
    %c0_23 = arith.constant 0 : index
    %c0_24 = arith.constant 0 : index
    %53 = vector.load %arg8[%c0_23, %c0_24] : memref<256x32xbf16, #tpu.memory_space<vmem>>, vector<256x32xbf16>
    tpu.vector_store %arg8[%c0_23, %c0_24], %52 {strides = array<i32>} : memref<256x32xbf16, #tpu.memory_space<vmem>>, vector<256x32xbf16>,
    return
  }
  func.func @transform_0(%arg0: i32) -> (i32, i32) {
    %c0_i32 = arith.constant 0 : i32
    %c0_i32_0 = arith.constant 0 : i32
    return %arg0, %c0_i32 : i32, i32
  }
  func.func @transform_1(%arg0: i32) -> (i32, i32) {
    %c0_i32 = arith.constant 0 : i32
    %c0_i32_0 = arith.constant 0 : i32
    %c0_i32_1 = arith.constant 0 : i32
    return %c0_i32, %c0_i32_0 : i32, i32
  }
  func.func @transform_2(%arg0: i32) -> (i32, i32) {
    %c0_i32 = arith.constant 0 : i32
    %c0_i32_0 = arith.constant 0 : i32
    %c0_i32_1 = arith.constant 0 : i32
    return %c0_i32, %c0_i32_0 : i32, i32
  }
  func.func @transform_3(%arg0: i32) -> (i32, i32) {
    %c0_i32 = arith.constant 0 : i32
    %c0_i32_0 = arith.constant 0 : i32
    %c0_i32_1 = arith.constant 0 : i32
    return %c0_i32, %c0_i32_0 : i32, i32
  }
  func.func @transform_4(%arg0: i32) -> (i32, i32) {
    %c0_i32 = arith.constant 0 : i32
    %c0_i32_0 = arith.constant 0 : i32
    %c0_i32_1 = arith.constant 0 : i32
    return %c0_i32, %c0_i32_0 : i32, i32
  }
  func.func @transform_5(%arg0: i32) -> (i32, i32) {
    %c0_i32 = arith.constant 0 : i32
    %c0_i32_0 = arith.constant 0 : i32
    %c0_i32_1 = arith.constant 0 : i32
    return %c0_i32, %c0_i32_0 : i32, i32
  }
  func.func @transform_6(%arg0: i32) -> (i32, i32) {
    %c0_i32 = arith.constant 0 : i32
    %c0_i32_0 = arith.constant 0 : i32
    %c0_i32_1 = arith.constant 0 : i32
    return %c0_i32, %c0_i32_0 : i32, i32
  }
  func.func @transform_7(%arg0: i32) -> (i32, i32) {
    %c0_i32 = arith.constant 0 : i32
    %c0_i32_0 = arith.constant 0 : i32
    return %arg0, %c0_i32 : i32, i32
  }
}

module attributes {stable_mosaic.version = 11 : i64} {
  func.func @_attn_block_kernel(%arg0: i32, %arg1: memref<1x128x32xbf16, #tpu.memory_space<vmem>>, %arg2: memref<1x32xf32, #tpu.memory_space<vmem>>, %arg3: memref<1x32xf32, #tpu.memory_space<vmem>>, %arg4: memref<32x96xbf16, #tpu.memory_space<vmem>>, %arg5: memref<1x96xf32, #tpu.memory_space<vmem>>, %arg6: memref<32x32xbf16, #tpu.memory_space<vmem>>, %arg7: memref<1x32xf32, #tpu.memory_space<vmem>>, %arg8: memref<1x128x32xbf16, #tpu.memory_space<vmem>>, %arg9: memref<128x32xf32, #tpu.memory_space<vmem>>) attributes {dimension_semantics = [#tpu.dimension_semantics<parallel>], iteration_bounds = array<i64: 2>, scalar_prefetch = 0 : i64, scratch_operands = 1 : i64, tpu.core_type = #tpu.core_type<tc>, window_params = [{transform_indices = @transform_0, window_bounds = array<i64: 1, 128, 32>}, {pipeline_mode = #tpu.pipeline_mode<synchronous>, transform_indices = @transform_1, window_bounds = array<i64: 1, 32>}, {pipeline_mode = #tpu.pipeline_mode<synchronous>, transform_indices = @transform_2, window_bounds = array<i64: 1, 32>}, {pipeline_mode = #tpu.pipeline_mode<synchronous>, transform_indices = @transform_3, window_bounds = array<i64: 32, 96>}, {pipeline_mode = #tpu.pipeline_mode<synchronous>, transform_indices = @transform_4, window_bounds = array<i64: 1, 96>}, {pipeline_mode = #tpu.pipeline_mode<synchronous>, transform_indices = @transform_5, window_bounds = array<i64: 32, 32>}, {pipeline_mode = #tpu.pipeline_mode<synchronous>, transform_indices = @transform_6, window_bounds = array<i64: 1, 32>}, {transform_indices = @transform_7, window_bounds = array<i64: 1, 128, 32>}]} {
    %c0 = arith.constant 0 : index
    %c0_0 = arith.constant 0 : index
    %c0_1 = arith.constant 0 : index
    %0 = vector.load %arg1[%c0, %c0_0, %c0_1] : memref<1x128x32xbf16, #tpu.memory_space<vmem>>, vector<1x128x32xbf16>
    %1 = vector.shape_cast %0 : vector<1x128x32xbf16> to vector<128x32xbf16>
    %2 = arith.extf %1 : vector<128x32xbf16> to vector<128x32xf32>
    %c0_2 = arith.constant 0 : index
    %c0_3 = arith.constant 0 : index
    %3 = vector.load %arg2[%c0_2, %c0_3] : memref<1x32xf32, #tpu.memory_space<vmem>>, vector<1x32xf32>
    %c0_4 = arith.constant 0 : index
    %c0_5 = arith.constant 0 : index
    %4 = vector.load %arg3[%c0_4, %c0_5] : memref<1x32xf32, #tpu.memory_space<vmem>>, vector<1x32xf32>
    %cst = arith.constant dense<0.000000e+00> : vector<128xf32>
    %5 = vector.multi_reduction <add>, %2, %cst [1] : vector<128x32xf32> to vector<128xf32>
    %6 = vector.shape_cast %5 : vector<128xf32> to vector<128x1xf32>
    %cst_6 = arith.constant 3.200000e+01 : f32
    %7 = vector.broadcast %cst_6 : f32 to vector<128x1xf32>
    %8 = arith.divf %6, %7 : vector<128x1xf32>
    %9 = vector.broadcast %8 : vector<128x1xf32> to vector<128x32xf32>
    %10 = arith.subf %2, %9 : vector<128x32xf32>
    %11 = arith.mulf %10, %10 : vector<128x32xf32>
    %cst_7 = arith.constant dense<0.000000e+00> : vector<128xf32>
    %12 = vector.multi_reduction <add>, %11, %cst_7 [1] : vector<128x32xf32> to vector<128xf32>
    %13 = vector.shape_cast %12 : vector<128xf32> to vector<128x1xf32>
    %cst_8 = arith.constant 3.200000e+01 : f32
    %14 = vector.broadcast %cst_8 : f32 to vector<128x1xf32>
    %15 = arith.divf %13, %14 : vector<128x1xf32>
    %16 = vector.broadcast %8 : vector<128x1xf32> to vector<128x32xf32>
    %17 = arith.subf %2, %16 : vector<128x32xf32>
    %cst_9 = arith.constant 9.99999997E-7 : f32
    %18 = vector.broadcast %cst_9 : f32 to vector<128x1xf32>
    %19 = arith.addf %15, %18 : vector<128x1xf32>
    %20 = math.rsqrt %19 : vector<128x1xf32>
    %21 = vector.broadcast %20 : vector<128x1xf32> to vector<128x32xf32>
    %22 = arith.mulf %17, %21 : vector<128x32xf32>
    %23 = vector.broadcast %3 : vector<1x32xf32> to vector<128x32xf32>
    %24 = arith.mulf %22, %23 : vector<128x32xf32>
    %25 = vector.broadcast %4 : vector<1x32xf32> to vector<128x32xf32>
    %26 = arith.addf %24, %25 : vector<128x32xf32>
    %27 = arith.truncf %26 : vector<128x32xf32> to vector<128x32xbf16>
    %c0_10 = arith.constant 0 : index
    %c0_11 = arith.constant 0 : index
    %28 = vector.load %arg4[%c0_10, %c0_11] : memref<32x96xbf16, #tpu.memory_space<vmem>>, vector<32x96xbf16>
    %cst_12 = arith.constant dense<0.000000e+00> : vector<128x96xf32>
    %29 = tpu.matmul %27, %28, %cst_12 {dimension_numbers = #tpu.dot_dimension_numbers<[1], [0], [0], [1], [0, 0, 1, 1], [], []>} : vector<128x32xbf16>, vector<32x96xbf16>, vector<128x96xf32> -> vector<128x96xf32>
    %c0_13 = arith.constant 0 : index
    %c0_14 = arith.constant 0 : index
    %30 = vector.load %arg5[%c0_13, %c0_14] : memref<1x96xf32, #tpu.memory_space<vmem>>, vector<1x96xf32>
    %31 = vector.broadcast %30 : vector<1x96xf32> to vector<128x96xf32>
    %32 = arith.addf %29, %31 : vector<128x96xf32>
    %33 = vector.extract_strided_slice %32 {offsets = [0, 0], sizes = [128, 32], strides = [1, 1]} : vector<128x96xf32> to vector<128x32xf32>
    %cst_15 = arith.constant 0.353553385 : f32
    %34 = vector.broadcast %cst_15 : f32 to vector<128x32xf32>
    %35 = arith.mulf %33, %34 : vector<128x32xf32>
    %36 = arith.truncf %35 : vector<128x32xf32> to vector<128x32xbf16>
    %37 = vector.extract_strided_slice %32 {offsets = [0, 32], sizes = [128, 32], strides = [1, 1]} : vector<128x96xf32> to vector<128x32xf32>
    %38 = arith.truncf %37 : vector<128x32xf32> to vector<128x32xbf16>
    %39 = vector.extract_strided_slice %32 {offsets = [0, 64], sizes = [128, 32], strides = [1, 1]} : vector<128x96xf32> to vector<128x32xf32>
    %40 = arith.truncf %39 : vector<128x32xf32> to vector<128x32xbf16>
    %41 = tpu.iota {dimensions = array<i32: 1>} : vector<128x128xi32>
    %c5_i32 = arith.constant 5 : i32
    %42 = vector.broadcast %c5_i32 : i32 to vector<128x128xi32>
    %43 = arith.cmpi slt, %41, %42 : vector<128x128xi32>
    %44 = vector.extract_strided_slice %36 {offsets = [0, 0], sizes = [128, 8], strides = [1, 1]} : vector<128x32xbf16> to vector<128x8xbf16>
    %45 = vector.extract_strided_slice %38 {offsets = [0, 0], sizes = [128, 8], strides = [1, 1]} : vector<128x32xbf16> to vector<128x8xbf16>
    %cst_16 = arith.constant dense<0.000000e+00> : vector<128x128xf32>
    %46 = tpu.matmul %44, %45, %cst_16 {dimension_numbers = #tpu.dot_dimension_numbers<[1], [1], [0], [0], [0, 0, 1, 0], [], []>} : vector<128x8xbf16>, vector<128x8xbf16>, vector<128x128xf32> -> vector<128x128xf32>
    %cst_17 = arith.constant -1.000000e+30 : f32
    %47 = vector.broadcast %cst_17 : f32 to vector<128x128xf32>
    %48 = arith.select %43, %46, %47 : vector<128x128xi1>, vector<128x128xf32>
    %cst_18 = arith.constant dense<0xFF800000> : vector<128xf32>
    %49 = vector.multi_reduction <maximumf>, %48, %cst_18 [1] : vector<128x128xf32> to vector<128xf32>
    %50 = vector.shape_cast %49 : vector<128xf32> to vector<128x1xf32>
    %51 = vector.broadcast %50 : vector<128x1xf32> to vector<128x128xf32>
    %52 = arith.subf %48, %51 : vector<128x128xf32>
    %53 = math.exp %52 : vector<128x128xf32>
    %cst_19 = arith.constant dense<0.000000e+00> : vector<128xf32>
    %54 = vector.multi_reduction <add>, %53, %cst_19 [1] : vector<128x128xf32> to vector<128xf32>
    %55 = vector.shape_cast %54 : vector<128xf32> to vector<128x1xf32>
    %56 = tpu.reciprocal %55 {approx = true} : vector<128x1xf32> -> vector<128x1xf32>
    %57 = vector.broadcast %56 : vector<128x1xf32> to vector<128x128xf32>
    %58 = arith.mulf %53, %57 : vector<128x128xf32>
    %59 = arith.truncf %58 : vector<128x128xf32> to vector<128x128xbf16>
    %60 = vector.extract_strided_slice %40 {offsets = [0, 0], sizes = [128, 8], strides = [1, 1]} : vector<128x32xbf16> to vector<128x8xbf16>
    %cst_20 = arith.constant dense<0.000000e+00> : vector<128x8xf32>
    %61 = tpu.matmul %59, %60, %cst_20 {dimension_numbers = #tpu.dot_dimension_numbers<[1], [0], [0], [1], [0, 0, 1, 1], [], []>} : vector<128x128xbf16>, vector<128x8xbf16>, vector<128x8xf32> -> vector<128x8xf32>
    %c0_21 = arith.constant 0 : index
    %c0_22 = arith.constant 0 : index
    %62 = vector.load %arg9[%c0_21, %c0_22] : memref<128x32xf32, #tpu.memory_space<vmem>>, vector<128x8xf32>
    tpu.vector_store %arg9[%c0_21, %c0_22], %61 {strides = array<i32>} : memref<128x32xf32, #tpu.memory_space<vmem>>, vector<128x8xf32>,
    %63 = vector.extract_strided_slice %36 {offsets = [0, 8], sizes = [128, 8], strides = [1, 1]} : vector<128x32xbf16> to vector<128x8xbf16>
    %64 = vector.extract_strided_slice %38 {offsets = [0, 8], sizes = [128, 8], strides = [1, 1]} : vector<128x32xbf16> to vector<128x8xbf16>
    %cst_23 = arith.constant dense<0.000000e+00> : vector<128x128xf32>
    %65 = tpu.matmul %63, %64, %cst_23 {dimension_numbers = #tpu.dot_dimension_numbers<[1], [1], [0], [0], [0, 0, 1, 0], [], []>} : vector<128x8xbf16>, vector<128x8xbf16>, vector<128x128xf32> -> vector<128x128xf32>
    %cst_24 = arith.constant -1.000000e+30 : f32
    %66 = vector.broadcast %cst_24 : f32 to vector<128x128xf32>
    %67 = arith.select %43, %65, %66 : vector<128x128xi1>, vector<128x128xf32>
    %cst_25 = arith.constant dense<0xFF800000> : vector<128xf32>
    %68 = vector.multi_reduction <maximumf>, %67, %cst_25 [1] : vector<128x128xf32> to vector<128xf32>
    %69 = vector.shape_cast %68 : vector<128xf32> to vector<128x1xf32>
    %70 = vector.broadcast %69 : vector<128x1xf32> to vector<128x128xf32>
    %71 = arith.subf %67, %70 : vector<128x128xf32>
    %72 = math.exp %71 : vector<128x128xf32>
    %cst_26 = arith.constant dense<0.000000e+00> : vector<128xf32>
    %73 = vector.multi_reduction <add>, %72, %cst_26 [1] : vector<128x128xf32> to vector<128xf32>
    %74 = vector.shape_cast %73 : vector<128xf32> to vector<128x1xf32>
    %75 = tpu.reciprocal %74 {approx = true} : vector<128x1xf32> -> vector<128x1xf32>
    %76 = vector.broadcast %75 : vector<128x1xf32> to vector<128x128xf32>
    %77 = arith.mulf %72, %76 : vector<128x128xf32>
    %78 = arith.truncf %77 : vector<128x128xf32> to vector<128x128xbf16>
    %79 = vector.extract_strided_slice %40 {offsets = [0, 8], sizes = [128, 8], strides = [1, 1]} : vector<128x32xbf16> to vector<128x8xbf16>
    %cst_27 = arith.constant dense<0.000000e+00> : vector<128x8xf32>
    %80 = tpu.matmul %78, %79, %cst_27 {dimension_numbers = #tpu.dot_dimension_numbers<[1], [0], [0], [1], [0, 0, 1, 1], [], []>} : vector<128x128xbf16>, vector<128x8xbf16>, vector<128x8xf32> -> vector<128x8xf32>
    %c0_28 = arith.constant 0 : index
    %c8 = arith.constant 8 : index
    %81 = vector.load %arg9[%c0_28, %c8] : memref<128x32xf32, #tpu.memory_space<vmem>>, vector<128x8xf32>
    tpu.vector_store %arg9[%c0_28, %c8], %80 {strides = array<i32>} : memref<128x32xf32, #tpu.memory_space<vmem>>, vector<128x8xf32>,
    %82 = vector.extract_strided_slice %36 {offsets = [0, 16], sizes = [128, 8], strides = [1, 1]} : vector<128x32xbf16> to vector<128x8xbf16>
    %83 = vector.extract_strided_slice %38 {offsets = [0, 16], sizes = [128, 8], strides = [1, 1]} : vector<128x32xbf16> to vector<128x8xbf16>
    %cst_29 = arith.constant dense<0.000000e+00> : vector<128x128xf32>
    %84 = tpu.matmul %82, %83, %cst_29 {dimension_numbers = #tpu.dot_dimension_numbers<[1], [1], [0], [0], [0, 0, 1, 0], [], []>} : vector<128x8xbf16>, vector<128x8xbf16>, vector<128x128xf32> -> vector<128x128xf32>
    %cst_30 = arith.constant -1.000000e+30 : f32
    %85 = vector.broadcast %cst_30 : f32 to vector<128x128xf32>
    %86 = arith.select %43, %84, %85 : vector<128x128xi1>, vector<128x128xf32>
    %cst_31 = arith.constant dense<0xFF800000> : vector<128xf32>
    %87 = vector.multi_reduction <maximumf>, %86, %cst_31 [1] : vector<128x128xf32> to vector<128xf32>
    %88 = vector.shape_cast %87 : vector<128xf32> to vector<128x1xf32>
    %89 = vector.broadcast %88 : vector<128x1xf32> to vector<128x128xf32>
    %90 = arith.subf %86, %89 : vector<128x128xf32>
    %91 = math.exp %90 : vector<128x128xf32>
    %cst_32 = arith.constant dense<0.000000e+00> : vector<128xf32>
    %92 = vector.multi_reduction <add>, %91, %cst_32 [1] : vector<128x128xf32> to vector<128xf32>
    %93 = vector.shape_cast %92 : vector<128xf32> to vector<128x1xf32>
    %94 = tpu.reciprocal %93 {approx = true} : vector<128x1xf32> -> vector<128x1xf32>
    %95 = vector.broadcast %94 : vector<128x1xf32> to vector<128x128xf32>
    %96 = arith.mulf %91, %95 : vector<128x128xf32>
    %97 = arith.truncf %96 : vector<128x128xf32> to vector<128x128xbf16>
    %98 = vector.extract_strided_slice %40 {offsets = [0, 16], sizes = [128, 8], strides = [1, 1]} : vector<128x32xbf16> to vector<128x8xbf16>
    %cst_33 = arith.constant dense<0.000000e+00> : vector<128x8xf32>
    %99 = tpu.matmul %97, %98, %cst_33 {dimension_numbers = #tpu.dot_dimension_numbers<[1], [0], [0], [1], [0, 0, 1, 1], [], []>} : vector<128x128xbf16>, vector<128x8xbf16>, vector<128x8xf32> -> vector<128x8xf32>
    %c0_34 = arith.constant 0 : index
    %c16 = arith.constant 16 : index
    %100 = vector.load %arg9[%c0_34, %c16] : memref<128x32xf32, #tpu.memory_space<vmem>>, vector<128x8xf32>
    tpu.vector_store %arg9[%c0_34, %c16], %99 {strides = array<i32>} : memref<128x32xf32, #tpu.memory_space<vmem>>, vector<128x8xf32>,
    %101 = vector.extract_strided_slice %36 {offsets = [0, 24], sizes = [128, 8], strides = [1, 1]} : vector<128x32xbf16> to vector<128x8xbf16>
    %102 = vector.extract_strided_slice %38 {offsets = [0, 24], sizes = [128, 8], strides = [1, 1]} : vector<128x32xbf16> to vector<128x8xbf16>
    %cst_35 = arith.constant dense<0.000000e+00> : vector<128x128xf32>
    %103 = tpu.matmul %101, %102, %cst_35 {dimension_numbers = #tpu.dot_dimension_numbers<[1], [1], [0], [0], [0, 0, 1, 0], [], []>} : vector<128x8xbf16>, vector<128x8xbf16>, vector<128x128xf32> -> vector<128x128xf32>
    %cst_36 = arith.constant -1.000000e+30 : f32
    %104 = vector.broadcast %cst_36 : f32 to vector<128x128xf32>
    %105 = arith.select %43, %103, %104 : vector<128x128xi1>, vector<128x128xf32>
    %cst_37 = arith.constant dense<0xFF800000> : vector<128xf32>
    %106 = vector.multi_reduction <maximumf>, %105, %cst_37 [1] : vector<128x128xf32> to vector<128xf32>
    %107 = vector.shape_cast %106 : vector<128xf32> to vector<128x1xf32>
    %108 = vector.broadcast %107 : vector<128x1xf32> to vector<128x128xf32>
    %109 = arith.subf %105, %108 : vector<128x128xf32>
    %110 = math.exp %109 : vector<128x128xf32>
    %cst_38 = arith.constant dense<0.000000e+00> : vector<128xf32>
    %111 = vector.multi_reduction <add>, %110, %cst_38 [1] : vector<128x128xf32> to vector<128xf32>
    %112 = vector.shape_cast %111 : vector<128xf32> to vector<128x1xf32>
    %113 = tpu.reciprocal %112 {approx = true} : vector<128x1xf32> -> vector<128x1xf32>
    %114 = vector.broadcast %113 : vector<128x1xf32> to vector<128x128xf32>
    %115 = arith.mulf %110, %114 : vector<128x128xf32>
    %116 = arith.truncf %115 : vector<128x128xf32> to vector<128x128xbf16>
    %117 = vector.extract_strided_slice %40 {offsets = [0, 24], sizes = [128, 8], strides = [1, 1]} : vector<128x32xbf16> to vector<128x8xbf16>
    %cst_39 = arith.constant dense<0.000000e+00> : vector<128x8xf32>
    %118 = tpu.matmul %116, %117, %cst_39 {dimension_numbers = #tpu.dot_dimension_numbers<[1], [0], [0], [1], [0, 0, 1, 1], [], []>} : vector<128x128xbf16>, vector<128x8xbf16>, vector<128x8xf32> -> vector<128x8xf32>
    %c0_40 = arith.constant 0 : index
    %c24 = arith.constant 24 : index
    %119 = vector.load %arg9[%c0_40, %c24] : memref<128x32xf32, #tpu.memory_space<vmem>>, vector<128x8xf32>
    tpu.vector_store %arg9[%c0_40, %c24], %118 {strides = array<i32>} : memref<128x32xf32, #tpu.memory_space<vmem>>, vector<128x8xf32>,
    %c0_41 = arith.constant 0 : index
    %c0_42 = arith.constant 0 : index
    %120 = vector.load %arg9[%c0_41, %c0_42] : memref<128x32xf32, #tpu.memory_space<vmem>>, vector<128x32xf32>
    %121 = arith.truncf %120 : vector<128x32xf32> to vector<128x32xbf16>
    %c0_43 = arith.constant 0 : index
    %c0_44 = arith.constant 0 : index
    %122 = vector.load %arg6[%c0_43, %c0_44] : memref<32x32xbf16, #tpu.memory_space<vmem>>, vector<32x32xbf16>
    %cst_45 = arith.constant dense<0.000000e+00> : vector<128x32xf32>
    %123 = tpu.matmul %121, %122, %cst_45 {dimension_numbers = #tpu.dot_dimension_numbers<[1], [0], [0], [1], [0, 0, 1, 1], [], []>} : vector<128x32xbf16>, vector<32x32xbf16>, vector<128x32xf32> -> vector<128x32xf32>
    %124 = arith.addf %2, %123 : vector<128x32xf32>
    %c0_46 = arith.constant 0 : index
    %c0_47 = arith.constant 0 : index
    %125 = vector.load %arg7[%c0_46, %c0_47] : memref<1x32xf32, #tpu.memory_space<vmem>>, vector<1x32xf32>
    %126 = vector.broadcast %125 : vector<1x32xf32> to vector<128x32xf32>
    %127 = arith.addf %124, %126 : vector<128x32xf32>
    %128 = arith.truncf %127 : vector<128x32xf32> to vector<128x32xbf16>
    %c0_48 = arith.constant 0 : index
    %c0_49 = arith.constant 0 : index
    %c0_50 = arith.constant 0 : index
    %129 = vector.load %arg8[%c0_48, %c0_49, %c0_50] : memref<1x128x32xbf16, #tpu.memory_space<vmem>>, vector<1x128x32xbf16>
    %130 = vector.shape_cast %129 : vector<1x128x32xbf16> to vector<128x32xbf16>
    %131 = vector.shape_cast %128 : vector<128x32xbf16> to vector<1x128x32xbf16>
    tpu.vector_store %arg8[%c0_48, %c0_49, %c0_50], %131 {strides = array<i32>} : memref<1x128x32xbf16, #tpu.memory_space<vmem>>, vector<1x128x32xbf16>,
    return
  }
  func.func @transform_0(%arg0: i32) -> (i32, i32, i32) {
    %c0_i32 = arith.constant 0 : i32
    %c0_i32_0 = arith.constant 0 : i32
    %c0_i32_1 = arith.constant 0 : i32
    return %arg0, %c0_i32, %c0_i32_0 : i32, i32, i32
  }
  func.func @transform_1(%arg0: i32) -> (i32, i32) {
    %c0_i32 = arith.constant 0 : i32
    %c0_i32_0 = arith.constant 0 : i32
    %c0_i32_1 = arith.constant 0 : i32
    return %c0_i32, %c0_i32_0 : i32, i32
  }
  func.func @transform_2(%arg0: i32) -> (i32, i32) {
    %c0_i32 = arith.constant 0 : i32
    %c0_i32_0 = arith.constant 0 : i32
    %c0_i32_1 = arith.constant 0 : i32
    return %c0_i32, %c0_i32_0 : i32, i32
  }
  func.func @transform_3(%arg0: i32) -> (i32, i32) {
    %c0_i32 = arith.constant 0 : i32
    %c0_i32_0 = arith.constant 0 : i32
    %c0_i32_1 = arith.constant 0 : i32
    return %c0_i32, %c0_i32_0 : i32, i32
  }
  func.func @transform_4(%arg0: i32) -> (i32, i32) {
    %c0_i32 = arith.constant 0 : i32
    %c0_i32_0 = arith.constant 0 : i32
    %c0_i32_1 = arith.constant 0 : i32
    return %c0_i32, %c0_i32_0 : i32, i32
  }
  func.func @transform_5(%arg0: i32) -> (i32, i32) {
    %c0_i32 = arith.constant 0 : i32
    %c0_i32_0 = arith.constant 0 : i32
    %c0_i32_1 = arith.constant 0 : i32
    return %c0_i32, %c0_i32_0 : i32, i32
  }
  func.func @transform_6(%arg0: i32) -> (i32, i32) {
    %c0_i32 = arith.constant 0 : i32
    %c0_i32_0 = arith.constant 0 : i32
    %c0_i32_1 = arith.constant 0 : i32
    return %c0_i32, %c0_i32_0 : i32, i32
  }
  func.func @transform_7(%arg0: i32) -> (i32, i32, i32) {
    %c0_i32 = arith.constant 0 : i32
    %c0_i32_0 = arith.constant 0 : i32
    %c0_i32_1 = arith.constant 0 : i32
    return %arg0, %c0_i32, %c0_i32_0 : i32, i32, i32
  }
}

module attributes {stable_mosaic.version = 11 : i64} {
  func.func @_pooled_head_kernel(%arg0: memref<2x25x32xbf16, #tpu.memory_space<vmem>>, %arg1: memref<1x32xf32, #tpu.memory_space<vmem>>, %arg2: memref<1x32xf32, #tpu.memory_space<vmem>>, %arg3: memref<32x128xbf16, #tpu.memory_space<vmem>>, %arg4: memref<1x128xf32, #tpu.memory_space<vmem>>, %arg5: memref<2x128xf32, #tpu.memory_space<vmem>>) attributes {dimension_semantics = [], scalar_prefetch = 0 : i64, scratch_operands = 0 : i64, tpu.core_type = #tpu.core_type<tc>} {
    %c0 = arith.constant 0 : index
    %c0_0 = arith.constant 0 : index
    %c0_1 = arith.constant 0 : index
    %0 = vector.load %arg0[%c0, %c0_0, %c0_1] : memref<2x25x32xbf16, #tpu.memory_space<vmem>>, vector<2x25x32xbf16>
    %1 = arith.extf %0 : vector<2x25x32xbf16> to vector<2x25x32xf32>
    %c0_2 = arith.constant 0 : index
    %c0_3 = arith.constant 0 : index
    %2 = vector.load %arg1[%c0_2, %c0_3] : memref<1x32xf32, #tpu.memory_space<vmem>>, vector<1x32xf32>
    %c0_4 = arith.constant 0 : index
    %c0_5 = arith.constant 0 : index
    %3 = vector.load %arg2[%c0_4, %c0_5] : memref<1x32xf32, #tpu.memory_space<vmem>>, vector<1x32xf32>
    %cst = arith.constant dense<0.000000e+00> : vector<2x25xf32>
    %4 = vector.multi_reduction <add>, %1, %cst [2] : vector<2x25x32xf32> to vector<2x25xf32>
    %5 = vector.shape_cast %4 : vector<2x25xf32> to vector<2x25x1xf32>
    %cst_6 = arith.constant 3.200000e+01 : f32
    %6 = vector.broadcast %cst_6 : f32 to vector<2x25x1xf32>
    %7 = arith.divf %5, %6 : vector<2x25x1xf32>
    %8 = vector.broadcast %7 : vector<2x25x1xf32> to vector<2x25x32xf32>
    %9 = arith.subf %1, %8 : vector<2x25x32xf32>
    %10 = arith.mulf %9, %9 : vector<2x25x32xf32>
    %cst_7 = arith.constant dense<0.000000e+00> : vector<2x25xf32>
    %11 = vector.multi_reduction <add>, %10, %cst_7 [2] : vector<2x25x32xf32> to vector<2x25xf32>
    %12 = vector.shape_cast %11 : vector<2x25xf32> to vector<2x25x1xf32>
    %cst_8 = arith.constant 3.200000e+01 : f32
    %13 = vector.broadcast %cst_8 : f32 to vector<2x25x1xf32>
    %14 = arith.divf %12, %13 : vector<2x25x1xf32>
    %15 = vector.broadcast %7 : vector<2x25x1xf32> to vector<2x25x32xf32>
    %16 = arith.subf %1, %15 : vector<2x25x32xf32>
    %cst_9 = arith.constant 9.99999997E-7 : f32
    %17 = vector.broadcast %cst_9 : f32 to vector<2x25x1xf32>
    %18 = arith.addf %14, %17 : vector<2x25x1xf32>
    %19 = math.rsqrt %18 : vector<2x25x1xf32>
    %20 = vector.broadcast %19 : vector<2x25x1xf32> to vector<2x25x32xf32>
    %21 = arith.mulf %16, %20 : vector<2x25x32xf32>
    %22 = vector.shape_cast %2 : vector<1x32xf32> to vector<1x1x32xf32>
    %23 = vector.broadcast %22 : vector<1x1x32xf32> to vector<2x25x32xf32>
    %24 = arith.mulf %21, %23 : vector<2x25x32xf32>
    %25 = vector.shape_cast %3 : vector<1x32xf32> to vector<1x1x32xf32>
    %26 = vector.broadcast %25 : vector<1x1x32xf32> to vector<2x25x32xf32>
    %27 = arith.addf %24, %26 : vector<2x25x32xf32>
    %cst_10 = arith.constant dense<0.000000e+00> : vector<2x32xf32>
    %28 = vector.multi_reduction <add>, %27, %cst_10 [1] : vector<2x25x32xf32> to vector<2x32xf32>
    %cst_11 = arith.constant 2.500000e+01 : f32
    %29 = vector.broadcast %cst_11 : f32 to vector<2x32xf32>
    %30 = arith.divf %28, %29 : vector<2x32xf32>
    %31 = arith.truncf %30 : vector<2x32xf32> to vector<2x32xbf16>
    %c0_12 = arith.constant 0 : index
    %c0_13 = arith.constant 0 : index
    %32 = vector.load %arg3[%c0_12, %c0_13] : memref<32x128xbf16, #tpu.memory_space<vmem>>, vector<32x128xbf16>
    %cst_14 = arith.constant dense<0.000000e+00> : vector<2x128xf32>
    %33 = tpu.matmul %31, %32, %cst_14 {dimension_numbers = #tpu.dot_dimension_numbers<[1], [0], [0], [1], [0, 0, 1, 1], [], []>} : vector<2x32xbf16>, vector<32x128xbf16>, vector<2x128xf32> -> vector<2x128xf32>
    %c0_15 = arith.constant 0 : index
    %c0_16 = arith.constant 0 : index
    %34 = vector.load %arg4[%c0_15, %c0_16] : memref<1x128xf32, #tpu.memory_space<vmem>>, vector<1x128xf32>
    %35 = vector.broadcast %34 : vector<1x128xf32> to vector<2x128xf32>
    %36 = arith.addf %33, %35 : vector<2x128xf32>
    %c0_17 = arith.constant 0 : index
    %c0_18 = arith.constant 0 : index
    %37 = vector.load %arg5[%c0_17, %c0_18] : memref<2x128xf32, #tpu.memory_space<vmem>>, vector<2x128xf32>
    tpu.vector_store %arg5[%c0_17, %c0_18], %36 {strides = array<i32>} : memref<2x128xf32, #tpu.memory_space<vmem>>, vector<2x128xf32>,
    return
  }
}

module attributes {stable_mosaic.version = 11 : i64} {
  func.func @_attn_block_kernel(%arg0: i32, %arg1: memref<1x128x32xbf16, #tpu.memory_space<vmem>>, %arg2: memref<1x32xf32, #tpu.memory_space<vmem>>, %arg3: memref<1x32xf32, #tpu.memory_space<vmem>>, %arg4: memref<32x96xbf16, #tpu.memory_space<vmem>>, %arg5: memref<1x96xf32, #tpu.memory_space<vmem>>, %arg6: memref<32x32xbf16, #tpu.memory_space<vmem>>, %arg7: memref<1x32xf32, #tpu.memory_space<vmem>>, %arg8: memref<1x128x32xbf16, #tpu.memory_space<vmem>>, %arg9: memref<128x32xf32, #tpu.memory_space<vmem>>) attributes {dimension_semantics = [#tpu.dimension_semantics<parallel>], iteration_bounds = array<i64: 2>, scalar_prefetch = 0 : i64, scratch_operands = 1 : i64, tpu.core_type = #tpu.core_type<tc>, window_params = [{transform_indices = @transform_0, window_bounds = array<i64: 1, 128, 32>}, {pipeline_mode = #tpu.pipeline_mode<synchronous>, transform_indices = @transform_1, window_bounds = array<i64: 1, 32>}, {pipeline_mode = #tpu.pipeline_mode<synchronous>, transform_indices = @transform_2, window_bounds = array<i64: 1, 32>}, {pipeline_mode = #tpu.pipeline_mode<synchronous>, transform_indices = @transform_3, window_bounds = array<i64: 32, 96>}, {pipeline_mode = #tpu.pipeline_mode<synchronous>, transform_indices = @transform_4, window_bounds = array<i64: 1, 96>}, {pipeline_mode = #tpu.pipeline_mode<synchronous>, transform_indices = @transform_5, window_bounds = array<i64: 32, 32>}, {pipeline_mode = #tpu.pipeline_mode<synchronous>, transform_indices = @transform_6, window_bounds = array<i64: 1, 32>}, {transform_indices = @transform_7, window_bounds = array<i64: 1, 128, 32>}]} {
    %c0 = arith.constant 0 : index
    %c0_0 = arith.constant 0 : index
    %c0_1 = arith.constant 0 : index
    %0 = vector.load %arg1[%c0, %c0_0, %c0_1] : memref<1x128x32xbf16, #tpu.memory_space<vmem>>, vector<1x128x32xbf16>
    %1 = vector.shape_cast %0 : vector<1x128x32xbf16> to vector<128x32xbf16>
    %2 = arith.extf %1 : vector<128x32xbf16> to vector<128x32xf32>
    %c0_2 = arith.constant 0 : index
    %c0_3 = arith.constant 0 : index
    %3 = vector.load %arg2[%c0_2, %c0_3] : memref<1x32xf32, #tpu.memory_space<vmem>>, vector<1x32xf32>
    %c0_4 = arith.constant 0 : index
    %c0_5 = arith.constant 0 : index
    %4 = vector.load %arg3[%c0_4, %c0_5] : memref<1x32xf32, #tpu.memory_space<vmem>>, vector<1x32xf32>
    %cst = arith.constant dense<0.000000e+00> : vector<128xf32>
    %5 = vector.multi_reduction <add>, %2, %cst [1] : vector<128x32xf32> to vector<128xf32>
    %6 = vector.shape_cast %5 : vector<128xf32> to vector<128x1xf32>
    %cst_6 = arith.constant 3.200000e+01 : f32
    %7 = vector.broadcast %cst_6 : f32 to vector<128x1xf32>
    %8 = arith.divf %6, %7 : vector<128x1xf32>
    %9 = vector.broadcast %8 : vector<128x1xf32> to vector<128x32xf32>
    %10 = arith.subf %2, %9 : vector<128x32xf32>
    %11 = arith.mulf %10, %10 : vector<128x32xf32>
    %cst_7 = arith.constant dense<0.000000e+00> : vector<128xf32>
    %12 = vector.multi_reduction <add>, %11, %cst_7 [1] : vector<128x32xf32> to vector<128xf32>
    %13 = vector.shape_cast %12 : vector<128xf32> to vector<128x1xf32>
    %cst_8 = arith.constant 3.200000e+01 : f32
    %14 = vector.broadcast %cst_8 : f32 to vector<128x1xf32>
    %15 = arith.divf %13, %14 : vector<128x1xf32>
    %16 = vector.broadcast %8 : vector<128x1xf32> to vector<128x32xf32>
    %17 = arith.subf %2, %16 : vector<128x32xf32>
    %cst_9 = arith.constant 9.99999997E-7 : f32
    %18 = vector.broadcast %cst_9 : f32 to vector<128x1xf32>
    %19 = arith.addf %15, %18 : vector<128x1xf32>
    %20 = math.rsqrt %19 : vector<128x1xf32>
    %21 = vector.broadcast %20 : vector<128x1xf32> to vector<128x32xf32>
    %22 = arith.mulf %17, %21 : vector<128x32xf32>
    %23 = vector.broadcast %3 : vector<1x32xf32> to vector<128x32xf32>
    %24 = arith.mulf %22, %23 : vector<128x32xf32>
    %25 = vector.broadcast %4 : vector<1x32xf32> to vector<128x32xf32>
    %26 = arith.addf %24, %25 : vector<128x32xf32>
    %27 = arith.truncf %26 : vector<128x32xf32> to vector<128x32xbf16>
    %c0_10 = arith.constant 0 : index
    %c0_11 = arith.constant 0 : index
    %28 = vector.load %arg4[%c0_10, %c0_11] : memref<32x96xbf16, #tpu.memory_space<vmem>>, vector<32x96xbf16>
    %cst_12 = arith.constant dense<0.000000e+00> : vector<128x96xf32>
    %29 = tpu.matmul %27, %28, %cst_12 {dimension_numbers = #tpu.dot_dimension_numbers<[1], [0], [0], [1], [0, 0, 1, 1], [], []>} : vector<128x32xbf16>, vector<32x96xbf16>, vector<128x96xf32> -> vector<128x96xf32>
    %c0_13 = arith.constant 0 : index
    %c0_14 = arith.constant 0 : index
    %30 = vector.load %arg5[%c0_13, %c0_14] : memref<1x96xf32, #tpu.memory_space<vmem>>, vector<1x96xf32>
    %31 = vector.broadcast %30 : vector<1x96xf32> to vector<128x96xf32>
    %32 = arith.addf %29, %31 : vector<128x96xf32>
    %33 = vector.extract_strided_slice %32 {offsets = [0, 0], sizes = [128, 32], strides = [1, 1]} : vector<128x96xf32> to vector<128x32xf32>
    %cst_15 = arith.constant 0.353553385 : f32
    %34 = vector.broadcast %cst_15 : f32 to vector<128x32xf32>
    %35 = arith.mulf %33, %34 : vector<128x32xf32>
    %36 = arith.truncf %35 : vector<128x32xf32> to vector<128x32xbf16>
    %37 = vector.extract_strided_slice %32 {offsets = [0, 32], sizes = [128, 32], strides = [1, 1]} : vector<128x96xf32> to vector<128x32xf32>
    %38 = arith.truncf %37 : vector<128x32xf32> to vector<128x32xbf16>
    %39 = vector.extract_strided_slice %32 {offsets = [0, 64], sizes = [128, 32], strides = [1, 1]} : vector<128x96xf32> to vector<128x32xf32>
    %40 = arith.truncf %39 : vector<128x32xf32> to vector<128x32xbf16>
    %41 = tpu.iota {dimensions = array<i32: 1>} : vector<128x128xi32>
    %c30_i32 = arith.constant 30 : i32
    %42 = vector.broadcast %c30_i32 : i32 to vector<128x128xi32>
    %43 = arith.cmpi slt, %41, %42 : vector<128x128xi32>
    %44 = vector.extract_strided_slice %36 {offsets = [0, 0], sizes = [128, 8], strides = [1, 1]} : vector<128x32xbf16> to vector<128x8xbf16>
    %45 = vector.extract_strided_slice %38 {offsets = [0, 0], sizes = [128, 8], strides = [1, 1]} : vector<128x32xbf16> to vector<128x8xbf16>
    %cst_16 = arith.constant dense<0.000000e+00> : vector<128x128xf32>
    %46 = tpu.matmul %44, %45, %cst_16 {dimension_numbers = #tpu.dot_dimension_numbers<[1], [1], [0], [0], [0, 0, 1, 0], [], []>} : vector<128x8xbf16>, vector<128x8xbf16>, vector<128x128xf32> -> vector<128x128xf32>
    %cst_17 = arith.constant -1.000000e+30 : f32
    %47 = vector.broadcast %cst_17 : f32 to vector<128x128xf32>
    %48 = arith.select %43, %46, %47 : vector<128x128xi1>, vector<128x128xf32>
    %cst_18 = arith.constant dense<0xFF800000> : vector<128xf32>
    %49 = vector.multi_reduction <maximumf>, %48, %cst_18 [1] : vector<128x128xf32> to vector<128xf32>
    %50 = vector.shape_cast %49 : vector<128xf32> to vector<128x1xf32>
    %51 = vector.broadcast %50 : vector<128x1xf32> to vector<128x128xf32>
    %52 = arith.subf %48, %51 : vector<128x128xf32>
    %53 = math.exp %52 : vector<128x128xf32>
    %cst_19 = arith.constant dense<0.000000e+00> : vector<128xf32>
    %54 = vector.multi_reduction <add>, %53, %cst_19 [1] : vector<128x128xf32> to vector<128xf32>
    %55 = vector.shape_cast %54 : vector<128xf32> to vector<128x1xf32>
    %56 = tpu.reciprocal %55 {approx = true} : vector<128x1xf32> -> vector<128x1xf32>
    %57 = vector.broadcast %56 : vector<128x1xf32> to vector<128x128xf32>
    %58 = arith.mulf %53, %57 : vector<128x128xf32>
    %59 = arith.truncf %58 : vector<128x128xf32> to vector<128x128xbf16>
    %60 = vector.extract_strided_slice %40 {offsets = [0, 0], sizes = [128, 8], strides = [1, 1]} : vector<128x32xbf16> to vector<128x8xbf16>
    %cst_20 = arith.constant dense<0.000000e+00> : vector<128x8xf32>
    %61 = tpu.matmul %59, %60, %cst_20 {dimension_numbers = #tpu.dot_dimension_numbers<[1], [0], [0], [1], [0, 0, 1, 1], [], []>} : vector<128x128xbf16>, vector<128x8xbf16>, vector<128x8xf32> -> vector<128x8xf32>
    %c0_21 = arith.constant 0 : index
    %c0_22 = arith.constant 0 : index
    %62 = vector.load %arg9[%c0_21, %c0_22] : memref<128x32xf32, #tpu.memory_space<vmem>>, vector<128x8xf32>
    tpu.vector_store %arg9[%c0_21, %c0_22], %61 {strides = array<i32>} : memref<128x32xf32, #tpu.memory_space<vmem>>, vector<128x8xf32>,
    %63 = vector.extract_strided_slice %36 {offsets = [0, 8], sizes = [128, 8], strides = [1, 1]} : vector<128x32xbf16> to vector<128x8xbf16>
    %64 = vector.extract_strided_slice %38 {offsets = [0, 8], sizes = [128, 8], strides = [1, 1]} : vector<128x32xbf16> to vector<128x8xbf16>
    %cst_23 = arith.constant dense<0.000000e+00> : vector<128x128xf32>
    %65 = tpu.matmul %63, %64, %cst_23 {dimension_numbers = #tpu.dot_dimension_numbers<[1], [1], [0], [0], [0, 0, 1, 0], [], []>} : vector<128x8xbf16>, vector<128x8xbf16>, vector<128x128xf32> -> vector<128x128xf32>
    %cst_24 = arith.constant -1.000000e+30 : f32
    %66 = vector.broadcast %cst_24 : f32 to vector<128x128xf32>
    %67 = arith.select %43, %65, %66 : vector<128x128xi1>, vector<128x128xf32>
    %cst_25 = arith.constant dense<0xFF800000> : vector<128xf32>
    %68 = vector.multi_reduction <maximumf>, %67, %cst_25 [1] : vector<128x128xf32> to vector<128xf32>
    %69 = vector.shape_cast %68 : vector<128xf32> to vector<128x1xf32>
    %70 = vector.broadcast %69 : vector<128x1xf32> to vector<128x128xf32>
    %71 = arith.subf %67, %70 : vector<128x128xf32>
    %72 = math.exp %71 : vector<128x128xf32>
    %cst_26 = arith.constant dense<0.000000e+00> : vector<128xf32>
    %73 = vector.multi_reduction <add>, %72, %cst_26 [1] : vector<128x128xf32> to vector<128xf32>
    %74 = vector.shape_cast %73 : vector<128xf32> to vector<128x1xf32>
    %75 = tpu.reciprocal %74 {approx = true} : vector<128x1xf32> -> vector<128x1xf32>
    %76 = vector.broadcast %75 : vector<128x1xf32> to vector<128x128xf32>
    %77 = arith.mulf %72, %76 : vector<128x128xf32>
    %78 = arith.truncf %77 : vector<128x128xf32> to vector<128x128xbf16>
    %79 = vector.extract_strided_slice %40 {offsets = [0, 8], sizes = [128, 8], strides = [1, 1]} : vector<128x32xbf16> to vector<128x8xbf16>
    %cst_27 = arith.constant dense<0.000000e+00> : vector<128x8xf32>
    %80 = tpu.matmul %78, %79, %cst_27 {dimension_numbers = #tpu.dot_dimension_numbers<[1], [0], [0], [1], [0, 0, 1, 1], [], []>} : vector<128x128xbf16>, vector<128x8xbf16>, vector<128x8xf32> -> vector<128x8xf32>
    %c0_28 = arith.constant 0 : index
    %c8 = arith.constant 8 : index
    %81 = vector.load %arg9[%c0_28, %c8] : memref<128x32xf32, #tpu.memory_space<vmem>>, vector<128x8xf32>
    tpu.vector_store %arg9[%c0_28, %c8], %80 {strides = array<i32>} : memref<128x32xf32, #tpu.memory_space<vmem>>, vector<128x8xf32>,
    %82 = vector.extract_strided_slice %36 {offsets = [0, 16], sizes = [128, 8], strides = [1, 1]} : vector<128x32xbf16> to vector<128x8xbf16>
    %83 = vector.extract_strided_slice %38 {offsets = [0, 16], sizes = [128, 8], strides = [1, 1]} : vector<128x32xbf16> to vector<128x8xbf16>
    %cst_29 = arith.constant dense<0.000000e+00> : vector<128x128xf32>
    %84 = tpu.matmul %82, %83, %cst_29 {dimension_numbers = #tpu.dot_dimension_numbers<[1], [1], [0], [0], [0, 0, 1, 0], [], []>} : vector<128x8xbf16>, vector<128x8xbf16>, vector<128x128xf32> -> vector<128x128xf32>
    %cst_30 = arith.constant -1.000000e+30 : f32
    %85 = vector.broadcast %cst_30 : f32 to vector<128x128xf32>
    %86 = arith.select %43, %84, %85 : vector<128x128xi1>, vector<128x128xf32>
    %cst_31 = arith.constant dense<0xFF800000> : vector<128xf32>
    %87 = vector.multi_reduction <maximumf>, %86, %cst_31 [1] : vector<128x128xf32> to vector<128xf32>
    %88 = vector.shape_cast %87 : vector<128xf32> to vector<128x1xf32>
    %89 = vector.broadcast %88 : vector<128x1xf32> to vector<128x128xf32>
    %90 = arith.subf %86, %89 : vector<128x128xf32>
    %91 = math.exp %90 : vector<128x128xf32>
    %cst_32 = arith.constant dense<0.000000e+00> : vector<128xf32>
    %92 = vector.multi_reduction <add>, %91, %cst_32 [1] : vector<128x128xf32> to vector<128xf32>
    %93 = vector.shape_cast %92 : vector<128xf32> to vector<128x1xf32>
    %94 = tpu.reciprocal %93 {approx = true} : vector<128x1xf32> -> vector<128x1xf32>
    %95 = vector.broadcast %94 : vector<128x1xf32> to vector<128x128xf32>
    %96 = arith.mulf %91, %95 : vector<128x128xf32>
    %97 = arith.truncf %96 : vector<128x128xf32> to vector<128x128xbf16>
    %98 = vector.extract_strided_slice %40 {offsets = [0, 16], sizes = [128, 8], strides = [1, 1]} : vector<128x32xbf16> to vector<128x8xbf16>
    %cst_33 = arith.constant dense<0.000000e+00> : vector<128x8xf32>
    %99 = tpu.matmul %97, %98, %cst_33 {dimension_numbers = #tpu.dot_dimension_numbers<[1], [0], [0], [1], [0, 0, 1, 1], [], []>} : vector<128x128xbf16>, vector<128x8xbf16>, vector<128x8xf32> -> vector<128x8xf32>
    %c0_34 = arith.constant 0 : index
    %c16 = arith.constant 16 : index
    %100 = vector.load %arg9[%c0_34, %c16] : memref<128x32xf32, #tpu.memory_space<vmem>>, vector<128x8xf32>
    tpu.vector_store %arg9[%c0_34, %c16], %99 {strides = array<i32>} : memref<128x32xf32, #tpu.memory_space<vmem>>, vector<128x8xf32>,
    %101 = vector.extract_strided_slice %36 {offsets = [0, 24], sizes = [128, 8], strides = [1, 1]} : vector<128x32xbf16> to vector<128x8xbf16>
    %102 = vector.extract_strided_slice %38 {offsets = [0, 24], sizes = [128, 8], strides = [1, 1]} : vector<128x32xbf16> to vector<128x8xbf16>
    %cst_35 = arith.constant dense<0.000000e+00> : vector<128x128xf32>
    %103 = tpu.matmul %101, %102, %cst_35 {dimension_numbers = #tpu.dot_dimension_numbers<[1], [1], [0], [0], [0, 0, 1, 0], [], []>} : vector<128x8xbf16>, vector<128x8xbf16>, vector<128x128xf32> -> vector<128x128xf32>
    %cst_36 = arith.constant -1.000000e+30 : f32
    %104 = vector.broadcast %cst_36 : f32 to vector<128x128xf32>
    %105 = arith.select %43, %103, %104 : vector<128x128xi1>, vector<128x128xf32>
    %cst_37 = arith.constant dense<0xFF800000> : vector<128xf32>
    %106 = vector.multi_reduction <maximumf>, %105, %cst_37 [1] : vector<128x128xf32> to vector<128xf32>
    %107 = vector.shape_cast %106 : vector<128xf32> to vector<128x1xf32>
    %108 = vector.broadcast %107 : vector<128x1xf32> to vector<128x128xf32>
    %109 = arith.subf %105, %108 : vector<128x128xf32>
    %110 = math.exp %109 : vector<128x128xf32>
    %cst_38 = arith.constant dense<0.000000e+00> : vector<128xf32>
    %111 = vector.multi_reduction <add>, %110, %cst_38 [1] : vector<128x128xf32> to vector<128xf32>
    %112 = vector.shape_cast %111 : vector<128xf32> to vector<128x1xf32>
    %113 = tpu.reciprocal %112 {approx = true} : vector<128x1xf32> -> vector<128x1xf32>
    %114 = vector.broadcast %113 : vector<128x1xf32> to vector<128x128xf32>
    %115 = arith.mulf %110, %114 : vector<128x128xf32>
    %116 = arith.truncf %115 : vector<128x128xf32> to vector<128x128xbf16>
    %117 = vector.extract_strided_slice %40 {offsets = [0, 24], sizes = [128, 8], strides = [1, 1]} : vector<128x32xbf16> to vector<128x8xbf16>
    %cst_39 = arith.constant dense<0.000000e+00> : vector<128x8xf32>
    %118 = tpu.matmul %116, %117, %cst_39 {dimension_numbers = #tpu.dot_dimension_numbers<[1], [0], [0], [1], [0, 0, 1, 1], [], []>} : vector<128x128xbf16>, vector<128x8xbf16>, vector<128x8xf32> -> vector<128x8xf32>
    %c0_40 = arith.constant 0 : index
    %c24 = arith.constant 24 : index
    %119 = vector.load %arg9[%c0_40, %c24] : memref<128x32xf32, #tpu.memory_space<vmem>>, vector<128x8xf32>
    tpu.vector_store %arg9[%c0_40, %c24], %118 {strides = array<i32>} : memref<128x32xf32, #tpu.memory_space<vmem>>, vector<128x8xf32>,
    %c0_41 = arith.constant 0 : index
    %c0_42 = arith.constant 0 : index
    %120 = vector.load %arg9[%c0_41, %c0_42] : memref<128x32xf32, #tpu.memory_space<vmem>>, vector<128x32xf32>
    %121 = arith.truncf %120 : vector<128x32xf32> to vector<128x32xbf16>
    %c0_43 = arith.constant 0 : index
    %c0_44 = arith.constant 0 : index
    %122 = vector.load %arg6[%c0_43, %c0_44] : memref<32x32xbf16, #tpu.memory_space<vmem>>, vector<32x32xbf16>
    %cst_45 = arith.constant dense<0.000000e+00> : vector<128x32xf32>
    %123 = tpu.matmul %121, %122, %cst_45 {dimension_numbers = #tpu.dot_dimension_numbers<[1], [0], [0], [1], [0, 0, 1, 1], [], []>} : vector<128x32xbf16>, vector<32x32xbf16>, vector<128x32xf32> -> vector<128x32xf32>
    %124 = arith.addf %2, %123 : vector<128x32xf32>
    %c0_46 = arith.constant 0 : index
    %c0_47 = arith.constant 0 : index
    %125 = vector.load %arg7[%c0_46, %c0_47] : memref<1x32xf32, #tpu.memory_space<vmem>>, vector<1x32xf32>
    %126 = vector.broadcast %125 : vector<1x32xf32> to vector<128x32xf32>
    %127 = arith.addf %124, %126 : vector<128x32xf32>
    %128 = arith.truncf %127 : vector<128x32xf32> to vector<128x32xbf16>
    %c0_48 = arith.constant 0 : index
    %c0_49 = arith.constant 0 : index
    %c0_50 = arith.constant 0 : index
    %129 = vector.load %arg8[%c0_48, %c0_49, %c0_50] : memref<1x128x32xbf16, #tpu.memory_space<vmem>>, vector<1x128x32xbf16>
    %130 = vector.shape_cast %129 : vector<1x128x32xbf16> to vector<128x32xbf16>
    %131 = vector.shape_cast %128 : vector<128x32xbf16> to vector<1x128x32xbf16>
    tpu.vector_store %arg8[%c0_48, %c0_49, %c0_50], %131 {strides = array<i32>} : memref<1x128x32xbf16, #tpu.memory_space<vmem>>, vector<1x128x32xbf16>,
    return
  }
  func.func @transform_0(%arg0: i32) -> (i32, i32, i32) {
    %c0_i32 = arith.constant 0 : i32
    %c0_i32_0 = arith.constant 0 : i32
    %c0_i32_1 = arith.constant 0 : i32
    return %arg0, %c0_i32, %c0_i32_0 : i32, i32, i32
  }
  func.func @transform_1(%arg0: i32) -> (i32, i32) {
    %c0_i32 = arith.constant 0 : i32
    %c0_i32_0 = arith.constant 0 : i32
    %c0_i32_1 = arith.constant 0 : i32
    return %c0_i32, %c0_i32_0 : i32, i32
  }
  func.func @transform_2(%arg0: i32) -> (i32, i32) {
    %c0_i32 = arith.constant 0 : i32
    %c0_i32_0 = arith.constant 0 : i32
    %c0_i32_1 = arith.constant 0 : i32
    return %c0_i32, %c0_i32_0 : i32, i32
  }
  func.func @transform_3(%arg0: i32) -> (i32, i32) {
    %c0_i32 = arith.constant 0 : i32
    %c0_i32_0 = arith.constant 0 : i32
    %c0_i32_1 = arith.constant 0 : i32
    return %c0_i32, %c0_i32_0 : i32, i32
  }
  func.func @transform_4(%arg0: i32) -> (i32, i32) {
    %c0_i32 = arith.constant 0 : i32
    %c0_i32_0 = arith.constant 0 : i32
    %c0_i32_1 = arith.constant 0 : i32
    return %c0_i32, %c0_i32_0 : i32, i32
  }
  func.func @transform_5(%arg0: i32) -> (i32, i32) {
    %c0_i32 = arith.constant 0 : i32
    %c0_i32_0 = arith.constant 0 : i32
    %c0_i32_1 = arith.constant 0 : i32
    return %c0_i32, %c0_i32_0 : i32, i32
  }
  func.func @transform_6(%arg0: i32) -> (i32, i32) {
    %c0_i32 = arith.constant 0 : i32
    %c0_i32_0 = arith.constant 0 : i32
    %c0_i32_1 = arith.constant 0 : i32
    return %c0_i32, %c0_i32_0 : i32, i32
  }
  func.func @transform_7(%arg0: i32) -> (i32, i32, i32) {
    %c0_i32 = arith.constant 0 : i32
    %c0_i32_0 = arith.constant 0 : i32
    %c0_i32_1 = arith.constant 0 : i32
    return %arg0, %c0_i32, %c0_i32_0 : i32, i32, i32
  }
}

</mosaic_0001>

<bundles_post_ra>
// kernel: tpu_custom_call.1
= control target key start
LH: loop header
LB: loop body
LE: loop exit
PB: predicated region body
PF: predicated region fallthrough
CT: control target
= control target key end

     0   :  { %7 = vsyncpa [#allocation3], 0  ;;  %s633_s0 = inlined_call_operand.hbm [shape: f32[16,128], index: 0, kind: input, shape index: {}]   ;;  %s634_s1 = inlined_call_operand.hbm [shape: f32[8,128], index: 1, kind: input, shape index: {}]   ;;  %s635_s2 = inlined_call_operand.hbm [shape: f32[16,128], index: 2, kind: output, shape index: {}]  }
   0x1   :  { %9 = vsyncpa [#allocation3 + $0x1], 0 }
   0x2   :  { %10 = vsyncpa [#allocation6], 0 }
   0x3   :  { %11 = vsyncpa [#allocation4], 0 }
   0x4   :  { %13 = vsyncpa [#allocation4 + $0x1], 0  ;;  %s495_s9 = smov 0   ;;  %s497_s10 = smov 0  }
   0x5   :  { %s499_s11 = smov 0   ;;  %s501_s12 = smov 0  }
   0x6 LB: > { %s516_s13 = sadd.s32 4294967295, %s477_s12   ;;  %s276_s14 = sadd.s32 4294967294, %s477_s12   ;;  %s477_s12 = sphi %s501_s12, %s645_s12   ;;  %s473_s11 = sphi %s499_s11, %s644_s11   ;;  %s469_s10 = sphi %s497_s10, %s643_s10   ;;  %s465_s9 = sphi %s495_s9, %s642_s9  }
   0x7   : > { %p39_p0 = scmp.ne.s32.totalorder %s469_s10, %s465_s9  ;;  %p40_p1 = scmp.eq.s32.totalorder %s516_s13, 0 }
   0x8   : > { %p84_p2 = scmp.eq.s32.totalorder %s516_s13, 1  ;;  %p90_p3 = scmp.eq.s32.totalorder %s276_s14, 1 }
   0x9   : > { %p525_p4 = por %p40_p1, %p39_p0  ;;  %p277_p5 = scmp.ge.s32.totalorder %s477_s12, 1 }
   0xa   : > { %p530_p6 = por %p90_p3, %p39_p0  ;;  %p97_p7 = scmp.lt.s32.totalorder %s477_s12, 3 }
   0xb   : > { %s109_s19 = sshll.u32 %s634_s1, 4  ;;  %s479_s21 = smov [#allocation5]   ;;  %s110_s19 = int_to_ptr.hbm [resolvable:$true] %s109_s19 }
   0xc   : > { %p538_p8 = pnand %p277_p5, %p97_p7  ;;  %s111_s22 = sshll.u32 %s479_s21, 4  ;;  %s112_s22 = int_to_ptr.vmem [resolvable:$true] %s111_s22 }
   0xd   : > { %s548_s23 = sadd.s32 1, %s477_s12   ;;  %s26_s24 = sadd.s32 1, %s473_s11 }
   0xe   : > { %p298_p10 = pneg %p538_p8  ;;  %s23_s25 = ssub.s32 %s477_s12, %s548_s23 }
   0xf   : > { %p24_p12 = scmp.eq.s32.totalorder %s23_s25, 0  ;;  %p33_p13 = scmp.ne.s32.totalorder %s473_s11, %s469_s10 }
  0x10   : > { %p299_p11 = pnand %p298_p10, %p40_p1  ;;  %p34_p0 = scmp.eq.s32.totalorder %s477_s12, 0 }
  0x11   : > { %s557_s26 = scalar_select %p24_p12, %s473_s11, %s26_s24  }
  0x12   : > { %301 = dma.hbm_to_vmem [thread:$0]  (!%p299_p11), %s110_s19, 128, %s112_s22, [#allocation6]  }
  0x13   : > { %p561_p3 = por %p84_p2, %p33_p13  ;;  %p311_p5 = scmp.lt.s32.totalorder %s477_s12, 2 }
  0x14   : > { %s122_s28 = sand.u32 1, %s473_s11   ;;  %s281_s29 = sshll.u32 %s477_s12, 3 }
  0x15   : > { %p35_p7 = por %p34_p0, %p33_p13  ;;  %s280_s30 = sshll.u32 %s122_s28, 3 }
  0x16   : > { %s130_s5 = scalar_lea.hbm %s633_s0, %s281_s29  ;;  %s126_s7 = scalar_lea.vmem [#allocation2], %s280_s30 }
  0x17   : > { %s132_s6 = sshll.u32 %s130_s5, 4  ;;  %s134_s8 = sshll.u32 %s126_s7, 4  ;;  %s133_s6 = int_to_ptr.hbm [resolvable:$true] %s132_s6  ;;  %s135_s8 = int_to_ptr.vmem [resolvable:$true] %s134_s8 }
  0x18   : > { %p571_p10 = pnand %p311_p5, %p35_p7  ;;  %s123_s17 = scalar_lea.sflag [#allocation3], %s122_s28 }
  0x19   : > { %s377_s18 = sshra.s32 %s133_s6, 4  ;;  %s384_s24 = scalar_lea.hbm %s633_s0, 16  ;;  %s378_s18 = int_to_ptr.hbm [resolvable:$true] %s377_s18 }
  0x1a   : > { %s379_s19 = scalar_lea.hbm %s378_s18, 8  ;;  %p381_p11 = pneg %p571_p10 }
  0x1b   : > { %p380_p2 = scmp.ne.s32.totalorder %s378_s18, %s379_s19  ;;  %p385_p0 = scmp.lt.s32.totalorder %s378_s18, %s633_s0 }
  0x1c   : > { %p386_p5 = scmp.lt.s32.totalorder %s384_s24, %s379_s19 }
  0x1d   : > { %p382_p12 = pnand %p381_p11, %p380_p2 }
  0x1e   : > { %p387_p7 = por %p386_p5, %p385_p0 }
  0x1f   : > { %p383_p13 = pneg %p382_p12 }
  0x21   : > { %p388_p9 = pnand %p387_p7, %p383_p13 }
  0x23   : > { %391 = shalt.err (!%p388_p9)
}
  0x24   : > { %305 = dma.hbm_to_vmem [thread:$0]  (!%p571_p10), %s133_s6, 128, %s135_s8, %s123_s17  }
  0x25   : > { %143 = sbr.rel (%p538_p8) target bundleno = 60 (0x3c), region = 28  ;;  %s588_s28 = sand.u32 (!%p538_p8), 1, %s469_s10  }
  0x26   : > { %s283_s30 = sshll.u32 (!%p538_p8), %s588_s28, 3  ;;  %s146_s3 = scalar_lea.sflag (!%p538_p8), [#allocation3], %s588_s28 }
  0x27   : > { %s149_s4 = scalar_lea.vmem (!%p538_p8), [#allocation2], %s283_s30 }
  0x2a   : > { %452 = dma.done.wait (%p525_p4), %s146_s3, 128  }
  0x2b   : > { %454 = vsyncadd (%p525_p4), %s146_s3, 4294967168 }
  0x2c   : > { %456 = dma.done.wait (%p40_p1), [#allocation6], 128  }
  0x2d   : > { %458 = vsyncadd (%p40_p1), [#allocation6], 4294967168  ;;  %s287_s20 = sshll.u32 %s516_s13, 3  ;;  %s175_s8 = scalar_lea.vmem [#allocation7], %s283_s30  ;;  %v176_v0 = vld [vmem:[%s149_s4] sm:$0xff]  ;;  %v177_v1 = vld [vmem:[#allocation5] sm:$0xff] }
  0x2e   : > { %s191_s7 = scalar_lea.hbm %s635_s2, %s287_s20  ;;  %s193_s14 = sshll.u32 %s175_s8, 4  ;;  %v178_v2 = vadd.f32 %v177_v1, %v176_v0  ;;  %s194_s14 = int_to_ptr.vmem [resolvable:$true] %s193_s14 }
  0x2f   : > { %s195_s17 = sshll.u32 %s191_s7, 4  ;;  %s181_s15 = scalar_lea.sflag [#allocation4], %s588_s28  ;;  %s196_s17 = int_to_ptr.hbm [resolvable:$true] %s195_s17 }
  0x30   : > { %179 = vst [vmem:[%s175_s8] sm:$0xff] %v178_v2  ;;  %s421_s18 = sshra.s32 %s196_s17, 4  ;;  %s427_s22 = scalar_lea.hbm %s635_s2, 16  ;;  %s422_s18 = int_to_ptr.hbm [resolvable:$true] %s421_s18 }
  0x31   : > { %s423_s19 = scalar_lea.hbm %s422_s18, 8  ;;  %p428_p9 = scmp.lt.s32.totalorder %s422_s18, %s635_s2 }
  0x32   : > { %p424_p1 = scmp.ne.s32.totalorder %s422_s18, %s423_s19  ;;  %p429_p10 = scmp.lt.s32.totalorder %s427_s22, %s423_s19 }
  0x34   : > { %p425_p4 = pnand %p424_p1, %p561_p3  ;;  %p430_p2 = por %p429_p10, %p428_p9 }
  0x36   : > { %p426_p8 = pneg %p425_p4 }
  0x38   : > { %p431_p11 = pnand %p430_p2, %p426_p8 }
  0x3a   : > { %434 = shalt.err (!%p431_p11)
}
  0x3b   : > { %296 = dma.vmem_to_hbm [thread:$0]  (%p561_p3), %s194_s14, 128, %s196_s17, %s181_s15  }
  0x3c PF: > { %s207_s29 = sand.u32 1, %s465_s9   ;;  %p641_p12 = scmp.ge.s32.totalorder %s477_s12, 2 }
  0x3d   : > { %s208_s28 = scalar_lea.sflag [#allocation4], %s207_s29 }
  0x3e   : > { %p307_p13 = pnand %p641_p12, %p530_p6 }
  0x40   : > { %p308_p0 = pneg %p307_p13 }
  0x42   : > { %460 = dma.done.wait (%p308_p0), %s208_s28, 128  }
  0x43   : > { %462 = vsyncadd (%p308_p0), %s208_s28, 4294967168  ;;  %p16_p5 = scmp.ge.s32.totalorder %s548_s23, 4   ;;  %s642_s9 = smov %s469_s10 }
  0x44   : > { %s643_s10 = smov %s473_s11  ;;  %s644_s11 = smov %s557_s26 }
  0x45   : > { %s645_s12 = smov %s548_s23  ;;  %18 = sbr.rel (!%p16_p5) target bundleno = 6 (0x6), region = 77 }
  0x4a   :  { %214 = vsyncpa [#allocation3], 1 }
  0x4b   :  { %216 = vsyncpa [#allocation3 + $0x1], 1 }
  0x4c   :  { %217 = vsyncpa [#allocation6], 1 }
  0x4d   :  { %218 = vsyncpa [#allocation4], 1 }
  0x4e   :  { %220 = vsyncpa [#allocation4 + $0x1], 1 }

// kernel: gausskey_l2p_forward.11
= control target key start
LH: loop header
LB: loop body
LE: loop exit
PB: predicated region body
PF: predicated region fallthrough
CT: control target
= control target key end

     0   :  { %vm122_vm0 = vcmask 523264   ;;  %vm153_vm1 = vcmask 257024   ;;  %s286_s1 = inlined_call_operand.vmem [shape: bf16[192,32], index: 1, kind: input, shape index: {}]   ;;  %s287_s0 = inlined_call_operand.vmem [shape: bf16[8,192], index: 0, kind: input, shape index: {}]   ;;  %s288_s2 = inlined_call_operand.vmem [shape: f32[1,32], index: 2, kind: input, shape index: {}]   ;;  %s289_s3 = inlined_call_operand.vmem [shape: bf16[8,32], index: 3, kind: output, shape index: {}]  }
   0x1   :  { %v215_v0 = vld [vmem:[%s286_s1 + $0x38] sm:$0xff]  ;;  %v214_v2 = vld [vmem:[%s286_s1 + $0x30] sm:$0xff]  ;;  %v213_v4 = vld [vmem:[%s286_s1 + $0x28] sm:$0xff] }
   0x2   :  { %v219_v1 = vld [vmem:[%s286_s1 + $0x58] sm:$0xff]  ;;  %126 = vmatpush.bf16.msra.mxu0 %v215_v0  ;;  %v218_v3 = vld [vmem:[%s286_s1 + $0x50] sm:$0xff]  ;;  %v217_v5 = vld [vmem:[%s286_s1 + $0x48] sm:$0xff] }
   0x3   :  { %143 = vmatpush.bf16.msra.mxu1 %v219_v1  ;;  %v15_v6 = vld [vmem:[%s287_s0] sm:$0xff]  ;;  %v211_v10 = vld [vmem:[%s286_s1 + $0x18] sm:$0xff]  ;;  %v210_v12 = vld [vmem:[%s286_s1 + $0x10] sm:$0xff] }
   0x4   :  { %v212_v7 = vld [vmem:[%s286_s1 + $0x20] sm:$0xff]  ;;  %v46_v8 = vunpack.c.h.b16 %v15_v6  ;;  %v209_v13 = vld [vmem:[%s286_s1 + $0x8] sm:$0xff]  ;;  %v45_v14 = vunpack.c.l.b16 %v15_v6 }
   0x5   :  { %v216_v9 = vld [vmem:[%s286_s1 + $0x40] sm:$0xff] }
   0x6   :  { %127 = vmatpush.bf16.msra.mxu0 %v214_v2  ;;  %v48_v11 = vpack.c.b16 %v46_v8, %v46_v8  ;;  %v208_v15 = vld [vmem:[%s286_s1] sm:$0xff]  ;;  %v47_v16 = vpack.c.b16 %v45_v14, %v45_v14 }
   0x7   :  { %144 = vmatpush.bf16.msra.mxu1 %v218_v3  ;;  %v220_v19 = vld [vmem:[%s288_s2] ss:$0 sm:$0xff] }
   0xa   :  { %128 = vmatpush.bf16.msra.mxu0 %v213_v4 }
   0xb   :  { %145 = vmatpush.bf16.msra.mxu1 %v217_v5 }
   0xe   :  { %129 = vmatpush.bf16.msra.mxu0 %v212_v7 }
   0xf   :  { %146 = vmatpush.bf16.msra.mxu1 %v216_v9 }
  0x12   :  { %130 = vmatpush.bf16.msra.mxu0 %v211_v10  ;;  %207 = vmatmul.msk.bf16.vlgmr.msra.gmra.mxu1 %vm122_vm0, %v48_v11 }
  0x16   :  { %131 = vmatpush.bf16.msra.mxu0 %v210_v12 }
  0x1a   :  { %132 = vmatpush.bf16.msra.mxu0 %v209_v13 }
  0x1e   :  { %133 = vmatpush.bf16.msra.mxu0 %v208_v15 }
  0x21   :  { %134 = vmatmul.bf16.vlgmr.msra.gmra.mxu0 %v47_v16 }
  0x8f   :  { %v148_v17 = vpop.f32.mrf.mxu1 }
  0x97   :  { %v150_v18 = vpop.f32.mrf.mxu1 }
  0x9e   :  { %v135_v20 = vpop.f32.mrf.mxu0 }
  0x9f   :  { %v136_v21 = vadd.f32 %v220_v19, %v135_v20 }
  0xa1   :  { %v149_v22 = vadd.f32 %v148_v17, %v136_v21 }
  0xa3   :  { %v152_v23 = vpack.c.bf16 %v149_v22, %v149_v22 }
  0xa5   :  { %154 = vst.msk [vmem:[%s289_s3] sm:$0xf] %vm153_vm1, %v152_v23 }
  0xa6   :  { %v137_v24 = vpop.f32.mrf.mxu0 }

// kernel: gausskey_l2p_forward.16
= control target key start
LH: loop header
LB: loop body
LE: loop exit
PB: predicated region body
PF: predicated region fallthrough
CT: control target
= control target key end

     0   :  { %vm28_vm0 = vcmask 254976   ;;  %v370_v3 = vmov 32.0   ;;  %vm107_vm5 = vcmask 261120   ;;  %s373_s27 = smov 96   ;;  %vm283_vm6 = vcmask 7168   ;;  %s509_s0 = inlined_call_operand.vmem [shape: bf16[2,32], index: 0, kind: input, shape index: {}]   ;;  %s510_s1 = inlined_call_operand.vmem [shape: f32[1,32], index: 1, kind: input, shape index: {}]   ;;  %s511_s2 = inlined_call_operand.vmem [shape: f32[1,32], index: 2, kind: input, shape index: {}]   ;;  %s512_s3 = inlined_call_operand.vmem [shape: bf16[32,320], index: 3, kind: input, shape index: {}]   ;;  %s513_s4 = inlined_call_operand.vmem [shape: bf16[32,10], index: 4, kind: input, shape index: {}]   ;;  %s514_s5 = inlined_call_operand.vmem [shape: f32[1,10], index: 5, kind: input, shape index: {}]   ;;  %s515_s6 = inlined_call_operand.vmem [shape: f32[2,10], index: 6, kind: output, shape index: {}]  }
   0x1   :  { %v24_v0 = vld [vmem:[%s509_s0] sm:$0x1]  ;;  %366 = vrcp.f32 %v370_v3  ;;  %v329_v15 = vld [vmem:[%s512_s3 + $0x18] sm:$0xf]  ;;  %v355_v16 = vld [vmem:[%s512_s3 + $0x20] sm:$0xf0] }
   0x2   :  { %v25_v1 = vunpack.c.l.bf16 %v24_v0  ;;  %v354_v17 = vld [vmem:[%s512_s3 + $0x1c] sm:$0xf]  ;;  %v330_v18 = vor.u32 %v355_v16, %v329_v15  ;;  %v331_v19 = vld [vmem:[%s512_s3 + $0x24] sm:$0xf0]  ;;  %v337_v20 = vld [vmem:[%s512_s3 + $0x20] sm:$0xf] }
   0x3   :  { %v356_v21 = vld [vmem:[%s512_s3 + $0x28] sm:$0xf0]  ;;  %v334_v22 = vor.u32 %v354_v17, %v331_v19  ;;  %v317_v25 = vld [vmem:[%s512_s3] sm:$0xf]  ;;  %v351_v27 = vld [vmem:[%s512_s3 + $0x4] sm:$0xf] }
   0x4   :  { %v29_v2 = vsel %vm28_vm0, %v25_v1, 0.0  ;;  %v338_v23 = vor.u32 %v356_v21, %v337_v20  ;;  %v358_v24 = vld [vmem:[%s513_s4 + $0x8] sm:$0xff]  ;;  %117 = vmatpush.bf16.msra.mxu0 %v330_v18  ;;  %v319_v29 = vld [vmem:[%s512_s3 + $0xc] sm:$0xf0]  ;;  %v353_v31 = vld [vmem:[%s512_s3 + $0x10] sm:$0xf0] }
   0x5   :  { %30 = vadd.xlane.f32.xlu0 %v29_v2  ;;  %130 = vmatpush.bf16.msra.mxu1 %v334_v22  ;;  %v352_v26 = vld [vmem:[%s512_s3 + $0x8] sm:$0xf0]  ;;  %v325_v30 = vld [vmem:[%s512_s3 + $0x8] sm:$0xf]  ;;  %v322_v32 = vor.u32 %v351_v27, %v319_v29  ;;  %v357_v34 = vld [vmem:[%s513_s4] sm:$0xff]  ;;  %vm285_vm7 = vcmask 15360  }
   0x6   :  { %143 = vmatpush.bf16.msra.mxu2 %v338_v23  ;;  %172 = vmatpush.bf16.msra.mxu3 %v358_v24  ;;  %v318_v28 = vor.u32 %v352_v26, %v317_v25  ;;  %v326_v33 = vor.u32 %v353_v31, %v325_v30  ;;  %v363_v44 = vld [vmem:[%s510_s1] ss:$0 sm:$0xff]  ;;  %s371_s1 = smov 32   ;;  %vm287_vm8 = vcmask 23552   ;;  %vm289_vm9 = vcmask 31744  }
   0x7   :  { %v367_v4 = vpop.eup %366  ;;  %v364_v46 = vld [vmem:[%s511_s2] ss:$0 sm:$0xff]  ;;  %s372_s2 = smov 64   ;;  %vm291_vm10 = vcmask 39936   ;;  %vm293_vm11 = vcmask 48128   ;;  %vm295_vm12 = vcmask 56320  }
   0x8   :  { %v33_v5 = vmul.f32 32.0, %v367_v4  ;;  %vm37_vm1 = vweird.f32 %v367_v4  ;;  %118 = vmatpush.bf16.msra.mxu0 %v318_v28  ;;  %vm297_vm13 = vcmask 64512   ;;  %vm299_vm14 = vcmask 72704  }
   0x9   :  { %131 = vmatpush.bf16.msra.mxu1 %v322_v32  ;;  %vm309_vm15 = vcmask 74752  }
   0xa   :  { %v34_v6 = vsub.f32 1.0, %v33_v5  ;;  %144 = vmatpush.bf16.msra.mxu2 %v326_v33  ;;  %173 = vmatpush.bf16.msra.mxu3 %v357_v34 }
   0xc   :  { %v35_v7 = vmul.f32 %v367_v4, %v34_v6 }
   0xe   :  { %v36_v8 = vadd.f32 %v367_v4, %v35_v7 }
  0x10   :  { %v38_v9 = vsel %vm37_vm1, %v367_v4, %v36_v8 }
  0x78   :  { %v31_v10 = vpop.xlane.xlu0 %30 }
  0x79   :  { %v39_v11 = vmul.f32 %v38_v9, %v31_v10 }
  0x7b   :  { %v40_v12 = vsub.f32 %v25_v1, %v39_v11 }
  0x7d   :  { %v41_v13 = vmul.f32 %v40_v12, %v40_v12 }
  0x7f   :  { %v42_v14 = vsel %vm28_vm0, %v41_v13, 0.0 }
  0x80   :  { %43 = vadd.xlane.f32.xlu0 %v42_v14 }
  0xf3   :  { %v44_v35 = vpop.xlane.xlu0 %43 }
  0xf4   :  { %v45_v36 = vmul.f32 %v44_v35, %v38_v9 }
  0xf6   :  { %v46_v37 = vadd.f32 1e-06, %v45_v36 }
  0xf8   :  { %368 = vrsqrt.f32 %v46_v37  ;;  %vm53_vm3 = vweird.f32 %v46_v37 }
  0xfe   :  { %v369_v38 = vpop.eup %368 }
  0xff   :  { %v48_v39 = vmul.f32 %v369_v38, %v46_v37  ;;  %vm54_vm2 = vweird.f32 %v369_v38 }
 0x100   :  { %vm55_vm4 = vmor %vm53_vm3, %vm54_vm2 }
 0x101   :  { %v49_v40 = vmul.f32 %v369_v38, %v48_v39 }
 0x103   :  { %v50_v41 = vmul.f32 0.5, %v49_v40 }
 0x105   :  { %v51_v42 = vsub.f32 1.5, %v50_v41 }
 0x107   :  { %v52_v43 = vmul.f32 %v369_v38, %v51_v42 }
 0x109   :  { %v56_v45 = vsel %vm55_vm4, %v369_v38, %v52_v43 }
 0x10a   :  { %v57_v47 = vmul.f32 %v56_v45, %v40_v12 }
 0x10c   :  { %v61_v48 = vmul.f32 %v363_v44, %v57_v47 }
 0x10e   :  { %v462_v49 = vadd.f32 %v364_v46, %v61_v48 }
 0x110   :  { %184 = vst [vmem:[#allocation1] ss:$4 sm:$0xff] %v462_v49  ;;  %v66_v50 = vpack.c.bf16 %v462_v49, %v462_v49 }
 0x112   :  { %339 = vmatmul.msk.bf16.vlgmr.msra.gmra.mxu0 %vm107_vm5, %v66_v50  ;;  %340 = vmatmul.msk.bf16.vlgmr.msra.gmra.mxu1 %vm107_vm5, %v66_v50 }
 0x113   :  { %341 = vmatmul.msk.bf16.vlgmr.msra.gmra.mxu2 %vm107_vm5, %v66_v50  ;;  %350 = vmatmul.msk.bf16.vlgmr.msra.gmra.mxu3 %vm107_vm5, %v66_v50 }
 0x117   :  { %v185_v51 = vld.sshfl [vmem:[#allocation1] sm:$0xff pattern:$0x73625140] }
 0x118   :  { %186 = vrot.lane.b32.xlu1 %v185_v51, %s371_s1  ;;  %197 = vst [vmem:[#allocation1] ss:$4 sm:$0xff] %v462_v49 }
 0x11f   :  { %v198_v52 = vld.sshfl [vmem:[#allocation1] sm:$0xff pattern:$0x73625140] }
 0x120   :  { %199 = vrot.lane.b32.xlu0 %v198_v52, %s372_s2  ;;  %210 = vst [vmem:[#allocation1] ss:$4 sm:$0xff] %v462_v49 }
 0x127   :  { %v211_v53 = vld.sshfl [vmem:[#allocation1] sm:$0xff pattern:$0x73625140] }
 0x128   :  { %212 = vrot.lane.b32.xlu1 %v211_v53, %s373_s27  ;;  %227 = vst [vmem:[#allocation1] ss:$4 sm:$0xff] %v462_v49  ;;  %v365_v53 = vld [vmem:[%s514_s5] ss:$0 sm:$0xff] }
 0x12f   :  { %v228_v54 = vld.sshfl [vmem:[#allocation1] sm:$0xff pattern:$0x73625140] }
 0x130   :  { %229 = vrot.lane.b32.xlu1 %v228_v54, %s371_s1  ;;  %240 = vst [vmem:[#allocation1] ss:$4 sm:$0xff] %v462_v49 }
 0x137   :  { %v241_v55 = vld.sshfl [vmem:[#allocation1] sm:$0xff pattern:$0x73625140] }
 0x138   :  { %242 = vrot.lane.b32.xlu2 %v241_v55, %s372_s2  ;;  %253 = vst [vmem:[#allocation1] ss:$4 sm:$0xff] %v462_v49 }
 0x13f   :  { %v254_v56 = vld.sshfl [vmem:[#allocation1] sm:$0xff pattern:$0x73625140] }
 0x140   :  { %255 = vrot.lane.b32.xlu1 %v254_v56, %s373_s27  ;;  %270 = vst [vmem:[#allocation1] ss:$4 sm:$0xff] %v462_v49 }
 0x147   :  { %v271_v57 = vld.sshfl [vmem:[#allocation1] sm:$0xff pattern:$0x73625140] }
 0x148   :  { %272 = vrot.lane.b32.xlu1 %v271_v57, %s371_s1 }
 0x18a   :  { %v187_v58 = vpop.permute.xlu1 %186 }
 0x18f   :  { %v120_v59 = vpop.f32.mrf.mxu0  ;;  %v133_v60 = vpop.f32.mrf.mxu1 }
 0x190   :  { %v189_v61 = vmul.f32 %v187_v58, %v120_v59  ;;  %v179_v62 = vmul.f32 %v120_v59, %v462_v49  ;;  %v223_v25 = vmul.f32 %v133_v60, %v462_v49 }
 0x192   :  { %191 = vrot.lane.b32.xlu2 %v189_v61, %s373_s27  ;;  %v180_v63 = vsel %vm28_vm0, %v179_v62, 0.0  ;;  %v200_v9 = vpop.permute.xlu0 %199  ;;  %v243_v12 = vpop.permute.xlu2 %242  ;;  %v224_v27 = vsel %vm28_vm0, %v223_v25, 0.0 }
 0x193   :  { %181 = vadd.xlane.f32.xlu1 %v180_v63  ;;  %v202_v10 = vmul.f32 %v200_v9, %v120_v59  ;;  %v245_v13 = vmul.f32 %v243_v12, %v133_v60 }
 0x196   :  { %v146_v0 = vpop.f32.mrf.mxu2  ;;  %v483_v1 = vpop.f32.mrf.mxu3 }
 0x197   :  { %v122_v2 = vpop.f32.mrf.mxu0  ;;  %v135_v3 = vpop.f32.mrf.mxu1  ;;  %v266_v29 = vmul.f32 %v146_v0, %v462_v49  ;;  %v301_v52 = vmul.f32 2.0, %v483_v1 }
 0x199   :  { %v267_v30 = vsel %vm28_vm0, %v266_v29, 0.0 }
 0x19a   :  { %v213_v4 = vpop.permute.xlu1 %212 }
 0x19b   :  { %v215_v11 = vmul.f32 %v213_v4, %v120_v59 }
 0x19e   :  { %v148_v5 = vpop.f32.mrf.mxu2  ;;  %v177_v6 = vpop.f32.mrf.mxu3 }
 0x1a2   :  { %v230_v7 = vpop.permute.xlu1 %229 }
 0x1a3   :  { %v232_v8 = vmul.f32 %v230_v7, %v133_v60 }
 0x1a5   :  { %234 = vrot.lane.b32.xlu0 %v232_v8, %s373_s27 }
 0x1ac   :  { %204 = vrot.lane.b32.xlu1 %v202_v10, %s372_s2 }
 0x1b2   :  { %v256_v14 = vpop.permute.xlu1 %255 }
 0x1b3   :  { %v258_v15 = vmul.f32 %v256_v14, %v133_v60 }
 0x1b4   :  { %217 = vrot.lane.b32.xlu1 %v215_v11, %s371_s1 }
 0x1ba   :  { %v273_v16 = vpop.permute.xlu1 %272 }
 0x1bb   :  { %v275_v17 = vmul.f32 %v273_v16, %v146_v0 }
 0x1bc   :  { %247 = vrot.lane.b32.xlu1 %v245_v13, %s372_s2 }
 0x1c4   :  { %260 = vrot.lane.b32.xlu1 %v258_v15, %s371_s1 }
 0x1cc   :  { %277 = vrot.lane.b32.xlu1 %v275_v17, %s373_s27 }
 0x1ec   :  { %v192_v18 = vpop.permute.xlu2 %191 }
 0x1ed   :  { %v194_v19 = vsel %vm28_vm0, %v192_v18, 0.0 }
 0x1ee   :  { %195 = vadd.xlane.f32.xlu2 %v194_v19 }
 0x206   :  { %v182_v20 = vpop.xlane.xlu1 %181 }
 0x217   :  { %v235_v21 = vpop.permute.xlu0 %234 }
 0x218   :  { %v237_v22 = vsel %vm28_vm0, %v235_v21, 0.0 }
 0x219   :  { %238 = vadd.xlane.f32.xlu1 %v237_v22 }
 0x21e   :  { %v205_v23 = vpop.permute.xlu1 %204 }
 0x21f   :  { %v207_v24 = vsel %vm28_vm0, %v205_v23, 0.0 }
 0x220   :  { %208 = vadd.xlane.f32.xlu0 %v207_v24 }
 0x226   :  { %v218_v26 = vpop.permute.xlu1 %217 }
 0x227   :  { %v220_v28 = vsel %vm28_vm0, %v218_v26, 0.0 }
 0x228   :  { %225 = vadd.xlane.f32.xlu0 %v224_v27  ;;  %221 = vadd.xlane.f32.xlu2 %v220_v28 }
 0x22e   :  { %v248_v31 = vpop.permute.xlu1 %247 }
 0x22f   :  { %v250_v32 = vsel %vm28_vm0, %v248_v31, 0.0 }
 0x230   :  { %268 = vadd.xlane.f32.xlu2 %v267_v30 }
 0x236   :  { %v261_v33 = vpop.permute.xlu1 %260 }
 0x237   :  { %v263_v34 = vsel %vm28_vm0, %v261_v33, 0.0 }
 0x238   :  { %251 = vadd.xlane.f32.xlu2 %v250_v32 }
 0x23e   :  { %v278_v35 = vpop.permute.xlu1 %277 }
 0x23f   :  { %v280_v36 = vsel %vm28_vm0, %v278_v35, 0.0 }
 0x240   :  { %264 = vadd.xlane.f32.xlu2 %v263_v34 }
 0x248   :  { %281 = vadd.xlane.f32.xlu2 %v280_v36 }
 0x261   :  { %v196_v37 = vpop.xlane.xlu2 %195 }
 0x262   :  { %v284_v42 = vsel %vm283_vm6, %v182_v20, %v196_v37 }
 0x28c   :  { %v239_v48 = vpop.xlane.xlu1 %238 }
 0x293   :  { %v209_v40 = vpop.xlane.xlu0 %208 }
 0x294   :  { %v286_v43 = vsel %vm285_vm7, %v284_v42, %v209_v40 }
 0x29b   :  { %v222_v38 = vpop.xlane.xlu2 %221  ;;  %v226_v44 = vpop.xlane.xlu0 %225 }
 0x29c   :  { %v288_v45 = vsel %vm287_vm8, %v286_v43, %v222_v38 }
 0x29d   :  { %v290_v46 = vsel %vm289_vm9, %v288_v45, %v226_v44 }
 0x29e   :  { %v292_v49 = vsel %vm291_vm10, %v290_v46, %v239_v48 }
 0x2a3   :  { %v269_v39 = vpop.xlane.xlu2 %268 }
 0x2ab   :  { %v252_v41 = vpop.xlane.xlu2 %251 }
 0x2ac   :  { %v294_v50 = vsel %vm293_vm11, %v292_v49, %v252_v41 }
 0x2b3   :  { %v265_v47 = vpop.xlane.xlu2 %264 }
 0x2b4   :  { %v296_v51 = vsel %vm295_vm12, %v294_v50, %v265_v47 }
 0x2b5   :  { %v298_v55 = vsel %vm297_vm13, %v296_v51, %v269_v39 }
 0x2bb   :  { %v282_v54 = vpop.xlane.xlu2 %281 }
 0x2bc   :  { %v300_v56 = vsel %vm299_vm14, %v298_v55, %v282_v54 }
 0x2bd   :  { %v302_v57 = vsub.f32 %v300_v56, %v301_v52 }
 0x2bf   :  { %v307_v58 = vadd.f32 %v365_v53, %v302_v57 }
 0x2c1   :  { %v308_v59 = vmul.f32 -0.5, %v307_v58 }
 0x2c3   :  { %310 = vst.msk [vmem:[%s515_s6] sm:$0x3] %vm309_vm15, %v308_v59 }

// kernel: gausskey_l2p_forward.13
= control target key start
LH: loop header
LB: loop body
LE: loop exit
PB: predicated region body
PF: predicated region fallthrough
CT: control target
= control target key end

     0   :  { %vm93_vm0 = vcmask 261120   ;;  %v1916_v18 = vmov 32.0   ;;  %s3391_s0 = inlined_call_operand.vmem [shape: bf16[256,32], index: 0, kind: input, shape index: {}]   ;;  %s3392_s1 = inlined_call_operand.vmem [shape: f32[1,32], index: 1, kind: input, shape index: {}]   ;;  %s3393_s2 = inlined_call_operand.vmem [shape: f32[1,32], index: 2, kind: input, shape index: {}]   ;;  %s3394_s3 = inlined_call_operand.vmem [shape: bf16[32,64], index: 3, kind: input, shape index: {}]   ;;  %s3395_s4 = inlined_call_operand.vmem [shape: f32[1,64], index: 4, kind: input, shape index: {}]   ;;  %s3396_s5 = inlined_call_operand.vmem [shape: bf16[64,32], index: 5, kind: input, shape index: {}]   ;;  %s3397_s6 = inlined_call_operand.vmem [shape: f32[1,32], index: 6, kind: input, shape index: {}]   ;;  %s3398_s7 = inlined_call_operand.vmem [shape: bf16[256,32], index: 7, kind: output, shape index: {}]  }
   0x1   :  { %v1753_v0 = vld [vmem:[%s3391_s0 + $0x8] sm:$0xff]   ;;  %v1690_v1 = vld [vmem:[%s3391_s0] sm:$0xff]   ;;  %v1754_v2 = vld [vmem:[%s3391_s0 + $0x10] sm:$0xff]   ;;  %1779 = vrcp.f32 %v1916_v18 }
   0x2   :  { %v1966_v3 = vunpack.c.l.bf16 %v1753_v0  ;;  %v1968_v4 = vunpack.c.l.bf16 %v1690_v1  ;;  %v1970_v5 = vunpack.c.l.bf16 %v1754_v2  ;;  %v1978_v9 = vunpack.c.h.bf16 %v1753_v0  ;;  %v1755_v15 = vld [vmem:[%s3391_s0 + $0x18] sm:$0xff]   ;;  %v1756_v47 = vld [vmem:[%s3391_s0 + $0x20] sm:$0xff]   ;;  %v1757_v59 = vld [vmem:[%s3391_s0 + $0x28] sm:$0xff]  }
   0x3   :  { %v1980_v10 = vunpack.c.h.bf16 %v1690_v1  ;;  %v1982_v11 = vunpack.c.h.bf16 %v1754_v2  ;;  %v1993_v16 = vunpack.c.l.bf16 %v1755_v15  ;;  %v2009_v37 = vunpack.c.h.bf16 %v1755_v15 }
   0x4   :  { %v100_v6 = vsel %vm93_vm0, %v1966_v3, 0.0  ;;  %v94_v7 = vsel %vm93_vm0, %v1968_v4, 0.0  ;;  %v106_v8 = vsel %vm93_vm0, %v1970_v5, 0.0  ;;  %v103_v12 = vsel %vm93_vm0, %v1978_v9, 0.0 }
   0x5   :  { %101 = vadd.xlane.f32.xlu1 %v100_v6  ;;  %95 = vadd.xlane.f32.xlu0 %v94_v7  ;;  %v97_v13 = vsel %vm93_vm0, %v1980_v10, 0.0  ;;  %v109_v14 = vsel %vm93_vm0, %v1982_v11, 0.0  ;;  %v112_v17 = vsel %vm93_vm0, %v1993_v16, 0.0  ;;  %v115_v44 = vsel %vm93_vm0, %v2009_v37, 0.0  ;;  %v1758_v7 = vld [vmem:[%s3391_s0 + $0x30] sm:$0xff]  }
   0x6   :  { %107 = vadd.xlane.f32.xlu2 %v106_v8  ;;  %v2038_v52 = vunpack.c.l.bf16 %v1756_v47  ;;  %v2053_v61 = vunpack.c.h.bf16 %v1757_v59  ;;  %v2057_v63 = vunpack.c.h.bf16 %v1756_v47  ;;  %v2081_v18 = vunpack.c.h.bf16 %v1758_v7 }
   0x7   :  { %v1780_v19 = vpop.eup %1779 }
   0x8   :  { %v191_v20 = vmul.f32 32.0, %v1780_v19  ;;  %vm195_vm1 = vweird.f32 %v1780_v19  ;;  %v118_v56 = vsel %vm93_vm0, %v2038_v52, 0.0  ;;  %v127_v1 = vsel %vm93_vm0, %v2053_v61, 0.0  ;;  %3413 = vst [vmem:[#allocation2_spill] sm:$0xff] %v2081_v18 }
   0x9   :  { %v121_v6 = vsel %vm93_vm0, %v2057_v63, 0.0 }
   0xa   :  { %v192_v21 = vsub.f32 1.0, %v191_v20  ;;  %v2088_v20 = vld [vmem:[%s3391_s0 + $0x38] sm:$0xff]  }
   0xc   :  { %v193_v22 = vmul.f32 %v1780_v19, %v192_v21  ;;  %v2091_v21 = vunpack.c.l.bf16 %v2088_v20 }
   0xd   :  { %104 = vadd.xlane.f32.xlu1 %v103_v12  ;;  %98 = vadd.xlane.f32.xlu0 %v97_v13  ;;  %v2072_v12 = vunpack.c.l.bf16 %v1758_v7  ;;  %v2074_v13 = vunpack.c.l.bf16 %v1757_v59 }
   0xe   :  { %110 = vadd.xlane.f32.xlu2 %v109_v14  ;;  %v194_v23 = vadd.f32 %v1780_v19, %v193_v22  ;;  %3414 = vst [vmem:[#allocation3_spill] sm:$0xff] %v2091_v21  ;;  %v136_v22 = vsel %vm93_vm0, %v2091_v21, 0.0 }
   0xf   :  { %v130_v15 = vsel %vm93_vm0, %v2072_v12, 0.0 }
  0x10   :  { %v1997_v24 = vsel %vm195_vm1, %v1780_v19, %v194_v23  ;;  %v133_v19 = vsel %vm93_vm0, %v2081_v18, 0.0 }
  0x16   :  { %113 = vadd.xlane.f32.xlu2 %v112_v17  ;;  %v124_v17 = vsel %vm93_vm0, %v2074_v13, 0.0 }
  0x78   :  { %v102_v25 = vpop.xlane.xlu1 %101  ;;  %v96_v26 = vpop.xlane.xlu0 %95 }
  0x79   :  { %v197_v27 = vmul.f32 %v1997_v24, %v96_v26  ;;  %v108_v28 = vpop.xlane.xlu2 %107  ;;  %v199_v38 = vmul.f32 %v1997_v24, %v102_v25  ;;  %v1684_v25 = vld [vmem:[%s3394_s3 + $0x8] sm:$0xff] }
  0x7a   :  { %v201_v36 = vmul.f32 %v1997_v24, %v108_v28  ;;  %965 = vmatpush.bf16.msra.mxu0 %v1684_v25  ;;  %1768 = vmatpush.bf16.msra.mxu3 %v1684_v25  ;;  %v1683_v28 = vld [vmem:[%s3394_s3] sm:$0xff] }
  0x7b   :  { %v2001_v29 = vsub.f32 %v1968_v4, %v197_v27  ;;  %v2028_v46 = vsub.f32 %v1966_v3, %v199_v38 }
  0x7c   :  { %v2019_v42 = vsub.f32 %v1970_v5, %v201_v36 }
  0x7d   :  { %v261_v30 = vmul.f32 %v2001_v29, %v2001_v29  ;;  %v263_v53 = vmul.f32 %v2028_v46, %v2028_v46 }
  0x7e   :  { %v265_v51 = vmul.f32 %v2019_v42, %v2019_v42  ;;  %966 = vmatpush.bf16.msra.mxu0 %v1683_v28  ;;  %1769 = vmatpush.bf16.msra.mxu3 %v1683_v28 }
  0x7f   :  { %v293_v31 = vsel %vm93_vm0, %v261_v30, 0.0  ;;  %v299_v57 = vsel %vm93_vm0, %v263_v53, 0.0 }
  0x80   :  { %v105_v32 = vpop.xlane.xlu1 %104  ;;  %294 = vadd.xlane.f32.xlu0 %v293_v31  ;;  %v99_v33 = vpop.xlane.xlu0 %98  ;;  %v305_v55 = vsel %vm93_vm0, %v265_v51, 0.0 }
  0x81   :  { %v200_v34 = vmul.f32 %v1997_v24, %v105_v32  ;;  %v198_v35 = vmul.f32 %v1997_v24, %v99_v33  ;;  %v111_v41 = vpop.xlane.xlu2 %110 }
  0x82   :  { %v202_v50 = vmul.f32 %v1997_v24, %v111_v41 }
  0x83   :  { %v2013_v39 = vsub.f32 %v1978_v9, %v200_v34  ;;  %v2016_v40 = vsub.f32 %v1980_v10, %v198_v35 }
  0x84   :  { %v2043_v54 = vsub.f32 %v1982_v11, %v202_v50 }
  0x85   :  { %v264_v43 = vmul.f32 %v2013_v39, %v2013_v39  ;;  %v262_v45 = vmul.f32 %v2016_v40, %v2016_v40 }
  0x86   :  { %v266_v62 = vmul.f32 %v2043_v54, %v2043_v54 }
  0x87   :  { %v302_v48 = vsel %vm93_vm0, %v264_v43, 0.0  ;;  %v296_v49 = vsel %vm93_vm0, %v262_v45, 0.0 }
  0x88   :  { %303 = vadd.xlane.f32.xlu2 %v302_v48  ;;  %116 = vadd.xlane.f32.xlu0 %v115_v44  ;;  %v308_v2 = vsel %vm93_vm0, %v266_v62, 0.0 }
  0x89   :  { %297 = vadd.xlane.f32.xlu1 %v296_v49  ;;  %v114_v58 = vpop.xlane.xlu2 %113 }
  0x8a   :  { %v203_v60 = vmul.f32 %v1997_v24, %v114_v58 }
  0x8c   :  { %v2060_v0 = vsub.f32 %v1993_v16, %v203_v60 }
  0x8e   :  { %v267_v8 = vmul.f32 %v2060_v0, %v2060_v0 }
  0x90   :  { %306 = vadd.xlane.f32.xlu2 %v305_v55  ;;  %119 = vadd.xlane.f32.xlu0 %v118_v56  ;;  %v311_v14 = vsel %vm93_vm0, %v267_v8, 0.0 }
  0x91   :  { %300 = vadd.xlane.f32.xlu1 %v299_v57 }
  0x98   :  { %128 = vadd.xlane.f32.xlu2 %v127_v1  ;;  %309 = vadd.xlane.f32.xlu0 %v308_v2 }
  0x99   :  { %122 = vadd.xlane.f32.xlu1 %v121_v6 }
  0xa0   :  { %312 = vadd.xlane.f32.xlu0 %v311_v14  ;;  %131 = vadd.xlane.f32.xlu2 %v130_v15 }
  0xa1   :  { %125 = vadd.xlane.f32.xlu1 %v124_v17 }
  0xa8   :  { %134 = vadd.xlane.f32.xlu0 %v133_v19 }
  0xb0   :  { %137 = vadd.xlane.f32.xlu0 %v136_v22 }
  0xf3   :  { %v295_v23 = vpop.xlane.xlu0 %294 }
  0xf4   :  { %v389_v26 = vmul.f32 %v295_v23, %v1997_v24 }
  0xf6   :  { %v421_v27 = vadd.f32 1e-06, %v389_v26 }
  0xf8   :  { %1781 = vrsqrt.f32 %v421_v27  ;;  %vm459_vm3 = vweird.f32 %v421_v27 }
  0xfb   :  { %v304_v30 = vpop.xlane.xlu2 %303  ;;  %v117_v31 = vpop.xlane.xlu0 %116 }
  0xfc   :  { %v392_v32 = vmul.f32 %v304_v30, %v1997_v24  ;;  %v298_v33 = vpop.xlane.xlu1 %297  ;;  %v204_v34 = vmul.f32 %v1997_v24, %v117_v31 }
  0xfd   :  { %v390_v35 = vmul.f32 %v298_v33, %v1997_v24  ;;  %v2143_v33 = vunpack.c.h.bf16 %v2088_v20 }
  0xfe   :  { %v1782_v36 = vpop.eup %1781  ;;  %v2105_v38 = vadd.f32 1e-06, %v392_v32  ;;  %v2108_v41 = vsub.f32 %v2009_v37, %v204_v34 }
  0xff   :  { %v454_v43 = vmul.f32 %v1782_v36, %v421_v27  ;;  %v422_v44 = vadd.f32 1e-06, %v390_v35  ;;  %vm460_vm2 = vweird.f32 %v1782_v36  ;;  %3417 = vst [vmem:[#allocation4_spill] sm:$0xff] %v2143_v33 }
 0x100   :  { %1783 = vrsqrt.f32 %v2105_v38  ;;  %v268_v45 = vmul.f32 %v2108_v41, %v2108_v41  ;;  %vm2131_vm4 = vmor %vm459_vm3, %vm460_vm2  ;;  %vm489_vm8 = vweird.f32 %v2105_v38 }
 0x101   :  { %v455_v47 = vmul.f32 %v1782_v36, %v454_v43  ;;  %1785 = vrsqrt.f32 %v422_v44  ;;  %vm469_vm6 = vweird.f32 %v422_v44 }
 0x102   :  { %v314_v48 = vsel %vm93_vm0, %v268_v45, 0.0 }
 0x103   :  { %v456_v49 = vmul.f32 0.5, %v455_v47  ;;  %v307_v50 = vpop.xlane.xlu2 %306  ;;  %315 = vadd.xlane.f32.xlu1 %v314_v48  ;;  %v120_v51 = vpop.xlane.xlu0 %119 }
 0x104   :  { %v301_v53 = vpop.xlane.xlu1 %300  ;;  %v205_v55 = vmul.f32 %v1997_v24, %v120_v51  ;;  %v393_v62 = vmul.f32 %v307_v50, %v1997_v24 }
 0x105   :  { %v457_v56 = vsub.f32 1.5, %v456_v49  ;;  %v391_v57 = vmul.f32 %v301_v53, %v1997_v24  ;;  %v2163_v49 = vld [vmem:[%s3392_s1] ss:$0 sm:$0xff] }
 0x106   :  { %v2116_v58 = vpop.eup %1783  ;;  %v2119_v59 = vsub.f32 %v2038_v52, %v205_v55  ;;  %v2129_v15 = vadd.f32 1e-06, %v393_v62 }
 0x107   :  { %v1786_v60 = vpop.eup %1785  ;;  %v2122_v1 = vadd.f32 1e-06, %v391_v57  ;;  %v458_v6 = vmul.f32 %v1782_v36, %v457_v56  ;;  %v484_v7 = vmul.f32 %v2116_v58, %v2105_v38  ;;  %v139_v56 = vsel %vm93_vm0, %v2143_v33, 0.0 }
 0x108   :  { %v464_v2 = vmul.f32 %v1786_v60, %v422_v44  ;;  %v269_v14 = vmul.f32 %v2119_v59, %v2119_v59  ;;  %vm470_vm5 = vweird.f32 %v1786_v60  ;;  %vm490_vm9 = vweird.f32 %v2116_v58 }
 0x109   :  { %1787 = vrsqrt.f32 %v2122_v1  ;;  %v462_v31 = vsel %vm2131_vm4, %v1782_v36, %v458_v6  ;;  %v485_v27 = vmul.f32 %v2116_v58, %v484_v7  ;;  %vm471_vm7 = vmor %vm469_vm6, %vm470_vm5  ;;  %v1760_v6 = vld [vmem:[%s3391_s0 + $0x40] sm:$0xff]   ;;  %vm479_vm12 = vweird.f32 %v2122_v1 }
 0x10a   :  { %v465_v8 = vmul.f32 %v1786_v60, %v464_v2  ;;  %v317_v28 = vsel %vm93_vm0, %v269_v14, 0.0  ;;  %1789 = vrsqrt.f32 %v2129_v15  ;;  %v773_v47 = vmul.f32 %v462_v31, %v2001_v29  ;;  %v1761_v29 = vld [vmem:[%s3391_s0 + $0x48] sm:$0xff]   ;;  %vm2213_vm11 = vmor %vm489_vm8, %vm490_vm9 }
 0x10b   :  { %v129_v17 = vpop.xlane.xlu2 %128  ;;  %v310_v19 = vpop.xlane.xlu0 %309  ;;  %318 = vadd.xlane.f32.xlu1 %v317_v28  ;;  %v486_v50 = vmul.f32 0.5, %v485_v27  ;;  %vm499_vm1 = vweird.f32 %v2129_v15 }
 0x10c   :  { %v466_v23 = vmul.f32 0.5, %v465_v8  ;;  %v208_v25 = vmul.f32 %v1997_v24, %v129_v17  ;;  %v123_v26 = vpop.xlane.xlu1 %122  ;;  %v394_v30 = vmul.f32 %v310_v19, %v1997_v24  ;;  %v808_v14 = vmul.f32 %v2163_v49, %v773_v47  ;;  %v2187_v17 = vld [vmem:[%s3393_s2] ss:$0 sm:$0xff] }
 0x10d   :  { %v206_v32 = vmul.f32 %v1997_v24, %v123_v26  ;;  %v487_v22 = vsub.f32 1.5, %v486_v50 }
 0x10e   :  { %v467_v34 = vsub.f32 1.5, %v466_v23  ;;  %v2146_v35 = vsub.f32 %v2053_v61, %v208_v25  ;;  %v2148_v43 = vadd.f32 1e-06, %v394_v30  ;;  %v2199_v30 = vunpack.c.l.bf16 %v1760_v6 }
 0x10f   :  { %v2150_v45 = vpop.eup %1787  ;;  %v2154_v36 = vsub.f32 %v2057_v63, %v206_v32 }
 0x110   :  { %v468_v48 = vmul.f32 %v1786_v60, %v467_v34  ;;  %v474_v20 = vmul.f32 %v2150_v45, %v2122_v1  ;;  %1791 = vrsqrt.f32 %v2148_v43  ;;  %v272_v44 = vmul.f32 %v2146_v35, %v2146_v35  ;;  %v2191_v19 = vpop.eup %1789  ;;  %3419 = vst [vmem:[#allocation6_spill] sm:$0xff] %v2199_v30 }
 0x111   :  { %v270_v55 = vmul.f32 %v2154_v36, %v2154_v36  ;;  %vm480_vm10 = vweird.f32 %v2150_v45  ;;  %v843_v34 = vadd.f32 %v2187_v17, %v808_v14  ;;  %v494_v50 = vmul.f32 %v2191_v19, %v2129_v15 }
 0x112   :  { %v472_v51 = vsel %vm471_vm7, %v1786_v60, %v468_v48  ;;  %v475_v53 = vmul.f32 %v2150_v45, %v474_v20  ;;  %v326_v62 = vsel %vm93_vm0, %v272_v44, 0.0  ;;  %v488_v48 = vmul.f32 %v2116_v58, %v487_v22  ;;  %vm2222_vm13 = vmor %vm479_vm12, %vm480_vm10 }
 0x113   :  { %v774_v57 = vmul.f32 %v472_v51, %v2016_v40  ;;  %v2177_v2 = vpop.xlane.xlu0 %312  ;;  %327 = vadd.xlane.f32.xlu0 %v326_v62  ;;  %v320_v60 = vsel %vm93_vm0, %v270_v55, 0.0  ;;  %v2189_v40 = vunpack.c.l.bf16 %v1761_v29  ;;  %140 = vadd.xlane.f32.xlu1 %v139_v56  ;;  %v142_v55 = vsel %vm93_vm0, %v2199_v30, 0.0 }
 0x114   :  { %v476_v7 = vmul.f32 0.5, %v475_v53  ;;  %v126_v8 = vpop.xlane.xlu1 %125  ;;  %321 = vadd.xlane.f32.xlu2 %v320_v60  ;;  %v495_v14 = vmul.f32 %v2191_v19, %v494_v50  ;;  %vm509_vm14 = vweird.f32 %v2148_v43  ;;  %vm500_vm2 = vweird.f32 %v2191_v19 }
 0x115   :  { %3418 = vst [vmem:[#allocation5_spill] sm:$0xff] %v2189_v40  ;;  %v207_v23 = vmul.f32 %v1997_v24, %v126_v8  ;;  %v809_v25 = vmul.f32 %v2163_v49, %v774_v57  ;;  %v148_v38 = vsel %vm93_vm0, %v2189_v40, 0.0  ;;  %v492_v8 = vsel %vm2213_vm11, %v2116_v58, %v488_v48  ;;  %vm501_vm4 = vmor %vm499_vm1, %vm500_vm2 }
 0x116   :  { %v2195_v26 = vpop.eup %1791  ;;  %v477_v28 = vsub.f32 1.5, %v476_v7  ;;  %v132_v7 = vpop.xlane.xlu2 %131 }
 0x117   :  { %v504_v31 = vmul.f32 %v2195_v26, %v2148_v43  ;;  %v2205_v27 = vsub.f32 %v2074_v13, %v207_v23  ;;  %v844_v47 = vadd.f32 %v2187_v17, %v809_v25  ;;  %v209_v25 = vmul.f32 %v1997_v24, %v132_v7 }
 0x118   :  { %v478_v32 = vmul.f32 %v2150_v45, %v477_v28  ;;  %v2246_v28 = vunpack.c.h.bf16 %v1761_v29  ;;  %vm510_vm15 = vweird.f32 %v2195_v26 }
 0x119   :  { %v271_v44 = vmul.f32 %v2205_v27, %v2205_v27  ;;  %v875_v53 = vpack.c.bf16 %v844_v47, %v843_v34  ;;  %v505_v57 = vmul.f32 %v2195_v26, %v504_v31  ;;  %v496_v34 = vmul.f32 0.5, %v495_v14  ;;  %vm2278_vm3 = vmor %vm509_vm14, %vm510_vm15 }
 0x11a   :  { %v482_v56 = vsel %vm2222_vm13, %v2150_v45, %v478_v32  ;;  %v2239_v45 = vunpack.c.h.bf16 %v1760_v6  ;;  %3425 = vst [vmem:[#allocation8_spill] sm:$0xff] %v2246_v28  ;;  %v776_v32 = vmul.f32 %v492_v8, %v2013_v39  ;;  %v2254_v47 = vsub.f32 %v2072_v12, %v209_v25  ;;  %v1762_v39 = vld [vmem:[%s3391_s0 + $0x50] sm:$0xff]   ;;  %v1763_v25 = vld [vmem:[%s3391_s0 + $0x58] sm:$0xff]  }
 0x11b   :  { %v323_v62 = vsel %vm93_vm0, %v271_v44, 0.0  ;;  %v135_v1 = vpop.xlane.xlu0 %134  ;;  %1635 = vmatmul.msk.bf16.vlgmr.msra.gmra.mxu0 %vm93_vm0, %v875_v53  ;;  %149 = vadd.xlane.f32.xlu0 %v148_v38  ;;  %v775_v22 = vmul.f32 %v482_v56, %v2028_v46  ;;  %v506_v31 = vmul.f32 0.5, %v505_v57  ;;  %v151_v46 = vsel %vm93_vm0, %v2246_v28, 0.0 }
 0x11c   :  { %v210_v60 = vmul.f32 %v1997_v24, %v135_v1  ;;  %324 = vadd.xlane.f32.xlu2 %v323_v62  ;;  %143 = vadd.xlane.f32.xlu1 %v142_v55  ;;  %3424 = vst [vmem:[#allocation7_spill] sm:$0xff] %v2239_v45  ;;  %v145_v6 = vsel %vm93_vm0, %v2239_v45, 0.0  ;;  %v811_v44 = vmul.f32 %v2163_v49, %v776_v32  ;;  %v497_v51 = vsub.f32 1.5, %v496_v34 }
 0x11d   :  { %v810_v29 = vmul.f32 %v2163_v49, %v775_v22  ;;  %v507_v48 = vsub.f32 1.5, %v506_v31  ;;  %v273_v56 = vmul.f32 %v2254_v47, %v2254_v47  ;;  %v2273_v57 = vunpack.c.l.bf16 %v1762_v39 }
 0x11e   :  { %v2243_v23 = vsub.f32 %v2081_v18, %v210_v60  ;;  %v846_v1 = vadd.f32 %v2187_v17, %v811_v44  ;;  %v498_v60 = vmul.f32 %v2191_v19, %v497_v51 }
 0x11f   :  { %v845_v55 = vadd.f32 %v2187_v17, %v810_v29  ;;  %3426 = vst [vmem:[#allocation9_spill] sm:$0xff] %v2273_v57  ;;  %v508_v43 = vmul.f32 %v2195_v26, %v507_v48  ;;  %v329_v14 = vsel %vm93_vm0, %v273_v56, 0.0  ;;  %v154_v15 = vsel %vm93_vm0, %v2273_v57, 0.0 }
 0x120   :  { %v274_v58 = vmul.f32 %v2243_v23, %v2243_v23  ;;  %v502_v32 = vsel %vm501_vm4, %v2191_v19, %v498_v60 }
 0x121   :  { %v876_v8 = vpack.c.bf16 %v846_v1, %v845_v55  ;;  %v512_v31 = vsel %vm2278_vm3, %v2195_v26, %v508_v43 }
 0x122   :  { %v332_v38 = vsel %vm93_vm0, %v274_v58, 0.0  ;;  %v2298_v58 = vunpack.c.h.bf16 %v1763_v25  ;;  %v778_v34 = vmul.f32 %v512_v31, %v2043_v54 }
 0x123   :  { %v138_v20 = vpop.xlane.xlu0 %137  ;;  %333 = vadd.xlane.f32.xlu0 %v332_v38 }
 0x124   :  { %v211_v50 = vmul.f32 %v1997_v24, %v138_v20  ;;  %146 = vadd.xlane.f32.xlu2 %v145_v6  ;;  %152 = vadd.xlane.f32.xlu1 %v151_v46  ;;  %3429 = vst [vmem:[#allocation10_spill] sm:$0xff] %v2298_v58  ;;  %v2301_v6 = vunpack.c.h.bf16 %v1762_v39  ;;  %v777_v46 = vmul.f32 %v502_v32, %v2019_v42  ;;  %v163_v38 = vsel %vm93_vm0, %v2298_v58, 0.0 }
 0x125   :  { %v813_v29 = vmul.f32 %v2163_v49, %v778_v34  ;;  %v2311_v20 = vunpack.c.l.bf16 %v1763_v25 }
 0x126   :  { %v2268_v53 = vsub.f32 %v2091_v21, %v211_v50  ;;  %v157_v26 = vsel %vm93_vm0, %v2301_v6, 0.0  ;;  %v812_v19 = vmul.f32 %v2163_v49, %v777_v46  ;;  %v395_v50 = vmul.f32 %v2177_v2, %v1997_v24 }
 0x127   :  { %v848_v48 = vadd.f32 %v2187_v17, %v813_v29  ;;  %3430 = vst [vmem:[#allocation11_spill] sm:$0xff] %v2311_v20  ;;  %v160_v42 = vsel %vm93_vm0, %v2311_v20, 0.0 }
 0x128   :  { %v275_v7 = vmul.f32 %v2268_v53, %v2268_v53  ;;  %v847_v54 = vadd.f32 %v2187_v17, %v812_v19  ;;  %v427_v44 = vadd.f32 1e-06, %v395_v50 }
 0x12a   :  { %v335_v22 = vsel %vm93_vm0, %v275_v7, 0.0  ;;  %v877_v39 = vpack.c.bf16 %v848_v48, %v847_v54  ;;  %1793 = vrsqrt.f32 %v427_v44  ;;  %vm519_vm5 = vweird.f32 %v427_v44 }
 0x12b   :  { %1636 = vmatmul.msk.bf16.gmra.mxu0 %vm93_vm0, %v876_v8  ;;  %336 = vadd.xlane.f32.xlu0 %v335_v22 }
 0x12c   :  { %330 = vadd.xlane.f32.xlu2 %v329_v14  ;;  %155 = vadd.xlane.f32.xlu1 %v154_v15 }
 0x130   :  { %v1794_v51 = vpop.eup %1793 }
 0x131   :  { %v514_v55 = vmul.f32 %v1794_v51, %v427_v44  ;;  %vm520_vm6 = vweird.f32 %v1794_v51 }
 0x132   :  { %vm521_vm7 = vmor %vm519_vm5, %vm520_vm6 }
 0x133   :  { %164 = vadd.xlane.f32.xlu0 %v163_v38  ;;  %v515_v43 = vmul.f32 %v1794_v51, %v514_v55 }
 0x134   :  { %158 = vadd.xlane.f32.xlu2 %v157_v26 }
 0x135   :  { %v516_v7 = vmul.f32 0.5, %v515_v43 }
 0x137   :  { %v517_v60 = vsub.f32 1.5, %v516_v7 }
 0x139   :  { %v518_v2 = vmul.f32 %v1794_v51, %v517_v60 }
 0x13b   :  { %1637 = vmatmul.msk.bf16.gmra.mxu0 %vm93_vm0, %v877_v39  ;;  %v522_v34 = vsel %vm521_vm7, %v1794_v51, %v518_v2 }
 0x13c   :  { %161 = vadd.xlane.f32.xlu2 %v160_v42  ;;  %v779_v39 = vmul.f32 %v522_v34, %v2060_v0 }
 0x13e   :  { %v814_v7 = vmul.f32 %v2163_v49, %v779_v39 }
 0x176   :  { %v316_v56 = vpop.xlane.xlu1 %315 }
 0x177   :  { %v396_v62 = vmul.f32 %v316_v56, %v1997_v24 }
 0x179   :  { %v428_v1 = vadd.f32 1e-06, %v396_v62 }
 0x17b   :  { %1795 = vrsqrt.f32 %v428_v1  ;;  %vm529_vm8 = vweird.f32 %v428_v1 }
 0x17e   :  { %v319_v8 = vpop.xlane.xlu1 %318 }
 0x17f   :  { %v397_v15 = vmul.f32 %v319_v8, %v1997_v24 }
 0x181   :  { %v1796_v14 = vpop.eup %1795  ;;  %v2321_v25 = vadd.f32 1e-06, %v397_v15 }
 0x182   :  { %v524_v22 = vmul.f32 %v1796_v14, %v428_v1  ;;  %vm530_vm9 = vweird.f32 %v1796_v14 }
 0x183   :  { %1797 = vrsqrt.f32 %v2321_v25  ;;  %vm531_vm10 = vmor %vm529_vm8, %vm530_vm9  ;;  %vm539_vm11 = vweird.f32 %v2321_v25 }
 0x184   :  { %v525_v31 = vmul.f32 %v1796_v14, %v524_v22 }
 0x186   :  { %v526_v32 = vmul.f32 0.5, %v525_v31  ;;  %v328_v46 = vpop.xlane.xlu0 %327  ;;  %v141_v29 = vpop.xlane.xlu1 %140 }
 0x187   :  { %v322_v26 = vpop.xlane.xlu2 %321  ;;  %v400_v19 = vmul.f32 %v328_v46, %v1997_v24  ;;  %v212_v54 = vmul.f32 %v1997_v24, %v141_v29 }
 0x188   :  { %v527_v38 = vsub.f32 1.5, %v526_v32  ;;  %v398_v48 = vmul.f32 %v322_v26, %v1997_v24 }
 0x189   :  { %v2328_v50 = vadd.f32 1e-06, %v400_v19  ;;  %v2330_v44 = vpop.eup %1797  ;;  %v2335_v51 = vsub.f32 %v2143_v33, %v212_v54  ;;  %v849_v19 = vadd.f32 %v2187_v17, %v814_v7 }
 0x18a   :  { %v528_v42 = vmul.f32 %v1796_v14, %v527_v38  ;;  %v2332_v55 = vadd.f32 1e-06, %v398_v48  ;;  %v534_v43 = vmul.f32 %v2330_v44, %v2321_v25  ;;  %vm540_vm12 = vweird.f32 %v2330_v44 }
 0x18b   :  { %1799 = vrsqrt.f32 %v2328_v50  ;;  %v276_v1 = vmul.f32 %v2335_v51, %v2335_v51  ;;  %vm2391_vm13 = vmor %vm539_vm11, %vm540_vm12  ;;  %vm569_vm2 = vweird.f32 %v2328_v50 }
 0x18c   :  { %v532_v56 = vsel %vm531_vm10, %v1796_v14, %v528_v42  ;;  %1801 = vrsqrt.f32 %v2332_v55  ;;  %v535_v0 = vmul.f32 %v2330_v44, %v534_v43  ;;  %v1688_v14 = vld [vmem:[%s3396_s5 + $0x18] sm:$0xff]  ;;  %v1687_v42 = vld [vmem:[%s3396_s5 + $0x10] sm:$0xff]  ;;  %vm549_vm15 = vweird.f32 %v2332_v55 }
 0x18d   :  { %v780_v62 = vmul.f32 %v532_v56, %v2108_v41  ;;  %v338_v41 = vsel %vm93_vm0, %v276_v1, 0.0  ;;  %1441 = vmatpush.bf16.msra.mxu1 %v1688_v14  ;;  %1770 = vmatpush.bf16.msra.mxu2 %v1688_v14  ;;  %v1764_v14 = vld [vmem:[%s3391_s0 + $0x60] sm:$0xff]  }
 0x18e   :  { %v150_v60 = vpop.xlane.xlu0 %149  ;;  %v536_v15 = vmul.f32 0.5, %v535_v0  ;;  %339 = vadd.xlane.f32.xlu1 %v338_v41 }
 0x18f   :  { %v815_v8 = vmul.f32 %v2163_v49, %v780_v62  ;;  %v325_v22 = vpop.xlane.xlu2 %324  ;;  %v144_v2 = vpop.xlane.xlu1 %143  ;;  %v215_v31 = vmul.f32 %v1997_v24, %v150_v60 }
 0x190   :  { %v399_v32 = vmul.f32 %v325_v22, %v1997_v24  ;;  %v213_v34 = vmul.f32 %v1997_v24, %v144_v2  ;;  %v537_v26 = vsub.f32 1.5, %v536_v15  ;;  %v1686_v2 = vld [vmem:[%s3396_s5 + $0x8] sm:$0xff]  ;;  %v1685_v15 = vld [vmem:[%s3396_s5] sm:$0xff] }
 0x191   :  { %v850_v46 = vadd.f32 %v2187_v17, %v815_v8  ;;  %v2355_v38 = vpop.eup %1799  ;;  %v2358_v29 = vsub.f32 %v2189_v40, %v215_v31  ;;  %1442 = vmatpush.bf16.msra.mxu1 %v1687_v42  ;;  %v2384_v8 = vld [vmem:[%s3395_s4] ss:$0 sm:$0xff]  ;;  %1771 = vmatpush.bf16.msra.mxu2 %v1687_v42 }
 0x192   :  { %v1802_v48 = vpop.eup %1801  ;;  %v2362_v54 = vadd.f32 1e-06, %v399_v32  ;;  %v2365_v39 = vsub.f32 %v2199_v30, %v213_v34  ;;  %v564_v43 = vmul.f32 %v2355_v38, %v2328_v50  ;;  %v538_v1 = vmul.f32 %v2330_v44, %v537_v26 }
 0x193   :  { %v544_v56 = vmul.f32 %v1802_v48, %v2332_v55  ;;  %v878_v62 = vpack.c.bf16 %v850_v46, %v849_v19  ;;  %v279_v60 = vmul.f32 %v2358_v29, %v2358_v29  ;;  %vm550_vm14 = vweird.f32 %v1802_v48 }
 0x194   :  { %1803 = vrsqrt.f32 %v2362_v54  ;;  %v277_v0 = vmul.f32 %v2365_v39, %v2365_v39  ;;  %v565_v32 = vmul.f32 %v2355_v38, %v564_v43  ;;  %v542_v43 = vsel %vm2391_vm13, %v2330_v44, %v538_v1  ;;  %vm551_vm1 = vmor %vm549_vm15, %vm550_vm14 }
 0x195   :  { %v545_v7 = vmul.f32 %v1802_v48, %v544_v56  ;;  %1638 = vmatmul.msk.bf16.gmra.mxu0 %vm93_vm0, %v878_v62  ;;  %v347_v26 = vsel %vm93_vm0, %v279_v60, 0.0  ;;  %v2404_v62 = vunpack.c.h.bf16 %v1764_v14  ;;  %1443 = vmatpush.bf16.msra.mxu1 %v1686_v2  ;;  %vm570_vm3 = vweird.f32 %v2355_v38 }
 0x196   :  { %v341_v22 = vsel %vm93_vm0, %v277_v0, 0.0  ;;  %v334_v41 = vpop.xlane.xlu0 %333  ;;  %348 = vadd.xlane.f32.xlu0 %v347_v26  ;;  %1772 = vmatpush.bf16.msra.mxu2 %v1686_v2  ;;  %v566_v44 = vmul.f32 0.5, %v565_v32  ;;  %v781_v2 = vmul.f32 %v542_v43, %v2119_v59  ;;  %v1765_v32 = vld [vmem:[%s3391_s0 + $0x68] sm:$0xff]   ;;  %vm2479_vm5 = vmor %vm569_vm2, %vm570_vm3  ;;  %vm559_vm6 = vweird.f32 %v2362_v54 }
 0x197   :  { %v546_v31 = vmul.f32 0.5, %v545_v7  ;;  %v147_v34 = vpop.xlane.xlu2 %146  ;;  %v153_v46 = vpop.xlane.xlu1 %152  ;;  %v402_v25 = vmul.f32 %v334_v41, %v1997_v24  ;;  %342 = vadd.xlane.f32.xlu1 %v341_v22  ;;  %3433 = vst [vmem:[#allocation12_spill] sm:$0xff] %v2404_v62  ;;  %v169_v55 = vsel %vm93_vm0, %v2404_v62, 0.0  ;;  %v2451_v30 = vunpack.c.l.bf16 %v1765_v32 }
 0x198   :  { %v214_v19 = vmul.f32 %v1997_v24, %v147_v34  ;;  %v216_v42 = vmul.f32 %v1997_v24, %v153_v46  ;;  %v968_v56 = vpop.f32.mrf.mxu0  ;;  %vm1388_vm14 = vcmask 523264  }
 0x199   :  { %v547_v0 = vsub.f32 1.5, %v546_v31  ;;  %v2409_v7 = vadd.f32 1e-06, %v402_v25  ;;  %v2412_v60 = vadd.f32 %v2384_v8, %v968_v56  ;;  %1444 = vmatpush.bf16.msra.mxu1 %v1685_v15  ;;  %3434 = vst [vmem:[#allocation13_spill] sm:$0xff] %v2451_v30 }
 0x19a   :  { %v2414_v41 = vpop.eup %1803  ;;  %v2417_v22 = vsub.f32 %v2239_v45, %v214_v19  ;;  %v2420_v34 = vsub.f32 %v2246_v28, %v216_v42  ;;  %v2448_v28 = vunpack.c.l.bf16 %v1764_v14  ;;  %1773 = vmatpush.bf16.msra.mxu2 %v1685_v15  ;;  %v816_v14 = vmul.f32 %v2163_v49, %v781_v2 }
 0x19b   :  { %v548_v46 = vmul.f32 %v1802_v48, %v547_v0  ;;  %v554_v1 = vmul.f32 %v2414_v41, %v2362_v54  ;;  %v1048_v31 = vmul.f32 %v2412_v60, %v2412_v60  ;;  %1805 = vrsqrt.f32 %v2409_v7 }
 0x19c   :  { %v278_v26 = vmul.f32 %v2417_v22, %v2417_v22  ;;  %v280_v59 = vmul.f32 %v2420_v34, %v2420_v34  ;;  %vm560_vm4 = vweird.f32 %v2414_v41  ;;  %vm589_vm10 = vweird.f32 %v2409_v7 }
 0x19d   :  { %v552_v25 = vsel %vm551_vm1, %v1802_v48, %v548_v46  ;;  %v555_v19 = vmul.f32 %v2414_v41, %v554_v1  ;;  %v1080_v56 = vmul.f32 %v1048_v31, %v2412_v60  ;;  %v567_v48 = vsub.f32 1.5, %v566_v44  ;;  %vm2491_vm7 = vmor %vm559_vm6, %vm560_vm4 }
 0x19e   :  { %v782_v42 = vmul.f32 %v552_v25, %v2154_v36  ;;  %v344_v43 = vsel %vm93_vm0, %v278_v26, 0.0  ;;  %v2446_v0 = vpop.xlane.xlu0 %336  ;;  %v350_v40 = vsel %vm93_vm0, %v280_v59, 0.0  ;;  %170 = vadd.xlane.f32.xlu0 %v169_v55  ;;  %v166_v55 = vsel %vm93_vm0, %v2448_v28, 0.0 }
 0x19f   :  { %v556_v46 = vmul.f32 0.5, %v555_v19  ;;  %345 = vadd.xlane.f32.xlu2 %v344_v43  ;;  %v331_v1 = vpop.xlane.xlu2 %330  ;;  %v156_v45 = vpop.xlane.xlu1 %155  ;;  %v1112_v33 = vmul.f32 0.044715, %v1080_v56  ;;  %351 = vadd.xlane.f32.xlu1 %v350_v40 }
 0x1a0   :  { %v401_v36 = vmul.f32 %v331_v1, %v1997_v24  ;;  %v217_v31 = vmul.f32 %v1997_v24, %v156_v45  ;;  %v970_v26 = vpop.f32.mrf.mxu0  ;;  %v817_v25 = vmul.f32 %v2163_v49, %v782_v42  ;;  %v568_v45 = vmul.f32 %v2355_v38, %v567_v48 }
 0x1a1   :  { %v557_v15 = vsub.f32 1.5, %v556_v46  ;;  %v2457_v44 = vadd.f32 %v2384_v8, %v970_v26  ;;  %v1144_v19 = vadd.f32 %v1112_v33, %v2412_v60  ;;  %v2465_v40 = vpop.eup %1805  ;;  %v172_v42 = vsel %vm93_vm0, %v2451_v30, 0.0  ;;  %v1766_v26 = vld [vmem:[%s3391_s0 + $0x70] sm:$0xff]  }
 0x1a2   :  { %v2463_v59 = vadd.f32 1e-06, %v401_v36  ;;  %v2469_v2 = vsub.f32 %v2273_v57, %v217_v31  ;;  %v851_v33 = vadd.f32 %v2187_v17, %v816_v14  ;;  %v852_v46 = vadd.f32 %v2187_v17, %v817_v25 }
 0x1a3   :  { %v558_v50 = vmul.f32 %v2414_v41, %v557_v15  ;;  %v1176_v43 = vmul.f32 0.7978846, %v1144_v19  ;;  %v1049_v48 = vmul.f32 %v2457_v44, %v2457_v44  ;;  %v584_v36 = vmul.f32 %v2465_v40, %v2409_v7 }
 0x1a4   :  { %1807 = vrsqrt.f32 %v2463_v59  ;;  %v281_v1 = vmul.f32 %v2469_v2, %v2469_v2  ;;  %v879_v15 = vpack.c.bf16 %v852_v46, %v851_v33  ;;  %v572_v54 = vsel %vm2479_vm5, %v2355_v38, %v568_v45 }
 0x1a5   :  { %v1081_v14 = vmul.f32 %v1049_v48, %v2457_v44  ;;  %v562_v21 = vsel %vm2491_vm7, %v2414_v41, %v558_v50  ;;  %v2505_v33 = vunpack.c.h.bf16 %v1765_v32  ;;  %1809 = vtanh.f32 %v1176_v43 }
 0x1a6   :  { %v165_v31 = vpop.xlane.xlu0 %164  ;;  %v353_v25 = vsel %vm93_vm0, %v281_v1, 0.0  ;;  %173 = vadd.xlane.f32.xlu0 %v172_v42  ;;  %1639 = vmatmul.msk.bf16.gmra.mxu0 %vm93_vm0, %v879_v15  ;;  %v585_v41 = vmul.f32 %v2465_v40, %v584_v36  ;;  %v783_v32 = vmul.f32 %v562_v21, %v2205_v27  ;;  %v784_v43 = vmul.f32 %v572_v54, %v2146_v35 }
 0x1a7   :  { %167 = vadd.xlane.f32.xlu2 %v166_v55  ;;  %v159_v19 = vpop.xlane.xlu2 %158  ;;  %v220_v57 = vmul.f32 %v1997_v24, %v165_v31  ;;  %354 = vadd.xlane.f32.xlu1 %v353_v25  ;;  %3439 = vst [vmem:[#allocation14_spill] sm:$0xff] %v2505_v33  ;;  %v1113_v55 = vmul.f32 0.044715, %v1081_v14  ;;  %v175_v27 = vsel %vm93_vm0, %v2505_v33, 0.0  ;;  %vm579_vm8 = vweird.f32 %v2463_v59 }
 0x1a8   :  { %v218_v18 = vmul.f32 %v1997_v24, %v159_v19  ;;  %v973_v48 = vpop.f32.mrf.mxu0  ;;  %v586_v14 = vmul.f32 0.5, %v585_v41  ;;  %v2543_v41 = vunpack.c.l.bf16 %v1766_v26  ;;  %vm590_vm11 = vweird.f32 %v2465_v40 }
 0x1a9   :  { %v2509_v46 = vsub.f32 %v2298_v58, %v220_v57  ;;  %v2512_v38 = vadd.f32 %v2384_v8, %v973_v48  ;;  %v1145_v56 = vadd.f32 %v1113_v55, %v2457_v44  ;;  %v818_v55 = vmul.f32 %v2163_v49, %v783_v32  ;;  %vm2574_vm13 = vmor %vm589_vm10, %vm590_vm11 }
 0x1aa   :  { %v2514_v45 = vpop.eup %1807  ;;  %v2518_v50 = vsub.f32 %v2301_v6, %v218_v18  ;;  %3440 = vst [vmem:[#allocation15_spill] sm:$0xff] %v2543_v41  ;;  %v178_v7 = vsel %vm93_vm0, %v2543_v41, 0.0 }
 0x1ab   :  { %v574_v42 = vmul.f32 %v2514_v45, %v2463_v59  ;;  %v1050_v57 = vmul.f32 %v2512_v38, %v2512_v38  ;;  %v284_v36 = vmul.f32 %v2509_v46, %v2509_v46  ;;  %v1177_v31 = vmul.f32 0.7978846, %v1145_v56  ;;  %v1810_v19 = vpop.eup %1809 }
 0x1ac   :  { %v282_v1 = vmul.f32 %v2518_v50, %v2518_v50  ;;  %vm580_vm9 = vweird.f32 %v2514_v45 }
 0x1ad   :  { %v575_v18 = vmul.f32 %v2514_v45, %v574_v42  ;;  %v1082_v21 = vmul.f32 %v1050_v57, %v2512_v38  ;;  %v362_v15 = vsel %vm93_vm0, %v284_v36, 0.0  ;;  %1811 = vtanh.f32 %v1177_v31  ;;  %vm2564_vm12 = vmor %vm579_vm8, %vm580_vm9 }
 0x1ae   :  { %v356_v35 = vsel %vm93_vm0, %v282_v1, 0.0  ;;  %363 = vadd.xlane.f32.xlu0 %v362_v15  ;;  %v819_v57 = vmul.f32 %v2163_v49, %v784_v43  ;;  %v587_v31 = vsub.f32 1.5, %v586_v14 }
 0x1af   :  { %v576_v25 = vmul.f32 0.5, %v575_v18  ;;  %v1114_v54 = vmul.f32 0.044715, %v1082_v21  ;;  %357 = vadd.xlane.f32.xlu2 %v356_v35  ;;  %v162_v48 = vpop.xlane.xlu2 %161  ;;  %176 = vadd.xlane.f32.xlu1 %v175_v27  ;;  %v1240_v21 = vadd.f32 1.0, %v1810_v19  ;;  %v853_v35 = vadd.f32 %v2187_v17, %v818_v55 }
 0x1b0   :  { %v219_v42 = vmul.f32 %v1997_v24, %v162_v48  ;;  %v975_v56 = vpop.f32.mrf.mxu0  ;;  %v854_v48 = vadd.f32 %v2187_v17, %v819_v57  ;;  %v588_v55 = vmul.f32 %v2465_v40, %v587_v31  ;;  %v2581_v31 = vunpack.c.h.bf16 %v1766_v26 }
 0x1b1   :  { %v577_v1 = vsub.f32 1.5, %v576_v25  ;;  %v1146_v36 = vadd.f32 %v1114_v54, %v2512_v38  ;;  %v2548_v18 = vadd.f32 %v2384_v8, %v975_v56 }
 0x1b2   :  { %v2552_v32 = vsub.f32 %v2311_v20, %v219_v42  ;;  %v880_v58 = vpack.c.bf16 %v854_v48, %v853_v35 }
 0x1b3   :  { %v1178_v27 = vmul.f32 0.7978846, %v1146_v36  ;;  %v1051_v43 = vmul.f32 %v2548_v18, %v2548_v18  ;;  %v578_v15 = vmul.f32 %v2514_v45, %v577_v1  ;;  %v1812_v25 = vpop.eup %1811  ;;  %v1272_v1 = vmul.f32 0.5, %v1240_v21 }
 0x1b4   :  { %v283_v14 = vmul.f32 %v2552_v32, %v2552_v32  ;;  %v1241_v56 = vadd.f32 1.0, %v1812_v25 }
 0x1b5   :  { %v1083_v54 = vmul.f32 %v1051_v43, %v2548_v18  ;;  %1813 = vtanh.f32 %v1178_v27  ;;  %v582_v57 = vsel %vm2564_vm12, %v2514_v45, %v578_v15  ;;  %v592_v27 = vsel %vm2574_vm13, %v2465_v40, %v588_v55 }
 0x1b6   :  { %v359_v42 = vsel %vm93_vm0, %v283_v14, 0.0  ;;  %v1273_v20 = vmul.f32 0.5, %v1241_v56  ;;  %1640 = vmatmul.msk.bf16.gmra.mxu0 %vm93_vm0, %v880_v58  ;;  %v1304_v35 = vmul.f32 %v1272_v1, %v2412_v60  ;;  %v785_v45 = vmul.f32 %v582_v57, %v2254_v47  ;;  %v2598_v60 = vld [vmem:[%s3391_s0 + $0x78] sm:$0xff]  }
 0x1b7   :  { %v1115_v59 = vmul.f32 0.044715, %v1083_v54  ;;  %360 = vadd.xlane.f32.xlu2 %v359_v42  ;;  %179 = vadd.xlane.f32.xlu1 %v178_v7  ;;  %v181_v54 = vsel %vm93_vm0, %v2581_v31, 0.0  ;;  %v786_v48 = vmul.f32 %v592_v27, %v2243_v23  ;;  %v2603_v40 = vunpack.c.l.bf16 %v2598_v60 }
 0x1b8   :  { %v978_v43 = vpop.f32.mrf.mxu0  ;;  %v1305_v25 = vmul.f32 %v1273_v20, %v2457_v44  ;;  %v820_v20 = vmul.f32 %v2163_v49, %v785_v45 }
 0x1b9   :  { %v1147_v14 = vadd.f32 %v1115_v59, %v2548_v18  ;;  %v979_v21 = vadd.f32 %v2384_v8, %v978_v43  ;;  %v821_v56 = vmul.f32 %v2163_v49, %v786_v48  ;;  %v184_v43 = vsel %vm93_vm0, %v2603_v40, 0.0 }
 0x1ba   :  { %v1336_v26 = vpack.c.bf16 %v1305_v25, %v1304_v35  ;;  %v855_v57 = vadd.f32 %v2187_v17, %v820_v20 }
 0x1bb   :  { %v1179_v15 = vmul.f32 0.7978846, %v1147_v14  ;;  %v1052_v19 = vmul.f32 %v979_v21, %v979_v21  ;;  %v1814_v58 = vpop.eup %1813  ;;  %v856_v25 = vadd.f32 %v2187_v17, %v821_v56 }
 0x1bc   :  { %1667 = vmatmul.msk.bf16.vlgmr.msra.gmra.mxu1 %vm1388_vm14, %v1336_v26  ;;  %v1242_v55 = vadd.f32 1.0, %v1814_v58 }
 0x1bd   :  { %1815 = vtanh.f32 %v1179_v15  ;;  %v1084_v7 = vmul.f32 %v1052_v19, %v979_v21  ;;  %v881_v19 = vpack.c.bf16 %v856_v25, %v855_v57 }
 0x1be   :  { %v1274_v27 = vmul.f32 0.5, %v1242_v55 }
 0x1bf   :  { %v1116_v47 = vmul.f32 0.044715, %v1084_v7  ;;  %182 = vadd.xlane.f32.xlu2 %v181_v54 }
 0x1c0   :  { %v980_v44 = vpop.f32.mrf.mxu0  ;;  %v1306_v26 = vmul.f32 %v1274_v27, %v2512_v38  ;;  %v403_v38 = vmul.f32 %v2446_v0, %v1997_v24 }
 0x1c1   :  { %v1148_v42 = vadd.f32 %v1116_v47, %v979_v21  ;;  %v981_v23 = vadd.f32 %v2384_v8, %v980_v44 }
 0x1c3   :  { %v1816_v1 = vpop.eup %1815  ;;  %v1180_v36 = vmul.f32 0.7978846, %v1148_v42  ;;  %v1053_v59 = vmul.f32 %v981_v23, %v981_v23 }
 0x1c4   :  { %v1243_v14 = vadd.f32 1.0, %v1816_v1 }
 0x1c5   :  { %v1085_v35 = vmul.f32 %v1053_v59, %v981_v23  ;;  %1817 = vtanh.f32 %v1180_v36 }
 0x1c6   :  { %v1275_v45 = vmul.f32 0.5, %v1243_v14  ;;  %1641 = vmatmul.msk.bf16.gmra.mxu0 %vm93_vm0, %v881_v19 }
 0x1c7   :  { %v1117_v15 = vmul.f32 0.044715, %v1085_v35  ;;  %185 = vadd.xlane.f32.xlu2 %v184_v43 }
 0x1c8   :  { %v1307_v54 = vmul.f32 %v1275_v45, %v2548_v18  ;;  %v435_v18 = vadd.f32 1e-06, %v403_v38 }
 0x1c9   :  { %v1149_v58 = vadd.f32 %v1117_v15, %v981_v23 }
 0x1ca   :  { %v1337_v48 = vpack.c.bf16 %v1307_v54, %v1306_v26  ;;  %vm599_vm15 = vweird.f32 %v435_v18 }
 0x1cb   :  { %v1181_v7 = vmul.f32 0.7978846, %v1149_v58  ;;  %v1818_v47 = vpop.eup %1817 }
 0x1cc   :  { %1668 = vmatmul.msk.bf16.gmra.mxu1 %vm1388_vm14, %v1337_v48  ;;  %v1244_v20 = vadd.f32 1.0, %v1818_v47 }
 0x1cd   :  { %1819 = vtanh.f32 %v1181_v7 }
 0x1ce   :  { %v1276_v42 = vmul.f32 0.5, %v1244_v20  ;;  %1821 = vrsqrt.f32 %v435_v18 }
 0x1d0   :  { %v1308_v1 = vmul.f32 %v1276_v42, %v979_v21 }
 0x1d3   :  { %v1820_v44 = vpop.eup %1819 }
 0x1d4   :  { %v1245_v55 = vadd.f32 1.0, %v1820_v44  ;;  %v1822_v57 = vpop.eup %1821 }
 0x1d5   :  { %v594_v43 = vmul.f32 %v1822_v57, %v435_v18  ;;  %vm600_vm1 = vweird.f32 %v1822_v57 }
 0x1d6   :  { %v1277_v56 = vmul.f32 0.5, %v1245_v55  ;;  %vm601_vm2 = vmor %vm599_vm15, %vm600_vm1 }
 0x1d7   :  { %v595_v14 = vmul.f32 %v1822_v57, %v594_v43 }
 0x1d8   :  { %v1309_v36 = vmul.f32 %v1277_v56, %v981_v23 }
 0x1d9   :  { %v596_v27 = vmul.f32 0.5, %v595_v14 }
 0x1da   :  { %v1338_v59 = vpack.c.bf16 %v1309_v36, %v1308_v1 }
 0x1db   :  { %v597_v45 = vsub.f32 1.5, %v596_v27 }
 0x1dc   :  { %1669 = vmatmul.msk.bf16.gmra.mxu1 %vm1388_vm14, %v1338_v59 }
 0x1dd   :  { %v598_v21 = vmul.f32 %v1822_v57, %v597_v45 }
 0x1df   :  { %v602_v54 = vsel %vm601_vm2, %v1822_v57, %v598_v21 }
 0x1e0   :  { %v787_v20 = vmul.f32 %v602_v54, %v2268_v53 }
 0x1e2   :  { %v822_v57 = vmul.f32 %v2163_v49, %v787_v20 }
 0x201   :  { %v340_v35 = vpop.xlane.xlu1 %339 }
 0x202   :  { %v404_v25 = vmul.f32 %v340_v35, %v1997_v24 }
 0x204   :  { %v436_v15 = vadd.f32 1e-06, %v404_v25 }
 0x206   :  { %1823 = vrsqrt.f32 %v436_v15  ;;  %vm609_vm3 = vweird.f32 %v436_v15 }
 0x209   :  { %v349_v19 = vpop.xlane.xlu0 %348 }
 0x20a   :  { %v343_v23 = vpop.xlane.xlu1 %342  ;;  %v407_v26 = vmul.f32 %v349_v19, %v1997_v24 }
 0x20b   :  { %v405_v0 = vmul.f32 %v343_v23, %v1997_v24 }
 0x20c   :  { %v2621_v58 = vpop.eup %1823  ;;  %v2625_v7 = vadd.f32 1e-06, %v407_v26  ;;  %v2666_v26 = vadd.f32 %v2187_v17, %v822_v57 }
 0x20d   :  { %v2623_v48 = vadd.f32 1e-06, %v405_v0  ;;  %v604_v47 = vmul.f32 %v2621_v58, %v436_v15  ;;  %vm610_vm4 = vweird.f32 %v2621_v58  ;;  %v2672_v15 = vunpack.c.h.bf16 %v2598_v60 }
 0x20e   :  { %vm2658_vm5 = vmor %vm609_vm3, %vm610_vm4  ;;  %vm639_vm8 = vweird.f32 %v2625_v7 }
 0x20f   :  { %1825 = vrsqrt.f32 %v2623_v48  ;;  %v605_v44 = vmul.f32 %v2621_v58, %v604_v47  ;;  %vm619_vm6 = vweird.f32 %v2623_v48 }
 0x210   :  { %1827 = vrsqrt.f32 %v2625_v7 }
 0x211   :  { %v606_v56 = vmul.f32 0.5, %v605_v44  ;;  %v171_v59 = vpop.xlane.xlu0 %170 }
 0x212   :  { %v346_v55 = vpop.xlane.xlu2 %345  ;;  %v983_v42 = vpop.f32.mrf.mxu0  ;;  %v222_v53 = vmul.f32 %v1997_v24, %v171_v59 }
 0x213   :  { %v406_v1 = vmul.f32 %v346_v55, %v1997_v24  ;;  %v352_v36 = vpop.xlane.xlu1 %351  ;;  %v2634_v38 = vadd.f32 %v2384_v8, %v983_v42  ;;  %v607_v43 = vsub.f32 1.5, %v606_v56 }
 0x214   :  { %v408_v18 = vmul.f32 %v352_v36, %v1997_v24  ;;  %v2649_v45 = vsub.f32 %v2404_v62, %v222_v53  ;;  %v187_v62 = vsel %vm93_vm0, %v2672_v15, 0.0 }
 0x215   :  { %v2640_v14 = vadd.f32 1e-06, %v406_v1  ;;  %v1054_v27 = vmul.f32 %v2634_v38, %v2634_v38  ;;  %v2644_v35 = vpop.eup %1825  ;;  %v608_v23 = vmul.f32 %v2621_v58, %v607_v43 }
 0x216   :  { %v2646_v25 = vadd.f32 1e-06, %v408_v18  ;;  %v2651_v21 = vpop.eup %1827  ;;  %v614_v49 = vmul.f32 %v2644_v35, %v2623_v48  ;;  %vm620_vm7 = vweird.f32 %v2644_v35  ;;  %v286_v17 = vmul.f32 %v2649_v45, %v2649_v45 }
 0x217   :  { %1829 = vrsqrt.f32 %v2640_v14  ;;  %v634_v0 = vmul.f32 %v2651_v21, %v2625_v7  ;;  %v1086_v47 = vmul.f32 %v1054_v27, %v2634_v38  ;;  %v612_v42 = vsel %vm2658_vm5, %v2621_v58, %v608_v23  ;;  %vm2710_vm11 = vmor %vm619_vm6, %vm620_vm7 }
 0x218   :  { %1831 = vrsqrt.f32 %v2646_v25  ;;  %v615_v54 = vmul.f32 %v2644_v35, %v614_v49  ;;  %v368_v43 = vsel %vm93_vm0, %v286_v17, 0.0  ;;  %vm640_vm9 = vweird.f32 %v2651_v21 }
 0x219   :  { %v635_v20 = vmul.f32 %v2651_v21, %v634_v0  ;;  %v1118_v1 = vmul.f32 0.044715, %v1086_v47  ;;  %v174_v60 = vpop.xlane.xlu0 %173  ;;  %369 = vadd.xlane.f32.xlu1 %v368_v43  ;;  %vm629_vm10 = vweird.f32 %v2640_v14  ;;  %vm649_vm12 = vweird.f32 %v2646_v25  ;;  %vm2745_vm1 = vmor %vm639_vm8, %vm640_vm9 }
 0x21a   :  { %v168_v44 = vpop.xlane.xlu2 %167  ;;  %v985_v55 = vpop.f32.mrf.mxu0  ;;  %v616_v56 = vmul.f32 0.5, %v615_v54  ;;  %v223_v23 = vmul.f32 %v1997_v24, %v174_v60 }
 0x21b   :  { %v355_v36 = vpop.xlane.xlu1 %354  ;;  %v2683_v59 = vadd.f32 %v2384_v8, %v985_v55  ;;  %v636_v18 = vmul.f32 0.5, %v635_v20  ;;  %v221_v53 = vmul.f32 %v1997_v24, %v168_v44  ;;  %v1150_v58 = vadd.f32 %v1118_v1, %v2634_v38 }
 0x21c   :  { %v409_v57 = vmul.f32 %v355_v36, %v1997_v24  ;;  %v617_v49 = vsub.f32 1.5, %v616_v56  ;;  %v788_v44 = vmul.f32 %v612_v42, %v2335_v51  ;;  %v2724_v48 = vsub.f32 %v2451_v30, %v223_v23 }
 0x21d   :  { %v2688_v27 = vpop.eup %1829  ;;  %v637_v0 = vsub.f32 1.5, %v636_v18  ;;  %v1055_v20 = vmul.f32 %v2683_v59, %v2683_v59  ;;  %v2717_v51 = vsub.f32 %v2448_v28, %v221_v53  ;;  %v1182_v18 = vmul.f32 0.7978846, %v1150_v58 }
 0x21e   :  { %v2693_v19 = vpop.eup %1831  ;;  %v624_v54 = vmul.f32 %v2688_v27, %v2640_v14  ;;  %v2697_v47 = vadd.f32 1e-06, %v409_v57  ;;  %v618_v17 = vmul.f32 %v2644_v35, %v617_v49  ;;  %vm630_vm13 = vweird.f32 %v2688_v27 }
 0x21f   :  { %v644_v55 = vmul.f32 %v2693_v19, %v2646_v25  ;;  %vm650_vm15 = vweird.f32 %v2693_v19  ;;  %v638_v36 = vmul.f32 %v2651_v21, %v637_v0  ;;  %v1087_v57 = vmul.f32 %v1055_v20, %v2683_v59  ;;  %vm2766_vm2 = vmor %vm629_vm10, %vm630_vm13 }
 0x220   :  { %v625_v1 = vmul.f32 %v2688_v27, %v624_v54  ;;  %1833 = vrsqrt.f32 %v2697_v47  ;;  %v622_v53 = vsel %vm2710_vm11, %v2644_v35, %v618_v17  ;;  %v2734_v54 = vld [vmem:[%s3392_s1] ss:$0 sm:$0xff]  ;;  %v285_v30 = vmul.f32 %v2717_v51, %v2717_v51  ;;  %vm2777_vm3 = vmor %vm649_vm12, %vm650_vm15 }
 0x221   :  { %v645_v42 = vmul.f32 %v2693_v19, %v644_v55  ;;  %v823_v23 = vmul.f32 %v2734_v54, %v788_v44  ;;  %v1119_v58 = vmul.f32 0.044715, %v1087_v57  ;;  %v2752_v44 = vld [vmem:[%s3393_s2] ss:$0 sm:$0xff]  ;;  %1835 = vtanh.f32 %v1182_v18 }
 0x222   :  { %v626_v60 = vmul.f32 0.5, %v625_v1  ;;  %v358_v43 = vpop.xlane.xlu2 %357  ;;  %vm659_vm4 = vweird.f32 %v2697_v47  ;;  %vm1590_vm10 = vcmask 257024  }
 0x223   :  { %v646_v49 = vmul.f32 0.5, %v645_v42  ;;  %v410_v55 = vmul.f32 %v358_v43, %v1997_v24  ;;  %v177_v0 = vpop.xlane.xlu1 %176  ;;  %v858_v56 = vadd.f32 %v2752_v44, %v823_v23  ;;  %v365_v23 = vsel %vm93_vm0, %v285_v30, 0.0  ;;  %v364_v30 = vpop.xlane.xlu0 %363 }
 0x224   :  { %v627_v1 = vsub.f32 1.5, %v626_v60  ;;  %v224_v20 = vmul.f32 %v1997_v24, %v177_v0  ;;  %v287_v60 = vmul.f32 %v2724_v48, %v2724_v48  ;;  %366 = vadd.xlane.f32.xlu0 %v365_v23 }
 0x225   :  { %v647_v17 = vsub.f32 1.5, %v646_v49  ;;  %v2755_v42 = vadd.f32 1e-06, %v410_v55  ;;  %v1151_v49 = vadd.f32 %v1119_v58, %v2683_v59  ;;  %v988_v55 = vpop.f32.mrf.mxu0  ;;  %v882_v18 = vpack.c.bf16 %v858_v56, %v2666_v26 }
 0x226   :  { %v2759_v57 = vpop.eup %1833  ;;  %v628_v7 = vmul.f32 %v2688_v27, %v627_v1  ;;  %v2785_v58 = vsub.f32 %v2505_v33, %v224_v20  ;;  %v371_v23 = vsel %vm93_vm0, %v287_v60, 0.0  ;;  %v2806_v35 = vadd.f32 %v2384_v8, %v988_v55 }
 0x227   :  { %v648_v0 = vmul.f32 %v2693_v19, %v647_v17  ;;  %v654_v14 = vmul.f32 %v2759_v57, %v2697_v47  ;;  %v642_v17 = vsel %vm2745_vm1, %v2651_v21, %v638_v36  ;;  %1837 = vrsqrt.f32 %v2755_v42  ;;  %1642 = vmatmul.msk.bf16.gmra.mxu0 %vm93_vm0, %v882_v18  ;;  %372 = vadd.xlane.f32.xlu1 %v371_v23 }
 0x228   :  { %v632_v25 = vsel %vm2766_vm2, %v2688_v27, %v628_v7  ;;  %v1183_v56 = vmul.f32 0.7978846, %v1151_v49  ;;  %v789_v21 = vmul.f32 %v622_v53, %v2365_v39  ;;  %v412_v36 = vmul.f32 %v364_v30, %v1997_v24  ;;  %v1836_v53 = vpop.eup %1835 }
 0x229   :  { %v790_v26 = vmul.f32 %v632_v25, %v2417_v22  ;;  %v655_v20 = vmul.f32 %v2759_v57, %v654_v14  ;;  %v652_v27 = vsel %vm2777_vm3, %v2693_v19, %v648_v0  ;;  %v791_v7 = vmul.f32 %v642_v17, %v2358_v29 }
 0x22a   :  { %v361_v22 = vpop.xlane.xlu2 %360  ;;  %v288_v60 = vmul.f32 %v2785_v58, %v2785_v58  ;;  %v2812_v14 = vadd.f32 1e-06, %v412_v36  ;;  %v1056_v19 = vmul.f32 %v2806_v35, %v2806_v35  ;;  %v792_v1 = vmul.f32 %v652_v27, %v2420_v34 }
 0x22b   :  { %v656_v43 = vmul.f32 0.5, %v655_v20  ;;  %v411_v49 = vmul.f32 %v361_v22, %v1997_v24  ;;  %v180_v39 = vpop.xlane.xlu1 %179  ;;  %v825_v55 = vmul.f32 %v2734_v54, %v790_v26  ;;  %1839 = vtanh.f32 %v1183_v56 }
 0x22c   :  { %v225_v0 = vmul.f32 %v1997_v24, %v180_v39  ;;  %v374_v18 = vsel %vm93_vm0, %v288_v60, 0.0  ;;  %1841 = vrsqrt.f32 %v2812_v14  ;;  %v1088_v25 = vmul.f32 %v1056_v19, %v2806_v35  ;;  %188 = vadd.xlane.f32.xlu0 %v187_v62 }
 0x22d   :  { %v2819_v29 = vadd.f32 1e-06, %v411_v49  ;;  %v2822_v30 = vpop.eup %1837  ;;  %v657_v17 = vsub.f32 1.5, %v656_v43  ;;  %375 = vadd.xlane.f32.xlu2 %v374_v18  ;;  %v990_v20 = vpop.f32.mrf.mxu0  ;;  %v824_v23 = vmul.f32 %v2734_v54, %v789_v21  ;;  %vm660_vm5 = vweird.f32 %v2759_v57 }
 0x22e   :  { %v664_v34 = vmul.f32 %v2822_v30, %v2755_v42  ;;  %v1120_v26 = vmul.f32 0.044715, %v1088_v25  ;;  %v2833_v56 = vsub.f32 %v2543_v41, %v225_v0  ;;  %v2836_v27 = vadd.f32 %v2384_v8, %v990_v20  ;;  %vm2852_vm7 = vmor %vm659_vm4, %vm660_vm5 }
 0x22f   :  { %1843 = vrsqrt.f32 %v2819_v29  ;;  %v860_v36 = vadd.f32 %v2752_v44, %v825_v55  ;;  %vm669_vm6 = vweird.f32 %v2755_v42  ;;  %v826_v22 = vmul.f32 %v2734_v54, %v791_v7 }
 0x230   :  { %v665_v21 = vmul.f32 %v2822_v30, %v664_v34  ;;  %v827_v43 = vmul.f32 %v2734_v54, %v792_v1  ;;  %v658_v49 = vmul.f32 %v2759_v57, %v657_v17  ;;  %v1152_v62 = vadd.f32 %v1120_v26, %v2806_v35 }
 0x231   :  { %v1057_v60 = vmul.f32 %v2836_v27, %v2836_v27  ;;  %v859_v39 = vadd.f32 %v2752_v44, %v824_v23  ;;  %v1840_v0 = vpop.eup %1839  ;;  %vm670_vm8 = vweird.f32 %v2822_v30  ;;  %v861_v1 = vadd.f32 %v2752_v44, %v826_v22 }
 0x232   :  { %v183_v19 = vpop.xlane.xlu2 %182  ;;  %v666_v7 = vmul.f32 0.5, %v665_v21  ;;  %v862_v18 = vadd.f32 %v2752_v44, %v827_v43  ;;  %v2859_v17 = vpop.eup %1841  ;;  %v289_v47 = vmul.f32 %v2833_v56, %v2833_v56  ;;  %v1246_v22 = vadd.f32 1.0, %v1836_v53  ;;  %vm2874_vm9 = vmor %vm669_vm6, %vm670_vm8 }
 0x233   :  { %v1089_v25 = vmul.f32 %v1057_v60, %v2836_v27  ;;  %v883_v20 = vpack.c.bf16 %v860_v36, %v859_v39  ;;  %v226_v23 = vmul.f32 %v1997_v24, %v183_v19  ;;  %v684_v21 = vmul.f32 %v2859_v17, %v2812_v14 }
 0x234   :  { %v667_v26 = vsub.f32 1.5, %v666_v7  ;;  %v884_v41 = vpack.c.bf16 %v862_v18, %v861_v1  ;;  %v662_v43 = vsel %vm2852_vm7, %v2759_v57, %v658_v49  ;;  %v1184_v60 = vmul.f32 0.7978846, %v1152_v62  ;;  %v2892_v1 = vld [vmem:[%s3397_s6] ss:$0 sm:$0xff] }
 0x235   :  { %v2865_v34 = vpop.eup %1843  ;;  %v1121_v19 = vmul.f32 0.044715, %v1089_v25  ;;  %v993_v7 = vpop.f32.mrf.mxu0  ;;  %v685_v53 = vmul.f32 %v2859_v17, %v684_v21  ;;  %v377_v57 = vsel %vm93_vm0, %v289_v47, 0.0  ;;  %v1247_v55 = vadd.f32 1.0, %v1840_v0 }
 0x236   :  { %v674_v39 = vmul.f32 %v2865_v34, %v2819_v29  ;;  %v668_v33 = vmul.f32 %v2822_v30, %v667_v26  ;;  %1644 = vmatmul.msk.bf16.vlgmr.msra.gmra.mxu3 %vm93_vm0, %v884_v41  ;;  %378 = vadd.xlane.f32.xlu0 %v377_v57  ;;  %v2887_v62 = vadd.f32 %v2384_v8, %v993_v7  ;;  %v1278_v47 = vmul.f32 0.5, %v1246_v22 }
 0x237   :  { %v1153_v49 = vadd.f32 %v1121_v19, %v2836_v27  ;;  %v793_v18 = vmul.f32 %v662_v43, %v2469_v2  ;;  %1643 = vmatmul.msk.bf16.gmra.mxu0 %vm93_vm0, %v883_v20  ;;  %v2900_v25 = vsub.f32 %v2581_v31, %v226_v23  ;;  %1845 = vtanh.f32 %v1184_v60 }
 0x238   :  { %v675_v42 = vmul.f32 %v2865_v34, %v674_v39  ;;  %v672_v41 = vsel %vm2874_vm9, %v2822_v30, %v668_v33  ;;  %v1058_v21 = vmul.f32 %v2887_v62, %v2887_v62  ;;  %v686_v19 = vmul.f32 0.5, %v685_v53 }
 0x239   :  { %v1185_v0 = vmul.f32 0.7978846, %v1153_v49  ;;  %v1279_v7 = vmul.f32 0.5, %v1247_v55  ;;  %v1446_v2 = vpop.f32.mrf.mxu1  ;;  %v794_v33 = vmul.f32 %v672_v41, %v2518_v50  ;;  %v1310_v22 = vmul.f32 %v1278_v47, %v2634_v38 }
 0x23a   :  { %v676_v26 = vmul.f32 0.5, %v675_v42  ;;  %v186_v39 = vpop.xlane.xlu2 %185  ;;  %v1090_v30 = vmul.f32 %v1058_v21, %v2887_v62  ;;  %v1447_v20 = vadd.f32 %v2892_v1, %v1446_v2  ;;  %v290_v60 = vmul.f32 %v2900_v25, %v2900_v25 }
 0x23b   :  { %v227_v43 = vmul.f32 %v1997_v24, %v186_v39  ;;  %1847 = vtanh.f32 %v1185_v0  ;;  %v1311_v36 = vmul.f32 %v1279_v7, %v2683_v59  ;;  %v828_v49 = vmul.f32 %v2734_v54, %v793_v18 }
 0x23c   :  { %v677_v23 = vsub.f32 1.5, %v676_v26  ;;  %v1122_v53 = vmul.f32 0.044715, %v1090_v30  ;;  %v1526_v57 = vadd.f32 %v1968_v4, %v1447_v20  ;;  %v380_v41 = vsel %vm93_vm0, %v290_v60, 0.0 }
 0x23d   :  { %v2914_v42 = vsub.f32 %v2603_v40, %v227_v43  ;;  %v995_v50 = vpop.f32.mrf.mxu0  ;;  %v1339_v55 = vpack.c.bf16 %v1311_v36, %v1310_v22  ;;  %v1846_v59 = vpop.eup %1845  ;;  %v687_v47 = vsub.f32 1.5, %v686_v19  ;;  %vm679_vm11 = vweird.f32 %v2819_v29  ;;  %381 = vadd.xlane.f32.xlu1 %v380_v41 }
 0x23e   :  { %v2919_v38 = vadd.f32 %v2384_v8, %v995_v50  ;;  %vm680_vm12 = vweird.f32 %v2865_v34  ;;  %v1558_v4 = vpack.c.bf16 %v1526_v57, %v1526_v57  ;;  %vm689_vm13 = vweird.f32 %v2812_v14  ;;  %v2966_v14 = vld [vmem:[%s3395_s4] ss:$0 sm:$0xff] }
 0x23f   :  { %vm690_vm15 = vweird.f32 %v2859_v17  ;;  %1670 = vmatmul.msk.bf16.gmra.mxu1 %vm1388_vm14, %v1339_v55  ;;  %v829_v8 = vmul.f32 %v2734_v54, %v794_v33  ;;  %v678_v0 = vmul.f32 %v2865_v34, %v677_v23  ;;  %v1154_v21 = vadd.f32 %v1122_v53, %v2887_v62  ;;  %vm2940_vm1 = vmor %vm679_vm11, %vm680_vm12 }
 0x240   :  { %v1059_v18 = vmul.f32 %v2919_v38, %v2919_v38  ;;  %1591 = vst.msk [vmem:[%s3398_s7] sm:$0xf] %vm1590_vm10, %v1558_v4  ;;  %v863_v39 = vadd.f32 %v2752_v44, %v828_v49  ;;  %v291_v19 = vmul.f32 %v2914_v42, %v2914_v42  ;;  %v1248_v30 = vadd.f32 1.0, %v1846_v59  ;;  %vm2953_vm2 = vmor %vm689_vm13, %vm690_vm15 }
 0x241   :  { %v1848_v26 = vpop.eup %1847  ;;  %v864_v43 = vadd.f32 %v2752_v44, %v829_v8  ;;  %v1448_v33 = vpop.f32.mrf.mxu1  ;;  %v688_v23 = vmul.f32 %v2859_v17, %v687_v47  ;;  %v682_v50 = vsel %vm2940_vm1, %v2865_v34, %v678_v0  ;;  %v1186_v49 = vmul.f32 0.7978846, %v1154_v21 }
 0x242   :  { %v1091_v2 = vmul.f32 %v1059_v18, %v2919_v38  ;;  %v1249_v20 = vadd.f32 1.0, %v1848_v26  ;;  %v1449_v22 = vadd.f32 %v2892_v1, %v1448_v33  ;;  %v383_v36 = vsel %vm93_vm0, %v291_v19, 0.0 }
 0x243   :  { %v885_v53 = vpack.c.bf16 %v864_v43, %v863_v39  ;;  %384 = vadd.xlane.f32.xlu2 %v383_v36  ;;  %v1280_v4 = vmul.f32 0.5, %v1248_v30  ;;  %v692_v34 = vsel %vm2953_vm2, %v2859_v17, %v688_v23  ;;  %1849 = vtanh.f32 %v1186_v49 }
 0x244   :  { %v1123_v60 = vmul.f32 0.044715, %v1091_v2  ;;  %v1281_v57 = vmul.f32 0.5, %v1249_v20  ;;  %v1527_v55 = vadd.f32 %v1980_v10, %v1449_v22  ;;  %v795_v10 = vmul.f32 %v682_v50, %v2552_v32 }
 0x245   :  { %v998_v41 = vpop.f32.mrf.mxu0  ;;  %v796_v21 = vmul.f32 %v692_v34, %v2509_v46  ;;  %v1312_v39 = vmul.f32 %v1280_v4, %v2806_v35 }
 0x246   :  { %v1155_v59 = vadd.f32 %v1123_v60, %v2919_v38  ;;  %1645 = vmatmul.msk.bf16.gmra.mxu3 %vm93_vm0, %v885_v53  ;;  %v2969_v47 = vadd.f32 %v2966_v14, %v998_v41  ;;  %v1559_v18 = vpack.c.bf16 %v1527_v55, %v1527_v55  ;;  %v1313_v0 = vmul.f32 %v1281_v57, %v2836_v27 }
 0x247   :  { %v830_v2 = vmul.f32 %v2734_v54, %v795_v10  ;;  %v831_v20 = vmul.f32 %v2734_v54, %v796_v21 }
 0x248   :  { %v1187_v8 = vmul.f32 0.7978846, %v1155_v59  ;;  %v1060_v26 = vmul.f32 %v2969_v47, %v2969_v47  ;;  %1592 = vst.msk [vmem:[%s3398_s7 + $0x4] sm:$0xf] %vm1590_vm10, %v1559_v18  ;;  %v1340_v7 = vpack.c.bf16 %v1313_v0, %v1312_v39 }
 0x249   :  { %v1451_v32 = vpop.f32.mrf.mxu1  ;;  %v1850_v46 = vpop.eup %1849  ;;  %v865_v36 = vadd.f32 %v2752_v44, %v830_v2  ;;  %v866_v53 = vadd.f32 %v2752_v44, %v831_v20 }
 0x24a   :  { %1851 = vtanh.f32 %v1187_v8  ;;  %v1092_v17 = vmul.f32 %v1060_v26, %v2969_v47  ;;  %v1452_v19 = vadd.f32 %v2892_v1, %v1451_v32  ;;  %v1250_v50 = vadd.f32 1.0, %v1850_v46 }
 0x24b   :  { %v886_v41 = vpack.c.bf16 %v866_v53, %v865_v36 }
 0x24c   :  { %v1124_v27 = vmul.f32 0.044715, %v1092_v17  ;;  %v1528_v43 = vadd.f32 %v1966_v3, %v1452_v19  ;;  %v1282_v10 = vmul.f32 0.5, %v1250_v50 }
 0x24d   :  { %v1000_v33 = vpop.f32.mrf.mxu0 }
 0x24e   :  { %v1001_v30 = vadd.f32 %v2966_v14, %v1000_v33  ;;  %v1560_v23 = vpack.c.bf16 %v1528_v43, %v1528_v43  ;;  %v1156_v29 = vadd.f32 %v1124_v27, %v2969_v47  ;;  %v1314_v21 = vmul.f32 %v1282_v10, %v2887_v62 }
 0x24f   :  { %1671 = vmatmul.msk.bf16.gmra.mxu1 %vm1388_vm14, %v1340_v7 }
 0x250   :  { %v1852_v22 = vpop.eup %1851  ;;  %v1061_v35 = vmul.f32 %v1001_v30, %v1001_v30  ;;  %1593 = vst.msk [vmem:[%s3398_s7 + $0x8] sm:$0xf] %vm1590_vm10, %v1560_v23  ;;  %v1188_v4 = vmul.f32 0.7978846, %v1156_v29 }
 0x251   :  { %v1251_v3 = vadd.f32 1.0, %v1852_v22  ;;  %v1453_v57 = vpop.f32.mrf.mxu1 }
 0x252   :  { %v1093_v60 = vmul.f32 %v1061_v35, %v1001_v30  ;;  %v1454_v49 = vadd.f32 %v2892_v1, %v1453_v57  ;;  %1853 = vtanh.f32 %v1188_v4 }
 0x253   :  { %v1283_v59 = vmul.f32 0.5, %v1251_v3 }
 0x254   :  { %v1125_v55 = vmul.f32 0.044715, %v1093_v60  ;;  %v1529_v34 = vadd.f32 %v1978_v9, %v1454_v49 }
 0x255   :  { %v1315_v0 = vmul.f32 %v1283_v59, %v2919_v38 }
 0x256   :  { %v1157_v18 = vadd.f32 %v1125_v55, %v1001_v30  ;;  %1646 = vmatmul.msk.bf16.gmra.mxu3 %vm93_vm0, %v886_v41  ;;  %v1561_v8 = vpack.c.bf16 %v1529_v34, %v1529_v34 }
 0x257   :  { %v1341_v39 = vpack.c.bf16 %v1315_v0, %v1314_v21 }
 0x258   :  { %v1189_v26 = vmul.f32 0.7978846, %v1157_v18  ;;  %1594 = vst.msk [vmem:[%s3398_s7 + $0xc] sm:$0xf] %vm1590_vm10, %v1561_v8  ;;  %v1854_v19 = vpop.eup %1853 }
 0x259   :  { %v1456_v17 = vpop.f32.mrf.mxu1  ;;  %v1252_v43 = vadd.f32 1.0, %v1854_v19 }
 0x25a   :  { %1855 = vtanh.f32 %v1189_v26  ;;  %v1457_v9 = vadd.f32 %v2892_v1, %v1456_v17 }
 0x25b   :  { %v1284_v46 = vmul.f32 0.5, %v1252_v43 }
 0x25c   :  { %v1530_v32 = vadd.f32 %v1970_v5, %v1457_v9 }
 0x25d   :  { %v1316_v22 = vmul.f32 %v1284_v46, %v2969_v47 }
 0x25e   :  { %v1562_v7 = vpack.c.bf16 %v1530_v32, %v1530_v32 }
 0x25f   :  { %1672 = vmatmul.msk.bf16.gmra.mxu1 %vm1388_vm14, %v1341_v39 }
 0x260   :  { %v1856_v2 = vpop.eup %1855  ;;  %1595 = vst.msk [vmem:[%s3398_s7 + $0x10] sm:$0xf] %vm1590_vm10, %v1562_v7 }
 0x261   :  { %v1253_v38 = vadd.f32 1.0, %v1856_v2  ;;  %v1458_v27 = vpop.f32.mrf.mxu1 }
 0x262   :  { %v1459_v62 = vadd.f32 %v2892_v1, %v1458_v27 }
 0x263   :  { %v1285_v33 = vmul.f32 0.5, %v1253_v38 }
 0x264   :  { %v1531_v20 = vadd.f32 %v1982_v11, %v1459_v62 }
 0x265   :  { %v1317_v23 = vmul.f32 %v1285_v33, %v1001_v30 }
 0x266   :  { %v1563_v5 = vpack.c.bf16 %v1531_v20, %v1531_v20 }
 0x267   :  { %v1342_v35 = vpack.c.bf16 %v1317_v23, %v1316_v22 }
 0x268   :  { %1596 = vst.msk [vmem:[%s3398_s7 + $0x14] sm:$0xf] %vm1590_vm10, %v1563_v5 }
 0x26f   :  { %1673 = vmatmul.msk.bf16.gmra.mxu1 %vm1388_vm14, %v1342_v35 }
 0x28c   :  { %v370_v36 = vpop.xlane.xlu1 %369 }
 0x28d   :  { %v414_v29 = vmul.f32 %v370_v36, %v1997_v24 }
 0x28f   :  { %v446_v3 = vadd.f32 1e-06, %v414_v29 }
 0x291   :  { %1857 = vrsqrt.f32 %v446_v3  ;;  %vm709_vm3 = vweird.f32 %v446_v3 }
 0x297   :  { %v367_v60 = vpop.xlane.xlu0 %366  ;;  %v1858_v11 = vpop.eup %1857 }
 0x298   :  { %v413_v53 = vmul.f32 %v367_v60, %v1997_v24  ;;  %v704_v30 = vmul.f32 %v1858_v11, %v446_v3  ;;  %vm710_vm4 = vweird.f32 %v1858_v11 }
 0x299   :  { %vm3040_vm5 = vmor %vm709_vm3, %vm710_vm4 }
 0x29a   :  { %v373_v57 = vpop.xlane.xlu1 %372  ;;  %v445_v50 = vadd.f32 1e-06, %v413_v53  ;;  %v705_v49 = vmul.f32 %v1858_v11, %v704_v30 }
 0x29b   :  { %v415_v55 = vmul.f32 %v373_v57, %v1997_v24 }
 0x29c   :  { %1859 = vrsqrt.f32 %v445_v50  ;;  %v706_v47 = vmul.f32 0.5, %v705_v49  ;;  %vm699_vm7 = vweird.f32 %v445_v50 }
 0x29d   :  { %v3025_v41 = vadd.f32 1e-06, %v415_v55 }
 0x29e   :  { %v707_v10 = vsub.f32 1.5, %v706_v47 }
 0x29f   :  { %1861 = vrsqrt.f32 %v3025_v41  ;;  %v189_v34 = vpop.xlane.xlu0 %188  ;;  %vm719_vm12 = vweird.f32 %v3025_v41 }
 0x2a0   :  { %v376_v59 = vpop.xlane.xlu2 %375  ;;  %v228_v18 = vmul.f32 %v1997_v24, %v189_v34  ;;  %v708_v19 = vmul.f32 %v1858_v11, %v707_v10 }
 0x2a1   :  { %v416_v4 = vmul.f32 %v376_v59, %v1997_v24 }
 0x2a2   :  { %v1860_v26 = vpop.eup %1859  ;;  %v3031_v0 = vsub.f32 %v2672_v15, %v228_v18  ;;  %v712_v23 = vsel %vm3040_vm5, %v1858_v11, %v708_v19 }
 0x2a3   :  { %v448_v8 = vadd.f32 1e-06, %v416_v4  ;;  %v694_v21 = vmul.f32 %v1860_v26, %v445_v50  ;;  %vm700_vm6 = vweird.f32 %v1860_v26  ;;  %v798_v57 = vmul.f32 %v712_v23, %v2649_v45 }
 0x2a4   :  { %v1003_v17 = vpop.f32.mrf.mxu0  ;;  %v292_v39 = vmul.f32 %v3031_v0, %v3031_v0  ;;  %vm701_vm8 = vmor %vm699_vm7, %vm700_vm6 }
 0x2a5   :  { %1863 = vrsqrt.f32 %v448_v8  ;;  %v3034_v9 = vadd.f32 %v2966_v14, %v1003_v17  ;;  %v3038_v32 = vpop.eup %1861  ;;  %v695_v7 = vmul.f32 %v1860_v26, %v694_v21  ;;  %vm729_vm9 = vweird.f32 %v448_v8 }
 0x2a6   :  { %v714_v38 = vmul.f32 %v3038_v32, %v3025_v41  ;;  %v386_v43 = vsel %vm93_vm0, %v292_v39, 0.0  ;;  %v833_v17 = vmul.f32 %v2734_v54, %v798_v57  ;;  %vm720_vm13 = vweird.f32 %v3038_v32 }
 0x2a7   :  { %v1062_v27 = vmul.f32 %v3034_v9, %v3034_v9  ;;  %v696_v62 = vmul.f32 0.5, %v695_v7  ;;  %387 = vadd.xlane.f32.xlu0 %v386_v43  ;;  %vm3080_vm1 = vmor %vm719_vm12, %vm720_vm13 }
 0x2a8   :  { %v715_v33 = vmul.f32 %v3038_v32, %v714_v38 }
 0x2a9   :  { %v1094_v20 = vmul.f32 %v1062_v27, %v3034_v9  ;;  %v379_v46 = vpop.xlane.xlu0 %378  ;;  %v697_v22 = vsub.f32 1.5, %v696_v62 }
 0x2aa   :  { %v417_v35 = vmul.f32 %v379_v46, %v1997_v24  ;;  %v716_v3 = vmul.f32 0.5, %v715_v33 }
 0x2ab   :  { %v1864_v5 = vpop.eup %1863  ;;  %v1126_v29 = vmul.f32 0.044715, %v1094_v20  ;;  %v698_v60 = vmul.f32 %v1860_v26, %v697_v22  ;;  %v868_v20 = vadd.f32 %v2752_v44, %v833_v17 }
 0x2ac   :  { %v724_v36 = vmul.f32 %v1864_v5, %v448_v8  ;;  %v3054_v53 = vadd.f32 1e-06, %v417_v35  ;;  %v1005_v30 = vpop.f32.mrf.mxu0  ;;  %v717_v34 = vsub.f32 1.5, %v716_v3  ;;  %vm730_vm11 = vweird.f32 %v1864_v5 }
 0x2ad   :  { %v1158_v55 = vadd.f32 %v1126_v29, %v3034_v9  ;;  %v3059_v11 = vadd.f32 %v2966_v14, %v1005_v30  ;;  %v702_v47 = vsel %vm701_vm8, %v1860_v26, %v698_v60  ;;  %vm3076_vm15 = vmor %vm729_vm9, %vm730_vm11 }
 0x2ae   :  { %v725_v49 = vmul.f32 %v1864_v5, %v724_v36  ;;  %1865 = vrsqrt.f32 %v3054_v53  ;;  %v797_v59 = vmul.f32 %v702_v47, %v2717_v51  ;;  %v718_v2 = vmul.f32 %v3038_v32, %v717_v34 }
 0x2af   :  { %v1190_v50 = vmul.f32 0.7978846, %v1158_v55  ;;  %v1063_v18 = vmul.f32 %v3059_v11, %v3059_v11  ;;  %vm739_vm2 = vweird.f32 %v3054_v53 }
 0x2b0   :  { %v726_v4 = vmul.f32 0.5, %v725_v49  ;;  %v382_v10 = vpop.xlane.xlu1 %381  ;;  %v832_v21 = vmul.f32 %v2734_v54, %v797_v59  ;;  %v722_v36 = vsel %vm3080_vm1, %v3038_v32, %v718_v2 }
 0x2b1   :  { %v1095_v51 = vmul.f32 %v1063_v18, %v3059_v11  ;;  %v418_v26 = vmul.f32 %v382_v10, %v1997_v24  ;;  %1867 = vtanh.f32 %v1190_v50 }
 0x2b2   :  { %v727_v45 = vsub.f32 1.5, %v726_v4  ;;  %v867_v19 = vadd.f32 %v2752_v44, %v832_v21 }
 0x2b3   :  { %v1127_v41 = vmul.f32 0.044715, %v1095_v51  ;;  %v450_v27 = vadd.f32 1e-06, %v418_v26 }
 0x2b4   :  { %v728_v39 = vmul.f32 %v1864_v5, %v727_v45  ;;  %v3072_v7 = vpop.eup %1865  ;;  %v1008_v43 = vpop.f32.mrf.mxu0  ;;  %v887_v35 = vpack.c.bf16 %v868_v20, %v867_v19 }
 0x2b5   :  { %v3085_v33 = vadd.f32 %v2966_v14, %v1008_v43  ;;  %v734_v8 = vmul.f32 %v3072_v7, %v3054_v53  ;;  %v1159_v46 = vadd.f32 %v1127_v41, %v3059_v11  ;;  %1869 = vrsqrt.f32 %v450_v27 }
 0x2b6   :  { %v732_v23 = vsel %vm3076_vm15, %v1864_v5, %v728_v39  ;;  %1647 = vmatmul.msk.bf16.gmra.mxu3 %vm93_vm0, %v887_v35  ;;  %v799_v5 = vmul.f32 %v722_v36, %v2724_v48  ;;  %vm749_vm3 = vweird.f32 %v450_v27  ;;  %vm740_vm5 = vweird.f32 %v3072_v7 }
 0x2b7   :  { %v1064_v22 = vmul.f32 %v3085_v33, %v3085_v33  ;;  %v1191_v29 = vmul.f32 0.7978846, %v1159_v46  ;;  %v1868_v30 = vpop.eup %1867  ;;  %v800_v57 = vmul.f32 %v732_v23, %v2785_v58  ;;  %v735_v49 = vmul.f32 %v3072_v7, %v734_v8  ;;  %vm3151_vm7 = vmor %vm739_vm2, %vm740_vm5 }
 0x2b8   :  { %v1254_v18 = vadd.f32 1.0, %v1868_v30  ;;  %v834_v17 = vmul.f32 %v2734_v54, %v799_v5 }
 0x2b9   :  { %v1013_v3 = vpop.f32.mrf.mxu3  ;;  %v1096_v60 = vmul.f32 %v1064_v22, %v3085_v33  ;;  %1871 = vtanh.f32 %v1191_v29  ;;  %v736_v45 = vmul.f32 0.5, %v735_v49  ;;  %v835_v48 = vmul.f32 %v2734_v54, %v800_v57 }
 0x2ba   :  { %v3106_v59 = vadd.f32 %v2966_v14, %v1013_v3  ;;  %v1286_v20 = vmul.f32 0.5, %v1254_v18 }
 0x2bb   :  { %v1128_v55 = vmul.f32 0.044715, %v1096_v60  ;;  %v3103_v47 = vpop.eup %1869  ;;  %v737_v8 = vsub.f32 1.5, %v736_v45  ;;  %v870_v23 = vadd.f32 %v2752_v44, %v835_v48  ;;  %v869_v60 = vadd.f32 %v2752_v44, %v834_v17 }
 0x2bc   :  { %v1461_v32 = vpop.f32.mrf.mxu1  ;;  %v1010_v4 = vpop.f32.mrf.mxu0  ;;  %v744_v34 = vmul.f32 %v3103_v47, %v450_v27  ;;  %v1066_v39 = vmul.f32 %v3106_v59, %v3106_v59  ;;  %vm750_vm4 = vweird.f32 %v3103_v47 }
 0x2bd   :  { %v1160_v50 = vadd.f32 %v1128_v55, %v3085_v33  ;;  %v1462_v58 = vadd.f32 %v2892_v1, %v1461_v32  ;;  %v3112_v10 = vadd.f32 %v2966_v14, %v1010_v4  ;;  %vm3140_vm6 = vmor %vm749_vm3, %vm750_vm4  ;;  %v738_v32 = vmul.f32 %v3072_v7, %v737_v8 }
 0x2be   :  { %v745_v21 = vmul.f32 %v3103_v47, %v744_v34  ;;  %v1098_v29 = vmul.f32 %v1066_v39, %v3106_v59  ;;  %v1318_v4 = vmul.f32 %v1286_v20, %v3034_v9 }
 0x2bf   :  { %v1872_v51 = vpop.eup %1871  ;;  %v1192_v26 = vmul.f32 0.7978846, %v1160_v50  ;;  %v1532_v19 = vadd.f32 %v1993_v16, %v1462_v58  ;;  %v1065_v2 = vmul.f32 %v3112_v10, %v3112_v10  ;;  %v888_v58 = vpack.c.bf16 %v870_v23, %v869_v60 }
 0x2c0   :  { %v746_v41 = vmul.f32 0.5, %v745_v21  ;;  %v1255_v62 = vadd.f32 1.0, %v1872_v51  ;;  %v1130_v21 = vmul.f32 0.044715, %v1098_v29 }
 0x2c1   :  { %v1015_v38 = vpop.f32.mrf.mxu3  ;;  %v1564_v46 = vpack.c.bf16 %v1532_v19, %v1532_v19  ;;  %v1097_v35 = vmul.f32 %v1065_v2, %v3112_v10  ;;  %1873 = vtanh.f32 %v1192_v26  ;;  %v742_v26 = vsel %vm3151_vm7, %v3072_v7, %v738_v32 }
 0x2c2   :  { %v3124_v43 = vadd.f32 %v2966_v14, %v1015_v38  ;;  %v747_v22 = vsub.f32 1.5, %v746_v41  ;;  %v1287_v36 = vmul.f32 0.5, %v1255_v62  ;;  %v801_v2 = vmul.f32 %v742_v26, %v2833_v56 }
 0x2c3   :  { %1597 = vst.msk [vmem:[%s3398_s7 + $0x18] sm:$0xf] %vm1590_vm10, %v1564_v46  ;;  %v1129_v49 = vmul.f32 0.044715, %v1097_v35 }
 0x2c4   :  { %v1067_v16 = vmul.f32 %v3124_v43, %v3124_v43  ;;  %v1463_v3 = vpop.f32.mrf.mxu1  ;;  %v748_v30 = vmul.f32 %v3103_v47, %v747_v22  ;;  %v1319_v34 = vmul.f32 %v1287_v36, %v3059_v11 }
 0x2c5   :  { %v1464_v55 = vadd.f32 %v2892_v1, %v1463_v3  ;;  %v1161_v27 = vadd.f32 %v1129_v49, %v3112_v10 }
 0x2c6   :  { %v1099_v5 = vmul.f32 %v1067_v16, %v3124_v43  ;;  %v752_v48 = vsel %vm3140_vm6, %v3103_v47, %v748_v30  ;;  %v1343_v9 = vpack.c.bf16 %v1319_v34, %v1318_v4  ;;  %1648 = vmatmul.msk.bf16.gmra.mxu3 %vm93_vm0, %v888_v58  ;;  %v1162_v47 = vadd.f32 %v1130_v21, %v3106_v59 }
 0x2c7   :  { %v1533_v45 = vadd.f32 %v2009_v37, %v1464_v55  ;;  %v1193_v11 = vmul.f32 0.7978846, %v1161_v27  ;;  %v1874_v53 = vpop.eup %1873  ;;  %v802_v37 = vmul.f32 %v752_v48, %v2900_v25  ;;  %v836_v16 = vmul.f32 %v2734_v54, %v801_v2 }
 0x2c8   :  { %v1131_v18 = vmul.f32 0.044715, %v1099_v5  ;;  %1674 = vmatmul.msk.bf16.gmra.mxu1 %vm1388_vm14, %v1343_v9  ;;  %v1256_v41 = vadd.f32 1.0, %v1874_v53  ;;  %v1194_v8 = vmul.f32 0.7978846, %v1162_v47 }
 0x2c9   :  { %v1018_v17 = vpop.f32.mrf.mxu3  ;;  %v1565_v51 = vpack.c.bf16 %v1533_v45, %v1533_v45  ;;  %1875 = vtanh.f32 %v1193_v11  ;;  %v837_v20 = vmul.f32 %v2734_v54, %v802_v37  ;;  %v871_v5 = vadd.f32 %v2752_v44, %v836_v16 }
 0x2ca   :  { %v1163_v39 = vadd.f32 %v1131_v18, %v3124_v43  ;;  %v3174_v38 = vadd.f32 %v2966_v14, %v1018_v17  ;;  %v1288_v29 = vmul.f32 0.5, %v1256_v41 }
 0x2cb   :  { %1598 = vst.msk [vmem:[%s3398_s7 + $0x1c] sm:$0xf] %vm1590_vm10, %v1565_v51  ;;  %v872_v3 = vadd.f32 %v2752_v44, %v837_v20 }
 0x2cc   :  { %v1466_v19 = vpop.f32.mrf.mxu1  ;;  %v1195_v25 = vmul.f32 0.7978846, %v1163_v39  ;;  %v1068_v22 = vmul.f32 %v3174_v38, %v3174_v38  ;;  %v1320_v55 = vmul.f32 %v1288_v29, %v3085_v33 }
 0x2cd   :  { %v1467_v7 = vadd.f32 %v2892_v1, %v1466_v19  ;;  %v889_v50 = vpack.c.bf16 %v872_v3, %v871_v5 }
 0x2ce   :  { %1877 = vtanh.f32 %v1195_v25  ;;  %v1100_v57 = vmul.f32 %v1068_v22, %v3174_v38 }
 0x2cf   :  { %v1534_v62 = vadd.f32 %v2038_v52, %v1467_v7  ;;  %v1876_v23 = vpop.eup %1875  ;;  %1879 = vtanh.f32 %v1194_v8 }
 0x2d0   :  { %v1257_v36 = vadd.f32 1.0, %v1876_v23  ;;  %v1132_v58 = vmul.f32 0.044715, %v1100_v57 }
 0x2d1   :  { %v1020_v46 = vpop.f32.mrf.mxu3  ;;  %v1566_v35 = vpack.c.bf16 %v1534_v62, %v1534_v62 }
 0x2d2   :  { %v3182_v56 = vadd.f32 %v2966_v14, %v1020_v46  ;;  %v1289_v30 = vmul.f32 0.5, %v1257_v36 }
 0x2d3   :  { %1599 = vst.msk [vmem:[%s3398_s7 + $0x20] sm:$0xf] %vm1590_vm10, %v1566_v35 }
 0x2d4   :  { %v1069_v52 = vmul.f32 %v3182_v56, %v3182_v56  ;;  %v1468_v60 = vpop.f32.mrf.mxu1  ;;  %v1321_v32 = vmul.f32 %v1289_v30, %v3112_v10  ;;  %v1878_v45 = vpop.eup %1877  ;;  %v1164_v10 = vadd.f32 %v1132_v58, %v3174_v38 }
 0x2d5   :  { %v1469_v49 = vadd.f32 %v2892_v1, %v1468_v60  ;;  %v1880_v21 = vpop.eup %1879 }
 0x2d6   :  { %v1101_v54 = vmul.f32 %v1069_v52, %v3182_v56  ;;  %v1344_v27 = vpack.c.bf16 %v1321_v32, %v1320_v55  ;;  %1649 = vmatmul.msk.bf16.gmra.mxu3 %vm93_vm0, %v889_v50  ;;  %v1258_v11 = vadd.f32 1.0, %v1880_v21  ;;  %v1196_v39 = vmul.f32 0.7978846, %v1164_v10  ;;  %v385_v10 = vpop.xlane.xlu2 %384 }
 0x2d7   :  { %v1535_v34 = vadd.f32 %v2057_v63, %v1469_v49  ;;  %v1259_v63 = vadd.f32 1.0, %v1878_v45 }
 0x2d8   :  { %v1133_v4 = vmul.f32 0.044715, %v1101_v54  ;;  %1675 = vmatmul.msk.bf16.vlgmr.msra.gmra.mxu2 %vm1388_vm14, %v1344_v27  ;;  %v1290_v7 = vmul.f32 0.5, %v1258_v11 }
 0x2d9   :  { %v1023_v18 = vpop.f32.mrf.mxu3  ;;  %v1567_v48 = vpack.c.bf16 %v1535_v34, %v1535_v34  ;;  %v1291_v37 = vmul.f32 0.5, %v1259_v63 }
 0x2da   :  { %v1165_v44 = vadd.f32 %v1133_v4, %v3182_v56  ;;  %v3208_v9 = vadd.f32 %v2966_v14, %v1023_v18  ;;  %v1322_v46 = vmul.f32 %v1290_v7, %v3106_v59  ;;  %v3473_v18 = vld [vmem:[#allocation2_spill] sm:$0xff] }
 0x2db   :  { %1600 = vst.msk [vmem:[%s3398_s7 + $0x24] sm:$0xf] %vm1590_vm10, %v1567_v48 }
 0x2dc   :  { %v1471_v33 = vpop.f32.mrf.mxu1  ;;  %v1197_v51 = vmul.f32 0.7978846, %v1165_v44  ;;  %v1070_v47 = vmul.f32 %v3208_v9, %v3208_v9 }
 0x2dd   :  { %v1472_v17 = vadd.f32 %v2892_v1, %v1471_v33 }
 0x2de   :  { %1881 = vtanh.f32 %v1197_v51  ;;  %v1102_v62 = vmul.f32 %v1070_v47, %v3208_v9 }
 0x2df   :  { %v1536_v53 = vadd.f32 %v2074_v13, %v1472_v17  ;;  %v1323_v13 = vmul.f32 %v1291_v37, %v3124_v43  ;;  %1883 = vtanh.f32 %v1196_v39 }
 0x2e0   :  { %v1134_v36 = vmul.f32 0.044715, %v1102_v62 }
 0x2e1   :  { %v1025_v26 = vpop.f32.mrf.mxu3  ;;  %v1568_v19 = vpack.c.bf16 %v1536_v53, %v1536_v53  ;;  %v1345_v35 = vpack.c.bf16 %v1323_v13, %v1322_v46 }
 0x2e2   :  { %v1026_v2 = vadd.f32 %v2966_v14, %v1025_v26  ;;  %v1166_v59 = vadd.f32 %v1134_v36, %v3208_v9 }
 0x2e3   :  { %1601 = vst.msk [vmem:[%s3398_s7 + $0x28] sm:$0xf] %vm1590_vm10, %v1568_v19 }
 0x2e4   :  { %v1071_v41 = vmul.f32 %v1026_v2, %v1026_v2  ;;  %v1473_v25 = vpop.f32.mrf.mxu1  ;;  %v1882_v16 = vpop.eup %1881  ;;  %v1198_v5 = vmul.f32 0.7978846, %v1166_v59 }
 0x2e5   :  { %v1474_v8 = vadd.f32 %v2892_v1, %v1473_v25  ;;  %v1884_v52 = vpop.eup %1883  ;;  %v1261_v60 = vadd.f32 1.0, %v1882_v16  ;;  %v1912_v16 = vld [vmem:[%s3392_s1] ss:$0 sm:$0xff] }
 0x2e6   :  { %v1103_v20 = vmul.f32 %v1071_v41, %v1026_v2 }
 0x2e7   :  { %v1537_v22 = vadd.f32 %v2053_v61, %v1474_v8  ;;  %v1260_v61 = vadd.f32 1.0, %v1884_v52  ;;  %v1293_v49 = vmul.f32 0.5, %v1261_v60  ;;  %v1913_v52 = vld [vmem:[%s3393_s2] ss:$0 sm:$0xff] }
 0x2e8   :  { %v1135_v23 = vmul.f32 0.044715, %v1103_v20  ;;  %1676 = vmatmul.msk.bf16.gmra.mxu2 %vm1388_vm14, %v1345_v35 }
 0x2e9   :  { %v1569_v29 = vpack.c.bf16 %v1537_v22, %v1537_v22  ;;  %v1292_v32 = vmul.f32 0.5, %v1260_v61  ;;  %v1325_v34 = vmul.f32 %v1293_v49, %v3182_v56 }
 0x2ea   :  { %v1167_v3 = vadd.f32 %v1135_v23, %v1026_v2 }
 0x2eb   :  { %1602 = vst.msk [vmem:[%s3398_s7 + $0x2c] sm:$0xf] %vm1590_vm10, %v1569_v29  ;;  %v1324_v27 = vmul.f32 %v1292_v32, %v3174_v38  ;;  %v419_v38 = vmul.f32 %v385_v10, %v1997_v24 }
 0x2ec   :  { %v1476_v43 = vpop.f32.mrf.mxu1  ;;  %v1199_v57 = vmul.f32 0.7978846, %v1167_v3 }
 0x2ed   :  { %v1477_v30 = vadd.f32 %v2892_v1, %v1476_v43  ;;  %v1346_v45 = vpack.c.bf16 %v1325_v34, %v1324_v27  ;;  %v451_v53 = vadd.f32 1e-06, %v419_v38 }
 0x2ee   :  { %1885 = vtanh.f32 %v1199_v57 }
 0x2ef   :  { %v1538_v54 = vadd.f32 %v2072_v12, %v1477_v30  ;;  %1887 = vtanh.f32 %v1198_v5  ;;  %vm759_vm8 = vweird.f32 %v451_v53 }
 0x2f0   :  { %1889 = vrsqrt.f32 %v451_v53 }
 0x2f1   :  { %v1570_v55 = vpack.c.bf16 %v1538_v54, %v1538_v54 }
 0x2f3   :  { %1603 = vst.msk [vmem:[%s3398_s7 + $0x30] sm:$0xf] %vm1590_vm10, %v1570_v55 }
 0x2f4   :  { %v1478_v4 = vpop.f32.mrf.mxu1  ;;  %v1886_v58 = vpop.eup %1885 }
 0x2f5   :  { %v1479_v50 = vadd.f32 %v2892_v1, %v1478_v4  ;;  %v1888_v21 = vpop.eup %1887  ;;  %v1263_v44 = vadd.f32 1.0, %v1886_v58 }
 0x2f6   :  { %v1262_v56 = vadd.f32 1.0, %v1888_v21  ;;  %v1890_v26 = vpop.eup %1889 }
 0x2f7   :  { %v1539_v12 = vadd.f32 %v3473_v18, %v1479_v50  ;;  %v1295_v33 = vmul.f32 0.5, %v1263_v44  ;;  %v754_v37 = vmul.f32 %v1890_v26, %v451_v53  ;;  %vm760_vm9 = vweird.f32 %v1890_v26  ;;  %v3474_v50 = vld [vmem:[#allocation3_spill] sm:$0xff] }
 0x2f8   :  { %1677 = vmatmul.msk.bf16.gmra.mxu2 %vm1388_vm14, %v1346_v45  ;;  %v1294_v63 = vmul.f32 0.5, %v1262_v56  ;;  %vm761_vm11 = vmor %vm759_vm8, %vm760_vm9 }
 0x2f9   :  { %v1571_v48 = vpack.c.bf16 %v1539_v12, %v1539_v12  ;;  %v1327_v17 = vmul.f32 %v1295_v33, %v1026_v2  ;;  %v755_v39 = vmul.f32 %v1890_v26, %v754_v37 }
 0x2fa   :  { %v1326_v11 = vmul.f32 %v1294_v63, %v3208_v9 }
 0x2fb   :  { %1604 = vst.msk [vmem:[%s3398_s7 + $0x34] sm:$0xf] %vm1590_vm10, %v1571_v48  ;;  %v756_v41 = vmul.f32 0.5, %v755_v39 }
 0x2fc   :  { %v1347_v51 = vpack.c.bf16 %v1327_v17, %v1326_v11  ;;  %v3475_v17 = vld [vmem:[#allocation4_spill] sm:$0xff] }
 0x2fd   :  { %v757_v25 = vsub.f32 1.5, %v756_v41 }
 0x2ff   :  { %v758_v13 = vmul.f32 %v1890_v26, %v757_v25 }
 0x301   :  { %v762_v20 = vsel %vm761_vm11, %v1890_v26, %v758_v13 }
 0x302   :  { %v803_v23 = vmul.f32 %v762_v20, %v2914_v42 }
 0x304   :  { %v838_v36 = vmul.f32 %v1912_v16, %v803_v23 }
 0x306   :  { %v873_v3 = vadd.f32 %v1913_v52, %v838_v36 }
 0x308   :  { %1678 = vmatmul.msk.bf16.gmra.mxu2 %vm1388_vm14, %v1347_v51 }
 0x31a   :  { %v388_v47 = vpop.xlane.xlu0 %387 }
 0x31b   :  { %v420_v19 = vmul.f32 %v388_v47, %v1997_v24 }
 0x31d   :  { %v452_v7 = vadd.f32 1e-06, %v420_v19 }
 0x31f   :  { %1891 = vrsqrt.f32 %v452_v7  ;;  %vm769_vm13 = vweird.f32 %v452_v7 }
 0x325   :  { %v1892_v2 = vpop.eup %1891 }
 0x326   :  { %v764_v9 = vmul.f32 %v1892_v2, %v452_v7  ;;  %vm770_vm12 = vweird.f32 %v1892_v2 }
 0x327   :  { %vm771_vm15 = vmor %vm769_vm13, %vm770_vm12 }
 0x328   :  { %v765_v62 = vmul.f32 %v1892_v2, %v764_v9 }
 0x32a   :  { %v766_v8 = vmul.f32 0.5, %v765_v62 }
 0x32c   :  { %v767_v46 = vsub.f32 1.5, %v766_v8 }
 0x32e   :  { %v768_v22 = vmul.f32 %v1892_v2, %v767_v46 }
 0x330   :  { %v772_v24 = vsel %vm771_vm15, %v1892_v2, %v768_v22  ;;  %v3284_v22 = vld [vmem:[%s3397_s6] ss:$0 sm:$0xff] }
 0x331   :  { %v804_v35 = vmul.f32 %v772_v24, %v3031_v0 }
 0x333   :  { %v839_v29 = vmul.f32 %v1912_v16, %v804_v35 }
 0x335   :  { %v874_v43 = vadd.f32 %v1913_v52, %v839_v29  ;;  %v3476_v29 = vld [vmem:[#allocation6_spill] sm:$0xff] }
 0x337   :  { %v890_v60 = vpack.c.bf16 %v874_v43, %v873_v3 }
 0x339   :  { %1650 = vmatmul.msk.bf16.gmra.mxu3 %vm93_vm0, %v890_v60  ;;  %v1028_v42 = vpop.f32.mrf.mxu3 }
 0x33a   :  { %v1029_v59 = vadd.f32 %v2966_v14, %v1028_v42 }
 0x33c   :  { %v1072_v30 = vmul.f32 %v1029_v59, %v1029_v59 }
 0x33e   :  { %v1104_v0 = vmul.f32 %v1072_v30, %v1029_v59 }
 0x340   :  { %v1136_v61 = vmul.f32 0.044715, %v1104_v0 }
 0x341   :  { %v1030_v57 = vpop.f32.mrf.mxu3 }
 0x342   :  { %v1168_v54 = vadd.f32 %v1136_v61, %v1029_v59  ;;  %v1031_v49 = vadd.f32 %v2966_v14, %v1030_v57 }
 0x344   :  { %v1200_v5 = vmul.f32 0.7978846, %v1168_v54  ;;  %v1073_v55 = vmul.f32 %v1031_v49, %v1031_v49 }
 0x345   :  { %v1481_v32 = vpop.f32.mrf.mxu1 }
 0x346   :  { %v1482_v4 = vadd.f32 %v2892_v1, %v1481_v32  ;;  %v1105_v34 = vmul.f32 %v1073_v55, %v1031_v49  ;;  %1893 = vtanh.f32 %v1200_v5  ;;  %v3477_v32 = vld [vmem:[#allocation7_spill] sm:$0xff] }
 0x348   :  { %v1540_v27 = vadd.f32 %v3474_v50, %v1482_v4  ;;  %v1137_v18 = vmul.f32 0.044715, %v1105_v34 }
 0x349   :  { %v1033_v45 = vpop.f32.mrf.mxu3 }
 0x34a   :  { %v1572_v12 = vpack.c.bf16 %v1540_v27, %v1540_v27  ;;  %v1169_v58 = vadd.f32 %v1137_v18, %v1031_v49  ;;  %v3263_v48 = vadd.f32 %v2966_v14, %v1033_v45 }
 0x34c   :  { %1605 = vst.msk [vmem:[%s3398_s7 + $0x38] sm:$0xf] %vm1590_vm10, %v1572_v12  ;;  %v1201_v21 = vmul.f32 0.7978846, %v1169_v58  ;;  %v1074_v44 = vmul.f32 %v3263_v48, %v3263_v48  ;;  %v1894_v63 = vpop.eup %1893 }
 0x34d   :  { %v1483_v56 = vpop.f32.mrf.mxu1  ;;  %v1264_v26 = vadd.f32 1.0, %v1894_v63 }
 0x34e   :  { %v1484_v33 = vadd.f32 %v2892_v1, %v1483_v56  ;;  %1895 = vtanh.f32 %v1201_v21  ;;  %v1106_v10 = vmul.f32 %v1074_v44, %v3263_v48 }
 0x34f   :  { %v1296_v41 = vmul.f32 0.5, %v1264_v26 }
 0x350   :  { %v1541_v38 = vadd.f32 %v3475_v17, %v1484_v33  ;;  %v1138_v11 = vmul.f32 0.044715, %v1106_v10  ;;  %v3478_v10 = vld [vmem:[#allocation5_spill] sm:$0xff] }
 0x351   :  { %v1035_v53 = vpop.f32.mrf.mxu3  ;;  %v1328_v62 = vmul.f32 %v1296_v41, %v1029_v59 }
 0x352   :  { %v1573_v51 = vpack.c.bf16 %v1541_v38, %v1541_v38  ;;  %v1170_v37 = vadd.f32 %v1138_v11, %v3263_v48  ;;  %v1036_v39 = vadd.f32 %v2966_v14, %v1035_v53 }
 0x354   :  { %1606 = vst.msk [vmem:[%s3398_s7 + $0x3c] sm:$0xf] %vm1590_vm10, %v1573_v51  ;;  %v1896_v1 = vpop.eup %1895  ;;  %v1202_v47 = vmul.f32 0.7978846, %v1170_v37  ;;  %v1075_v19 = vmul.f32 %v1036_v39, %v1036_v39  ;;  %v3479_v37 = vld [vmem:[#allocation8_spill] sm:$0xff] }
 0x355   :  { %v1265_v7 = vadd.f32 1.0, %v1896_v1 }
 0x356   :  { %v1107_v25 = vmul.f32 %v1075_v19, %v1036_v39  ;;  %1897 = vtanh.f32 %v1202_v47 }
 0x357   :  { %v1297_v2 = vmul.f32 0.5, %v1265_v7 }
 0x358   :  { %v1139_v13 = vmul.f32 0.044715, %v1107_v25 }
 0x359   :  { %v1038_v9 = vpop.f32.mrf.mxu3  ;;  %v1329_v20 = vmul.f32 %v1297_v2, %v1031_v49 }
 0x35a   :  { %v1171_v8 = vadd.f32 %v1139_v13, %v1036_v39  ;;  %v1039_v23 = vadd.f32 %v2966_v14, %v1038_v9 }
 0x35b   :  { %v1486_v46 = vpop.f32.mrf.mxu2  ;;  %v1348_v35 = vpack.c.bf16 %v1329_v20, %v1328_v62  ;;  %v3480_v62 = vld [vmem:[#allocation9_spill] sm:$0xff] }
 0x35c   :  { %v1487_v24 = vadd.f32 %v3284_v22, %v1486_v46  ;;  %v1203_v16 = vmul.f32 0.7978846, %v1171_v8  ;;  %v1076_v36 = vmul.f32 %v1039_v23, %v1039_v23  ;;  %v1898_v3 = vpop.eup %1897 }
 0x35d   :  { %1679 = vmatmul.msk.bf16.gmra.mxu2 %vm1388_vm14, %v1348_v35  ;;  %v1266_v30 = vadd.f32 1.0, %v1898_v3 }
 0x35e   :  { %v1542_v52 = vadd.f32 %v3476_v29, %v1487_v24  ;;  %1899 = vtanh.f32 %v1203_v16  ;;  %v1108_v43 = vmul.f32 %v1076_v36, %v1039_v23  ;;  %v3481_v29 = vld [vmem:[#allocation11_spill] sm:$0xff] }
 0x35f   :  { %v1298_v50 = vmul.f32 0.5, %v1266_v30 }
 0x360   :  { %v1574_v60 = vpack.c.bf16 %v1542_v52, %v1542_v52  ;;  %v1140_v42 = vmul.f32 0.044715, %v1108_v43 }
 0x361   :  { %v1040_v59 = vpop.f32.mrf.mxu3 }
 0x362   :  { %1607 = vst.msk [vmem:[%s3398_s7 + $0x40] sm:$0xf] %vm1590_vm10, %v1574_v60  ;;  %v1172_v0 = vadd.f32 %v1140_v42, %v1039_v23  ;;  %v1041_v57 = vadd.f32 %v2966_v14, %v1040_v59  ;;  %v1330_v14 = vmul.f32 %v1298_v50, %v3263_v48  ;;  %v3482_v60 = vld [vmem:[#allocation10_spill] sm:$0xff] }
 0x363   :  { %v1488_v61 = vpop.f32.mrf.mxu2 }
 0x364   :  { %v1489_v54 = vadd.f32 %v3284_v22, %v1488_v61  ;;  %v1900_v49 = vpop.eup %1899  ;;  %v1204_v5 = vmul.f32 0.7978846, %v1172_v0  ;;  %v1077_v55 = vmul.f32 %v1041_v57, %v1041_v57  ;;  %v1915_v0 = vld [vmem:[%s3395_s4] ss:$0 sm:$0xff] }
 0x365   :  { %v1267_v34 = vadd.f32 1.0, %v1900_v49 }
 0x366   :  { %v1543_v4 = vadd.f32 %v3477_v32, %v1489_v54  ;;  %v1109_v27 = vmul.f32 %v1077_v55, %v1041_v57  ;;  %1901 = vtanh.f32 %v1204_v5 }
 0x367   :  { %v1299_v12 = vmul.f32 0.5, %v1267_v34 }
 0x368   :  { %v1575_v18 = vpack.c.bf16 %v1543_v4, %v1543_v4  ;;  %v1141_v45 = vmul.f32 0.044715, %v1109_v27 }
 0x369   :  { %v1331_v58 = vmul.f32 %v1299_v12, %v1036_v39 }
 0x36a   :  { %1608 = vst.msk [vmem:[%s3398_s7 + $0x44] sm:$0xf] %vm1590_vm10, %v1575_v18  ;;  %v1173_v21 = vadd.f32 %v1141_v45, %v1041_v57 }
 0x36b   :  { %v1491_v44 = vpop.f32.mrf.mxu2  ;;  %v1349_v33 = vpack.c.bf16 %v1331_v58, %v1330_v14 }
 0x36c   :  { %v1492_v56 = vadd.f32 %v3284_v22, %v1491_v44  ;;  %v1205_v63 = vmul.f32 0.7978846, %v1173_v21  ;;  %v1902_v38 = vpop.eup %1901 }
 0x36d   :  { %1680 = vmatmul.msk.bf16.gmra.mxu2 %vm1388_vm14, %v1349_v33  ;;  %v1268_v48 = vadd.f32 1.0, %v1902_v38 }
 0x36e   :  { %v1544_v17 = vadd.f32 %v3478_v10, %v1492_v56  ;;  %1903 = vtanh.f32 %v1205_v63 }
 0x36f   :  { %v1300_v47 = vmul.f32 0.5, %v1268_v48 }
 0x370   :  { %v1576_v11 = vpack.c.bf16 %v1544_v17, %v1544_v17 }
 0x371   :  { %v1332_v41 = vmul.f32 %v1300_v47, %v1039_v23  ;;  %v3484_v47 = vld [vmem:[#allocation13_spill] sm:$0xff] }
 0x372   :  { %1609 = vst.msk [vmem:[%s3398_s7 + $0x48] sm:$0xf] %vm1590_vm10, %v1576_v11 }
 0x373   :  { %v1493_v51 = vpop.f32.mrf.mxu2 }
 0x374   :  { %v1494_v53 = vadd.f32 %v3284_v22, %v1493_v51  ;;  %v1904_v26 = vpop.eup %1903 }
 0x375   :  { %v1269_v1 = vadd.f32 1.0, %v1904_v26  ;;  %v3483_v26 = vld [vmem:[#allocation12_spill] sm:$0xff] }
 0x376   :  { %v1545_v39 = vadd.f32 %v3479_v37, %v1494_v53 }
 0x377   :  { %v1301_v7 = vmul.f32 0.5, %v1269_v1 }
 0x378   :  { %v1577_v19 = vpack.c.bf16 %v1545_v39, %v1545_v39 }
 0x379   :  { %v1333_v25 = vmul.f32 %v1301_v7, %v1041_v57 }
 0x37a   :  { %1610 = vst.msk [vmem:[%s3398_s7 + $0x4c] sm:$0xf] %vm1590_vm10, %v1577_v19 }
 0x37b   :  { %v1496_v2 = vpop.f32.mrf.mxu2  ;;  %v1350_v9 = vpack.c.bf16 %v1333_v25, %v1332_v41 }
 0x37c   :  { %v1497_v13 = vadd.f32 %v3284_v22, %v1496_v2  ;;  %v3485_v2 = vld [vmem:[#allocation14_spill] sm:$0xff] }
 0x37d   :  { %1681 = vmatmul.msk.bf16.gmra.mxu2 %vm1388_vm14, %v1350_v9 }
 0x37e   :  { %v1546_v20 = vadd.f32 %v3480_v62, %v1497_v13 }
 0x380   :  { %v1578_v8 = vpack.c.bf16 %v1546_v20, %v1546_v20 }
 0x382   :  { %1611 = vst.msk [vmem:[%s3398_s7 + $0x50] sm:$0xf] %vm1590_vm10, %v1578_v8  ;;  %v3486_v8 = vld [vmem:[#allocation15_spill] sm:$0xff] }
 0x383   :  { %v1498_v46 = vpop.f32.mrf.mxu2 }
 0x384   :  { %v1499_v24 = vadd.f32 %v3284_v22, %v1498_v46 }
 0x386   :  { %v1547_v23 = vadd.f32 %v2301_v6, %v1499_v24 }
 0x388   :  { %v1579_v35 = vpack.c.bf16 %v1547_v23, %v1547_v23 }
 0x38a   :  { %1612 = vst.msk [vmem:[%s3398_s7 + $0x54] sm:$0xf] %vm1590_vm10, %v1579_v35 }
 0x38b   :  { %v1501_v16 = vpop.f32.mrf.mxu2 }
 0x38c   :  { %v1502_v36 = vadd.f32 %v3284_v22, %v1501_v16 }
 0x38e   :  { %v1548_v52 = vadd.f32 %v3481_v29, %v1502_v36 }
 0x390   :  { %v1580_v3 = vpack.c.bf16 %v1548_v52, %v1548_v52 }
 0x392   :  { %1613 = vst.msk [vmem:[%s3398_s7 + $0x58] sm:$0xf] %vm1590_vm10, %v1580_v3 }
 0x393   :  { %v1503_v43 = vpop.f32.mrf.mxu2 }
 0x394   :  { %v1504_v6 = vadd.f32 %v3284_v22, %v1503_v43 }
 0x396   :  { %v1549_v42 = vadd.f32 %v3482_v60, %v1504_v6 }
 0x398   :  { %v1581_v59 = vpack.c.bf16 %v1549_v42, %v1549_v42 }
 0x39a   :  { %1614 = vst.msk [vmem:[%s3398_s7 + $0x5c] sm:$0xf] %vm1590_vm10, %v1581_v59 }
 0x3bc   :  { %v1043_v30 = vpop.f32.mrf.mxu3 }
 0x3bd   :  { %v1044_v61 = vadd.f32 %v1915_v0, %v1043_v30 }
 0x3bf   :  { %v1078_v57 = vmul.f32 %v1044_v61, %v1044_v61 }
 0x3c1   :  { %v1110_v54 = vmul.f32 %v1078_v57, %v1044_v61 }
 0x3c3   :  { %v1142_v49 = vmul.f32 0.044715, %v1110_v54 }
 0x3c4   :  { %v1045_v5 = vpop.f32.mrf.mxu3 }
 0x3c5   :  { %v1174_v55 = vadd.f32 %v1142_v49, %v1044_v61  ;;  %v1046_v32 = vadd.f32 %v1915_v0, %v1045_v5 }
 0x3c7   :  { %v1206_v4 = vmul.f32 0.7978846, %v1174_v55  ;;  %v1079_v34 = vmul.f32 %v1046_v32, %v1046_v32 }
 0x3c9   :  { %v1111_v50 = vmul.f32 %v1079_v34, %v1046_v32  ;;  %1905 = vtanh.f32 %v1206_v4 }
 0x3cb   :  { %v1143_v27 = vmul.f32 0.044715, %v1111_v50 }
 0x3cd   :  { %v1175_v18 = vadd.f32 %v1143_v27, %v1046_v32 }
 0x3cf   :  { %v1207_v12 = vmul.f32 0.7978846, %v1175_v18  ;;  %v1906_v45 = vpop.eup %1905 }
 0x3d0   :  { %v1270_v14 = vadd.f32 1.0, %v1906_v45 }
 0x3d1   :  { %1907 = vtanh.f32 %v1207_v12 }
 0x3d2   :  { %v1302_v44 = vmul.f32 0.5, %v1270_v14 }
 0x3d4   :  { %v1334_v33 = vmul.f32 %v1302_v44, %v1044_v61 }
 0x3d7   :  { %v1908_v58 = vpop.eup %1907 }
 0x3d8   :  { %v1271_v21 = vadd.f32 1.0, %v1908_v58 }
 0x3da   :  { %v1303_v56 = vmul.f32 0.5, %v1271_v21 }
 0x3dc   :  { %v1335_v63 = vmul.f32 %v1303_v56, %v1046_v32 }
 0x3de   :  { %v1351_v10 = vpack.c.bf16 %v1335_v63, %v1334_v33 }
 0x3e0   :  { %1682 = vmatmul.msk.bf16.gmra.mxu2 %vm1388_vm14, %v1351_v10  ;;  %v1506_v17 = vpop.f32.mrf.mxu2 }
 0x3e1   :  { %v1507_v38 = vadd.f32 %v3284_v22, %v1506_v17 }
 0x3e3   :  { %v1550_v11 = vadd.f32 %v2448_v28, %v1507_v38 }
 0x3e5   :  { %v1582_v48 = vpack.c.bf16 %v1550_v11, %v1550_v11 }
 0x3e7   :  { %1615 = vst.msk [vmem:[%s3398_s7 + $0x60] sm:$0xf] %vm1590_vm10, %v1582_v48 }
 0x3e8   :  { %v1508_v51 = vpop.f32.mrf.mxu2 }
 0x3e9   :  { %v1509_v53 = vadd.f32 %v3284_v22, %v1508_v51 }
 0x3eb   :  { %v1551_v37 = vadd.f32 %v3483_v26, %v1509_v53 }
 0x3ed   :  { %v1583_v39 = vpack.c.bf16 %v1551_v37, %v1551_v37 }
 0x3ef   :  { %1616 = vst.msk [vmem:[%s3398_s7 + $0x64] sm:$0xf] %vm1590_vm10, %v1583_v39 }
 0x3f0   :  { %v1511_v1 = vpop.f32.mrf.mxu2 }
 0x3f1   :  { %v1512_v28 = vadd.f32 %v3284_v22, %v1511_v1 }
 0x3f3   :  { %v1552_v19 = vadd.f32 %v3484_v47, %v1512_v28 }
 0x3f5   :  { %v1584_v7 = vpack.c.bf16 %v1552_v19, %v1552_v19 }
 0x3f7   :  { %1617 = vst.msk [vmem:[%s3398_s7 + $0x68] sm:$0xf] %vm1590_vm10, %v1584_v7 }
 0x3f8   :  { %v1513_v41 = vpop.f32.mrf.mxu2 }
 0x3f9   :  { %v1514_v25 = vadd.f32 %v3284_v22, %v1513_v41 }
 0x3fb   :  { %v1553_v13 = vadd.f32 %v3485_v2, %v1514_v25 }
 0x3fd   :  { %v1585_v9 = vpack.c.bf16 %v1553_v13, %v1553_v13 }
 0x3ff   :  { %1618 = vst.msk [vmem:[%s3398_s7 + $0x6c] sm:$0xf] %vm1590_vm10, %v1585_v9 }
 0x400   :  { %v1516_v62 = vpop.f32.mrf.mxu2 }
 0x401   :  { %v1517_v20 = vadd.f32 %v3284_v22, %v1516_v62 }
 0x403   :  { %v1554_v46 = vadd.f32 %v3486_v8, %v1517_v20 }
 0x405   :  { %v1586_v24 = vpack.c.bf16 %v1554_v46, %v1554_v46 }
 0x407   :  { %1619 = vst.msk [vmem:[%s3398_s7 + $0x70] sm:$0xf] %vm1590_vm10, %v1586_v24 }
 0x408   :  { %v1518_v23 = vpop.f32.mrf.mxu2 }
 0x409   :  { %v1519_v35 = vadd.f32 %v3284_v22, %v1518_v23 }
 0x40b   :  { %v1555_v16 = vadd.f32 %v2581_v31, %v1519_v35 }
 0x40d   :  { %v1587_v36 = vpack.c.bf16 %v1555_v16, %v1555_v16 }
 0x40f   :  { %1620 = vst.msk [vmem:[%s3398_s7 + $0x74] sm:$0xf] %vm1590_vm10, %v1587_v36 }
 0x463   :  { %v1521_v29 = vpop.f32.mrf.mxu2 }
 0x464   :  { %v1522_v52 = vadd.f32 %v3284_v22, %v1521_v29 }
 0x466   :  { %v1556_v3 = vadd.f32 %v2603_v40, %v1522_v52 }
 0x468   :  { %v1588_v43 = vpack.c.bf16 %v1556_v3, %v1556_v3 }
 0x46a   :  { %1621 = vst.msk [vmem:[%s3398_s7 + $0x78] sm:$0xf] %vm1590_vm10, %v1588_v43 }
 0x46b   :  { %v1523_v6 = vpop.f32.mrf.mxu2 }
 0x46c   :  { %v1524_v31 = vadd.f32 %v3284_v22, %v1523_v6 }
 0x46e   :  { %v1557_v60 = vadd.f32 %v2672_v15, %v1524_v31 }
 0x470   :  { %v1589_v42 = vpack.c.bf16 %v1557_v60, %v1557_v60 }
 0x472   :  { %1622 = vst.msk [vmem:[%s3398_s7 + $0x7c] sm:$0xf] %vm1590_vm10, %v1589_v42 }

// kernel: gausskey_l2p_forward.12
= control target key start
LH: loop header
LB: loop body
LE: loop exit
PB: predicated region body
PF: predicated region fallthrough
CT: control target
= control target key end

     0   :  { %s3423_s24 = smov 0   ;;  %s5216_s0 = inlined_call_operand.vmem [shape: bf16[2,128,32], index: 0, kind: input, shape index: {}]   ;;  %s5217_s1 = inlined_call_operand.vmem [shape: f32[1,32], index: 1, kind: input, shape index: {}]   ;;  %s5218_s2 = inlined_call_operand.vmem [shape: f32[1,32], index: 2, kind: input, shape index: {}]   ;;  %s5219_s3 = inlined_call_operand.vmem [shape: bf16[32,96], index: 3, kind: input, shape index: {}]   ;;  %s5220_s4 = inlined_call_operand.vmem [shape: f32[1,96], index: 4, kind: input, shape index: {}]   ;;  %s5221_s5 = inlined_call_operand.vmem [shape: bf16[32,32], index: 5, kind: input, shape index: {}]   ;;  %s5222_s6 = inlined_call_operand.vmem [shape: f32[1,32], index: 6, kind: input, shape index: {}]   ;;  %s5223_s7 = inlined_call_operand.vmem [shape: bf16[2,128,32], index: 7, kind: output, shape index: {}]  }
   0x1 LB: > { %s2905_s25 = sadd.s32 4294967295, %s3366_s24   ;;  %p2909_p0 = scmp.ge.s32.totalorder %s3366_s24, 1  ;;  %s3366_s24 = sphi %s3423_s24, %s17_s24  }
   0x2   : > { %p237_p1 = scmp.lt.s32.totalorder %s3366_s24, 3 }
   0x4   : > { %p238_p2 = pnand %p2909_p0, %p237_p1 }
   0x6   : > { %241 = sbr.rel (%p238_p2) target bundleno = 2633 (0xa49), region = 48 }
   0xb   : > { %p269_p3 = scmp.lt.s32.totalorder %s2905_s25, 1  ;;  %vm314_vm0 = vcmask 261120   ;;  %v3368_v18 = vmov 32.0   ;;  %s3369_s17 = smov 96  }
   0xc   : > { %3070 = vrcp.f32 %v3368_v18  ;;  %s3370_s18 = smov 88   ;;  %s3371_s19 = smov 64  }
   0xd   : > { %s5273_s25 = smov (!%p269_p3, %s2905_s25), 1  ;;  %s3372_s20 = smov 120  }
   0xe   : > { %s2980_s26 = sshll.u32 %s5273_s25, 6  ;;  %s3373_s21 = smov 72  }
   0xf   : > { %s3439_s29 = scalar_lea.vmem %s5216_s0, %s2980_s26  ;;  %s3374_s22 = smov 80  }
  0x10   : > { %v3020_v0 = vld [vmem:[%s3439_s29 + $0x18] sm:$0xff]   ;;  %v3019_v1 = vld [vmem:[%s3439_s29 + $0x10] sm:$0xff]   ;;  %v3021_v2 = vld [vmem:[%s3439_s29 + $0x20] sm:$0xff]   ;;  %s3375_s23 = smov 112   ;;  %s3376_s27 = smov 56  }
  0x11   : > { %v3444_v3 = vunpack.c.l.bf16 %v3020_v0  ;;  %v3446_v4 = vunpack.c.l.bf16 %v3019_v1  ;;  %v3448_v5 = vunpack.c.l.bf16 %v3021_v2  ;;  %v3456_v9 = vunpack.c.h.bf16 %v3020_v0  ;;  %v3022_v15 = vld [vmem:[%s3439_s29 + $0x28] sm:$0xff]   ;;  %v3023_v47 = vld [vmem:[%s3439_s29 + $0x30] sm:$0xff]   ;;  %v3024_v59 = vld [vmem:[%s3439_s29 + $0x38] sm:$0xff]   ;;  %s3377_s28 = smov 104   ;;  %s3379_s30 = smov 48  }
  0x12   : > { %v3458_v10 = vunpack.c.h.bf16 %v3019_v1  ;;  %v3460_v11 = vunpack.c.h.bf16 %v3021_v2  ;;  %v3469_v16 = vunpack.c.l.bf16 %v3022_v15  ;;  %v3071_v19 = vpop.eup %3070  ;;  %v3485_v37 = vunpack.c.h.bf16 %v3022_v15  ;;  %v2983_v15 = vld [vmem:[%s5219_s3 + $0x8] sm:$0xff]  ;;  %s3380_s8 = smov 8   ;;  %s3381_s9 = smov 16  }
  0x13   : > { %5238 = vst [vmem:[#allocation3_spill] sm:$0xff] %v3444_v3  ;;  %v333_v6 = vsel %vm314_vm0, %v3444_v3, 0.0  ;;  %v327_v7 = vsel %vm314_vm0, %v3446_v4, 0.0  ;;  %v339_v8 = vsel %vm314_vm0, %v3448_v5, 0.0  ;;  %v336_v12 = vsel %vm314_vm0, %v3456_v9, 0.0  ;;  %3025 = vmatpush.bf16.msra.mxu3 %v2983_v15  ;;  %770 = vmatpush.bf16.msra.mxu0 %v2983_v15  ;;  %s3382_s10 = smov 24  }
  0x14   : > { %5239 = vst [vmem:[#allocation4_spill] sm:$0xff] %v3446_v4  ;;  %334 = vadd.xlane.f32.xlu1 %v333_v6  ;;  %328 = vadd.xlane.f32.xlu0 %v327_v7  ;;  %v330_v13 = vsel %vm314_vm0, %v3458_v10, 0.0  ;;  %v342_v14 = vsel %vm314_vm0, %v3460_v11, 0.0  ;;  %v345_v17 = vsel %vm314_vm0, %v3469_v16, 0.0  ;;  %v364_v20 = vmul.f32 32.0, %v3071_v19 }
  0x15   : > { %5240 = vst [vmem:[#allocation5_spill] sm:$0xff] %v3448_v5  ;;  %340 = vadd.xlane.f32.xlu2 %v339_v8  ;;  %vm368_vm1 = vweird.f32 %v3071_v19  ;;  %v348_v44 = vsel %vm314_vm0, %v3485_v37, 0.0  ;;  %v3512_v52 = vunpack.c.l.bf16 %v3023_v47  ;;  %v3525_v61 = vunpack.c.h.bf16 %v3024_v59 }
  0x16   : > { %5241 = vst [vmem:[#allocation6_spill] sm:$0xff] %v3456_v9  ;;  %v365_v21 = vsub.f32 1.0, %v364_v20  ;;  %v3529_v63 = vunpack.c.h.bf16 %v3023_v47  ;;  %v3541_v8 = vunpack.c.l.bf16 %v3024_v59 }
  0x17   : > { %5242 = vst [vmem:[#allocation7_spill] sm:$0xff] %v3458_v10  ;;  %v351_v56 = vsel %vm314_vm0, %v3512_v52, 0.0  ;;  %v360_v1 = vsel %vm314_vm0, %v3525_v61, 0.0 }
  0x18   : > { %5243 = vst [vmem:[#allocation8_spill] sm:$0xff] %v3460_v11  ;;  %v366_v22 = vmul.f32 %v3071_v19, %v365_v21  ;;  %v354_v6 = vsel %vm314_vm0, %v3529_v63, 0.0 }
  0x19   : > { %5244 = vst [vmem:[#allocation9_spill] sm:$0xff] %v3469_v16 }
  0x1a   : > { %v367_v23 = vadd.f32 %v3071_v19, %v366_v22  ;;  %5245 = vst [vmem:[#allocation10_spill] sm:$0xff] %v3485_v37 }
  0x1b   : > { %5246 = vst [vmem:[#allocation11_spill] sm:$0xff] %v3512_v52 }
  0x1c   : > { %337 = vadd.xlane.f32.xlu1 %v336_v12  ;;  %331 = vadd.xlane.f32.xlu0 %v330_v13  ;;  %v3473_v24 = vsel %vm368_vm1, %v3071_v19, %v367_v23  ;;  %5247 = vst [vmem:[#allocation12_spill] sm:$0xff] %v3525_v61  ;;  %v357_v13 = vsel %vm314_vm0, %v3541_v8, 0.0  ;;  %v2982_v19 = vld [vmem:[%s5219_s3] sm:$0xff] }
  0x1d   : > { %343 = vadd.xlane.f32.xlu2 %v342_v14  ;;  %5248 = vst [vmem:[#allocation13_spill] sm:$0xff] %v3529_v63  ;;  %3026 = vmatpush.bf16.msra.mxu3 %v2982_v19 }
  0x1e   : > { %5249 = vst [vmem:[#allocation14_spill] sm:$0xff] %v3541_v8  ;;  %771 = vmatpush.bf16.msra.mxu0 %v2982_v19 }
  0x25   : > { %346 = vadd.xlane.f32.xlu2 %v345_v17 }
  0x87   : > { %v335_v25 = vpop.xlane.xlu1 %334  ;;  %v329_v26 = vpop.xlane.xlu0 %328 }
  0x88   : > { %v374_v27 = vmul.f32 %v3473_v24, %v329_v26  ;;  %v341_v28 = vpop.xlane.xlu2 %340  ;;  %v376_v38 = vmul.f32 %v3473_v24, %v335_v25 }
  0x89   : > { %v378_v36 = vmul.f32 %v3473_v24, %v341_v28 }
  0x8a   : > { %v3477_v29 = vsub.f32 %v3446_v4, %v374_v27  ;;  %v3504_v46 = vsub.f32 %v3444_v3, %v376_v38 }
  0x8b   : > { %v3495_v42 = vsub.f32 %v3448_v5, %v378_v36 }
  0x8c   : > { %v406_v30 = vmul.f32 %v3477_v29, %v3477_v29  ;;  %v408_v53 = vmul.f32 %v3504_v46, %v3504_v46 }
  0x8d   : > { %v410_v51 = vmul.f32 %v3495_v42, %v3495_v42 }
  0x8e   : > { %v430_v31 = vsel %vm314_vm0, %v406_v30, 0.0  ;;  %v436_v57 = vsel %vm314_vm0, %v408_v53, 0.0 }
  0x8f   : > { %v338_v32 = vpop.xlane.xlu1 %337  ;;  %431 = vadd.xlane.f32.xlu0 %v430_v31  ;;  %v332_v33 = vpop.xlane.xlu0 %331  ;;  %v442_v55 = vsel %vm314_vm0, %v410_v51, 0.0 }
  0x90   : > { %v377_v34 = vmul.f32 %v3473_v24, %v338_v32  ;;  %v375_v35 = vmul.f32 %v3473_v24, %v332_v33  ;;  %v344_v41 = vpop.xlane.xlu2 %343 }
  0x91   : > { %v379_v50 = vmul.f32 %v3473_v24, %v344_v41 }
  0x92   : > { %v3489_v39 = vsub.f32 %v3456_v9, %v377_v34  ;;  %v3492_v40 = vsub.f32 %v3458_v10, %v375_v35  ;;  %v2987_v35 = vld [vmem:[%s3439_s29] sm:$0xff]  }
  0x93   : > { %v3517_v54 = vsub.f32 %v3460_v11, %v379_v50  ;;  %v3567_v47 = vunpack.c.l.bf16 %v2987_v35 }
  0x94   : > { %v409_v43 = vmul.f32 %v3489_v39, %v3489_v39  ;;  %v407_v45 = vmul.f32 %v3492_v40, %v3492_v40 }
  0x95   : > { %v411_v62 = vmul.f32 %v3517_v54, %v3517_v54 }
  0x96   : > { %v439_v48 = vsel %vm314_vm0, %v409_v43, 0.0  ;;  %v433_v49 = vsel %vm314_vm0, %v407_v45, 0.0 }
  0x97   : > { %440 = vadd.xlane.f32.xlu2 %v439_v48  ;;  %349 = vadd.xlane.f32.xlu0 %v348_v44  ;;  %v445_v2 = vsel %vm314_vm0, %v411_v62, 0.0 }
  0x98   : > { %434 = vadd.xlane.f32.xlu1 %v433_v49  ;;  %v347_v58 = vpop.xlane.xlu2 %346 }
  0x99   : > { %v380_v60 = vmul.f32 %v3473_v24, %v347_v58  ;;  %v315_v58 = vsel %vm314_vm0, %v3567_v47, 0.0 }
  0x9b   : > { %v3532_v0 = vsub.f32 %v3469_v16, %v380_v60 }
  0x9d   : > { %v412_v7 = vmul.f32 %v3532_v0, %v3532_v0 }
  0x9f   : > { %443 = vadd.xlane.f32.xlu2 %v442_v55  ;;  %352 = vadd.xlane.f32.xlu0 %v351_v56  ;;  %v448_v12 = vsel %vm314_vm0, %v412_v7, 0.0 }
  0xa0   : > { %437 = vadd.xlane.f32.xlu1 %v436_v57 }
  0xa7   : > { %361 = vadd.xlane.f32.xlu2 %v360_v1  ;;  %446 = vadd.xlane.f32.xlu0 %v445_v2 }
  0xa8   : > { %355 = vadd.xlane.f32.xlu1 %v354_v6 }
  0xaf   : > { %449 = vadd.xlane.f32.xlu0 %v448_v12 }
  0xb0   : > { %358 = vadd.xlane.f32.xlu1 %v357_v13 }
 0x102   : > { %v432_v14 = vpop.xlane.xlu0 %431 }
 0x103   : > { %v470_v17 = vmul.f32 %v432_v14, %v3473_v24 }
 0x105   : > { %v486_v18 = vadd.f32 1e-06, %v470_v17 }
 0x107   : > { %3072 = vrsqrt.f32 %v486_v18  ;;  %vm544_vm3 = vweird.f32 %v486_v18 }
 0x10a   : > { %v441_v20 = vpop.xlane.xlu2 %440  ;;  %v350_v21 = vpop.xlane.xlu0 %349 }
 0x10b   : > { %v473_v22 = vmul.f32 %v441_v20, %v3473_v24  ;;  %v435_v23 = vpop.xlane.xlu1 %434  ;;  %v381_v25 = vmul.f32 %v3473_v24, %v350_v21 }
 0x10c   : > { %v471_v26 = vmul.f32 %v435_v23, %v3473_v24 }
 0x10d   : > { %v3073_v27 = vpop.eup %3072  ;;  %v3556_v28 = vadd.f32 1e-06, %v473_v22  ;;  %v3559_v30 = vsub.f32 %v3485_v37, %v381_v25  ;;  %v3598_v22 = vunpack.c.h.bf16 %v2987_v35 }
 0x10e   : > { %v539_v31 = vmul.f32 %v3073_v27, %v486_v18  ;;  %v487_v32 = vadd.f32 1e-06, %v471_v26  ;;  %vm545_vm2 = vweird.f32 %v3073_v27 }
 0x10f   : > { %3074 = vrsqrt.f32 %v3556_v28  ;;  %v413_v33 = vmul.f32 %v3559_v30, %v3559_v30  ;;  %vm3587_vm4 = vmor %vm544_vm3, %vm545_vm2  ;;  %vm574_vm8 = vweird.f32 %v3556_v28 }
 0x110   : > { %v540_v34 = vmul.f32 %v3073_v27, %v539_v31  ;;  %3076 = vrsqrt.f32 %v487_v32  ;;  %vm554_vm6 = vweird.f32 %v487_v32 }
 0x111   : > { %v451_v36 = vsel %vm314_vm0, %v413_v33, 0.0 }
 0x112   : > { %v541_v38 = vmul.f32 0.5, %v540_v34  ;;  %v444_v41 = vpop.xlane.xlu2 %443  ;;  %452 = vadd.xlane.f32.xlu1 %v451_v36  ;;  %v353_v43 = vpop.xlane.xlu0 %352  ;;  %v3615_v36 = vld [vmem:[%s5217_s1] ss:$0 sm:$0xff] }
 0x113   : > { %v438_v44 = vpop.xlane.xlu1 %437  ;;  %v382_v45 = vmul.f32 %v3473_v24, %v353_v43  ;;  %v474_v55 = vmul.f32 %v444_v41, %v3473_v24 }
 0x114   : > { %v542_v48 = vsub.f32 1.5, %v541_v38  ;;  %v472_v49 = vmul.f32 %v438_v44, %v3473_v24  ;;  %v318_v44 = vsel %vm314_vm0, %v3598_v22, 0.0 }
 0x115   : > { %v3570_v50 = vpop.eup %3074  ;;  %v3573_v51 = vsub.f32 %v3512_v52, %v382_v45  ;;  %v3585_v2 = vadd.f32 1e-06, %v474_v55 }
 0x116   : > { %v3077_v53 = vpop.eup %3076  ;;  %v3576_v56 = vadd.f32 1e-06, %v472_v49  ;;  %v543_v59 = vmul.f32 %v3073_v27, %v542_v48  ;;  %v569_v60 = vmul.f32 %v3570_v50, %v3556_v28  ;;  %v3018_v49 = vld [vmem:[%s3439_s29 + $0x8] sm:$0xff]   ;;  %vm575_vm9 = vweird.f32 %v3570_v50  ;;  %s3378_s29 = smov 40  }
 0x117   : > { %v549_v57 = vmul.f32 %v3077_v53, %v487_v32  ;;  %v414_v1 = vmul.f32 %v3573_v51, %v3573_v51  ;;  %vm555_vm5 = vweird.f32 %v3077_v53  ;;  %v3637_v12 = vunpack.c.l.bf16 %v3018_v49  ;;  %vm3646_vm11 = vmor %vm574_vm8, %vm575_vm9 }
 0x118   : > { %3078 = vrsqrt.f32 %v3576_v56  ;;  %v547_v18 = vsel %vm3587_vm4, %v3073_v27, %v543_v59  ;;  %v570_v20 = vmul.f32 %v3570_v50, %v569_v60  ;;  %vm556_vm7 = vmor %vm554_vm6, %vm555_vm5  ;;  %vm564_vm12 = vweird.f32 %v3576_v56 }
 0x119   : > { %v550_v62 = vmul.f32 %v3077_v53, %v549_v57  ;;  %v454_v17 = vsel %vm314_vm0, %v414_v1, 0.0  ;;  %3080 = vrsqrt.f32 %v3585_v2  ;;  %v662_v35 = vmul.f32 %v547_v18, %v3477_v29  ;;  %5252 = vst [vmem:[#allocation15_spill] sm:$0xff] %v3637_v12 }
 0x11a   : > { %v362_v6 = vpop.xlane.xlu2 %361  ;;  %v447_v7 = vpop.xlane.xlu0 %446  ;;  %316 = vadd.xlane.f32.xlu1 %v315_v58  ;;  %455 = vadd.xlane.f32.xlu2 %v454_v17  ;;  %v571_v38 = vmul.f32 0.5, %v570_v20  ;;  %vm584_vm1 = vweird.f32 %v3585_v2 }
 0x11b   : > { %v551_v13 = vmul.f32 0.5, %v550_v62  ;;  %v385_v14 = vmul.f32 %v3473_v24, %v362_v6  ;;  %v356_v15 = vpop.xlane.xlu1 %355  ;;  %v475_v19 = vmul.f32 %v447_v7, %v3473_v24  ;;  %v681_v59 = vmul.f32 %v3615_v36, %v662_v35 }
 0x11c   : > { %v383_v21 = vmul.f32 %v3473_v24, %v356_v15  ;;  %v572_v62 = vsub.f32 1.5, %v571_v38 }
 0x11d   : > { %v552_v23 = vsub.f32 1.5, %v551_v13  ;;  %v3601_v25 = vsub.f32 %v3525_v61, %v385_v14  ;;  %v3603_v26 = vadd.f32 1e-06, %v475_v19 }
 0x11e   : > { %v3079_v31 = vpop.eup %3078  ;;  %v3607_v27 = vsub.f32 %v3529_v63, %v383_v21  ;;  %v573_v18 = vmul.f32 %v3570_v50, %v572_v62 }
 0x11f   : > { %v553_v33 = vmul.f32 %v3077_v53, %v552_v23  ;;  %v559_v34 = vmul.f32 %v3079_v31, %v3576_v56  ;;  %3082 = vrsqrt.f32 %v3603_v26  ;;  %v417_v45 = vmul.f32 %v3601_v25, %v3601_v25  ;;  %v3081_v60 = vpop.eup %3080 }
 0x120   : > { %v415_v32 = vmul.f32 %v3607_v27, %v3607_v27  ;;  %vm565_vm10 = vweird.f32 %v3079_v31  ;;  %v579_v20 = vmul.f32 %v3081_v60, %v3585_v2  ;;  %vm594_vm14 = vweird.f32 %v3603_v26 }
 0x121   : > { %v557_v41 = vsel %vm556_vm7, %v3077_v53, %v553_v33  ;;  %v560_v43 = vmul.f32 %v3079_v31, %v559_v34  ;;  %v463_v58 = vsel %vm314_vm0, %v417_v45, 0.0  ;;  %v3631_v53 = vld [vmem:[%s5218_s2] ss:$0 sm:$0xff]  ;;  %vm566_vm13 = vmor %vm564_vm12, %vm565_vm10  ;;  %v321_v33 = vsel %vm314_vm0, %v3637_v12, 0.0 }
 0x122   : > { %v457_v29 = vsel %vm314_vm0, %v415_v32, 0.0  ;;  %v663_v48 = vmul.f32 %v557_v41, %v3492_v40  ;;  %319 = vadd.xlane.f32.xlu2 %v318_v44  ;;  %464 = vadd.xlane.f32.xlu1 %v463_v58  ;;  %v700_v17 = vadd.f32 %v3631_v53, %v681_v59  ;;  %v577_v32 = vsel %vm3646_vm11, %v3570_v50, %v573_v18 }
 0x123   : > { %v561_v55 = vmul.f32 0.5, %v560_v43  ;;  %458 = vadd.xlane.f32.xlu0 %v457_v29  ;;  %v359_v57 = vpop.xlane.xlu1 %358  ;;  %v580_v56 = vmul.f32 %v3081_v60, %v579_v20  ;;  %v3661_v41 = vunpack.c.h.bf16 %v3018_v49  ;;  %v665_v45 = vmul.f32 %v577_v32, %v3489_v39 }
 0x124   : > { %v384_v1 = vmul.f32 %v3473_v24, %v359_v57  ;;  %v682_v40 = vmul.f32 %v3615_v36, %v663_v48  ;;  %vm585_vm2 = vweird.f32 %v3081_v60 }
 0x125   : > { %v3083_v6 = vpop.eup %3082  ;;  %v562_v7 = vsub.f32 1.5, %v561_v55  ;;  %5255 = vst [vmem:[#allocation16_spill] sm:$0xff] %v3661_v41  ;;  %v324_v29 = vsel %vm314_vm0, %v3661_v41, 0.0  ;;  %v684_v57 = vmul.f32 %v3615_v36, %v665_v45  ;;  %vm586_vm4 = vmor %vm584_vm1, %vm585_vm2 }
 0x126   : > { %v589_v13 = vmul.f32 %v3083_v6, %v3603_v26  ;;  %v3641_v14 = vsub.f32 %v3541_v8, %v384_v1  ;;  %v701_v19 = vadd.f32 %v3631_v53, %v682_v40  ;;  %vm595_vm15 = vweird.f32 %v3083_v6 }
 0x127   : > { %v563_v15 = vmul.f32 %v3079_v31, %v562_v7  ;;  %vm596_vm3 = vmor %vm594_vm14, %vm595_vm15 }
 0x128   : > { %v416_v21 = vmul.f32 %v3641_v14, %v3641_v14  ;;  %v714_v23 = vpack.c.bf16 %v701_v19, %v700_v17  ;;  %v590_v35 = vmul.f32 %v3083_v6, %v589_v13  ;;  %v450_v19 = vpop.xlane.xlu0 %449 }
 0x129   : > { %v567_v34 = vsel %vm566_vm13, %v3079_v31, %v563_v15  ;;  %v581_v31 = vmul.f32 0.5, %v580_v56 }
 0x12a   : > { %v460_v38 = vsel %vm314_vm0, %v416_v21, 0.0  ;;  %2924 = vmatmul.msk.bf16.vlgmr.msra.gmra.mxu3 %vm314_vm0, %v714_v23  ;;  %322 = vadd.xlane.f32.xlu2 %v321_v33  ;;  %v664_v43 = vmul.f32 %v567_v34, %v3504_v46  ;;  %v591_v44 = vmul.f32 0.5, %v590_v35  ;;  %v703_v46 = vadd.f32 %v3631_v53, %v684_v57 }
 0x12b   : > { %461 = vadd.xlane.f32.xlu0 %v460_v38  ;;  %v582_v50 = vsub.f32 1.5, %v581_v31 }
 0x12c   : > { %v683_v48 = vmul.f32 %v3615_v36, %v664_v43  ;;  %v592_v55 = vsub.f32 1.5, %v591_v44 }
 0x12d   : > { %v583_v58 = vmul.f32 %v3081_v60, %v582_v50 }
 0x12e   : > { %v702_v49 = vadd.f32 %v3631_v53, %v683_v48  ;;  %v593_v39 = vmul.f32 %v3083_v6, %v592_v55 }
 0x12f   : > { %v587_v1 = vsel %vm586_vm4, %v3081_v60, %v583_v58 }
 0x130   : > { %v715_v59 = vpack.c.bf16 %v703_v46, %v702_v49  ;;  %v597_v62 = vsel %vm596_vm3, %v3083_v6, %v593_v39  ;;  %v666_v26 = vmul.f32 %v587_v1, %v3495_v42  ;;  %v476_v6 = vmul.f32 %v450_v19, %v3473_v24 }
 0x131   : > { %v667_v40 = vmul.f32 %v597_v62, %v3517_v54 }
 0x132   : > { %v685_v2 = vmul.f32 %v3615_v36, %v666_v26  ;;  %v492_v18 = vadd.f32 1e-06, %v476_v6 }
 0x133   : > { %325 = vadd.xlane.f32.xlu0 %v324_v29  ;;  %v686_v7 = vmul.f32 %v3615_v36, %v667_v40 }
 0x134   : > { %v704_v15 = vadd.f32 %v3631_v53, %v685_v2  ;;  %3084 = vrsqrt.f32 %v492_v18  ;;  %vm604_vm5 = vweird.f32 %v492_v18 }
 0x135   : > { %v705_v13 = vadd.f32 %v3631_v53, %v686_v7 }
 0x137   : > { %v716_v17 = vpack.c.bf16 %v705_v13, %v704_v15 }
 0x13a   : > { %2925 = vmatmul.msk.bf16.gmra.mxu3 %vm314_vm0, %v715_v59  ;;  %v3085_v60 = vpop.eup %3084 }
 0x13b   : > { %v599_v54 = vmul.f32 %v3085_v60, %v492_v18  ;;  %vm605_vm6 = vweird.f32 %v3085_v60 }
 0x13c   : > { %vm3690_vm7 = vmor %vm604_vm5, %vm605_vm6 }
 0x13d   : > { %v600_v20 = vmul.f32 %v3085_v60, %v599_v54 }
 0x13f   : > { %v601_v23 = vmul.f32 0.5, %v600_v20 }
 0x141   : > { %v602_v35 = vsub.f32 1.5, %v601_v23 }
 0x143   : > { %v603_v29 = vmul.f32 %v3085_v60, %v602_v35 }
 0x145   : > { %v607_v39 = vsel %vm3690_vm7, %v3085_v60, %v603_v29 }
 0x14a   : > { %2926 = vmatmul.msk.bf16.gmra.mxu3 %vm314_vm0, %v716_v17  ;;  %v668_v17 = vmul.f32 %v607_v39, %v3532_v0 }
 0x14c   : > { %v687_v20 = vmul.f32 %v3615_v36, %v668_v17 }
 0x14e   : > { %v706_v29 = vadd.f32 %v3631_v53, %v687_v20 }
 0x185   : > { %v453_v28 = vpop.xlane.xlu1 %452 }
 0x186   : > { %v477_v42 = vmul.f32 %v453_v28, %v3473_v24 }
 0x188   : > { %v493_v21 = vadd.f32 1e-06, %v477_v42 }
 0x18a   : > { %3086 = vrsqrt.f32 %v493_v21  ;;  %vm614_vm9 = vweird.f32 %v493_v21 }
 0x18d   : > { %v317_v33 = vpop.xlane.xlu1 %316  ;;  %v456_v38 = vpop.xlane.xlu2 %455 }
 0x18e   : > { %v370_v34 = vmul.f32 %v3473_v24, %v317_v33  ;;  %v478_v56 = vmul.f32 %v456_v38, %v3473_v24 }
 0x190   : > { %v3087_v32 = vpop.eup %3086  ;;  %v3686_v43 = vsub.f32 %v3567_v47, %v370_v34  ;;  %v494_v45 = vadd.f32 1e-06, %v478_v56 }
 0x191   : > { %v609_v44 = vmul.f32 %v3087_v32, %v493_v21  ;;  %vm615_vm8 = vweird.f32 %v3087_v32 }
 0x192   : > { %v402_v31 = vmul.f32 %v3686_v43, %v3686_v43  ;;  %3088 = vrsqrt.f32 %v494_v45  ;;  %vm616_vm10 = vmor %vm614_vm9, %vm615_vm8  ;;  %vm624_vm12 = vweird.f32 %v494_v45 }
 0x193   : > { %v610_v48 = vmul.f32 %v3087_v32, %v609_v44 }
 0x194   : > { %v418_v57 = vsel %vm314_vm0, %v402_v31, 0.0 }
 0x195   : > { %v611_v50 = vmul.f32 0.5, %v610_v48  ;;  %419 = vadd.xlane.f32.xlu1 %v418_v57  ;;  %v320_v59 = vpop.xlane.xlu2 %319  ;;  %v465_v62 = vpop.xlane.xlu1 %464 }
 0x196   : > { %v459_v49 = vpop.xlane.xlu0 %458  ;;  %v371_v1 = vmul.f32 %v3473_v24, %v320_v59  ;;  %v481_v40 = vmul.f32 %v465_v62, %v3473_v24 }
 0x197   : > { %v612_v46 = vsub.f32 1.5, %v611_v50  ;;  %v479_v58 = vmul.f32 %v459_v49, %v3473_v24 }
 0x198   : > { %v3089_v2 = vpop.eup %3088  ;;  %v3701_v13 = vsub.f32 %v3598_v22, %v371_v1  ;;  %v3703_v15 = vadd.f32 1e-06, %v481_v40 }
 0x199   : > { %v613_v26 = vmul.f32 %v3087_v32, %v612_v46  ;;  %v495_v7 = vadd.f32 1e-06, %v479_v58  ;;  %v619_v6 = vmul.f32 %v3089_v2, %v494_v45  ;;  %vm625_vm11 = vweird.f32 %v3089_v2 }
 0x19a   : > { %v403_v18 = vmul.f32 %v3701_v13, %v3701_v13  ;;  %vm626_vm13 = vmor %vm624_vm12, %vm625_vm11  ;;  %vm654_vm2 = vweird.f32 %v3703_v15 }
 0x19b   : > { %v617_v19 = vsel %vm616_vm10, %v3087_v32, %v613_v26  ;;  %3090 = vrsqrt.f32 %v495_v7  ;;  %v620_v60 = vmul.f32 %v3089_v2, %v619_v6  ;;  %vm634_vm15 = vweird.f32 %v495_v7 }
 0x19c   : > { %3092 = vrsqrt.f32 %v3703_v15  ;;  %v669_v54 = vmul.f32 %v617_v19, %v3559_v30  ;;  %v421_v42 = vsel %vm314_vm0, %v403_v18, 0.0 }
 0x19d   : > { %v621_v21 = vmul.f32 0.5, %v620_v60  ;;  %422 = vadd.xlane.f32.xlu2 %v421_v42  ;;  %v323_v0 = vpop.xlane.xlu2 %322 }
 0x19e   : > { %v462_v28 = vpop.xlane.xlu0 %461  ;;  %v688_v33 = vmul.f32 %v3615_v36, %v669_v54  ;;  %v372_v34 = vmul.f32 %v3473_v24, %v323_v0 }
 0x19f   : > { %v480_v23 = vmul.f32 %v462_v28, %v3473_v24  ;;  %v622_v38 = vsub.f32 1.5, %v621_v21  ;;  %v3739_v28 = vld [vmem:[%s5220_s4] ss:$0 sm:$0xff] }
 0x1a0   : > { %v707_v56 = vadd.f32 %v3631_v53, %v688_v33  ;;  %v3719_v31 = vsub.f32 %v3637_v12, %v372_v34 }
 0x1a1   : > { %v3091_v35 = vpop.eup %3090  ;;  %v496_v32 = vadd.f32 1e-06, %v480_v23  ;;  %v623_v48 = vmul.f32 %v3089_v2, %v622_v38 }
 0x1a2   : > { %v3716_v30 = vpop.eup %3092  ;;  %v629_v44 = vmul.f32 %v3091_v35, %v495_v7  ;;  %v717_v50 = vpack.c.bf16 %v707_v56, %v706_v29  ;;  %v404_v49 = vmul.f32 %v3719_v31, %v3719_v31  ;;  %vm635_vm14 = vweird.f32 %v3091_v35 }
 0x1a3   : > { %v649_v55 = vmul.f32 %v3716_v30, %v3703_v15  ;;  %3094 = vrsqrt.f32 %v496_v32  ;;  %v627_v39 = vsel %vm626_vm13, %v3089_v2, %v623_v48  ;;  %vm636_vm1 = vmor %vm634_vm15, %vm635_vm14  ;;  %vm655_vm3 = vweird.f32 %v3716_v30 }
 0x1a4   : > { %v630_v57 = vmul.f32 %v3091_v35, %v629_v44  ;;  %2927 = vmatmul.msk.bf16.gmra.mxu3 %vm314_vm0, %v717_v50  ;;  %v424_v59 = vsel %vm314_vm0, %v404_v49, 0.0  ;;  %v670_v17 = vmul.f32 %v627_v39, %v3573_v51  ;;  %vm656_vm5 = vmor %vm654_vm2, %vm655_vm3  ;;  %vm644_vm6 = vweird.f32 %v496_v32 }
 0x1a5   : > { %v650_v62 = vmul.f32 %v3716_v30, %v649_v55  ;;  %425 = vadd.xlane.f32.xlu0 %v424_v59 }
 0x1a6   : > { %v631_v46 = vmul.f32 0.5, %v630_v57  ;;  %v326_v58 = vpop.xlane.xlu0 %325  ;;  %v689_v51 = vmul.f32 %v3615_v36, %v670_v17 }
 0x1a7   : > { %v373_v1 = vmul.f32 %v3473_v24, %v326_v58  ;;  %v651_v6 = vmul.f32 0.5, %v650_v62 }
 0x1a8   : > { %v632_v40 = vsub.f32 1.5, %v631_v46 }
 0x1a9   : > { %v3095_v45 = vpop.eup %3094  ;;  %v3731_v26 = vsub.f32 %v3661_v41, %v373_v1  ;;  %v652_v23 = vsub.f32 1.5, %v651_v6 }
 0x1aa   : > { %v633_v2 = vmul.f32 %v3091_v35, %v632_v40  ;;  %v639_v19 = vmul.f32 %v3095_v45, %v496_v32  ;;  %vm645_vm4 = vweird.f32 %v3095_v45 }
 0x1ab   : > { %v405_v18 = vmul.f32 %v3731_v26, %v3731_v26  ;;  %v653_v56 = vmul.f32 %v3716_v30, %v652_v23  ;;  %vm646_vm7 = vmor %vm644_vm6, %vm645_vm4 }
 0x1ac   : > { %v637_v60 = vsel %vm636_vm1, %v3091_v35, %v633_v2  ;;  %v640_v54 = vmul.f32 %v3095_v45, %v639_v19  ;;  %v708_v35 = vadd.f32 %v3631_v53, %v689_v51 }
 0x1ad   : > { %v427_v42 = vsel %vm314_vm0, %v405_v18, 0.0  ;;  %v671_v20 = vmul.f32 %v637_v60, %v3607_v27  ;;  %v783_v21 = vpop.f32.mrf.mxu3  ;;  %v657_v55 = vsel %vm656_vm5, %v3716_v30, %v653_v56  ;;  %vm960_vm5 = vcmask 64512  }
 0x1ae   : > { %v641_v7 = vmul.f32 0.5, %v640_v54  ;;  %428 = vadd.xlane.f32.xlu1 %v427_v42  ;;  %v3748_v34 = vadd.f32 %v3739_v28, %v783_v21  ;;  %v673_v32 = vmul.f32 %v657_v55, %v3601_v25 }
 0x1af   : > { %v690_v0 = vmul.f32 %v3615_v36, %v671_v20 }
 0x1b0   : > { %v642_v33 = vsub.f32 1.5, %v641_v7  ;;  %v817_v15 = vmul.f32 0.35355338, %v3748_v34  ;;  %v692_v40 = vmul.f32 %v3615_v36, %v673_v32 }
 0x1b1   : > { %v709_v27 = vadd.f32 %v3631_v53, %v690_v0 }
 0x1b2   : > { %v643_v38 = vmul.f32 %v3095_v45, %v642_v33  ;;  %v833_v49 = vpack.c.bf16 %v817_v15, %v817_v15 }
 0x1b3   : > { %v718_v44 = vpack.c.bf16 %v709_v27, %v708_v35 }
 0x1b4   : > { %v647_v29 = vsel %vm646_vm7, %v3095_v45, %v643_v38  ;;  %v884_v59 = vunpack.c.l.b16 %v833_v49  ;;  %vm1749_vm7 = vcmask 130112  }
 0x1b5   : > { %v785_v48 = vpop.f32.mrf.mxu3  ;;  %2928 = vmatmul.msk.bf16.gmra.mxu3 %vm314_vm0, %v718_v44  ;;  %v672_v50 = vmul.f32 %v647_v29, %v3641_v14  ;;  %v711_v14 = vadd.f32 %v3631_v53, %v692_v40 }
 0x1b6   : > { %v3757_v57 = vadd.f32 %v3739_v28, %v785_v48 }
 0x1b7   : > { %v691_v58 = vmul.f32 %v3615_v36, %v672_v50 }
 0x1b8   : > { %v818_v39 = vmul.f32 0.35355338, %v3757_v57 }
 0x1b9   : > { %v710_v30 = vadd.f32 %v3631_v53, %v691_v58 }
 0x1ba   : > { %v834_v46 = vpack.c.bf16 %v818_v39, %v818_v39 }
 0x1bb   : > { %v719_v2 = vpack.c.bf16 %v711_v14, %v710_v30 }
 0x1bc   : > { %v885_v62 = vunpack.c.l.b16 %v834_v46 }
 0x1bd   : > { %v788_v1 = vpop.f32.mrf.mxu3 }
 0x1be   : > { %v3764_v45 = vpack.c.b16 %v885_v62, %v884_v59  ;;  %v3768_v17 = vadd.f32 %v3739_v28, %v788_v1 }
 0x1c0   : > { %v819_v25 = vmul.f32 0.35355338, %v3768_v17 }
 0x1c2   : > { %v835_v18 = vpack.c.bf16 %v819_v25, %v819_v25 }
 0x1c4   : > { %v886_v42 = vunpack.c.l.b16 %v835_v18 }
 0x1c5   : > { %v790_v19 = vpop.f32.mrf.mxu3  ;;  %2929 = vmatmul.msk.bf16.gmra.mxu3 %vm314_vm0, %v719_v2 }
 0x1c6   : > { %v3774_v6 = vadd.f32 %v3739_v28, %v790_v19 }
 0x1c8   : > { %v820_v60 = vmul.f32 0.35355338, %v3774_v6 }
 0x1ca   : > { %v836_v54 = vpack.c.bf16 %v820_v60, %v820_v60 }
 0x1cc   : > { %v887_v20 = vunpack.c.l.b16 %v836_v54 }
 0x1cd   : > { %v793_v51 = vpop.f32.mrf.mxu3 }
 0x1ce   : > { %v3777_v7 = vpack.c.b16 %v887_v20, %v886_v42  ;;  %v3780_v21 = vadd.f32 %v3739_v28, %v793_v51 }
 0x1d0   : > { %v821_v23 = vmul.f32 0.35355338, %v3780_v21 }
 0x1d2   : > { %v837_v35 = vpack.c.bf16 %v821_v23, %v821_v23 }
 0x1d4   : > { %v888_v56 = vunpack.c.l.b16 %v837_v35 }
 0x1d5   : > { %v795_v0 = vpop.f32.mrf.mxu3 }
 0x1d6   : > { %v3784_v33 = vadd.f32 %v3739_v28, %v795_v0 }
 0x1d8   : > { %v822_v27 = vmul.f32 0.35355338, %v3784_v33 }
 0x1da   : > { %v838_v38 = vpack.c.bf16 %v822_v27, %v822_v27 }
 0x1dc   : > { %v889_v44 = vunpack.c.l.b16 %v838_v38 }
 0x1de   : > { %v3787_v29 = vpack.c.b16 %v889_v44, %v888_v56 }
 0x208   : > { %v420_v15 = vpop.xlane.xlu1 %419 }
 0x209   : > { %v466_v48 = vmul.f32 %v420_v15, %v3473_v24 }
 0x20b   : > { %v482_v55 = vadd.f32 1e-06, %v466_v48 }
 0x20d   : > { %3096 = vrsqrt.f32 %v482_v55  ;;  %vm504_vm8 = vweird.f32 %v482_v55 }
 0x210   : > { %v423_v50 = vpop.xlane.xlu2 %422 }
 0x211   : > { %v467_v39 = vmul.f32 %v423_v50, %v3473_v24 }
 0x213   : > { %v3097_v49 = vpop.eup %3096  ;;  %v483_v46 = vadd.f32 1e-06, %v467_v39 }
 0x214   : > { %v499_v32 = vmul.f32 %v3097_v49, %v482_v55  ;;  %vm505_vm9 = vweird.f32 %v3097_v49 }
 0x215   : > { %3098 = vrsqrt.f32 %v483_v46  ;;  %vm506_vm10 = vmor %vm504_vm8, %vm505_vm9  ;;  %vm514_vm12 = vweird.f32 %v483_v46  ;;  %vm2200_vm8 = vcmask 195712   ;;  %vm2651_vm9 = vcmask 261312  }
 0x216   : > { %v500_v58 = vmul.f32 %v3097_v49, %v499_v32 }
 0x218   : > { %v501_v59 = vmul.f32 0.5, %v500_v58  ;;  %v426_v1 = vpop.xlane.xlu0 %425 }
 0x219   : > { %v468_v40 = vmul.f32 %v426_v1, %v3473_v24 }
 0x21a   : > { %v502_v62 = vsub.f32 1.5, %v501_v59 }
 0x21b   : > { %v3099_v30 = vpop.eup %3098  ;;  %v484_v14 = vadd.f32 1e-06, %v468_v40 }
 0x21c   : > { %v503_v2 = vmul.f32 %v3097_v49, %v502_v62  ;;  %v509_v25 = vmul.f32 %v3099_v30, %v483_v46  ;;  %vm515_vm11 = vweird.f32 %v3099_v30 }
 0x21d   : > { %3100 = vrsqrt.f32 %v484_v14  ;;  %vm516_vm13 = vmor %vm514_vm12, %vm515_vm11  ;;  %vm524_vm14 = vweird.f32 %v484_v14 }
 0x21e   : > { %v510_v19 = vmul.f32 %v3099_v30, %v509_v25  ;;  %v507_v60 = vsel %vm506_vm10, %v3097_v49, %v503_v2  ;;  %vm2833_vm10 = vcmask 257024  }
 0x21f   : > { %v658_v0 = vmul.f32 %v507_v60, %v3686_v43 }
 0x220   : > { %v511_v54 = vmul.f32 0.5, %v510_v19 }
 0x221   : > { %v429_v18 = vpop.xlane.xlu1 %428  ;;  %v677_v48 = vmul.f32 %v3615_v36, %v658_v0 }
 0x222   : > { %v469_v42 = vmul.f32 %v429_v18, %v3473_v24  ;;  %v512_v20 = vsub.f32 1.5, %v511_v54 }
 0x223   : > { %v3101_v23 = vpop.eup %3100  ;;  %v696_v32 = vadd.f32 %v3631_v53, %v677_v48 }
 0x224   : > { %v485_v51 = vadd.f32 1e-06, %v469_v42  ;;  %v513_v35 = vmul.f32 %v3099_v30, %v512_v20  ;;  %v519_v27 = vmul.f32 %v3101_v23, %v484_v14  ;;  %vm525_vm15 = vweird.f32 %v3101_v23 }
 0x225   : > { %vm526_vm1 = vmor %vm524_vm14, %vm525_vm15 }
 0x226   : > { %3102 = vrsqrt.f32 %v485_v51  ;;  %v517_v38 = vsel %vm516_vm13, %v3099_v30, %v513_v35  ;;  %v520_v56 = vmul.f32 %v3101_v23, %v519_v27  ;;  %vm534_vm3 = vweird.f32 %v485_v51 }
 0x227   : > { %v798_v44 = vpop.f32.mrf.mxu3  ;;  %v659_v15 = vmul.f32 %v517_v38, %v3701_v13 }
 0x228   : > { %v521_v55 = vmul.f32 0.5, %v520_v56  ;;  %v799_v24 = vadd.f32 %v3739_v28, %v798_v44 }
 0x229   : > { %v678_v50 = vmul.f32 %v3615_v36, %v659_v15 }
 0x22a   : > { %v522_v39 = vsub.f32 1.5, %v521_v55  ;;  %v823_v62 = vmul.f32 0.35355338, %v799_v24  ;;  %v855_v2 = vpack.c.bf16 %v799_v24, %v799_v24 }
 0x22b   : > { %v697_v46 = vadd.f32 %v3631_v53, %v678_v50 }
 0x22c   : > { %v3103_v49 = vpop.eup %3102  ;;  %v523_v58 = vmul.f32 %v3101_v23, %v522_v39  ;;  %v839_v19 = vpack.c.bf16 %v823_v62, %v823_v62  ;;  %v930_v20 = vunpack.c.l.b16 %v855_v2 }
 0x22d   : > { %v529_v43 = vmul.f32 %v3103_v49, %v485_v51  ;;  %v712_v13 = vpack.c.bf16 %v697_v46, %v696_v32  ;;  %vm535_vm2 = vweird.f32 %v3103_v49 }
 0x22e   : > { %v527_v1 = vsel %vm526_vm1, %v3101_v23, %v523_v58  ;;  %vm536_vm4 = vmor %vm534_vm3, %vm535_vm2  ;;  %v890_v27 = vunpack.c.l.b16 %v839_v19 }
 0x22f   : > { %v530_v59 = vmul.f32 %v3103_v49, %v529_v43  ;;  %2922 = vmatmul.msk.bf16.vlgmr.msra.gmra.mxu0 %vm314_vm0, %v712_v13  ;;  %v800_v30 = vpop.f32.mrf.mxu3  ;;  %v660_v54 = vmul.f32 %v527_v1, %v3719_v31  ;;  %v852_v1 = vpack.c.bf16 %v3774_v6, %v3774_v6 }
 0x230   : > { %v801_v25 = vadd.f32 %v3739_v28, %v800_v30 }
 0x231   : > { %v531_v40 = vmul.f32 0.5, %v530_v59  ;;  %v679_v15 = vmul.f32 %v3615_v36, %v660_v54  ;;  %v927_v19 = vunpack.c.l.b16 %v852_v1 }
 0x232   : > { %v824_v18 = vmul.f32 0.35355338, %v801_v25  ;;  %v856_v60 = vpack.c.bf16 %v801_v25, %v801_v25  ;;  %v851_v25 = vpack.c.bf16 %v3768_v17, %v3768_v17 }
 0x233   : > { %v532_v14 = vsub.f32 1.5, %v531_v40  ;;  %v698_v24 = vadd.f32 %v3631_v53, %v679_v15  ;;  %v854_v15 = vpack.c.bf16 %v3784_v33, %v3784_v33  ;;  %v849_v33 = vpack.c.bf16 %v3748_v34, %v3748_v34 }
 0x234   : > { %v840_v0 = vpack.c.bf16 %v824_v18, %v824_v18  ;;  %v931_v23 = vunpack.c.l.b16 %v856_v60  ;;  %v926_v60 = vunpack.c.l.b16 %v851_v25 }
 0x235   : > { %v533_v42 = vmul.f32 %v3103_v49, %v532_v14 }
 0x236   : > { %v891_v38 = vunpack.c.l.b16 %v840_v0  ;;  %v3803_v56 = vpack.c.b16 %v931_v23, %v930_v20  ;;  %v3828_v54 = vpack.c.b16 %v927_v19, %v926_v60 }
 0x237   : > { %v537_v35 = vsel %vm536_vm4, %v3103_v49, %v533_v42 }
 0x238   : > { %v661_v44 = vmul.f32 %v537_v35, %v3731_v26  ;;  %v803_v48 = vpop.f32.mrf.mxu3  ;;  %v3807_v55 = vpack.c.b16 %v891_v38, %v890_v27  ;;  %954 = vrot.lane.b32.xlu1 %v3803_v56, %s3369_s17 }
 0x239   : > { %v804_v51 = vadd.f32 %v3739_v28, %v803_v48 }
 0x23a   : > { %v680_v31 = vmul.f32 %v3615_v36, %v661_v44 }
 0x23b   : > { %v825_v39 = vmul.f32 0.35355338, %v804_v51  ;;  %v857_v43 = vpack.c.bf16 %v804_v51, %v804_v51 }
 0x23c   : > { %v699_v50 = vadd.f32 %v3631_v53, %v680_v31 }
 0x23d   : > { %v841_v46 = vpack.c.bf16 %v825_v39, %v825_v39  ;;  %v932_v62 = vunpack.c.l.b16 %v857_v43 }
 0x23e   : > { %v713_v49 = vpack.c.bf16 %v699_v50, %v698_v24  ;;  %v853_v24 = vpack.c.bf16 %v3780_v21, %v3780_v21  ;;  %v924_v21 = vunpack.c.l.b16 %v849_v33 }
 0x23f   : > { %v892_v40 = vunpack.c.l.b16 %v841_v46 }
 0x240   : > { %2923 = vmatmul.msk.bf16.gmra.mxu0 %vm314_vm0, %v713_v49  ;;  %v805_v26 = vpop.f32.mrf.mxu3  ;;  %v929_v49 = vunpack.c.l.b16 %v854_v15  ;;  %v928_v39 = vunpack.c.l.b16 %v853_v24 }
 0x241   : > { %v806_v32 = vadd.f32 %v3739_v28, %v805_v26  ;;  %v850_v26 = vpack.c.bf16 %v3757_v57, %v3757_v57 }
 0x242   : > { %v3845_v43 = vpack.c.b16 %v929_v49, %v928_v39 }
 0x243   : > { %v826_v58 = vmul.f32 0.35355338, %v806_v32  ;;  %v858_v59 = vpack.c.bf16 %v806_v32, %v806_v32  ;;  %v925_v32 = vunpack.c.l.b16 %v850_v26 }
 0x245   : > { %v842_v13 = vpack.c.bf16 %v826_v58, %v826_v58  ;;  %v933_v36 = vunpack.c.l.b16 %v858_v59  ;;  %v3851_v46 = vpack.c.b16 %v925_v32, %v924_v21 }
 0x247   : > { %v893_v30 = vunpack.c.l.b16 %v842_v13  ;;  %v3819_v53 = vpack.c.b16 %v933_v36, %v932_v62 }
 0x248   : > { %v808_v2 = vpop.f32.mrf.mxu3 }
 0x249   : > { %v3823_v14 = vpack.c.b16 %v893_v30, %v892_v40  ;;  %956 = vrot.lane.b32.xlu0 %v3819_v53, %s3369_s17  ;;  %v809_v18 = vadd.f32 %v3739_v28, %v808_v2 }
 0x24b   : > { %v827_v6 = vmul.f32 0.35355338, %v809_v18  ;;  %v859_v20 = vpack.c.bf16 %v809_v18, %v809_v18 }
 0x24d   : > { %v843_v17 = vpack.c.bf16 %v827_v6, %v827_v6  ;;  %v934_v27 = vunpack.c.l.b16 %v859_v20 }
 0x24f   : > { %v894_v48 = vunpack.c.l.b16 %v843_v17 }
 0x250   : > { %v810_v42 = vpop.f32.mrf.mxu3 }
 0x251   : > { %v811_v0 = vadd.f32 %v3739_v28, %v810_v42  ;;  %950 = vrot.lane.b32.xlu0 %v3828_v54, %s3369_s17 }
 0x253   : > { %v828_v23 = vmul.f32 0.35355338, %v811_v0  ;;  %v860_v35 = vpack.c.bf16 %v811_v0, %v811_v0 }
 0x255   : > { %v844_v38 = vpack.c.bf16 %v828_v23, %v828_v23  ;;  %v935_v44 = vunpack.c.l.b16 %v860_v35 }
 0x257   : > { %v895_v31 = vunpack.c.l.b16 %v844_v38  ;;  %v3835_v51 = vpack.c.b16 %v935_v44, %v934_v27 }
 0x259   : > { %v3839_v50 = vpack.c.b16 %v895_v31, %v894_v48  ;;  %958 = vrot.lane.b32.xlu2 %v3835_v51, %s3369_s17 }
 0x261   : > { %952 = vrot.lane.b32.xlu2 %v3845_v43, %s3369_s17 }
 0x269   : > { %948 = vrot.lane.b32.xlu2 %v3851_v46, %s3369_s17 }
 0x271   : > { %1339 = vrot.lane.b32.xlu2 %v3845_v43, %s3370_s18 }
 0x2aa   : > { %v955_v60 = vpop.permute.xlu1 %954 }
 0x2ab   : > { %v1001_v42 = vsel %vm960_vm5, %v955_v60, 0 }
 0x2ac   : > { %v773_v57 = vpop.f32.mrf.mxu0 }
 0x2ad   : > { %v774_v58 = vadd.f32 %v3739_v28, %v773_v57 }
 0x2af   : > { %v845_v13 = vpack.c.bf16 %v774_v58, %v774_v58 }
 0x2b1   : > { %v920_v40 = vunpack.c.l.b16 %v845_v13 }
 0x2b3   : > { %v959_v59 = vpop.permute.xlu2 %958 }
 0x2b4   : > { %v1007_v34 = vsel %vm960_vm5, %v959_v59, 0  ;;  %v775_v62 = vpop.f32.mrf.mxu0 }
 0x2b5   : > { %1009 = vmatpush.bf16.xpose.msra.mxu1 %v1007_v34  ;;  %v776_v36 = vadd.f32 %v3739_v28, %v775_v62  ;;  %v813_v34 = vmul.f32 0.35355338, %v774_v58 }
 0x2b7   : > { %v846_v1 = vpack.c.bf16 %v776_v36, %v776_v36  ;;  %v814_v59 = vmul.f32 0.35355338, %v776_v36  ;;  %v829_v13 = vpack.c.bf16 %v813_v34, %v813_v34 }
 0x2b9   : > { %v921_v30 = vunpack.c.l.b16 %v846_v1  ;;  %v830_v62 = vpack.c.bf16 %v814_v59, %v814_v59 }
 0x2bb   : > { %v957_v2 = vpop.permute.xlu0 %956  ;;  %v3860_v25 = vpack.c.b16 %v921_v30, %v920_v40  ;;  %v953_v27 = vpop.permute.xlu2 %952  ;;  %v881_v1 = vunpack.c.l.b16 %v830_v62  ;;  %v880_v40 = vunpack.c.l.b16 %v829_v13 }
 0x2bc   : > { %v1004_v19 = vsel %vm960_vm5, %v957_v2, 0  ;;  %v998_v24 = vsel %vm960_vm5, %v953_v27, 0 }
 0x2bd   : > { %v778_v18 = vpop.f32.mrf.mxu0  ;;  %1010 = vmatpush.bf16.xpose.msra.mxu1 %v1004_v19  ;;  %944 = vrot.lane.b32.xlu0 %v3860_v25, %s3369_s17  ;;  %v896_v30 = vpack.c.b16 %v881_v1, %v880_v40 }
 0x2be   : > { %v779_v6 = vadd.f32 %v3739_v28, %v778_v18 }
 0x2c0   : > { %v847_v0 = vpack.c.bf16 %v779_v6, %v779_v6  ;;  %v815_v38 = vmul.f32 0.35355338, %v779_v6 }
 0x2c2   : > { %v922_v44 = vunpack.c.l.b16 %v847_v0  ;;  %v831_v49 = vpack.c.bf16 %v815_v38, %v815_v38 }
 0x2c3   : > { %v951_v39 = vpop.permute.xlu0 %950  ;;  %v949_v21 = vpop.permute.xlu2 %948 }
 0x2c4   : > { %v882_v26 = vunpack.c.l.b16 %v831_v49  ;;  %v995_v32 = vsel %vm960_vm5, %v951_v39, 0  ;;  %v992_v57 = vsel %vm960_vm5, %v949_v21, 0 }
 0x2c5   : > { %v780_v20 = vpop.f32.mrf.mxu0  ;;  %1011 = vmatpush.bf16.xpose.msra.mxu1 %v1001_v42  ;;  %1341 = vrot.lane.b32.xlu0 %v3803_v56, %s3370_s18 }
 0x2c6   : > { %v781_v17 = vadd.f32 %v3739_v28, %v780_v20 }
 0x2c8   : > { %v816_v23 = vmul.f32 0.35355338, %v781_v17  ;;  %v848_v35 = vpack.c.bf16 %v781_v17, %v781_v17 }
 0x2ca   : > { %v923_v15 = vunpack.c.l.b16 %v848_v35  ;;  %v832_v48 = vpack.c.bf16 %v816_v23, %v816_v23 }
 0x2cb   : > { %v3941_v58 = vpop.permute.xlu2 %1339 }
 0x2cc   : > { %v3870_v31 = vpack.c.b16 %v923_v15, %v922_v44  ;;  %v883_v28 = vunpack.c.l.b16 %v832_v48 }
 0x2cd   : > { %1012 = vmatpush.bf16.xpose.msra.mxu1 %v998_v24  ;;  %1335 = vrot.lane.b32.xlu0 %v3851_v46, %s3370_s18 }
 0x2ce   : > { %1333 = vrot.lane.b32.xlu2 %v3870_v31, %s3370_s18  ;;  %946 = vrot.lane.b32.xlu1 %v3870_v31, %s3369_s17  ;;  %v3879_v33 = vpack.c.b16 %v883_v28, %v882_v26 }
 0x2d5   : > { %1013 = vmatpush.bf16.xpose.msra.mxu1 %v995_v32  ;;  %1234 = vrot.lane.b32.xlu0 %v3845_v43, %s3371_s19 }
 0x2d6   : > { %1317 = vrot.lane.b32.xlu2 %v3879_v33, %s3372_s20  ;;  %1343 = vrot.lane.b32.xlu1 %v3819_v53, %s3370_s18 }
 0x2dd   : > { %1014 = vmatpush.bf16.xpose.msra.mxu1 %v992_v57  ;;  %1230 = vrot.lane.b32.xlu0 %v3851_v46, %s3371_s19 }
 0x2de   : > { %1238 = vrot.lane.b32.xlu2 %v3819_v53, %s3371_s19  ;;  %1337 = vrot.lane.b32.xlu1 %v3828_v54, %s3370_s18 }
 0x2e5   : > { %1323 = vrot.lane.b32.xlu0 %v3787_v29, %s3372_s20 }
 0x2e6   : > { %1236 = vrot.lane.b32.xlu2 %v3803_v56, %s3371_s19  ;;  %1331 = vrot.lane.b32.xlu1 %v3860_v25, %s3370_s18 }
 0x2ed   : > { %2241 = vrot.lane.b32.xlu0 %v3845_v43, %s3373_s21 }
 0x2ee   : > { %1228 = vrot.lane.b32.xlu2 %v3870_v31, %s3371_s19  ;;  %1315 = vrot.lane.b32.xlu1 %v896_v30, %s3372_s20 }
 0x2f5   : > { %1782 = vrot.lane.b32.xlu0 %v3860_v25, %s3374_s22 }
 0x2f6   : > { %1788 = vrot.lane.b32.xlu2 %v3828_v54, %s3374_s22  ;;  %1319 = vrot.lane.b32.xlu1 %v3764_v45, %s3372_s20 }
 0x2fd   : > { %1770 = vrot.lane.b32.xlu0 %v3764_v45, %s3375_s23 }
 0x2fe   : > { %1786 = vrot.lane.b32.xlu2 %v3851_v46, %s3374_s22  ;;  %1232 = vrot.lane.b32.xlu1 %v3828_v54, %s3371_s19 }
 0x305   : > { %1774 = vrot.lane.b32.xlu0 %v3787_v29, %s3375_s23 }
 0x306   : > { %2237 = vrot.lane.b32.xlu2 %v3851_v46, %s3373_s21  ;;  %1321 = vrot.lane.b32.xlu1 %v3777_v7, %s3372_s20 }
 0x30d   : > { %1622 = vrot.lane.b32.xlu0 %v3803_v56, %s3376_s27 }
 0x30e   : > { %1784 = vrot.lane.b32.xlu2 %v3870_v31, %s3374_s22  ;;  %1226 = vrot.lane.b32.xlu1 %v3860_v25, %s3371_s19 }
 0x315   : > { %1614 = vrot.lane.b32.xlu0 %v3870_v31, %s3376_s27 }
 0x316   : > { %2235 = vrot.lane.b32.xlu2 %v3870_v31, %s3373_s21  ;;  %1794 = vrot.lane.b32.xlu1 %v3819_v53, %s3374_s22 }
 0x31d   : > { %1240 = vrot.lane.b32.xlu0 %v3835_v51, %s3371_s19  ;;  %s5137_s19 = scalar_lea.vmem %s5223_s7, %s2980_s26 }
 0x31e   : > { %1766 = vrot.lane.b32.xlu2 %v896_v30, %s3375_s23  ;;  %2245 = vrot.lane.b32.xlu1 %v3819_v53, %s3373_s21 }
 0x325   : > { %1796 = vrot.lane.b32.xlu0 %v3835_v51, %s3374_s22 }
 0x326   : > { %2217 = vrot.lane.b32.xlu2 %v896_v30, %s3377_s28  ;;  %1792 = vrot.lane.b32.xlu1 %v3803_v56, %s3374_s22 }
 0x328   : > { %v3948_v36 = vpop.permute.xlu2 %1333 }
 0x32e   : > { %2221 = vrot.lane.b32.xlu2 %v3764_v45, %s3377_s28  ;;  %1325 = vrot.lane.b32.xlu1 %v3807_v55, %s3372_s20 }
 0x32f   : > { %v945_v2 = vpop.permute.xlu0 %944 }
 0x330   : > { %v3954_v19 = vpop.permute.xlu2 %1317  ;;  %v986_v27 = vsel %vm960_vm5, %v945_v2, 0 }
 0x336   : > { %2223 = vrot.lane.b32.xlu2 %v3777_v7, %s3377_s28  ;;  %2243 = vrot.lane.b32.xlu1 %v3803_v56, %s3373_s21 }
 0x337   : > { %v3960_v18 = vpop.permute.xlu0 %1341 }
 0x338   : > { %v3962_v60 = vpop.permute.xlu2 %1238 }
 0x33e   : > { %2225 = vrot.lane.b32.xlu2 %v3787_v29, %s3377_s28  ;;  %1790 = vrot.lane.b32.xlu1 %v3845_v43, %s3374_s22 }
 0x33f   : > { %v3968_v6 = vpop.permute.xlu0 %1335 }
 0x340   : > { %v3970_v42 = vpop.permute.xlu2 %1236  ;;  %v947_v20 = vpop.permute.xlu1 %946 }
 0x341   : > { %v989_v0 = vsel %vm960_vm5, %v947_v20, 0 }
 0x342   : > { %1015 = vmatpush.bf16.xpose.msra.mxu1 %v989_v0 }
 0x346   : > { %1778 = vrot.lane.b32.xlu2 %v3823_v14, %s3375_s23  ;;  %1327 = vrot.lane.b32.xlu1 %v3823_v14, %s3372_s20 }
 0x347   : > { %v3977_v17 = vpop.permute.xlu0 %1234 }
 0x348   : > { %v3979_v23 = vpop.permute.xlu2 %1228  ;;  %v3981_v35 = vpop.permute.xlu1 %1343 }
 0x34a   : > { %1016 = vmatpush.bf16.xpose.msra.mxu1 %v986_v27 }
 0x34e   : > { %1618 = vrot.lane.b32.xlu2 %v3828_v54, %s3376_s27  ;;  %2239 = vrot.lane.b32.xlu1 %v3828_v54, %s3373_s21 }
 0x34f   : > { %v3988_v38 = vpop.permute.xlu0 %1230 }
 0x350   : > { %v3990_v44 = vpop.permute.xlu2 %1788  ;;  %v3992_v15 = vpop.permute.xlu1 %1337 }
 0x351   : > { %2930 = vmatmul.msk.bf16.vlgmr.msra.gmra.mxu1 %vm960_vm5, %v896_v30 }
 0x356   : > { %1345 = vrot.lane.b32.xlu2 %v3835_v51, %s3370_s18  ;;  %2233 = vrot.lane.b32.xlu1 %v3860_v25, %s3373_s21 }
 0x357   : > { %v3999_v48 = vpop.permute.xlu0 %1323 }
 0x358   : > { %v4001_v24 = vpop.permute.xlu2 %1786  ;;  %v4003_v49 = vpop.permute.xlu1 %1331 }
 0x35e   : > { %2247 = vrot.lane.b32.xlu2 %v3835_v51, %s3373_s21  ;;  %1768 = vrot.lane.b32.xlu1 %v3879_v33, %s3375_s23 }
 0x35f   : > { %v4009_v28 = vpop.permute.xlu0 %2241 }
 0x360   : > { %v4011_v39 = vpop.permute.xlu2 %2237  ;;  %v4013_v26 = vpop.permute.xlu1 %1315 }
 0x361   : > { %2931 = vmatmul.msk.bf16.gmra.mxu1 %vm960_vm5, %v3879_v33 }
 0x366   : > { %1329 = vrot.lane.b32.xlu2 %v3839_v50, %s3372_s20  ;;  %2219 = vrot.lane.b32.xlu1 %v3879_v33, %s3377_s28 }
 0x367   : > { %v4021_v32 = vpop.permute.xlu0 %1782 }
 0x368   : > { %v4023_v21 = vpop.permute.xlu2 %1784  ;;  %v4025_v57 = vpop.permute.xlu1 %1319 }
 0x36e   : > { %1772 = vrot.lane.b32.xlu1 %v3777_v7, %s3375_s23 }
 0x36f   : > { %v4029_v59 = vpop.permute.xlu0 %1770 }
 0x370   : > { %v4031_v34 = vpop.permute.xlu2 %2235  ;;  %v1233_v62 = vpop.permute.xlu1 %1232 }
 0x371   : > { %2932 = vmatmul.msk.bf16.gmra.mxu1 %vm960_vm5, %v3764_v45 }
 0x376   : > { %1776 = vrot.lane.b32.xlu1 %v3807_v55, %s3375_s23 }
 0x377   : > { %v4037_v33 = vpop.permute.xlu0 %1774 }
 0x378   : > { %v4039_v13 = vpop.permute.xlu2 %1766  ;;  %v4041_v1 = vpop.permute.xlu1 %1321 }
 0x37e   : > { %2227 = vrot.lane.b32.xlu1 %v3807_v55, %s3377_s28 }
 0x37f   : > { %v4045_v40 = vpop.permute.xlu0 %1622 }
 0x380   : > { %v4047_v30 = vpop.permute.xlu2 %2217  ;;  %v1227_v2 = vpop.permute.xlu1 %1226 }
 0x381   : > { %2933 = vmatmul.msk.bf16.gmra.mxu1 %vm960_vm5, %v3777_v7 }
 0x386   : > { %1624 = vrot.lane.b32.xlu1 %v3819_v53, %s3376_s27 }
 0x387   : > { %v4053_v45 = vpop.permute.xlu0 %1614 }
 0x388   : > { %v4055_v20 = vpop.permute.xlu2 %2221  ;;  %v1795_v0 = vpop.permute.xlu1 %1794 }
 0x389   : > { %v1841_v37 = vsel %vm960_vm5, %v1795_v0, 0 }
 0x38e   : > { %1620 = vrot.lane.b32.xlu1 %v3845_v43, %s3376_s27 }
 0x38f   : > { %v1241_v27 = vpop.permute.xlu0 %1240 }
 0x390   : > { %v4059_v61 = vpop.permute.xlu2 %2223  ;;  %v4061_v8 = vpop.permute.xlu1 %2245  ;;  %1250 = vmatpush.bf16.msrb.mxu0 %v1241_v27  ;;  %3027 = vmatpush.bf16.msrb.mxu1 %v1241_v27 }
 0x391   : > { %2934 = vmatmul.msk.bf16.gmra.mxu1 %vm960_vm5, %v3787_v29  ;;  %3028 = vmatpush.bf16.msra.mxu2 %v1241_v27 }
 0x394   : > { %1251 = vmatpush.bf16.msrb.mxu0 %v3962_v60  ;;  %3029 = vmatpush.bf16.msrb.mxu1 %v3962_v60 }
 0x395   : > { %3030 = vmatpush.bf16.msra.mxu2 %v3962_v60 }
 0x396   : > { %2229 = vrot.lane.b32.xlu1 %v3823_v14, %s3377_s28 }
 0x398   : > { %v4070_v7 = vpop.permute.xlu2 %2225  ;;  %v1793_v63 = vpop.permute.xlu1 %1792  ;;  %1252 = vmatpush.bf16.msrb.mxu0 %v3970_v42  ;;  %3031 = vmatpush.bf16.msrb.mxu1 %v3970_v42 }
 0x399   : > { %3032 = vmatpush.bf16.msra.mxu2 %v3970_v42 }
 0x39c   : > { %1253 = vmatpush.bf16.msrb.mxu0 %v3977_v17  ;;  %3033 = vmatpush.bf16.msrb.mxu1 %v3977_v17 }
 0x39d   : > { %3034 = vmatpush.bf16.msra.mxu2 %v3977_v17 }
 0x39e   : > { %1616 = vrot.lane.b32.xlu1 %v3851_v46, %s3376_s27 }
 0x3a0   : > { %v4080_v29 = vpop.permute.xlu2 %1778  ;;  %v4082_v60 = vpop.permute.xlu1 %1325  ;;  %1254 = vmatpush.bf16.msrb.mxu0 %v1233_v62  ;;  %3035 = vmatpush.bf16.msrb.mxu1 %v1233_v62 }
 0x3a1   : > { %2935 = vmatmul.msk.bf16.gmra.mxu1 %vm960_vm5, %v3807_v55  ;;  %3036 = vmatpush.bf16.msra.mxu2 %v1233_v62  ;;  %v1797_v55 = vpop.permute.xlu0 %1796 }
 0x3a2   : > { %v1844_v62 = vsel %vm960_vm5, %v1797_v55, 0 }
 0x3a4   : > { %1255 = vmatpush.bf16.msrb.mxu0 %v3988_v38  ;;  %3037 = vmatpush.bf16.msrb.mxu1 %v3988_v38 }
 0x3a5   : > { %3038 = vmatpush.bf16.msra.mxu2 %v3988_v38 }
 0x3a6   : > { %1626 = vrot.lane.b32.xlu1 %v3835_v51, %s3376_s27 }
 0x3a8   : > { %v4091_v42 = vpop.permute.xlu2 %1618  ;;  %v4093_v17 = vpop.permute.xlu1 %2243  ;;  %1256 = vmatpush.bf16.msrb.mxu0 %v3979_v23  ;;  %3039 = vmatpush.bf16.msrb.mxu1 %v3979_v23 }
 0x3a9   : > { %3040 = vmatpush.bf16.msra.mxu2 %v3979_v23  ;;  %v1390_v23 = vsel %vm960_vm5, %v3981_v35, 0  ;;  %v1384_v35 = vsel %vm960_vm5, %v3941_v58, 0  ;;  %v1381_v58 = vsel %vm960_vm5, %v3992_v15, 0  ;;  %v1826_v15 = vsel %vm960_vm5, %v4023_v21, 0 }
 0x3ac   : > { %1257 = vmatpush.bf16.msrb.mxu0 %v1227_v2  ;;  %3041 = vmatpush.bf16.msrb.mxu1 %v1227_v2 }
 0x3ad   : > { %3042 = vmatpush.bf16.msra.mxu2 %v1227_v2  ;;  %v1838_v2 = vsel %vm960_vm5, %v1793_v63, 0  ;;  %v1832_v63 = vsel %vm960_vm5, %v3990_v44, 0 }
 0x3b0   : > { %v1346_v38 = vpop.permute.xlu2 %1345  ;;  %v1791_v27 = vpop.permute.xlu1 %1790 }
 0x3b1   : > { %1846 = vmatpush.bf16.xpose.msrb.mxu2 %v1844_v62  ;;  %v1393_v52 = vsel %vm960_vm5, %v1346_v38, 0  ;;  %2936 = vmatmul.msk.bf16.gmra.mxu1 %vm960_vm5, %v3823_v14  ;;  %v1387_v62 = vsel %vm960_vm5, %v3960_v18, 0 }
 0x3b2   : > { %1395 = vmatpush.bf16.xpose.msrb.mxu3 %v1393_v52  ;;  %v861_v52 = vlaneseq }
 0x3b4   : > { %v4115_v0 = vand.u32 127, %v861_v52  ;;  %v1378_v52 = vsel %vm960_vm5, %v3968_v6, 0  ;;  %v1372_v6 = vsel %vm960_vm5, %v4003_v49, 0  ;;  %v2286_v49 = vsel %vm960_vm5, %v4009_v28, 0 }
 0x3b6   : > { %vm863_vm6 = vcmp.lt.s32.totalorder %v4115_v0, 5 }
 0x3b8   : > { %v4103_v16 = vpop.permute.xlu1 %1327 }
 0x3b9   : > { %1847 = vmatpush.bf16.xpose.msrb.mxu2 %v1841_v37  ;;  %v1835_v37 = vsel %vm960_vm5, %v1791_v27, 0 }
 0x3ba   : > { %1396 = vmatpush.bf16.xpose.msrb.mxu3 %v1390_v23  ;;  %v1829_v23 = vsel %vm960_vm5, %v4001_v24, 0  ;;  %v1375_v24 = vsel %vm960_vm5, %v3948_v36, 0  ;;  %v2292_v36 = vsel %vm960_vm5, %v4061_v8, 0 }
 0x3c0   : > { %v2240_v55 = vpop.permute.xlu1 %2239 }
 0x3c1   : > { %1848 = vmatpush.bf16.xpose.msrb.mxu2 %v1838_v2  ;;  %2937 = vmatmul.msk.bf16.gmra.mxu1 %vm960_vm5, %v3839_v50 }
 0x3c2   : > { %1397 = vmatpush.bf16.xpose.msrb.mxu3 %v1387_v62 }
 0x3c8   : > { %v2234_v14 = vpop.permute.xlu1 %2233 }
 0x3c9   : > { %1849 = vmatpush.bf16.xpose.msrb.mxu2 %v1835_v37  ;;  %v2274_v28 = vsel %vm960_vm5, %v2234_v14, 0 }
 0x3ca   : > { %1398 = vmatpush.bf16.xpose.msrb.mxu3 %v1384_v35  ;;  %v1823_v35 = vsel %vm960_vm5, %v4021_v32, 0 }
 0x3ce   : > { %v1018_v18 = vpop.f32.mrf.mxu1 }
 0x3cf   : > { %v4122_v38 = vsel %vm863_vm6, %v1018_v18, -1e+30 }
 0x3d0   : > { %1074 = vmax.xlane.f32.xlu2 %v4122_v38  ;;  %v4125_v27 = vpop.permute.xlu1 %1768 }
 0x3d1   : > { %1850 = vmatpush.bf16.xpose.msrb.mxu2 %v1832_v63  ;;  %v2248_v63 = vpop.permute.xlu2 %2247 }
 0x3d2   : > { %1399 = vmatpush.bf16.xpose.msrb.mxu3 %v1381_v58  ;;  %v2295_v58 = vsel %vm960_vm5, %v2248_v63, 0 }
 0x3d6   : > { %v1020_v2 = vpop.f32.mrf.mxu1 }
 0x3d7   : > { %v4133_v44 = vsel %vm863_vm6, %v1020_v2, -1e+30 }
 0x3d8   : > { %1076 = vmax.xlane.f32.xlu0 %v4133_v44  ;;  %v4136_v62 = vpop.permute.xlu1 %2219 }
 0x3d9   : > { %1851 = vmatpush.bf16.xpose.msrb.mxu2 %v1829_v23  ;;  %v2289_v23 = vsel %vm960_vm5, %v4093_v17, 0  ;;  %v2280_v17 = vsel %vm960_vm5, %v4011_v39, 0 }
 0x3da   : > { %1400 = vmatpush.bf16.xpose.msrb.mxu3 %v1378_v52 }
 0x3de   : > { %v1023_v39 = vpop.f32.mrf.mxu1 }
 0x3e0   : > { %v4142_v37 = vpop.permute.xlu1 %1772 }
 0x3e1   : > { %1852 = vmatpush.bf16.xpose.msrb.mxu2 %v1826_v15 }
 0x3e2   : > { %1401 = vmatpush.bf16.xpose.msrb.mxu3 %v1375_v24 }
 0x3e8   : > { %v4148_v18 = vpop.permute.xlu1 %1776 }
 0x3e9   : > { %1853 = vmatpush.bf16.xpose.msrb.mxu2 %v1823_v35 }
 0x3ea   : > { %1402 = vmatpush.bf16.xpose.msrb.mxu3 %v1372_v6  ;;  %v4212_v6 = vsel %vm863_vm6, %v1023_v39, -1e+30 }
 0x3f0   : > { %v4153_v21 = vpop.permute.xlu1 %2227 }
 0x3f1   : > { %2938 = vmatmul.msk.bf16.vlgmr.msrb.gmra.mxu3 %vm960_vm5, %v4013_v26  ;;  %v2283_v26 = vsel %vm960_vm5, %v2240_v55, 0  ;;  %v1330_v55 = vpop.permute.xlu2 %1329 }
 0x3f2   : > { %2297 = vmatpush.bf16.xpose.msra.mxu3 %v2295_v58 }
 0x3f8   : > { %v1625_v32 = vpop.permute.xlu1 %1624 }
 0x3fa   : > { %2298 = vmatpush.bf16.xpose.msra.mxu3 %v2292_v36 }
 0x400   : > { %v1621_v2 = vpop.permute.xlu1 %1620 }
 0x401   : > { %2939 = vmatmul.msk.bf16.gmra.mxu3 %vm960_vm5, %v3954_v19  ;;  %v2277_v19 = vsel %vm960_vm5, %v4031_v34, 0 }
 0x402   : > { %2299 = vmatpush.bf16.xpose.msra.mxu3 %v2289_v23 }
 0x408   : > { %v4165_v52 = vpop.permute.xlu1 %2229 }
 0x40a   : > { %2300 = vmatpush.bf16.xpose.msra.mxu3 %v2286_v49 }
 0x410   : > { %v1617_v8 = vpop.permute.xlu1 %1616 }
 0x411   : > { %2940 = vmatmul.msk.bf16.gmra.mxu3 %vm960_vm5, %v4025_v57  ;;  %v1025_v57 = vpop.f32.mrf.mxu1 }
 0x412   : > { %2301 = vmatpush.bf16.xpose.msra.mxu3 %v2283_v26  ;;  %v4200_v24 = vsel %vm863_vm6, %v1025_v57, -1e+30 }
 0x418   : > { %v1627_v15 = vpop.permute.xlu1 %1626 }
 0x419   : > { %1636 = vmatpush.bf16.msra.mxu0 %v1627_v15  ;;  %v1028_v34 = vpop.f32.mrf.mxu1 }
 0x41a   : > { %2302 = vmatpush.bf16.xpose.msra.mxu3 %v2280_v17  ;;  %v4233_v49 = vsel %vm863_vm6, %v1028_v34, -1e+30 }
 0x41d   : > { %1637 = vmatpush.bf16.msra.mxu0 %v1625_v32 }
 0x421   : > { %2941 = vmatmul.msk.bf16.gmra.mxu3 %vm960_vm5, %v4041_v1  ;;  %1638 = vmatpush.bf16.msra.mxu0 %v4045_v40  ;;  %v1030_v1 = vpop.f32.mrf.mxu1 }
 0x422   : > { %2303 = vmatpush.bf16.xpose.msra.mxu3 %v2277_v19 }
 0x425   : > { %1639 = vmatpush.bf16.msra.mxu0 %v1621_v2  ;;  %v4229_v2 = vsel %vm863_vm6, %v1030_v1, -1e+30 }
 0x429   : > { %1640 = vmatpush.bf16.msra.mxu0 %v4091_v42  ;;  %v4186_v40 = vpop.f32.mrf.mxu1 }
 0x42a   : > { %2304 = vmatpush.bf16.xpose.msra.mxu3 %v2274_v28 }
 0x42d   : > { %1641 = vmatpush.bf16.msra.mxu0 %v1617_v8 }
 0x431   : > { %2942 = vmatmul.msk.bf16.gmra.mxu3 %vm960_vm5, %v3999_v48  ;;  %1642 = vmatpush.bf16.msra.mxu0 %v4053_v45  ;;  %v4189_v42 = vpop.f32.mrf.mxu1 }
 0x439   : > { %v1038_v48 = vpop.f32.mrf.mxu1 }
 0x441   : > { %2943 = vmatmul.msk.bf16.gmra.mxu3 %vm960_vm5, %v4082_v60  ;;  %v1040_v14 = vpop.f32.mrf.mxu1 }
 0x442   : > { %v4251_v28 = vsel %vm863_vm6, %v1040_v14, -1e+30 }
 0x443   : > { %v1075_v14 = vpop.xlane.xlu2 %1074 }
 0x451   : > { %2944 = vmatmul.msk.bf16.gmra.mxu3 %vm960_vm5, %v4103_v16 }
 0x461   : > { %2945 = vmatmul.msk.bf16.gmra.mxu3 %vm960_vm5, %v1330_v55 }
 0x471   : > { %2954 = vmatmul.msk.bf16.vlgmr.msra.gmra.mxu3 %vm960_vm5, %v4047_v30  ;;  %v1043_v30 = vpop.f32.mrf.mxu1 }
 0x474   : > { %v1404_v45 = vpop.f32.mrf.mxu3 }
 0x475   : > { %v4195_v60 = vsel %vm863_vm6, %v1404_v45, -1e+30 }
 0x476   : > { %1460 = vmax.xlane.f32.xlu2 %v4195_v60 }
 0x479   : > { %v1045_v58 = vpop.f32.mrf.mxu1 }
 0x47a   : > { %v4278_v45 = vsel %vm863_vm6, %v1045_v58, -1e+30 }
 0x47c   : > { %v1406_v16 = vpop.f32.mrf.mxu3 }
 0x47d   : > { %v4204_v35 = vsel %vm863_vm6, %v1406_v16, -1e+30 }
 0x47e   : > { %1080 = vmax.xlane.f32.xlu2 %v4200_v24  ;;  %1462 = vmax.xlane.f32.xlu1 %v4204_v35 }
 0x481   : > { %2955 = vmatmul.msk.bf16.gmra.mxu3 %vm960_vm5, %v4136_v62  ;;  %v1048_v26 = vpop.f32.mrf.mxu1 }
 0x482   : > { %v4288_v16 = vsel %vm863_vm6, %v1048_v26, -1e+30 }
 0x484   : > { %v1409_v63 = vpop.f32.mrf.mxu3 }
 0x485   : > { %v4217_v32 = vsel %vm863_vm6, %v1409_v63, -1e+30  ;;  %v1106_v63 = vsub.f32 %v4122_v38, %v1075_v14 }
 0x486   : > { %1078 = vmax.xlane.f32.xlu1 %v4212_v6 }
 0x487   : > { %v1122_v58 = vmul.f32 1.442695, %v1106_v63 }
 0x489   : > { %v1050_v15 = vpop.f32.mrf.mxu1  ;;  %3104 = vpow2.f32 %v1122_v58 }
 0x48c   : > { %v1411_v36 = vpop.f32.mrf.mxu3 }
 0x48d   : > { %v4221_v23 = vsel %vm863_vm6, %v1411_v36, -1e+30  ;;  %v1077_v36 = vpop.xlane.xlu0 %1076 }
 0x48e   : > { %1464 = vmax.xlane.f32.xlu1 %v4217_v32  ;;  %1466 = vmax.xlane.f32.xlu0 %v4221_v23  ;;  %v1107_v26 = vsub.f32 %v4133_v44, %v1077_v36 }
 0x491   : > { %2956 = vmatmul.msk.bf16.gmra.mxu3 %vm960_vm5, %v4055_v20  ;;  %v1053_v57 = vpop.f32.mrf.mxu1 }
 0x492   : > { %v4261_v1 = vsel %vm863_vm6, %v1053_v57, -1e+30 }
 0x494   : > { %v1414_v62 = vpop.f32.mrf.mxu3 }
 0x495   : > { %v4239_v17 = vsel %vm863_vm6, %v1414_v62, -1e+30 }
 0x496   : > { %1084 = vmax.xlane.f32.xlu1 %v4229_v2  ;;  %1082 = vmax.xlane.f32.xlu0 %v4233_v49 }
 0x49c   : > { %v1416_v8 = vpop.f32.mrf.mxu3 }
 0x49d   : > { %v4243_v20 = vsel %vm863_vm6, %v1416_v8, -1e+30  ;;  %v1124_v8 = vmul.f32 1.442695, %v1107_v26 }
 0x49e   : > { %1468 = vmax.xlane.f32.xlu0 %v4239_v17  ;;  %1470 = vmax.xlane.f32.xlu2 %v4243_v20 }
 0x49f   : > { %3106 = vpow2.f32 %v1124_v8 }
 0x4a1   : > { %2957 = vmatmul.msk.bf16.gmra.mxu3 %vm960_vm5, %v4059_v61  ;;  %v4265_v61 = vsel %vm863_vm6, %v1038_v48, -1e+30  ;;  %v4283_v48 = vsel %vm863_vm6, %v1043_v30, -1e+30  ;;  %v1055_v30 = vpop.f32.mrf.mxu1 }
 0x4a2   : > { %v4301_v62 = vsel %vm863_vm6, %v1055_v30, -1e+30 }
 0x4a4   : > { %v1419_v19 = vpop.f32.mrf.mxu3 }
 0x4a5   : > { %v4255_v39 = vsel %vm863_vm6, %v1419_v19, -1e+30 }
 0x4a6   : > { %1092 = vmax.xlane.f32.xlu2 %v4251_v28  ;;  %1472 = vmax.xlane.f32.xlu0 %v4255_v39 }
 0x4ac   : > { %v1421_v34 = vpop.f32.mrf.mxu3 }
 0x4ad   : > { %v4269_v55 = vsel %vm863_vm6, %v1421_v34, -1e+30 }
 0x4ae   : > { %1102 = vmax.xlane.f32.xlu2 %v4261_v1  ;;  %1090 = vmax.xlane.f32.xlu0 %v4265_v61 }
 0x4af   : > { %1474 = vmax.xlane.f32.xlu1 %v4269_v55 }
 0x4b1   : > { %2958 = vmatmul.msk.bf16.gmra.mxu3 %vm960_vm5, %v4070_v7  ;;  %v4293_v7 = vsel %vm863_vm6, %v1050_v15, -1e+30  ;;  %v4305_v15 = vpop.eup %3104 }
 0x4b2   : > { %v4310_v38 = vpop.eup %3106 }
 0x4b6   : > { %1096 = vmax.xlane.f32.xlu0 %v4278_v45 }
 0x4b7   : > { %1094 = vmax.xlane.f32.xlu1 %v4283_v48 }
 0x4be   : > { %1098 = vmax.xlane.f32.xlu0 %v4288_v16 }
 0x4bf   : > { %1100 = vmax.xlane.f32.xlu1 %v4293_v7 }
 0x4c1   : > { %2959 = vmatmul.msk.bf16.gmra.mxu3 %vm960_vm5, %v4153_v21 }
 0x4c6   : > { %1104 = vmax.xlane.f32.xlu0 %v4301_v62 }
 0x4ce   : > { %1154 = vadd.xlane.f32.xlu0 %v4305_v15 }
 0x4d1   : > { %2960 = vmatmul.msk.bf16.gmra.mxu3 %vm960_vm5, %v4165_v52 }
 0x4d6   : > { %1156 = vadd.xlane.f32.xlu0 %v4310_v38 }
 0x4e9   : > { %v1461_v21 = vpop.xlane.xlu2 %1460 }
 0x4ea   : > { %v1492_v19 = vsub.f32 %v4195_v60, %v1461_v21 }
 0x4ec   : > { %v1508_v57 = vmul.f32 1.442695, %v1492_v19 }
 0x4ee   : > { %3108 = vpow2.f32 %v1508_v57 }
 0x4f1   : > { %v1081_v34 = vpop.xlane.xlu2 %1080  ;;  %v1463_v44 = vpop.xlane.xlu1 %1462 }
 0x4f2   : > { %v1109_v14 = vsub.f32 %v4200_v24, %v1081_v34  ;;  %v1493_v63 = vsub.f32 %v4204_v35, %v1463_v44 }
 0x4f4   : > { %v4316_v30 = vpop.eup %3108  ;;  %v1128_v58 = vmul.f32 1.442695, %v1109_v14  ;;  %v1510_v36 = vmul.f32 1.442695, %v1493_v63 }
 0x4f5   : > { %1540 = vadd.xlane.f32.xlu2 %v4316_v30 }
 0x4f6   : > { %3110 = vpow2.f32 %v1128_v58 }
 0x4f7   : > { %3112 = vpow2.f32 %v1510_v36 }
 0x4f9   : > { %v1079_v52 = vpop.xlane.xlu1 %1078 }
 0x4fa   : > { %v1108_v26 = vsub.f32 %v4212_v6, %v1079_v52 }
 0x4fc   : > { %v4320_v60 = vpop.eup %3110  ;;  %v1126_v8 = vmul.f32 1.442695, %v1108_v26 }
 0x4fd   : > { %v4322_v21 = vpop.eup %3112  ;;  %1160 = vadd.xlane.f32.xlu1 %v4320_v60 }
 0x4fe   : > { %3114 = vpow2.f32 %v1126_v8  ;;  %1542 = vadd.xlane.f32.xlu0 %v4322_v21 }
 0x501   : > { %v4326_v24 = vpop.xlane.xlu0 %1466  ;;  %v4328_v35 = vpop.xlane.xlu1 %1464 }
 0x504   : > { %v4330_v19 = vpop.eup %3114 }
 0x505   : > { %1158 = vadd.xlane.f32.xlu2 %v4330_v19 }
 0x509   : > { %v1083_v57 = vpop.xlane.xlu0 %1082  ;;  %v1085_v6 = vpop.xlane.xlu1 %1084 }
 0x50a   : > { %v1110_v34 = vsub.f32 %v4233_v49, %v1083_v57  ;;  %v1111_v44 = vsub.f32 %v4229_v2, %v1085_v6 }
 0x50c   : > { %v1130_v14 = vmul.f32 1.442695, %v1110_v34  ;;  %v1132_v63 = vmul.f32 1.442695, %v1111_v44 }
 0x50e   : > { %3116 = vpow2.f32 %v1130_v14 }
 0x50f   : > { %3118 = vpow2.f32 %v1132_v63 }
 0x511   : > { %v4335_v58 = vpop.xlane.xlu0 %1468  ;;  %v4337_v36 = vpop.xlane.xlu2 %1470 }
 0x514   : > { %v4339_v52 = vpop.eup %3116 }
 0x515   : > { %v4341_v26 = vpop.eup %3118  ;;  %1162 = vadd.xlane.f32.xlu0 %v4339_v52 }
 0x516   : > { %1164 = vadd.xlane.f32.xlu2 %v4341_v26 }
 0x519   : > { %v1093_v8 = vpop.xlane.xlu2 %1092  ;;  %v4345_v49 = vpop.xlane.xlu0 %1472 }
 0x51a   : > { %v1115_v2 = vsub.f32 %v4251_v28, %v1093_v8 }
 0x51c   : > { %v1140_v57 = vmul.f32 1.442695, %v1115_v2 }
 0x51e   : > { %3120 = vpow2.f32 %v1140_v57 }
 0x521   : > { %v1091_v6 = vpop.xlane.xlu0 %1090 }
 0x522   : > { %v1114_v34 = vsub.f32 %v4265_v61, %v1091_v6  ;;  %v4349_v44 = vpop.xlane.xlu1 %1474 }
 0x524   : > { %v4351_v14 = vpop.eup %3120  ;;  %v1138_v63 = vmul.f32 1.442695, %v1114_v34 }
 0x525   : > { %1172 = vadd.xlane.f32.xlu2 %v4351_v14 }
 0x526   : > { %3122 = vpow2.f32 %v1138_v63 }
 0x529   : > { %v1097_v11 = vpop.xlane.xlu0 %1096 }
 0x52a   : > { %v1117_v5 = vsub.f32 %v4278_v45, %v1097_v11  ;;  %v1095_v9 = vpop.xlane.xlu1 %1094 }
 0x52b   : > { %v1116_v3 = vsub.f32 %v4283_v48, %v1095_v9 }
 0x52c   : > { %v1144_v28 = vmul.f32 1.442695, %v1117_v5  ;;  %v4356_v8 = vpop.eup %3122 }
 0x52d   : > { %v1142_v2 = vmul.f32 1.442695, %v1116_v3  ;;  %1170 = vadd.xlane.f32.xlu1 %v4356_v8 }
 0x52e   : > { %3124 = vpow2.f32 %v1144_v28 }
 0x52f   : > { %3126 = vpow2.f32 %v1142_v2 }
 0x531   : > { %v1099_v61 = vpop.xlane.xlu0 %1098 }
 0x532   : > { %v1118_v57 = vsub.f32 %v4288_v16, %v1099_v61  ;;  %v1101_v6 = vpop.xlane.xlu1 %1100  ;;  %v1424_v16 = vpop.f32.mrf.mxu3 }
 0x533   : > { %v1119_v34 = vsub.f32 %v4293_v7, %v1101_v6 }
 0x534   : > { %v4361_v63 = vpop.eup %3124  ;;  %v1146_v11 = vmul.f32 1.442695, %v1118_v57 }
 0x535   : > { %v4363_v45 = vpop.eup %3126  ;;  %v1148_v9 = vmul.f32 1.442695, %v1119_v34  ;;  %1176 = vadd.xlane.f32.xlu2 %v4361_v63 }
 0x536   : > { %3128 = vpow2.f32 %v1146_v11  ;;  %1174 = vadd.xlane.f32.xlu0 %v4363_v45 }
 0x537   : > { %3130 = vpow2.f32 %v1148_v9 }
 0x539   : > { %v4367_v3 = vpop.xlane.xlu0 %1104 }
 0x53a   : > { %v1426_v28 = vpop.f32.mrf.mxu3 }
 0x53c   : > { %v4369_v5 = vpop.eup %3128 }
 0x53d   : > { %v4371_v48 = vpop.eup %3130 }
 0x53e   : > { %1178 = vadd.xlane.f32.xlu0 %v4369_v5  ;;  %1180 = vadd.xlane.f32.xlu2 %v4371_v48 }
 0x541   : > { %v1155_v7 = vpop.xlane.xlu0 %1154 }
 0x542   : > { %3132 = vrcp.f32 %v1155_v7  ;;  %v1429_v6 = vpop.f32.mrf.mxu3  ;;  %v4383_v7 = vpop.xlane.xlu2 %1102 }
 0x546   : > { %1612 = vrot.lane.b32.xlu1 %v3860_v25, %s3376_s27 }
 0x548   : > { %v3133_v61 = vpop.eup %3132 }
 0x549   : > { %v1157_v2 = vpop.xlane.xlu0 %1156  ;;  %v1202_v34 = vmul.f32 %v3133_v61, %v4305_v15  ;;  %v4389_v15 = vsel %vm863_vm6, %v1424_v16, -1e+30 }
 0x54a   : > { %3134 = vrcp.f32 %v1157_v2  ;;  %v1431_v10 = vpop.f32.mrf.mxu3  ;;  %v1495_v2 = vsub.f32 %v4221_v23, %v4326_v24 }
 0x54c   : > { %v1514_v41 = vmul.f32 1.442695, %v1495_v2 }
 0x54e   : > { %3136 = vpow2.f32 %v1514_v41  ;;  %v4405_v41 = vsel %vm863_vm6, %v1426_v28, -1e+30 }
 0x550   : > { %v3135_v57 = vpop.eup %3134 }
 0x551   : > { %v1203_v11 = vmul.f32 %v3135_v57, %v4310_v38  ;;  %v1494_v38 = vsub.f32 %v4217_v32, %v4328_v35 }
 0x552   : > { %2231 = vrot.lane.b32.xlu0 %v3839_v50, %s3377_s28  ;;  %v1434_v4 = vpop.f32.mrf.mxu3 }
 0x553   : > { %v1218_v9 = vpack.c.bf16 %v1203_v11, %v1202_v34  ;;  %v1512_v57 = vmul.f32 1.442695, %v1494_v38 }
 0x554   : > { %v4398_v24 = vpop.eup %3136 }
 0x555   : > { %1258 = vmatmul.bf16.vlgmr.msrb.gmra.mxu0 %v1218_v9 }
 0x556   : > { %1780 = vrot.lane.b32.xlu2 %v3839_v50, %s3375_s23  ;;  %v1496_v50 = vsub.f32 %v4239_v17, %v4335_v58  ;;  %v1497_v17 = vsub.f32 %v4243_v20, %v4337_v36  ;;  %v4422_v20 = vsel %vm863_vm6, %v1429_v6, -1e+30  ;;  %v1498_v36 = vsub.f32 %v4255_v39, %v4345_v49 }
 0x557   : > { %v1499_v6 = vsub.f32 %v4269_v55, %v4349_v44  ;;  %v1121_v39 = vsub.f32 %v4301_v62, %v4367_v3  ;;  %v4448_v55 = vsel %vm863_vm6, %v1434_v4, -1e+30  ;;  %v4454_v62 = vsel %vm863_vm6, %v4186_v40, -1e+30 }
 0x558   : > { %v1516_v23 = vmul.f32 1.442695, %v1496_v50  ;;  %v1518_v50 = vmul.f32 1.442695, %v1497_v17 }
 0x559   : > { %v1522_v49 = vmul.f32 1.442695, %v1499_v6  ;;  %v1152_v44 = vmul.f32 1.442695, %v1121_v39 }
 0x55a   : > { %v1436_v12 = vpop.f32.mrf.mxu3 }
 0x562   : > { %v4400_v11 = vpop.f32.mrf.mxu3 }
 0x568   : > { %v4393_v61 = vpop.xlane.xlu2 %1540 }
 0x570   : > { %1476 = vmax.xlane.f32.xlu1 %v4389_v15  ;;  %v1161_v34 = vpop.xlane.xlu1 %1160 }
 0x571   : > { %3138 = vrcp.f32 %v1161_v34  ;;  %v4415_v2 = vpop.xlane.xlu0 %1542  ;;  %v1441_v34 = vpop.f32.mrf.mxu3 }
 0x572   : > { %3140 = vpow2.f32 %v1512_v57  ;;  %v4484_v6 = vsel %vm863_vm6, %v1441_v34, -1e+30 }
 0x577   : > { %v3139_v32 = vpop.eup %3138 }
 0x578   : > { %v1159_v16 = vpop.xlane.xlu2 %1158  ;;  %1546 = vadd.xlane.f32.xlu1 %v4398_v24  ;;  %v4410_v35 = vpop.eup %3140  ;;  %v1205_v28 = vmul.f32 %v3139_v32, %v4320_v60  ;;  %v4434_v60 = vsel %vm863_vm6, %v1436_v12, -1e+30 }
 0x579   : > { %3142 = vrcp.f32 %v1159_v16  ;;  %v1520_v16 = vmul.f32 1.442695, %v1498_v36  ;;  %v4444_v12 = vpop.f32.mrf.mxu3 }
 0x57a   : > { %3144 = vpow2.f32 %v1516_v23 }
 0x57b   : > { %3146 = vpow2.f32 %v1518_v50  ;;  %v1120_v50 = vsub.f32 %v4261_v1, %v4383_v7  ;;  %v4479_v7 = vsel %vm863_vm6, %v4400_v11, -1e+30 }
 0x57c   : > { %1478 = vmax.xlane.f32.xlu0 %v4405_v41 }
 0x57d   : > { %v1150_v36 = vmul.f32 1.442695, %v1120_v50 }
 0x57f   : > { %v3143_v58 = vpop.eup %3142  ;;  %1544 = vadd.xlane.f32.xlu2 %v4410_v35 }
 0x580   : > { %v4413_v9 = vpop.eup %3144  ;;  %v1204_v38 = vmul.f32 %v3143_v58, %v4330_v19  ;;  %v4429_v19 = vsel %vm863_vm6, %v1431_v10, -1e+30 }
 0x581   : > { %1548 = vadd.xlane.f32.xlu1 %v4413_v9  ;;  %v4441_v10 = vpop.eup %3146  ;;  %v2308_v40 = vpop.f32.mrf.mxu3 }
 0x582   : > { %v1219_v57 = vpack.c.bf16 %v1205_v28, %v1204_v38  ;;  %v4494_v39 = vsel %vm863_vm6, %v2308_v40, -1e+30 }
 0x584   : > { %1480 = vmax.xlane.f32.xlu0 %v4422_v20  ;;  %1263 = vmatmul.bf16.gmra.mxu0 %v1219_v57 }
 0x587   : > { %1482 = vmax.xlane.f32.xlu2 %v4429_v19 }
 0x588   : > { %v1163_v23 = vpop.xlane.xlu0 %1162 }
 0x589   : > { %1486 = vmax.xlane.f32.xlu1 %v4434_v60  ;;  %3148 = vrcp.f32 %v1163_v23  ;;  %v1165_v32 = vpop.xlane.xlu2 %1164  ;;  %v4486_v23 = vpop.f32.mrf.mxu3 }
 0x58a   : > { %3150 = vrcp.f32 %v1165_v32 }
 0x58b   : > { %3152 = vpow2.f32 %v1520_v16 }
 0x58c   : > { %1550 = vadd.xlane.f32.xlu0 %v4441_v10  ;;  %3154 = vpow2.f32 %v1522_v49 }
 0x58d   : > { %3156 = vpow2.f32 %v1152_v44 }
 0x58e   : > { %3158 = vpow2.f32 %v1150_v36 }
 0x58f   : > { %v3149_v17 = vpop.eup %3148  ;;  %1484 = vmax.xlane.f32.xlu2 %v4448_v55 }
 0x590   : > { %v3151_v58 = vpop.eup %3150  ;;  %v1206_v3 = vmul.f32 %v3149_v17, %v4339_v52 }
 0x591   : > { %1086 = vmax.xlane.f32.xlu1 %v4454_v62  ;;  %v1207_v38 = vmul.f32 %v3151_v58, %v4341_v26  ;;  %v4459_v4 = vpop.eup %3152  ;;  %v4473_v26 = vsel %vm863_vm6, %v4189_v42, -1e+30  ;;  %v2313_v17 = vpop.f32.mrf.mxu3 }
 0x592   : > { %v4464_v57 = vpop.eup %3154 }
 0x593   : > { %v1220_v28 = vpack.c.bf16 %v1207_v38, %v1206_v3  ;;  %v4467_v52 = vpop.eup %3156  ;;  %v4502_v38 = vsel %vm863_vm6, %v2313_v17, -1e+30 }
 0x594   : > { %1552 = vadd.xlane.f32.xlu0 %v4459_v4  ;;  %v4489_v16 = vpop.eup %3158 }
 0x595   : > { %1268 = vmatmul.bf16.gmra.mxu0 %v1220_v28 }
 0x597   : > { %1554 = vadd.xlane.f32.xlu2 %v4464_v57 }
 0x598   : > { %v1173_v1 = vpop.xlane.xlu2 %1172 }
 0x599   : > { %1184 = vadd.xlane.f32.xlu1 %v4467_v52  ;;  %3160 = vrcp.f32 %v1173_v1  ;;  %v2316_v50 = vpop.f32.mrf.mxu3 }
 0x59c   : > { %1088 = vmax.xlane.f32.xlu0 %v4473_v26 }
 0x59f   : > { %1488 = vmax.xlane.f32.xlu2 %v4479_v7  ;;  %v3161_v32 = vpop.eup %3160 }
 0x5a0   : > { %v1171_v42 = vpop.xlane.xlu1 %1170  ;;  %v1211_v49 = vmul.f32 %v3161_v32, %v4351_v14 }
 0x5a1   : > { %1490 = vmax.xlane.f32.xlu1 %v4484_v6  ;;  %3162 = vrcp.f32 %v1171_v42  ;;  %v4511_v42 = vsel %vm863_vm6, %v2316_v50, -1e+30 }
 0x5a2   : > { %3164 = vrcp.f32 %v4415_v2 }
 0x5a4   : > { %1182 = vadd.xlane.f32.xlu0 %v4489_v16 }
 0x5a7   : > { %v3163_v11 = vpop.eup %3162 }
 0x5a8   : > { %v1210_v34 = vmul.f32 %v3163_v11, %v4356_v8  ;;  %v1177_v44 = vpop.xlane.xlu2 %1176  ;;  %v3165_v8 = vpop.eup %3164 }
 0x5a9   : > { %2364 = vmax.xlane.f32.xlu1 %v4494_v39  ;;  %v1175_v58 = vpop.xlane.xlu0 %1174  ;;  %3166 = vrcp.f32 %v1177_v44  ;;  %v1589_v36 = vmul.f32 %v3165_v8, %v4322_v21 }
 0x5aa   : > { %v1222_v3 = vpack.c.bf16 %v1211_v49, %v1210_v34  ;;  %3168 = vrcp.f32 %v1175_v58 }
 0x5ab   : > { %3170 = vrcp.f32 %v4393_v61 }
 0x5ac   : > { %1278 = vmatmul.bf16.vlgmr.msra.gmra.mxu2 %v1222_v3 }
 0x5af   : > { %v3167_v28 = vpop.eup %3166 }
 0x5b0   : > { %v3169_v14 = vpop.eup %3168  ;;  %v1213_v1 = vmul.f32 %v3167_v28, %v4361_v63 }
 0x5b1   : > { %2368 = vmax.xlane.f32.xlu1 %v4502_v38  ;;  %v3171_v40 = vpop.eup %3170  ;;  %v1212_v2 = vmul.f32 %v3169_v14, %v4363_v45  ;;  %v1179_v11 = vpop.xlane.xlu0 %1178 }
 0x5b2   : > { %v1588_v32 = vmul.f32 %v3171_v40, %v4316_v30  ;;  %v1181_v34 = vpop.xlane.xlu2 %1180  ;;  %3172 = vrcp.f32 %v1179_v11 }
 0x5b3   : > { %v1223_v49 = vpack.c.bf16 %v1213_v1, %v1212_v2  ;;  %3174 = vrcp.f32 %v1181_v34 }
 0x5b4   : > { %v1604_v44 = vpack.c.bf16 %v1589_v36, %v1588_v32 }
 0x5b8   : > { %v1613_v61 = vpop.permute.xlu1 %1612  ;;  %v3173_v21 = vpop.eup %3172 }
 0x5b9   : > { %2370 = vmax.xlane.f32.xlu1 %v4511_v42  ;;  %1643 = vmatpush.bf16.msra.mxu0 %v1613_v61  ;;  %v3175_v63 = vpop.eup %3174  ;;  %v1214_v17 = vmul.f32 %v3173_v21, %v4369_v5 }
 0x5ba   : > { %v1215_v30 = vmul.f32 %v3175_v63, %v4371_v48  ;;  %v4527_v14 = vpop.permute.xlu2 %1780 }
 0x5bc   : > { %1283 = vmatmul.bf16.gmra.mxu2 %v1223_v49  ;;  %1644 = vmatmul.bf16.vlgmr.msra.gmra.mxu0 %v1604_v44  ;;  %v1224_v58 = vpack.c.bf16 %v1215_v30, %v1214_v17 }
 0x5c4   : > { %v2232_v45 = vpop.permute.xlu0 %2231 }
 0x5c5   : > { %2961 = vmatmul.msk.bf16.gmra.mxu3 %vm960_vm5, %v2232_v45 }
 0x5cc   : > { %1288 = vmatmul.bf16.gmra.mxu2 %v1224_v58 }
 0x5d2   : > { %2528 = vrot.lane.b32.xlu1 %v3835_v51, %s3378_s29  ;;  %v1259_v3 = vpop.f32.mrf.mxu0 }
 0x5d3   : > { %1299 = vst.msk [vmem:[#allocation2] sm:$0xff] %vm960_vm5, %v1259_v3 }
 0x5da   : > { %2526 = vrot.lane.b32.xlu1 %v3819_v53, %s3378_s29  ;;  %v1261_v8 = vpop.f32.mrf.mxu0 }
 0x5db   : > { %1300 = vst.msk [vmem:[#allocation2 + $0x8] sm:$0xff] %vm960_vm5, %v1261_v8 }
 0x5e2   : > { %2073 = vrot.lane.b32.xlu1 %v3803_v56, %s3379_s30 }
 0x5e3   : > { %v1477_v5 = vpop.xlane.xlu1 %1476 }
 0x5e4   : > { %v1500_v48 = vsub.f32 %v4389_v15, %v1477_v5 }
 0x5e6   : > { %v1524_v28 = vmul.f32 1.442695, %v1500_v48 }
 0x5e8   : > { %3176 = vpow2.f32 %v1524_v28 }
 0x5ea   : > { %2524 = vrot.lane.b32.xlu1 %v3803_v56, %s3378_s29 }
 0x5eb   : > { %v1547_v50 = vpop.xlane.xlu1 %1546 }
 0x5ec   : > { %3178 = vrcp.f32 %v1547_v50 }
 0x5ee   : > { %v4531_v40 = vpop.eup %3176 }
 0x5ef   : > { %v1479_v36 = vpop.xlane.xlu0 %1478  ;;  %1556 = vadd.xlane.f32.xlu0 %v4531_v40 }
 0x5f0   : > { %v1501_v2 = vsub.f32 %v4405_v41, %v1479_v36 }
 0x5f2   : > { %v1526_v1 = vmul.f32 1.442695, %v1501_v2  ;;  %2522 = vrot.lane.b32.xlu1 %v3845_v43, %s3378_s29  ;;  %v1545_v15 = vpop.xlane.xlu2 %1544  ;;  %v3179_v61 = vpop.eup %3178 }
 0x5f3   : > { %3180 = vrcp.f32 %v1545_v15  ;;  %v1591_v63 = vmul.f32 %v3179_v61, %v4398_v24  ;;  %v2318_v15 = vpop.f32.mrf.mxu3 }
 0x5f4   : > { %3182 = vpow2.f32 %v1526_v1  ;;  %v1549_v32 = vpop.xlane.xlu1 %1548 }
 0x5f7   : > { %v1481_v11 = vpop.xlane.xlu0 %1480 }
 0x5f8   : > { %v1502_v56 = vsub.f32 %v4422_v20, %v1481_v11 }
 0x5f9   : > { %v3181_v34 = vpop.eup %3180 }
 0x5fa   : > { %v4538_v49 = vpop.eup %3182  ;;  %v1528_v44 = vmul.f32 1.442695, %v1502_v56  ;;  %2069 = vrot.lane.b32.xlu1 %v3828_v54, %s3379_s30  ;;  %v1483_v41 = vpop.xlane.xlu2 %1482  ;;  %v1590_v21 = vmul.f32 %v3181_v34, %v4410_v35  ;;  %v4551_v35 = vsel %vm863_vm6, %v4444_v12, -1e+30 }
 0x5fb   : > { %1558 = vadd.xlane.f32.xlu2 %v4538_v49  ;;  %v1503_v45 = vsub.f32 %v4429_v19, %v1483_v41 }
 0x5fc   : > { %3184 = vpow2.f32 %v1528_v44  ;;  %v1605_v17 = vpack.c.bf16 %v1591_v63, %v1590_v21  ;;  %v1487_v20 = vpop.xlane.xlu1 %1486 }
 0x5fd   : > { %v1530_v58 = vmul.f32 1.442695, %v1503_v45  ;;  %v4579_v45 = vpop.f32.mrf.mxu3 }
 0x5fe   : > { %1649 = vmatmul.bf16.gmra.mxu0 %v1605_v17 }
 0x5ff   : > { %v1551_v30 = vpop.xlane.xlu0 %1550 }
 0x600   : > { %3186 = vrcp.f32 %v1551_v30 }
 0x601   : > { %3188 = vrcp.f32 %v1549_v32  ;;  %v1264_v3 = vpop.f32.mrf.mxu0  ;;  %v1505_v32 = vsub.f32 %v4434_v60, %v1487_v20 }
 0x602   : > { %v4546_v8 = vpop.eup %3184  ;;  %v1485_v24 = vpop.xlane.xlu2 %1484  ;;  %1301 = vst.msk [vmem:[#allocation2 + $0x10] sm:$0xff] %vm960_vm5, %v1264_v3  ;;  %3190 = vpow2.f32 %v1530_v58 }
 0x603   : > { %v1504_v19 = vsub.f32 %v4448_v55, %v1485_v24  ;;  %2362 = vmax.xlane.f32.xlu2 %v4551_v35  ;;  %1560 = vadd.xlane.f32.xlu0 %v4546_v8  ;;  %v1534_v44 = vmul.f32 1.442695, %v1505_v32 }
 0x604   : > { %v1087_v2 = vpop.xlane.xlu1 %1086 }
 0x605   : > { %v1532_v5 = vmul.f32 1.442695, %v1504_v19 }
 0x606   : > { %v3187_v48 = vpop.eup %3186 }
 0x607   : > { %v3189_v28 = vpop.eup %3188  ;;  %3192 = vpow2.f32 %v1532_v5  ;;  %v1553_v50 = vpop.xlane.xlu0 %1552  ;;  %v1593_v36 = vmul.f32 %v3187_v48, %v4441_v10  ;;  %v1112_v10 = vsub.f32 %v4454_v62, %v1087_v2  ;;  %v4577_v62 = vsel %vm863_vm6, %v2318_v15, -1e+30 }
 0x608   : > { %v4558_v1 = vpop.eup %3190  ;;  %v1592_v55 = vmul.f32 %v3189_v28, %v4413_v9  ;;  %v4571_v9 = vsel %vm863_vm6, %v4486_v23, -1e+30 }
 0x609   : > { %v1266_v12 = vpop.f32.mrf.mxu0  ;;  %v1134_v60 = vmul.f32 1.442695, %v1112_v10 }
 0x60a   : > { %1302 = vst.msk [vmem:[#allocation2 + $0x18] sm:$0xff] %vm960_vm5, %v1266_v12  ;;  %v1555_v61 = vpop.xlane.xlu2 %1554  ;;  %v1606_v11 = vpack.c.bf16 %v1593_v36, %v1592_v55 }
 0x60b   : > { %1562 = vadd.xlane.f32.xlu2 %v4558_v1  ;;  %3194 = vrcp.f32 %v1555_v61 }
 0x60c   : > { %3196 = vrcp.f32 %v1553_v50  ;;  %v1185_v21 = vpop.xlane.xlu1 %1184 }
 0x60d   : > { %v4564_v56 = vpop.eup %3192  ;;  %3198 = vpow2.f32 %v1534_v44 }
 0x60e   : > { %1564 = vadd.xlane.f32.xlu0 %v4564_v56  ;;  %1654 = vmatmul.bf16.gmra.mxu0 %v1606_v11  ;;  %3200 = vrcp.f32 %v1185_v21  ;;  %v4639_v21 = vsel %vm863_vm6, %v4579_v45, -1e+30 }
 0x60f   : > { %v1089_v34 = vpop.xlane.xlu0 %1088  ;;  %3202 = vpow2.f32 %v1134_v60 }
 0x610   : > { %v1113_v17 = vsub.f32 %v4473_v26, %v1089_v34 }
 0x611   : > { %v3195_v63 = vpop.eup %3194 }
 0x612   : > { %v1269_v41 = vpop.f32.mrf.mxu0  ;;  %v3197_v23 = vpop.eup %3196  ;;  %v1595_v30 = vmul.f32 %v3195_v63, %v4464_v57  ;;  %v1136_v19 = vmul.f32 1.442695, %v1113_v17 }
 0x613   : > { %1303 = vst.msk [vmem:[#allocation2 + $0x20] sm:$0xff] %vm960_vm5, %v1269_v41  ;;  %2366 = vmax.xlane.f32.xlu2 %v4571_v9  ;;  %v4584_v58 = vpop.eup %3198  ;;  %v1594_v24 = vmul.f32 %v3197_v23, %v4459_v4  ;;  %v2323_v4 = vpop.f32.mrf.mxu3 }
 0x614   : > { %v3201_v5 = vpop.eup %3200  ;;  %v1491_v26 = vpop.xlane.xlu1 %1490  ;;  %v4596_v12 = vsel %vm863_vm6, %v2323_v4, -1e+30 }
 0x615   : > { %v1607_v48 = vpack.c.bf16 %v1595_v30, %v1594_v24  ;;  %v4589_v28 = vpop.eup %3202  ;;  %v1217_v36 = vmul.f32 %v3201_v5, %v4467_v52  ;;  %v1489_v10 = vpop.xlane.xlu2 %1488  ;;  %v1507_v63 = vsub.f32 %v4484_v6, %v1491_v26 }
 0x616   : > { %2372 = vmax.xlane.f32.xlu0 %v4577_v62  ;;  %v1506_v34 = vsub.f32 %v4479_v7, %v1489_v10 }
 0x617   : > { %v1183_v20 = vpop.xlane.xlu0 %1182  ;;  %v1538_v17 = vmul.f32 1.442695, %v1507_v63 }
 0x618   : > { %3204 = vrcp.f32 %v1183_v20  ;;  %v1536_v41 = vmul.f32 1.442695, %v1506_v34 }
 0x619   : > { %3206 = vpow2.f32 %v1136_v19 }
 0x61a   : > { %v1271_v3 = vpop.f32.mrf.mxu0  ;;  %3208 = vpow2.f32 %v1536_v41 }
 0x61b   : > { %1304 = vst.msk [vmem:[#allocation2 + $0x28] sm:$0xff] %vm960_vm5, %v1271_v3  ;;  %1566 = vadd.xlane.f32.xlu2 %v4584_v58 }
 0x61c   : > { %v4602_v15 = vpop.xlane.xlu1 %2364 }
 0x61e   : > { %v3205_v50 = vpop.eup %3204  ;;  %1659 = vmatmul.bf16.gmra.mxu0 %v1607_v48  ;;  %1166 = vadd.xlane.f32.xlu0 %v4589_v28 }
 0x61f   : > { %v1216_v57 = vmul.f32 %v3205_v50, %v4489_v16  ;;  %v4599_v55 = vpop.eup %3206  ;;  %v2395_v50 = vsub.f32 %v4494_v39, %v4602_v15 }
 0x620   : > { %v4633_v60 = vpop.eup %3208 }
 0x621   : > { %v1225_v2 = vpack.c.bf16 %v1217_v36, %v1216_v57 }
 0x623   : > { %1293 = vmatmul.bf16.gmra.mxu2 %v1225_v2 }
 0x624   : > { %2376 = vmax.xlane.f32.xlu1 %v4596_v12  ;;  %v4605_v16 = vpop.xlane.xlu1 %2368 }
 0x626   : > { %1168 = vadd.xlane.f32.xlu0 %v4599_v55 }
 0x62c   : > { %v4614_v61 = vpop.xlane.xlu1 %2370 }
 0x62f   : > { %v1279_v32 = vpop.f32.mrf.mxu2 }
 0x630   : > { %1307 = vst.msk [vmem:[#allocation2 + $0x40] sm:$0xff] %vm960_vm5, %v1279_v32 }
 0x633   : > { %2077 = vrot.lane.b32.xlu2 %v3835_v51, %s3379_s30  ;;  %2946 = vmatmul.msk.bf16.vlgmr.msrb.gmra.mxu2 %vm960_vm5, %v4039_v13 }
 0x637   : > { %v1281_v52 = vpop.f32.mrf.mxu2 }
 0x638   : > { %1308 = vst.msk [vmem:[#allocation2 + $0x48] sm:$0xff] %vm960_vm5, %v1281_v52 }
 0x63a   : > { %2075 = vrot.lane.b32.xlu0 %v3819_v53, %s3379_s30 }
 0x63f   : > { %v1284_v11 = vpop.f32.mrf.mxu2 }
 0x640   : > { %1309 = vst.msk [vmem:[#allocation2 + $0x50] sm:$0xff] %vm960_vm5, %v1284_v11 }
 0x642   : > { %2071 = vrot.lane.b32.xlu0 %v3845_v43, %s3379_s30 }
 0x643   : > { %2947 = vmatmul.msk.bf16.gmra.mxu2 %vm960_vm5, %v4125_v27 }
 0x644   : > { %v2529_v51 = vpop.permute.xlu1 %2528 }
 0x645   : > { %2538 = vmatpush.bf16.msrb.mxu0 %v2529_v51 }
 0x647   : > { %v1286_v13 = vpop.f32.mrf.mxu2 }
 0x648   : > { %1310 = vst.msk [vmem:[#allocation2 + $0x58] sm:$0xff] %vm960_vm5, %v1286_v13 }
 0x64a   : > { %2067 = vrot.lane.b32.xlu0 %v3851_v46, %s3379_s30 }
 0x64c   : > { %v2527_v53 = vpop.permute.xlu1 %2526 }
 0x64d   : > { %2539 = vmatpush.bf16.msrb.mxu0 %v2527_v53 }
 0x64f   : > { %v1289_v44 = vpop.f32.mrf.mxu2 }
 0x650   : > { %1311 = vst.msk [vmem:[#allocation2 + $0x60] sm:$0xff] %vm960_vm5, %v1289_v44 }
 0x652   : > { %2518 = vrot.lane.b32.xlu0 %v3851_v46, %s3378_s29 }
 0x653   : > { %2948 = vmatmul.msk.bf16.gmra.mxu2 %vm960_vm5, %v4029_v59 }
 0x654   : > { %v4630_v43 = vpop.permute.xlu1 %2073 }
 0x657   : > { %v1291_v27 = vpop.f32.mrf.mxu2 }
 0x658   : > { %1312 = vst.msk [vmem:[#allocation2 + $0x68] sm:$0xff] %vm960_vm5, %v1291_v27 }
 0x65c   : > { %1568 = vadd.xlane.f32.xlu2 %v4633_v60  ;;  %v2525_v7 = vpop.permute.xlu1 %2524 }
 0x65d   : > { %2540 = vmatpush.bf16.msrb.mxu0 %v2525_v7 }
 0x662   : > { %v1557_v59 = vpop.xlane.xlu0 %1556 }
 0x663   : > { %2949 = vmatmul.msk.bf16.gmra.mxu2 %vm960_vm5, %v4142_v37  ;;  %3210 = vrcp.f32 %v1557_v59 }
 0x664   : > { %2374 = vmax.xlane.f32.xlu2 %v4639_v21  ;;  %v2523_v46 = vpop.permute.xlu1 %2522 }
 0x665   : > { %2541 = vmatpush.bf16.msrb.mxu0 %v2523_v46 }
 0x669   : > { %v3211_v20 = vpop.eup %3210 }
 0x66a   : > { %v1596_v37 = vmul.f32 %v3211_v20, %v4531_v40  ;;  %v2412_v40 = vmul.f32 1.442695, %v2395_v50 }
 0x66c   : > { %v2070_v59 = vpop.permute.xlu1 %2069 }
 0x66e   : > { %v1559_v23 = vpop.xlane.xlu2 %1558 }
 0x66f   : > { %3212 = vrcp.f32 %v1559_v23 }
 0x670   : > { %3214 = vpow2.f32 %v1538_v17 }
 0x673   : > { %2950 = vmatmul.msk.bf16.gmra.mxu2 %vm960_vm5, %v4037_v33 }
 0x675   : > { %v3213_v45 = vpop.eup %3212 }
 0x676   : > { %v2363_v30 = vpop.xlane.xlu2 %2362  ;;  %v1597_v3 = vmul.f32 %v3213_v45, %v4538_v49  ;;  %v1561_v6 = vpop.xlane.xlu0 %1560 }
 0x677   : > { %v2394_v24 = vsub.f32 %v4551_v35, %v2363_v30  ;;  %v4650_v48 = vpop.eup %3214 }
 0x678   : > { %v1608_v19 = vpack.c.bf16 %v1597_v3, %v1596_v37 }
 0x679   : > { %v2410_v5 = vmul.f32 1.442695, %v2394_v24 }
 0x67a   : > { %1664 = vmatmul.bf16.gmra.mxu0 %v1608_v19 }
 0x67b   : > { %3216 = vpow2.f32 %v2410_v5 }
 0x67c   : > { %2520 = vrot.lane.b32.xlu2 %v3828_v54, %s3378_s29  ;;  %1570 = vadd.xlane.f32.xlu0 %v4650_v48  ;;  %3218 = vrcp.f32 %v1561_v6 }
 0x67e   : > { %v1563_v33 = vpop.xlane.xlu2 %1562 }
 0x67f   : > { %3220 = vrcp.f32 %v1563_v33 }
 0x680   : > { %3222 = vpow2.f32 %v2412_v40 }
 0x681   : > { %v4657_v49 = vpop.eup %3216  ;;  %v1565_v35 = vpop.xlane.xlu0 %1564 }
 0x682   : > { %2442 = vadd.xlane.f32.xlu1 %v4657_v49  ;;  %v3219_v26 = vpop.eup %3218  ;;  %3224 = vrcp.f32 %v1565_v35 }
 0x683   : > { %2951 = vmatmul.msk.bf16.gmra.mxu2 %vm960_vm5, %v4148_v18  ;;  %v1598_v57 = vmul.f32 %v3219_v26, %v4546_v8 }
 0x684   : > { %2063 = vrot.lane.b32.xlu2 %v3860_v25, %s3379_s30 }
 0x685   : > { %v3221_v54 = vpop.eup %3220 }
 0x686   : > { %v4664_v39 = vpop.xlane.xlu2 %2366  ;;  %v1599_v36 = vmul.f32 %v3221_v54, %v4558_v1  ;;  %v4668_v2 = vpop.eup %3222 }
 0x688   : > { %v1609_v4 = vpack.c.bf16 %v1599_v36, %v1598_v57  ;;  %v3225_v52 = vpop.eup %3224 }
 0x689   : > { %v4670_v15 = vpop.xlane.xlu0 %2372  ;;  %v1600_v1 = vmul.f32 %v3225_v52, %v4564_v56 }
 0x68a   : > { %1669 = vmatmul.bf16.gmra.mxu0 %v1609_v4  ;;  %2444 = vadd.xlane.f32.xlu1 %v4668_v2  ;;  %v2396_v4 = vsub.f32 %v4571_v9, %v4664_v39 }
 0x68e   : > { %v1567_v18 = vpop.xlane.xlu2 %1566 }
 0x68f   : > { %3226 = vrcp.f32 %v1567_v18 }
 0x691   : > { %v1167_v32 = vpop.xlane.xlu0 %1166 }
 0x692   : > { %3228 = vrcp.f32 %v1167_v32  ;;  %v2414_v32 = vmul.f32 1.442695, %v2396_v4 }
 0x693   : > { %2952 = vmatmul.msk.bf16.gmra.mxu2 %vm960_vm5, %v4080_v29 }
 0x695   : > { %v3227_v11 = vpop.eup %3226 }
 0x696   : > { %v2078_v8 = vpop.permute.xlu2 %2077  ;;  %v1601_v51 = vmul.f32 %v3227_v11, %v4584_v58  ;;  %v2326_v58 = vpop.f32.mrf.mxu3 }
 0x697   : > { %2087 = vmatpush.bf16.msra.mxu1 %v2078_v8  ;;  %v4684_v27 = vsel %vm863_vm6, %v2326_v58, -1e+30  ;;  %v4736_v9 = vpop.xlane.xlu1 %2376 }
 0x698   : > { %v1610_v13 = vpack.c.bf16 %v1601_v51, %v1600_v1  ;;  %v3229_v53 = vpop.eup %3228 }
 0x699   : > { %v1169_v10 = vpop.xlane.xlu0 %1168  ;;  %v1208_v44 = vmul.f32 %v3229_v53, %v4589_v28 }
 0x69a   : > { %3230 = vrcp.f32 %v1169_v10  ;;  %1674 = vmatmul.bf16.gmra.mxu0 %v1610_v13 }
 0x69e   : > { %v2328_v36 = vpop.f32.mrf.mxu3 }
 0x69f   : > { %v4723_v18 = vsel %vm863_vm6, %v2328_v36, -1e+30 }
 0x6a0   : > { %v3231_v34 = vpop.eup %3230 }
 0x6a1   : > { %v1209_v41 = vmul.f32 %v3231_v34, %v4599_v55 }
 0x6a3   : > { %2953 = vmatmul.msk.bf16.gmra.mxu2 %vm960_vm5, %v4527_v14  ;;  %v1221_v29 = vpack.c.bf16 %v1209_v41, %v1208_v44 }
 0x6a5   : > { %1273 = vmatmul.bf16.vlgmr.msrb.gmra.mxu1 %v1221_v29 }
 0x6a6   : > { %v1294_v56 = vpop.f32.mrf.mxu2 }
 0x6a7   : > { %1313 = vst.msk [vmem:[#allocation2 + $0x70] sm:$0xff] %vm960_vm5, %v1294_v56 }
 0x6ac   : > { %v2076_v7 = vpop.permute.xlu0 %2075 }
 0x6ad   : > { %2378 = vmax.xlane.f32.xlu2 %v4684_v27  ;;  %2088 = vmatpush.bf16.msra.mxu1 %v2076_v7 }
 0x6ae   : > { %v1296_v28 = vpop.f32.mrf.mxu2 }
 0x6af   : > { %1314 = vst.msk [vmem:[#allocation2 + $0x78] sm:$0xff] %vm960_vm5, %v1296_v28 }
 0x6b1   : > { %2089 = vmatpush.bf16.msra.mxu1 %v4630_v43 }
 0x6b4   : > { %v2072_v14 = vpop.permute.xlu0 %2071 }
 0x6b5   : > { %2090 = vmatpush.bf16.msra.mxu1 %v2072_v14  ;;  %v2397_v14 = vsub.f32 %v4502_v38, %v4605_v16  ;;  %v2399_v16 = vsub.f32 %v4577_v62, %v4670_v15 }
 0x6b6   : > { %v1855_v55 = vpop.f32.mrf.mxu2 }
 0x6b7   : > { %v4691_v46 = vsel %vm863_vm6, %v1855_v55, -1e+30  ;;  %v2416_v55 = vmul.f32 1.442695, %v2397_v14 }
 0x6b8   : > { %1911 = vmax.xlane.f32.xlu1 %v4691_v46 }
 0x6b9   : > { %2091 = vmatpush.bf16.msra.mxu1 %v2070_v59 }
 0x6bc   : > { %v2068_v63 = vpop.permute.xlu0 %2067 }
 0x6bd   : > { %2092 = vmatpush.bf16.msra.mxu1 %v2068_v63 }
 0x6be   : > { %v1857_v23 = vpop.f32.mrf.mxu2 }
 0x6bf   : > { %v4696_v17 = vsel %vm863_vm6, %v1857_v23, -1e+30 }
 0x6c0   : > { %1913 = vmax.xlane.f32.xlu0 %v4696_v17 }
 0x6c4   : > { %v2519_v5 = vpop.permute.xlu0 %2518 }
 0x6c6   : > { %v1860_v43 = vpop.f32.mrf.mxu2 }
 0x6c7   : > { %v4701_v20 = vsel %vm863_vm6, %v1860_v43, -1e+30 }
 0x6c8   : > { %1915 = vmax.xlane.f32.xlu1 %v4701_v20 }
 0x6ce   : > { %v1862_v45 = vpop.f32.mrf.mxu2 }
 0x6cf   : > { %v1569_v30 = vpop.xlane.xlu2 %1568 }
 0x6d0   : > { %3232 = vrcp.f32 %v1569_v30 }
 0x6d4   : > { %2516 = vrot.lane.b32.xlu0 %v3870_v31, %s3378_s29 }
 0x6d6   : > { %v1865_v37 = vpop.f32.mrf.mxu2  ;;  %v3233_v40 = vpop.eup %3232 }
 0x6d7   : > { %v4706_v3 = vpop.xlane.xlu2 %2374  ;;  %v1602_v26 = vmul.f32 %v3233_v40, %v4633_v60  ;;  %v4728_v52 = vsel %vm863_vm6, %v1865_v37, -1e+30 }
 0x6dc   : > { %2514 = vrot.lane.b32.xlu0 %v3860_v25, %s3378_s29 }
 0x6de   : > { %v1867_v24 = vpop.f32.mrf.mxu2 }
 0x6df   : > { %v2521_v19 = vpop.permute.xlu2 %2520  ;;  %v4743_v8 = vsel %vm863_vm6, %v1867_v24, -1e+30 }
 0x6e0   : > { %2542 = vmatpush.bf16.msrb.mxu0 %v2521_v19  ;;  %v2420_v19 = vmul.f32 1.442695, %v2399_v16 }
 0x6e1   : > { %2065 = vrot.lane.b32.xlu1 %v3870_v31, %s3379_s30 }
 0x6e4   : > { %2543 = vmatpush.bf16.msrb.mxu0 %v2519_v5 }
 0x6e6   : > { %v1870_v6 = vpop.f32.mrf.mxu2 }
 0x6e7   : > { %v4714_v50 = vsel %vm863_vm6, %v1870_v6, -1e+30 }
 0x6e8   : > { %1923 = vmax.xlane.f32.xlu2 %v4714_v50 }
 0x6ee   : > { %v1872_v35 = vpop.f32.mrf.mxu2 }
 0x6ef   : > { %v1571_v33 = vpop.xlane.xlu0 %1570  ;;  %v4753_v13 = vsel %vm863_vm6, %v1872_v35, -1e+30 }
 0x6f0   : > { %3234 = vrcp.f32 %v1571_v33 }
 0x6f1   : > { %3236 = vpow2.f32 %v2414_v32 }
 0x6f5   : > { %v2443_v1 = vpop.xlane.xlu1 %2442 }
 0x6f6   : > { %v3235_v25 = vpop.eup %3234  ;;  %v1875_v57 = vpop.f32.mrf.mxu2 }
 0x6f7   : > { %v1603_v54 = vmul.f32 %v3235_v25, %v4650_v48  ;;  %v4733_v48 = vsel %vm863_vm6, %v1862_v45, -1e+30  ;;  %v4738_v39 = vpop.eup %3236  ;;  %v4764_v41 = vsel %vm863_vm6, %v1875_v57, -1e+30 }
 0x6f9   : > { %v1611_v31 = vpack.c.bf16 %v1603_v54, %v1602_v26 }
 0x6fb   : > { %1679 = vmatmul.bf16.gmra.mxu0 %v1611_v31 }
 0x6fd   : > { %v2445_v44 = vpop.xlane.xlu1 %2444 }
 0x6fe   : > { %v1877_v60 = vpop.f32.mrf.mxu2 }
 0x6ff   : > { %v4748_v51 = vsel %vm863_vm6, %v1877_v60, -1e+30 }
 0x706   : > { %2380 = vmax.xlane.f32.xlu0 %v4723_v18  ;;  %v1880_v11 = vpop.f32.mrf.mxu2 }
 0x707   : > { %v4771_v7 = vsel %vm863_vm6, %v1880_v11, -1e+30 }
 0x70b   : > { %1919 = vmax.xlane.f32.xlu1 %v4728_v52 }
 0x70e   : > { %1917 = vmax.xlane.f32.xlu0 %v4733_v48  ;;  %v1882_v10 = vpop.f32.mrf.mxu2 }
 0x70f   : > { %v4758_v53 = vsel %vm863_vm6, %v1882_v10, -1e+30 }
 0x713   : > { %2446 = vadd.xlane.f32.xlu1 %v4738_v39 }
 0x716   : > { %1921 = vmax.xlane.f32.xlu0 %v4743_v8  ;;  %v1885_v25 = vpop.f32.mrf.mxu2 }
 0x717   : > { %v4808_v31 = vsel %vm863_vm6, %v1885_v25, -1e+30 }
 0x71b   : > { %1929 = vmax.xlane.f32.xlu1 %v4748_v51 }
 0x71e   : > { %1925 = vmax.xlane.f32.xlu0 %v4753_v13 }
 0x722   : > { %v1274_v34 = vpop.f32.mrf.mxu1 }
 0x723   : > { %1305 = vst.msk [vmem:[#allocation2 + $0x30] sm:$0xff] %vm960_vm5, %v1274_v34  ;;  %1933 = vmax.xlane.f32.xlu1 %v4758_v53  ;;  %v2398_v34 = vsub.f32 %v4511_v42, %v4614_v61 }
 0x726   : > { %1927 = vmax.xlane.f32.xlu0 %v4764_v41 }
 0x72a   : > { %v1276_v29 = vpop.f32.mrf.mxu1 }
 0x72b   : > { %1306 = vst.msk [vmem:[#allocation2 + $0x38] sm:$0xff] %vm960_vm5, %v1276_v29  ;;  %v1912_v56 = vpop.xlane.xlu1 %1911  ;;  %v2418_v29 = vmul.f32 1.442695, %v2398_v34 }
 0x72c   : > { %v1943_v58 = vsub.f32 %v4691_v46, %v1912_v56  ;;  %v2331_v46 = vpop.f32.mrf.mxu3 }
 0x72d   : > { %v4797_v33 = vsel %vm863_vm6, %v2331_v46, -1e+30  ;;  %v1887_v46 = vpop.f32.mrf.mxu2 }
 0x72e   : > { %v1959_v28 = vmul.f32 1.442695, %v1943_v58  ;;  %1931 = vmax.xlane.f32.xlu0 %v4771_v7 }
 0x730   : > { %3238 = vpow2.f32 %v1959_v28 }
 0x731   : > { %3240 = vpow2.f32 %v2416_v55 }
 0x733   : > { %v1914_v59 = vpop.xlane.xlu0 %1913 }
 0x734   : > { %v1944_v63 = vsub.f32 %v4696_v17, %v1914_v59  ;;  %v2333_v17 = vpop.f32.mrf.mxu3 }
 0x736   : > { %v4777_v23 = vpop.eup %3238  ;;  %v1961_v43 = vmul.f32 1.442695, %v1944_v63 }
 0x737   : > { %1991 = vadd.xlane.f32.xlu2 %v4777_v23  ;;  %v4781_v37 = vpop.eup %3240 }
 0x738   : > { %3242 = vpow2.f32 %v1961_v43  ;;  %v2401_v43 = vsub.f32 %v4596_v12, %v4736_v9  ;;  %v4849_v12 = vsel %vm863_vm6, %v1887_v46, -1e+30  ;;  %v1890_v9 = vpop.f32.mrf.mxu2 }
 0x73b   : > { %v1916_v45 = vpop.xlane.xlu1 %1915 }
 0x73c   : > { %v1945_v30 = vsub.f32 %v4701_v20, %v1916_v45  ;;  %v4793_v20 = vsel %vm863_vm6, %v2333_v17, -1e+30  ;;  %v2336_v14 = vpop.f32.mrf.mxu3  ;;  %v2400_v45 = vsub.f32 %v4639_v21, %v4706_v3 }
 0x73d   : > { %v4827_v42 = vsel %vm863_vm6, %v2336_v14, -1e+30 }
 0x73e   : > { %v4783_v24 = vpop.eup %3242  ;;  %v1963_v38 = vmul.f32 1.442695, %v1945_v30  ;;  %v2422_v16 = vmul.f32 1.442695, %v2400_v45 }
 0x73f   : > { %1993 = vadd.xlane.f32.xlu0 %v4783_v24  ;;  %2448 = vadd.xlane.f32.xlu2 %v4781_v37 }
 0x740   : > { %3244 = vpow2.f32 %v1963_v38  ;;  %v2424_v38 = vmul.f32 1.442695, %v2401_v43 }
 0x741   : > { %3246 = vrcp.f32 %v2445_v44 }
 0x742   : > { %3248 = vrcp.f32 %v2443_v1 }
 0x743   : > { %3250 = vpow2.f32 %v2420_v19 }
 0x746   : > { %v4789_v5 = vpop.eup %3244  ;;  %v2517_v6 = vpop.permute.xlu0 %2516 }
 0x747   : > { %2384 = vmax.xlane.f32.xlu0 %v4793_v20  ;;  %2544 = vmatpush.bf16.msrb.mxu0 %v2517_v6  ;;  %v3247_v62 = vpop.eup %3246 }
 0x748   : > { %2382 = vmax.xlane.f32.xlu2 %v4797_v33  ;;  %1995 = vadd.xlane.f32.xlu1 %v4789_v5  ;;  %v3249_v15 = vpop.eup %3248  ;;  %v2491_v40 = vmul.f32 %v3247_v62, %v4668_v2  ;;  %v2064_v2 = vpop.permute.xlu2 %2063 }
 0x749   : > { %v2490_v35 = vmul.f32 %v3249_v15, %v4657_v49  ;;  %v4804_v54 = vpop.eup %3250 }
 0x74b   : > { %v2506_v57 = vpack.c.bf16 %v2491_v40, %v2490_v35 }
 0x74e   : > { %v2515_v26 = vpop.permute.xlu0 %2514 }
 0x74f   : > { %2545 = vmatpush.bf16.msrb.mxu0 %v2515_v26  ;;  %v4861_v26 = vsel %vm863_vm6, %v1890_v9, -1e+30 }
 0x750   : > { %1935 = vmax.xlane.f32.xlu2 %v4808_v31  ;;  %2452 = vadd.xlane.f32.xlu1 %v4804_v54  ;;  %v2379_v55 = vpop.xlane.xlu2 %2378 }
 0x752   : > { %2546 = vmatmul.bf16.vlgmr.msrb.gmra.mxu0 %v2506_v57  ;;  %v2402_v57 = vsub.f32 %v4684_v27, %v2379_v55 }
 0x753   : > { %v2066_v36 = vpop.permute.xlu1 %2065 }
 0x754   : > { %2093 = vmatpush.bf16.msra.mxu1 %v2066_v36 }
 0x758   : > { %2094 = vmatpush.bf16.msra.mxu1 %v2064_v2  ;;  %v1892_v2 = vpop.f32.mrf.mxu2 }
 0x75b   : > { %v1924_v17 = vpop.xlane.xlu2 %1923 }
 0x75c   : > { %v1949_v21 = vsub.f32 %v4714_v50, %v1924_v17 }
 0x75e   : > { %v1971_v15 = vmul.f32 1.442695, %v1949_v21 }
 0x779   : > { %v4812_v4 = vpop.xlane.xlu0 %2380 }
 0x77a   : > { %v2403_v27 = vsub.f32 %v4723_v18, %v4812_v4 }
 0x77e   : > { %v1920_v49 = vpop.xlane.xlu1 %1919 }
 0x77f   : > { %v1947_v32 = vsub.f32 %v4728_v52, %v1920_v49 }
 0x781   : > { %v1967_v60 = vmul.f32 1.442695, %v1947_v32  ;;  %v1918_v11 = vpop.xlane.xlu0 %1917 }
 0x782   : > { %v1946_v1 = vsub.f32 %v4733_v48, %v1918_v11  ;;  %v2426_v11 = vmul.f32 1.442695, %v2402_v57 }
 0x783   : > { %3252 = vpow2.f32 %v1967_v60 }
 0x784   : > { %v1965_v10 = vmul.f32 1.442695, %v1946_v1 }
 0x786   : > { %3254 = vpow2.f32 %v1965_v10  ;;  %v2447_v30 = vpop.xlane.xlu1 %2446  ;;  %v4872_v10 = vsel %vm863_vm6, %v1892_v2, -1e+30 }
 0x787   : > { %3256 = vpow2.f32 %v2418_v29 }
 0x789   : > { %v4818_v44 = vpop.eup %3252  ;;  %v1922_v56 = vpop.xlane.xlu0 %1921 }
 0x78a   : > { %v1948_v58 = vsub.f32 %v4743_v8, %v1922_v56  ;;  %1999 = vadd.xlane.f32.xlu1 %v4818_v44 }
 0x78c   : > { %v4822_v28 = vpop.eup %3254  ;;  %v1969_v52 = vmul.f32 1.442695, %v1948_v58  ;;  %v4885_v58 = vpop.f32.mrf.mxu0 }
 0x78d   : > { %1997 = vadd.xlane.f32.xlu0 %v4822_v28  ;;  %v4831_v8 = vpop.eup %3256 }
 0x78e   : > { %3258 = vpow2.f32 %v1969_v52  ;;  %v1930_v40 = vpop.xlane.xlu1 %1929  ;;  %v2428_v52 = vmul.f32 1.442695, %v2403_v27 }
 0x78f   : > { %v1952_v29 = vsub.f32 %v4748_v51, %v1930_v40 }
 0x791   : > { %v1926_v61 = vpop.xlane.xlu0 %1925  ;;  %v1977_v14 = vmul.f32 1.442695, %v1952_v29 }
 0x792   : > { %v1950_v48 = vsub.f32 %v4753_v13, %v1926_v61  ;;  %2386 = vmax.xlane.f32.xlu1 %v4827_v42  ;;  %v2338_v13 = vpop.f32.mrf.mxu3 }
 0x793   : > { %v4845_v6 = vsel %vm863_vm6, %v2338_v13, -1e+30 }
 0x794   : > { %v4833_v59 = vpop.eup %3258  ;;  %v1973_v63 = vmul.f32 1.442695, %v1950_v48  ;;  %v4899_v45 = vpop.f32.mrf.mxu0 }
 0x795   : > { %2450 = vadd.xlane.f32.xlu0 %v4831_v8  ;;  %2001 = vadd.xlane.f32.xlu2 %v4833_v59 }
 0x796   : > { %3260 = vpow2.f32 %v1973_v63  ;;  %v1934_v34 = vpop.xlane.xlu1 %1933 }
 0x797   : > { %3262 = vpow2.f32 %v2424_v38  ;;  %v1954_v56 = vsub.f32 %v4758_v53, %v1934_v34 }
 0x798   : > { %3264 = vpow2.f32 %v2422_v16 }
 0x799   : > { %v1928_v62 = vpop.xlane.xlu0 %1927  ;;  %3266 = vpow2.f32 %v1971_v15  ;;  %v1981_v4 = vmul.f32 1.442695, %v1954_v56 }
 0x79a   : > { %v2341_v3 = vpop.f32.mrf.mxu3  ;;  %v1951_v50 = vsub.f32 %v4764_v41, %v1928_v62 }
 0x79b   : > { %v4891_v51 = vsel %vm863_vm6, %v2341_v3, -1e+30 }
 0x79c   : > { %v4841_v19 = vpop.eup %3260  ;;  %v1975_v49 = vmul.f32 1.442695, %v1951_v50 }
 0x79d   : > { %1937 = vmax.xlane.f32.xlu0 %v4849_v12  ;;  %2388 = vmax.xlane.f32.xlu2 %v4845_v6  ;;  %v4855_v25 = vpop.eup %3262 }
 0x79e   : > { %2005 = vadd.xlane.f32.xlu1 %v4841_v19  ;;  %v4857_v35 = vpop.eup %3264  ;;  %3268 = vpow2.f32 %v1975_v49 }
 0x79f   : > { %v4868_v1 = vpop.eup %3266  ;;  %3270 = vpow2.f32 %v2426_v11 }
 0x7a1   : > { %v1932_v32 = vpop.xlane.xlu0 %1931 }
 0x7a2   : > { %v2343_v36 = vpop.f32.mrf.mxu3  ;;  %v1953_v53 = vsub.f32 %v4771_v7, %v1932_v32 }
 0x7a3   : > { %v4876_v41 = vsel %vm863_vm6, %v2343_v36, -1e+30 }
 0x7a4   : > { %v4887_v48 = vpop.eup %3268  ;;  %v1979_v13 = vmul.f32 1.442695, %v1953_v53 }
 0x7a5   : > { %2456 = vadd.xlane.f32.xlu0 %v4855_v25  ;;  %2454 = vadd.xlane.f32.xlu2 %v4857_v35  ;;  %v4893_v55 = vpop.eup %3270 }
 0x7a6   : > { %1939 = vmax.xlane.f32.xlu1 %v4861_v26 }
 0x7aa   : > { %v1992_v60 = vpop.xlane.xlu2 %1991 }
 0x7ab   : > { %3272 = vrcp.f32 %v1992_v60 }
 0x7ac   : > { %3274 = vrcp.f32 %v2447_v30 }
 0x7ad   : > { %2003 = vadd.xlane.f32.xlu0 %v4868_v1  ;;  %1941 = vmax.xlane.f32.xlu2 %v4872_v10 }
 0x7ae   : > { %2392 = vmax.xlane.f32.xlu1 %v4876_v41 }
 0x7b1   : > { %v3273_v63 = vpop.eup %3272 }
 0x7b2   : > { %v1994_v61 = vpop.xlane.xlu0 %1993  ;;  %v2449_v18 = vpop.xlane.xlu2 %2448  ;;  %v2039_v30 = vmul.f32 %v3273_v63, %v4777_v23 }
 0x7b3   : > { %3276 = vrcp.f32 %v1994_v61  ;;  %v3275_v43 = vpop.eup %3274 }
 0x7b4   : > { %3278 = vrcp.f32 %v2449_v18  ;;  %v2492_v7 = vmul.f32 %v3275_v43, %v4738_v39 }
 0x7b5   : > { %3280 = vpow2.f32 %v2428_v52  ;;  %2390 = vmax.xlane.f32.xlu0 %v4891_v51  ;;  %2007 = vadd.xlane.f32.xlu2 %v4887_v48 }
 0x7b6   : > { %3282 = vpow2.f32 %v1977_v14  ;;  %2458 = vadd.xlane.f32.xlu1 %v4893_v55 }
 0x7b7   : > { %3284 = vpow2.f32 %v1981_v4 }
 0x7b8   : > { %3286 = vpow2.f32 %v1979_v13 }
 0x7b9   : > { %v3277_v46 = vpop.eup %3276 }
 0x7ba   : > { %v3279_v0 = vpop.eup %3278  ;;  %v2040_v38 = vmul.f32 %v3277_v46, %v4783_v24  ;;  %v2385_v17 = vpop.xlane.xlu0 %2384 }
 0x7bb   : > { %v4903_v16 = vpop.eup %3280  ;;  %v2383_v21 = vpop.xlane.xlu2 %2382  ;;  %v2493_v3 = vmul.f32 %v3279_v0, %v4781_v37  ;;  %v2405_v24 = vsub.f32 %v4793_v20, %v2385_v17 }
 0x7bc   : > { %v4907_v9 = vpop.eup %3282  ;;  %v2404_v62 = vsub.f32 %v4797_v33, %v2383_v21  ;;  %v2055_v15 = vpack.c.bf16 %v2040_v38, %v2039_v30  ;;  %v4916_v37 = vpop.f32.mrf.mxu0 }
 0x7bd   : > { %v4910_v40 = vpop.eup %3284  ;;  %2460 = vadd.xlane.f32.xlu2 %v4903_v16  ;;  %2009 = vadd.xlane.f32.xlu0 %v4907_v9  ;;  %v2507_v23 = vpack.c.bf16 %v2493_v3, %v2492_v7  ;;  %v2432_v39 = vmul.f32 1.442695, %v2405_v24  ;;  %v1996_v27 = vpop.xlane.xlu1 %1995 }
 0x7be   : > { %v2430_v50 = vmul.f32 1.442695, %v2404_v62  ;;  %2013 = vadd.xlane.f32.xlu1 %v4910_v40  ;;  %2095 = vmatmul.bf16.vlgmr.msra.gmra.mxu1 %v2055_v15  ;;  %v4918_v57 = vpop.eup %3286 }
 0x7bf   : > { %2551 = vmatmul.bf16.gmra.mxu0 %v2507_v23 }
 0x7c0   : > { %3288 = vpow2.f32 %v2430_v50 }
 0x7c1   : > { %3290 = vpow2.f32 %v2432_v39 }
 0x7c3   : > { %v1936_v33 = vpop.xlane.xlu2 %1935 }
 0x7c4   : > { %v1955_v36 = vsub.f32 %v4808_v31, %v1936_v33  ;;  %v4927_v32 = vpop.f32.mrf.mxu0 }
 0x7c5   : > { %2011 = vadd.xlane.f32.xlu0 %v4918_v57  ;;  %v2453_v56 = vpop.xlane.xlu1 %2452 }
 0x7c6   : > { %v4922_v2 = vpop.eup %3288  ;;  %v1983_v20 = vmul.f32 1.442695, %v1955_v36 }
 0x7c7   : > { %2462 = vadd.xlane.f32.xlu2 %v4922_v2  ;;  %v4925_v49 = vpop.eup %3290 }
 0x7c8   : > { %3292 = vpow2.f32 %v1983_v20 }
 0x7c9   : > { %3294 = vrcp.f32 %v1996_v27 }
 0x7cc   : > { %v4933_v31 = vpop.f32.mrf.mxu0 }
 0x7cd   : > { %2464 = vadd.xlane.f32.xlu0 %v4925_v49 }
 0x7ce   : > { %v4930_v60 = vpop.eup %3292 }
 0x7cf   : > { %2015 = vadd.xlane.f32.xlu1 %v4930_v60  ;;  %v3295_v18 = vpop.eup %3294 }
 0x7d0   : > { %v2041_v30 = vmul.f32 %v3295_v18, %v4789_v5 }
 0x7d4   : > { %v4935_v11 = vpop.f32.mrf.mxu0 }
 0x7dc   : > { %v4937_v34 = vpop.f32.mrf.mxu0 }
 0x7e4   : > { %v4939_v29 = vpop.f32.mrf.mxu0 }
 0x7ec   : > { %v4941_v52 = vpop.f32.mrf.mxu0 }
 0x7f4   : > { %v4944_v43 = vpop.f32.mrf.mxu0 }
 0x7fc   : > { %v4952_v24 = vpop.f32.mrf.mxu0 }
 0x7fd   : > { %v2000_v14 = vpop.xlane.xlu1 %1999 }
 0x800   : > { %v1998_v61 = vpop.xlane.xlu0 %1997 }
 0x801   : > { %3296 = vrcp.f32 %v1998_v61 }
 0x802   : > { %3298 = vrcp.f32 %v2453_v56 }
 0x805   : > { %v2387_v4 = vpop.xlane.xlu1 %2386 }
 0x806   : > { %v2406_v53 = vsub.f32 %v4827_v42, %v2387_v4  ;;  %v4962_v4 = vpop.f32.mrf.mxu0 }
 0x807   : > { %v3297_v63 = vpop.eup %3296 }
 0x808   : > { %v2434_v46 = vmul.f32 1.442695, %v2406_v53  ;;  %v2451_v0 = vpop.xlane.xlu0 %2450  ;;  %v2002_v13 = vpop.xlane.xlu2 %2001  ;;  %v2042_v38 = vmul.f32 %v3297_v63, %v4822_v28 }
 0x809   : > { %3300 = vrcp.f32 %v2451_v0  ;;  %v3299_v21 = vpop.eup %3298 }
 0x80a   : > { %3302 = vpow2.f32 %v2434_v46  ;;  %v2056_v17 = vpack.c.bf16 %v2042_v38, %v2041_v30  ;;  %v2495_v23 = vmul.f32 %v3299_v21, %v4804_v54 }
 0x80b   : > { %3304 = vrcp.f32 %v2002_v13 }
 0x80c   : > { %2100 = vmatmul.bf16.gmra.mxu1 %v2056_v17  ;;  %3306 = vrcp.f32 %v2000_v14 }
 0x80f   : > { %v3301_v7 = vpop.eup %3300 }
 0x810   : > { %v4948_v42 = vpop.eup %3302  ;;  %v1938_v3 = vpop.xlane.xlu0 %1937  ;;  %v2494_v15 = vmul.f32 %v3301_v7, %v4831_v8 }
 0x811   : > { %v2389_v62 = vpop.xlane.xlu2 %2388  ;;  %v1956_v5 = vsub.f32 %v4849_v12, %v1938_v3  ;;  %v2006_v50 = vpop.xlane.xlu1 %2005  ;;  %2466 = vadd.xlane.f32.xlu0 %v4948_v42 }
 0x812   : > { %v2407_v28 = vsub.f32 %v4845_v6, %v2389_v62  ;;  %v2508_v39 = vpack.c.bf16 %v2495_v23, %v2494_v15  ;;  %v3305_v33 = vpop.eup %3304  ;;  %v4974_v23 = vpop.f32.mrf.mxu0 }
 0x813   : > { %v1985_v36 = vmul.f32 1.442695, %v1956_v5  ;;  %v3307_v27 = vpop.eup %3306  ;;  %v2044_v8 = vmul.f32 %v3305_v33, %v4833_v59 }
 0x814   : > { %v2436_v20 = vmul.f32 1.442695, %v2407_v28  ;;  %2556 = vmatmul.bf16.gmra.mxu0 %v2508_v39  ;;  %v2043_v14 = vmul.f32 %v3307_v27, %v4818_v44 }
 0x815   : > { %3308 = vpow2.f32 %v1985_v36 }
 0x816   : > { %3310 = vpow2.f32 %v2436_v20  ;;  %v2057_v61 = vpack.c.bf16 %v2044_v8, %v2043_v14 }
 0x818   : > { %v2457_v54 = vpop.xlane.xlu0 %2456 }
 0x819   : > { %v2455_v56 = vpop.xlane.xlu2 %2454  ;;  %3312 = vrcp.f32 %v2457_v54  ;;  %v1940_v12 = vpop.xlane.xlu1 %1939 }
 0x81a   : > { %3314 = vrcp.f32 %v2455_v56  ;;  %v1957_v6 = vsub.f32 %v4861_v26, %v1940_v12  ;;  %v4986_v27 = vpop.f32.mrf.mxu0 }
 0x81b   : > { %v4960_v18 = vpop.eup %3308 }
 0x81c   : > { %v4964_v53 = vpop.eup %3310  ;;  %v1987_v63 = vmul.f32 1.442695, %v1957_v6  ;;  %2017 = vadd.xlane.f32.xlu2 %v4960_v18  ;;  %2105 = vmatmul.bf16.gmra.mxu1 %v2057_v61 }
 0x81d   : > { %2468 = vadd.xlane.f32.xlu1 %v4964_v53 }
 0x81e   : > { %3316 = vpow2.f32 %v1987_v63 }
 0x81f   : > { %v3313_v44 = vpop.eup %3312  ;;  %3318 = vrcp.f32 %v2006_v50 }
 0x820   : > { %v3315_v59 = vpop.eup %3314  ;;  %v2004_v46 = vpop.xlane.xlu0 %2003  ;;  %v2497_v26 = vmul.f32 %v3313_v44, %v4855_v25 }
 0x821   : > { %v1942_v0 = vpop.xlane.xlu2 %1941  ;;  %3320 = vrcp.f32 %v2004_v46  ;;  %v2393_v30 = vpop.xlane.xlu1 %2392  ;;  %v2496_v38 = vmul.f32 %v3315_v59, %v4857_v35 }
 0x822   : > { %v1958_v13 = vsub.f32 %v4872_v10, %v1942_v0  ;;  %v2409_v17 = vsub.f32 %v4876_v41, %v2393_v30  ;;  %v4991_v12 = vpop.f32.mrf.mxu0 }
 0x823   : > { %v2509_v7 = vpack.c.bf16 %v2497_v26, %v2496_v38 }
 0x824   : > { %v1989_v21 = vmul.f32 1.442695, %v1958_v13  ;;  %v4972_v3 = vpop.eup %3316  ;;  %v2440_v62 = vmul.f32 1.442695, %v2409_v17 }
 0x825   : > { %v3319_v15 = vpop.eup %3318  ;;  %2561 = vmatmul.bf16.gmra.mxu0 %v2509_v7  ;;  %2019 = vadd.xlane.f32.xlu2 %v4972_v3 }
 0x826   : > { %3322 = vpow2.f32 %v1989_v21  ;;  %v2046_v41 = vmul.f32 %v3319_v15, %v4841_v19 }
 0x827   : > { %3324 = vpow2.f32 %v2440_v62  ;;  %v3321_v25 = vpop.eup %3320 }
 0x828   : > { %v2391_v10 = vpop.xlane.xlu0 %2390  ;;  %v2045_v35 = vmul.f32 %v3321_v25, %v4868_v1 }
 0x829   : > { %v2008_v5 = vpop.xlane.xlu2 %2007  ;;  %v2408_v28 = vsub.f32 %v4891_v51, %v2391_v10  ;;  %v2459_v20 = vpop.xlane.xlu1 %2458 }
 0x82a   : > { %v2058_v50 = vpack.c.bf16 %v2046_v41, %v2045_v35 }
 0x82b   : > { %v2438_v33 = vmul.f32 1.442695, %v2408_v28 }
 0x82c   : > { %v4980_v39 = vpop.eup %3322  ;;  %2110 = vmatmul.bf16.gmra.mxu1 %v2058_v50 }
 0x82d   : > { %v4982_v36 = vpop.eup %3324  ;;  %2021 = vadd.xlane.f32.xlu0 %v4980_v39  ;;  %3326 = vpow2.f32 %v2438_v33 }
 0x82e   : > { %2472 = vadd.xlane.f32.xlu2 %v4982_v36  ;;  %3328 = vrcp.f32 %v2459_v20 }
 0x82f   : > { %3330 = vrcp.f32 %v2008_v5 }
 0x830   : > { %v2010_v1 = vpop.xlane.xlu0 %2009 }
 0x831   : > { %v2461_v19 = vpop.xlane.xlu2 %2460  ;;  %v2014_v13 = vpop.xlane.xlu1 %2013 }
 0x832   : > { %3332 = vrcp.f32 %v2461_v19 }
 0x833   : > { %3334 = vrcp.f32 %v2010_v1  ;;  %v4988_v51 = vpop.eup %3326 }
 0x834   : > { %2470 = vadd.xlane.f32.xlu1 %v4988_v51  ;;  %v3329_v8 = vpop.eup %3328 }
 0x835   : > { %v3331_v54 = vpop.eup %3330  ;;  %v2498_v61 = vmul.f32 %v3329_v8, %v4893_v55  ;;  %v4999_v55 = vpop.f32.mrf.mxu0 }
 0x836   : > { %v2047_v44 = vmul.f32 %v3331_v54, %v4887_v48 }
 0x838   : > { %v3333_v56 = vpop.eup %3332  ;;  %v2012_v6 = vpop.xlane.xlu0 %2011 }
 0x839   : > { %v3335_v14 = vpop.eup %3334  ;;  %v2499_v63 = vmul.f32 %v3333_v56, %v4903_v16  ;;  %3336 = vrcp.f32 %v2012_v6 }
 0x83a   : > { %v2048_v59 = vmul.f32 %v3335_v14, %v4907_v9  ;;  %v2463_v26 = vpop.xlane.xlu2 %2462 }
 0x83b   : > { %v2510_v46 = vpack.c.bf16 %v2499_v63, %v2498_v61  ;;  %v2096_v30 = vpop.f32.mrf.mxu1  ;;  %3338 = vrcp.f32 %v2463_v26 }
 0x83c   : > { %v2059_v0 = vpack.c.bf16 %v2048_v59, %v2047_v44  ;;  %3340 = vrcp.f32 %v2014_v13 }
 0x83d   : > { %2566 = vmatmul.bf16.gmra.mxu0 %v2510_v46  ;;  %v2547_v25 = vpop.f32.mrf.mxu0 }
 0x83e   : > { %2115 = vmatmul.bf16.gmra.mxu1 %v2059_v0 }
 0x83f   : > { %v3337_v48 = vpop.eup %3336 }
 0x840   : > { %v2465_v38 = vpop.xlane.xlu0 %2464  ;;  %v2049_v7 = vmul.f32 %v3337_v48, %v4918_v57 }
 0x841   : > { %1701 = vrot.lane.b32.xlu0 %v4885_v58, %s3380_s8  ;;  %3342 = vrcp.f32 %v2465_v38  ;;  %v3339_v16 = vpop.eup %3338 }
 0x842   : > { %v3341_v9 = vpop.eup %3340  ;;  %v2500_v62 = vmul.f32 %v3339_v16, %v4922_v2  ;;  %v2016_v2 = vpop.xlane.xlu1 %2015 }
 0x843   : > { %v2098_v21 = vpop.f32.mrf.mxu1  ;;  %v2050_v58 = vmul.f32 %v3341_v9, %v4910_v40  ;;  %3344 = vrcp.f32 %v2016_v2 }
 0x845   : > { %v2060_v5 = vpack.c.bf16 %v2050_v58, %v2049_v7  ;;  %v2549_v57 = vpop.f32.mrf.mxu0 }
 0x846   : > { %2152 = vrot.lane.b32.xlu2 %v2096_v30, %s3381_s9  ;;  %v2985_v30 = vld [vmem:[%s5221_s5 + $0x8] sm:$0xff] }
 0x847   : > { %v3343_v17 = vpop.eup %3342  ;;  %2738 = vmatpush.bf16.msra.mxu2 %v2985_v30 }
 0x848   : > { %v2501_v15 = vmul.f32 %v3343_v17, %v4925_v49 }
 0x849   : > { %2154 = vrot.lane.b32.xlu0 %v2098_v21, %s3381_s9 }
 0x84a   : > { %v2511_v10 = vpack.c.bf16 %v2501_v15, %v2500_v62 }
 0x84d   : > { %2571 = vmatmul.bf16.gmra.mxu0 %v2511_v10  ;;  %1703 = vrot.lane.b32.xlu1 %v4899_v45, %s3380_s8  ;;  %v2552_v40 = vpop.f32.mrf.mxu0 }
 0x84e   : > { %2603 = vrot.lane.b32.xlu2 %v2547_v25, %s3382_s10  ;;  %2120 = vmatmul.bf16.gmra.mxu1 %v2060_v5 }
 0x851   : > { %1705 = vrot.lane.b32.xlu0 %v4916_v37, %s3380_s8 }
 0x855   : > { %2605 = vrot.lane.b32.xlu1 %v2549_v57, %s3382_s10  ;;  %v2554_v49 = vpop.f32.mrf.mxu0 }
 0x856   : > { %1707 = vrot.lane.b32.xlu2 %v4927_v32, %s3380_s8 }
 0x85e   : > { %2607 = vrot.lane.b32.xlu2 %v2552_v40, %s3382_s10 }
 0x866   : > { %1711 = vrot.lane.b32.xlu2 %v4935_v11, %s3380_s8  ;;  %v3345_v11 = vpop.eup %3344 }
 0x867   : > { %v2051_v19 = vmul.f32 %v3345_v11, %v4930_v60 }
 0x884   : > { %v2467_v45 = vpop.xlane.xlu0 %2466 }
 0x885   : > { %3346 = vrcp.f32 %v2467_v45 }
 0x889   : > { %v2101_v35 = vpop.f32.mrf.mxu1 }
 0x88a   : > { %2156 = vrot.lane.b32.xlu1 %v2101_v35, %s3381_s9 }
 0x88b   : > { %v3347_v50 = vpop.eup %3346 }
 0x88c   : > { %v2502_v54 = vmul.f32 %v3347_v50, %v4948_v42 }
 0x88f   : > { %v2018_v37 = vpop.xlane.xlu2 %2017 }
 0x890   : > { %3348 = vrcp.f32 %v2018_v37  ;;  %v2469_v41 = vpop.xlane.xlu1 %2468 }
 0x891   : > { %3350 = vrcp.f32 %v2469_v41  ;;  %v2103_v32 = vpop.f32.mrf.mxu1  ;;  %v2557_v28 = vpop.f32.mrf.mxu0 }
 0x892   : > { %2609 = vrot.lane.b32.xlu1 %v2554_v49, %s3382_s10  ;;  %2158 = vrot.lane.b32.xlu0 %v2103_v32, %s3381_s9 }
 0x893   : > { %2611 = vrot.lane.b32.xlu2 %v2557_v28, %s3382_s10 }
 0x896   : > { %v3349_v33 = vpop.eup %3348 }
 0x897   : > { %v3351_v20 = vpop.eup %3350  ;;  %v2052_v1 = vmul.f32 %v3349_v33, %v4960_v18 }
 0x898   : > { %v2020_v8 = vpop.xlane.xlu2 %2019  ;;  %v2503_v56 = vmul.f32 %v3351_v20, %v4964_v53 }
 0x899   : > { %v2106_v14 = vpop.f32.mrf.mxu1  ;;  %v2559_v6 = vpop.f32.mrf.mxu0  ;;  %v2061_v61 = vpack.c.bf16 %v2052_v1, %v2051_v19  ;;  %3352 = vrcp.f32 %v2020_v8 }
 0x89a   : > { %2160 = vrot.lane.b32.xlu1 %v2106_v14, %s3381_s9  ;;  %1709 = vrot.lane.b32.xlu0 %v4933_v31, %s3380_s8  ;;  %v2512_v63 = vpack.c.bf16 %v2503_v56, %v2502_v54 }
 0x89b   : > { %1715 = vrot.lane.b32.xlu2 %v4939_v29, %s3380_s8  ;;  %2125 = vmatmul.bf16.gmra.mxu1 %v2061_v61 }
 0x89c   : > { %2576 = vmatmul.bf16.gmra.mxu0 %v2512_v63 }
 0x89f   : > { %v3353_v44 = vpop.eup %3352 }
 0x8a0   : > { %v2022_v60 = vpop.xlane.xlu0 %2021  ;;  %v2053_v29 = vmul.f32 %v3353_v44, %v4972_v3 }
 0x8a1   : > { %3354 = vrcp.f32 %v2022_v60  ;;  %v2473_v42 = vpop.xlane.xlu2 %2472  ;;  %v2108_v18 = vpop.f32.mrf.mxu1 }
 0x8a2   : > { %v2562_v53 = vpop.f32.mrf.mxu0  ;;  %2613 = vrot.lane.b32.xlu1 %v2559_v6, %s3382_s10  ;;  %2162 = vrot.lane.b32.xlu0 %v2108_v18, %s3381_s9  ;;  %3356 = vrcp.f32 %v2473_v42 }
 0x8a3   : > { %2615 = vrot.lane.b32.xlu2 %v2562_v53, %s3382_s10 }
 0x8a7   : > { %v3355_v31 = vpop.eup %3354  ;;  %v2471_v59 = vpop.xlane.xlu1 %2470 }
 0x8a8   : > { %v2054_v46 = vmul.f32 %v3355_v31, %v4980_v39  ;;  %3358 = vrcp.f32 %v2471_v59  ;;  %v3357_v3 = vpop.eup %3356  ;;  %v2984_v39 = vld [vmem:[%s5221_s5] sm:$0xff] }
 0x8a9   : > { %v2153_v0 = vpop.permute.xlu2 %2152  ;;  %v2111_v26 = vpop.f32.mrf.mxu1  ;;  %2739 = vmatpush.bf16.msra.mxu2 %v2984_v39 }
 0x8aa   : > { %v2062_v13 = vpack.c.bf16 %v2054_v46, %v2053_v29  ;;  %1713 = vrot.lane.b32.xlu0 %v4937_v34, %s3380_s8  ;;  %2164 = vrot.lane.b32.xlu1 %v2111_v26, %s3381_s9  ;;  %v2505_v34 = vmul.f32 %v3357_v3, %v4982_v36  ;;  %v2564_v9 = vpop.f32.mrf.mxu0 }
 0x8ab   : > { %1719 = vrot.lane.b32.xlu2 %v4944_v43, %s3380_s8 }
 0x8ac   : > { %2130 = vmatmul.bf16.gmra.mxu1 %v2062_v13 }
 0x8ae   : > { %v3359_v38 = vpop.eup %3358 }
 0x8af   : > { %v2504_v48 = vmul.f32 %v3359_v38, %v4988_v51 }
 0x8b1   : > { %v2604_v16 = vpop.permute.xlu2 %2603  ;;  %v2113_v43 = vpop.f32.mrf.mxu1  ;;  %v2513_v17 = vpack.c.bf16 %v2505_v34, %v2504_v48 }
 0x8b2   : > { %2617 = vrot.lane.b32.xlu1 %v2564_v9, %s3382_s10  ;;  %2166 = vrot.lane.b32.xlu0 %v2113_v43, %s3381_s9 }
 0x8b3   : > { %v1702_v21 = vpop.permute.xlu0 %1701  ;;  %2581 = vmatmul.bf16.gmra.mxu0 %v2513_v17 }
 0x8b4   : > { %1750 = vst.msk [vmem:[#allocation2] sm:$0xff] %vm1749_vm7, %v1702_v21 }
 0x8b5   : > { %2201 = vst.msk [vmem:[#allocation2] sm:$0xff] %vm2200_vm8, %v2153_v0 }
 0x8b6   : > { %2652 = vst.msk [vmem:[#allocation2] sm:$0xff] %vm2651_vm9, %v2604_v16 }
 0x8b9   : > { %v1708_v36 = vpop.permute.xlu2 %1707 }
 0x8ba   : > { %1753 = vst.msk [vmem:[#allocation2 + $0x18] sm:$0xff] %vm1749_vm7, %v1708_v36  ;;  %v2567_v51 = vpop.f32.mrf.mxu0  ;;  %1717 = vrot.lane.b32.xlu0 %v4941_v52, %s3380_s8 }
 0x8bb   : > { %v2116_v7 = vpop.f32.mrf.mxu1  ;;  %v2155_v62 = vpop.permute.xlu0 %2154  ;;  %2619 = vrot.lane.b32.xlu2 %v2567_v51, %s3382_s10 }
 0x8bc   : > { %2168 = vrot.lane.b32.xlu1 %v2116_v7, %s3381_s9 }
 0x8bd   : > { %v2668_v49 = vld [vmem:[#allocation2] sm:$0xff] }
 0x8bf   : > { %v1704_v58 = vpop.permute.xlu1 %1703 }
 0x8c0   : > { %1751 = vst.msk [vmem:[#allocation2 + $0x8] sm:$0xff] %vm1749_vm7, %v1704_v58 }
 0x8c1   : > { %v2608_v15 = vpop.permute.xlu2 %2607  ;;  %2202 = vst.msk [vmem:[#allocation2 + $0x8] sm:$0xff] %vm2200_vm8, %v2155_v62 }
 0x8c2   : > { %v2569_v25 = vpop.f32.mrf.mxu0 }
 0x8c3   : > { %v2118_v10 = vpop.f32.mrf.mxu1  ;;  %v1706_v5 = vpop.permute.xlu0 %1705  ;;  %1723 = vrot.lane.b32.xlu2 %v4962_v4, %s3380_s8 }
 0x8c4   : > { %1752 = vst.msk [vmem:[#allocation2 + $0x10] sm:$0xff] %vm1749_vm7, %v1706_v5  ;;  %2170 = vrot.lane.b32.xlu0 %v2118_v10, %s3381_s9  ;;  %2621 = vrot.lane.b32.xlu1 %v2569_v25, %s3382_s10  ;;  %v5128_v10 = vld [vmem:[%s5222_s6] ss:$0 sm:$0xff] }
 0x8c7   : > { %v2606_v57 = vpop.permute.xlu1 %2605 }
 0x8c8   : > { %2653 = vst.msk [vmem:[#allocation2 + $0x8] sm:$0xff] %vm2651_vm9, %v2606_v57 }
 0x8c9   : > { %v1712_v52 = vpop.permute.xlu2 %1711 }
 0x8ca   : > { %1755 = vst.msk [vmem:[#allocation2 + $0x28] sm:$0xff] %vm1749_vm7, %v1712_v52  ;;  %v2572_v40 = vpop.f32.mrf.mxu0 }
 0x8cb   : > { %v2121_v2 = vpop.f32.mrf.mxu1  ;;  %2623 = vrot.lane.b32.xlu2 %v2572_v40, %s3382_s10 }
 0x8cc   : > { %1721 = vrot.lane.b32.xlu0 %v4952_v24, %s3380_s8  ;;  %2172 = vrot.lane.b32.xlu1 %v2121_v2, %s3381_s9 }
 0x8cf   : > { %v2669_v35 = vld [vmem:[#allocation2 + $0x8] sm:$0xff] }
 0x8d0   : > { %v2684_v37 = vpack.c.bf16 %v2669_v35, %v2668_v49 }
 0x8d2   : > { %v2574_v4 = vpop.f32.mrf.mxu0  ;;  %2970 = vmatmul.msk.bf16.vlgmr.msra.gmra.mxu2 %vm314_vm0, %v2684_v37 }
 0x8d3   : > { %v2123_v45 = vpop.f32.mrf.mxu1  ;;  %1727 = vrot.lane.b32.xlu2 %v4986_v27, %s3380_s8 }
 0x8d4   : > { %2625 = vrot.lane.b32.xlu1 %v2574_v4, %s3382_s10  ;;  %2174 = vrot.lane.b32.xlu0 %v2123_v45, %s3381_s9 }
 0x8dc   : > { %1725 = vrot.lane.b32.xlu0 %v4974_v23, %s3380_s8 }
 0x8ed   : > { %v2612_v24 = vpop.permute.xlu2 %2611 }
 0x8f5   : > { %v1716_v41 = vpop.permute.xlu2 %1715 }
 0x8f6   : > { %1757 = vst.msk [vmem:[#allocation2 + $0x38] sm:$0xff] %vm1749_vm7, %v1716_v41 }
 0x8fc   : > { %v2157_v32 = vpop.permute.xlu1 %2156 }
 0x8fd   : > { %v2616_v28 = vpop.permute.xlu2 %2615  ;;  %2203 = vst.msk [vmem:[#allocation2 + $0x10] sm:$0xff] %vm2200_vm8, %v2157_v32  ;;  %v5258_v32 = vld [vmem:[#allocation15_spill] sm:$0xff] }
 0x8fe   : > { %2654 = vst.msk [vmem:[#allocation2 + $0x10] sm:$0xff] %vm2651_vm9, %v2608_v15 }
 0x904   : > { %v2159_v27 = vpop.permute.xlu0 %2158  ;;  %v2610_v11 = vpop.permute.xlu1 %2609 }
 0x905   : > { %2204 = vst.msk [vmem:[#allocation2 + $0x18] sm:$0xff] %vm2200_vm8, %v2159_v27  ;;  %v1720_v50 = vpop.permute.xlu2 %1719  ;;  %v2670_v20 = vld [vmem:[#allocation2 + $0x10] sm:$0xff] }
 0x906   : > { %1759 = vst.msk [vmem:[#allocation2 + $0x48] sm:$0xff] %vm1749_vm7, %v1720_v50 }
 0x907   : > { %2655 = vst.msk [vmem:[#allocation2 + $0x18] sm:$0xff] %vm2651_vm9, %v2610_v11 }
 0x90c   : > { %v1710_v23 = vpop.permute.xlu0 %1709  ;;  %v2161_v33 = vpop.permute.xlu1 %2160 }
 0x90d   : > { %1754 = vst.msk [vmem:[#allocation2 + $0x20] sm:$0xff] %vm1749_vm7, %v1710_v23 }
 0x90e   : > { %2205 = vst.msk [vmem:[#allocation2 + $0x20] sm:$0xff] %vm2200_vm8, %v2161_v33  ;;  %v2671_v19 = vld [vmem:[#allocation2 + $0x18] sm:$0xff] }
 0x90f   : > { %2656 = vst.msk [vmem:[#allocation2 + $0x20] sm:$0xff] %vm2651_vm9, %v2612_v24  ;;  %v2685_v1 = vpack.c.bf16 %v2671_v19, %v2670_v20 }
 0x911   : > { %2971 = vmatmul.msk.bf16.gmra.mxu2 %vm314_vm0, %v2685_v1 }
 0x914   : > { %v2163_v8 = vpop.permute.xlu0 %2162  ;;  %v2614_v56 = vpop.permute.xlu1 %2613 }
 0x915   : > { %v2620_v54 = vpop.permute.xlu2 %2619  ;;  %2206 = vst.msk [vmem:[#allocation2 + $0x28] sm:$0xff] %vm2200_vm8, %v2163_v8  ;;  %v5259_v8 = vld [vmem:[#allocation16_spill] sm:$0xff] }
 0x916   : > { %2657 = vst.msk [vmem:[#allocation2 + $0x28] sm:$0xff] %vm2651_vm9, %v2614_v56  ;;  %v2672_v42 = vld [vmem:[#allocation2 + $0x20] sm:$0xff] }
 0x918   : > { %v2126_v14 = vpop.f32.mrf.mxu1 }
 0x919   : > { %v2577_v6 = vpop.f32.mrf.mxu0  ;;  %2176 = vrot.lane.b32.xlu1 %v2126_v14, %s3381_s9 }
 0x91a   : > { %2627 = vrot.lane.b32.xlu2 %v2577_v6, %s3382_s10 }
 0x91c   : > { %v1714_v61 = vpop.permute.xlu0 %1713  ;;  %v2165_v60 = vpop.permute.xlu1 %2164 }
 0x91d   : > { %v1724_v63 = vpop.permute.xlu2 %1723  ;;  %1756 = vst.msk [vmem:[#allocation2 + $0x30] sm:$0xff] %vm1749_vm7, %v1714_v61  ;;  %v2673_v18 = vld [vmem:[#allocation2 + $0x28] sm:$0xff] }
 0x91e   : > { %1761 = vst.msk [vmem:[#allocation2 + $0x58] sm:$0xff] %vm1749_vm7, %v1724_v63  ;;  %v2686_v53 = vpack.c.bf16 %v2673_v18, %v2672_v42 }
 0x91f   : > { %2207 = vst.msk [vmem:[#allocation2 + $0x30] sm:$0xff] %vm2200_vm8, %v2165_v60  ;;  %v5260_v60 = vld [vmem:[#allocation4_spill] sm:$0xff] }
 0x920   : > { %2658 = vst.msk [vmem:[#allocation2 + $0x30] sm:$0xff] %vm2651_vm9, %v2616_v28  ;;  %v2128_v44 = vpop.f32.mrf.mxu1 }
 0x921   : > { %v2579_v31 = vpop.f32.mrf.mxu0  ;;  %2972 = vmatmul.msk.bf16.gmra.mxu2 %vm314_vm0, %v2686_v53  ;;  %2178 = vrot.lane.b32.xlu0 %v2128_v44, %s3381_s9 }
 0x922   : > { %1731 = vrot.lane.b32.xlu2 %v4999_v55, %s3380_s8  ;;  %2629 = vrot.lane.b32.xlu1 %v2579_v31, %s3382_s10 }
 0x924   : > { %v2167_v59 = vpop.permute.xlu0 %2166  ;;  %v2618_v46 = vpop.permute.xlu1 %2617 }
 0x925   : > { %v2624_v29 = vpop.permute.xlu2 %2623  ;;  %2208 = vst.msk [vmem:[#allocation2 + $0x38] sm:$0xff] %vm2200_vm8, %v2167_v59  ;;  %v5261_v59 = vld [vmem:[#allocation7_spill] sm:$0xff] }
 0x926   : > { %2659 = vst.msk [vmem:[#allocation2 + $0x38] sm:$0xff] %vm2651_vm9, %v2618_v46 }
 0x927   : > { %v2674_v30 = vld [vmem:[#allocation2 + $0x30] sm:$0xff] }
 0x929   : > { %v2131_v0 = vpop.f32.mrf.mxu1  ;;  %1729 = vrot.lane.b32.xlu0 %v4991_v12, %s3380_s8 }
 0x92a   : > { %2180 = vrot.lane.b32.xlu1 %v2131_v0, %s3381_s9 }
 0x92c   : > { %v1718_v26 = vpop.permute.xlu0 %1717 }
 0x92d   : > { %v1728_v13 = vpop.permute.xlu2 %1727  ;;  %1758 = vst.msk [vmem:[#allocation2 + $0x40] sm:$0xff] %vm1749_vm7, %v1718_v26  ;;  %v2675_v3 = vld [vmem:[#allocation2 + $0x38] sm:$0xff] }
 0x92e   : > { %v2169_v55 = vpop.permute.xlu1 %2168  ;;  %1763 = vst.msk [vmem:[#allocation2 + $0x68] sm:$0xff] %vm1749_vm7, %v1728_v13  ;;  %v2687_v39 = vpack.c.bf16 %v2675_v3, %v2674_v30  ;;  %v5262_v3 = vld [vmem:[#allocation3_spill] sm:$0xff] }
 0x92f   : > { %2209 = vst.msk [vmem:[#allocation2 + $0x40] sm:$0xff] %vm2200_vm8, %v2169_v55 }
 0x930   : > { %2660 = vst.msk [vmem:[#allocation2 + $0x40] sm:$0xff] %vm2651_vm9, %v2620_v54  ;;  %v2582_v48 = vpop.f32.mrf.mxu0 }
 0x931   : > { %v2133_v38 = vpop.f32.mrf.mxu1  ;;  %2973 = vmatmul.msk.bf16.gmra.mxu2 %vm314_vm0, %v2687_v39  ;;  %2631 = vrot.lane.b32.xlu2 %v2582_v48, %s3382_s10 }
 0x932   : > { %2182 = vrot.lane.b32.xlu0 %v2133_v38, %s3381_s9 }
 0x936   : > { %v2171_v12 = vpop.permute.xlu0 %2170  ;;  %v2622_v34 = vpop.permute.xlu1 %2621 }
 0x937   : > { %2210 = vst.msk [vmem:[#allocation2 + $0x48] sm:$0xff] %vm2200_vm8, %v2171_v12  ;;  %v2676_v17 = vld [vmem:[#allocation2 + $0x40] sm:$0xff] }
 0x938   : > { %2661 = vst.msk [vmem:[#allocation2 + $0x48] sm:$0xff] %vm2651_vm9, %v2622_v34  ;;  %v2584_v16 = vpop.f32.mrf.mxu0  ;;  %v5263_v34 = vld [vmem:[#allocation6_spill] sm:$0xff] }
 0x939   : > { %2633 = vrot.lane.b32.xlu1 %v2584_v16, %s3382_s10 }
 0x93e   : > { %v1722_v9 = vpop.permute.xlu0 %1721  ;;  %v2173_v43 = vpop.permute.xlu1 %2172 }
 0x93f   : > { %1760 = vst.msk [vmem:[#allocation2 + $0x50] sm:$0xff] %vm1749_vm7, %v1722_v9  ;;  %v2677_v21 = vld [vmem:[#allocation2 + $0x48] sm:$0xff] }
 0x940   : > { %2211 = vst.msk [vmem:[#allocation2 + $0x50] sm:$0xff] %vm2200_vm8, %v2173_v43  ;;  %v2688_v36 = vpack.c.bf16 %v2677_v21, %v2676_v17  ;;  %v5264_v21 = vld [vmem:[#allocation5_spill] sm:$0xff] }
 0x941   : > { %2662 = vst.msk [vmem:[#allocation2 + $0x50] sm:$0xff] %vm2651_vm9, %v2624_v29 }
 0x942   : > { %2974 = vmatmul.msk.bf16.gmra.mxu2 %vm314_vm0, %v2688_v36 }
 0x946   : > { %v2175_v51 = vpop.permute.xlu0 %2174  ;;  %v2626_v7 = vpop.permute.xlu1 %2625 }
 0x947   : > { %2212 = vst.msk [vmem:[#allocation2 + $0x58] sm:$0xff] %vm2200_vm8, %v2175_v51 }
 0x948   : > { %2663 = vst.msk [vmem:[#allocation2 + $0x58] sm:$0xff] %vm2651_vm9, %v2626_v7  ;;  %v2678_v15 = vld [vmem:[#allocation2 + $0x50] sm:$0xff] }
 0x94e   : > { %v1726_v62 = vpop.permute.xlu0 %1725 }
 0x94f   : > { %1762 = vst.msk [vmem:[#allocation2 + $0x60] sm:$0xff] %vm1749_vm7, %v1726_v62  ;;  %v2679_v58 = vld [vmem:[#allocation2 + $0x58] sm:$0xff] }
 0x950   : > { %v2689_v25 = vpack.c.bf16 %v2679_v58, %v2678_v15  ;;  %v5265_v15 = vld [vmem:[#allocation8_spill] sm:$0xff] }
 0x952   : > { %2975 = vmatmul.msk.bf16.gmra.mxu2 %vm314_vm0, %v2689_v25 }
 0x955   : > { %v2741_v5 = vpop.f32.mrf.mxu2 }
 0x956   : > { %v2781_v52 = vadd.f32 %v3567_v47, %v2741_v5 }
 0x958   : > { %v2801_v57 = vadd.f32 %v5128_v10, %v2781_v52 }
 0x95a   : > { %v2817_v40 = vpack.c.bf16 %v2801_v57, %v2801_v57  ;;  %v5266_v57 = vld [vmem:[#allocation9_spill] sm:$0xff] }
 0x95c   : > { %2834 = vst.msk [vmem:[%s5137_s19] sm:$0xf] %vm2833_vm10, %v2817_v40 }
 0x95d   : > { %v2743_v2 = vpop.f32.mrf.mxu2 }
 0x95e   : > { %v2782_v4 = vadd.f32 %v3598_v22, %v2743_v2 }
 0x960   : > { %v2802_v49 = vadd.f32 %v5128_v10, %v2782_v4 }
 0x962   : > { %v2818_v47 = vpack.c.bf16 %v2802_v49, %v2802_v49 }
 0x964   : > { %2835 = vst.msk [vmem:[%s5137_s19 + $0x4] sm:$0xf] %vm2833_vm10, %v2818_v47  ;;  %v5267_v47 = vld [vmem:[#allocation10_spill] sm:$0xff] }
 0x974   : > { %v2628_v35 = vpop.permute.xlu2 %2627 }
 0x97c   : > { %v1732_v45 = vpop.permute.xlu2 %1731 }
 0x97d   : > { %1765 = vst.msk [vmem:[#allocation2 + $0x78] sm:$0xff] %vm1749_vm7, %v1732_v45 }
 0x98b   : > { %v2177_v37 = vpop.permute.xlu1 %2176  ;;  %v2632_v1 = vpop.permute.xlu2 %2631 }
 0x98c   : > { %2213 = vst.msk [vmem:[#allocation2 + $0x60] sm:$0xff] %vm2200_vm8, %v2177_v37 }
 0x98d   : > { %2664 = vst.msk [vmem:[#allocation2 + $0x60] sm:$0xff] %vm2651_vm9, %v2628_v35 }
 0x993   : > { %v2179_v24 = vpop.permute.xlu0 %2178 }
 0x994   : > { %2214 = vst.msk [vmem:[#allocation2 + $0x68] sm:$0xff] %vm2200_vm8, %v2179_v24  ;;  %v2746_v41 = vpop.f32.mrf.mxu2  ;;  %v2630_v22 = vpop.permute.xlu1 %2629  ;;  %v2680_v20 = vld [vmem:[#allocation2 + $0x60] sm:$0xff] }
 0x995   : > { %v2783_v28 = vadd.f32 %v5258_v32, %v2746_v41  ;;  %2665 = vst.msk [vmem:[#allocation2 + $0x68] sm:$0xff] %vm2651_vm9, %v2630_v22  ;;  %v5268_v41 = vld [vmem:[#allocation11_spill] sm:$0xff] }
 0x997   : > { %v2803_v27 = vadd.f32 %v5128_v10, %v2783_v28 }
 0x999   : > { %v2819_v11 = vpack.c.bf16 %v2803_v27, %v2803_v27 }
 0x99b   : > { %2836 = vst.msk [vmem:[%s5137_s19 + $0x8] sm:$0xf] %vm2833_vm10, %v2819_v11  ;;  %v1730_v50 = vpop.permute.xlu0 %1729  ;;  %v5269_v11 = vld [vmem:[#allocation13_spill] sm:$0xff] }
 0x99c   : > { %1764 = vst.msk [vmem:[#allocation2 + $0x70] sm:$0xff] %vm1749_vm7, %v1730_v50  ;;  %v2748_v23 = vpop.f32.mrf.mxu2  ;;  %v2181_v33 = vpop.permute.xlu1 %2180  ;;  %v2681_v19 = vld [vmem:[#allocation2 + $0x68] sm:$0xff] }
 0x99d   : > { %v2784_v54 = vadd.f32 %v5259_v8, %v2748_v23  ;;  %2215 = vst.msk [vmem:[#allocation2 + $0x70] sm:$0xff] %vm2200_vm8, %v2181_v33  ;;  %v2690_v56 = vpack.c.bf16 %v2681_v19, %v2680_v20  ;;  %v5270_v19 = vld [vmem:[#allocation14_spill] sm:$0xff] }
 0x99e   : > { %2666 = vst.msk [vmem:[#allocation2 + $0x70] sm:$0xff] %vm2651_vm9, %v2632_v1 }
 0x99f   : > { %v2804_v14 = vadd.f32 %v5128_v10, %v2784_v54  ;;  %2976 = vmatmul.msk.bf16.gmra.mxu2 %vm314_vm0, %v2690_v56 }
 0x9a1   : > { %v2820_v6 = vpack.c.bf16 %v2804_v14, %v2804_v14  ;;  %v5271_v14 = vld [vmem:[#allocation12_spill] sm:$0xff] }
 0x9a3   : > { %2837 = vst.msk [vmem:[%s5137_s19 + $0xc] sm:$0xf] %vm2833_vm10, %v2820_v6 }
 0x9a4   : > { %v2183_v61 = vpop.permute.xlu0 %2182  ;;  %v2751_v63 = vpop.f32.mrf.mxu2 }
 0x9a5   : > { %2216 = vst.msk [vmem:[#allocation2 + $0x78] sm:$0xff] %vm2200_vm8, %v2183_v61  ;;  %v2785_v42 = vadd.f32 %v5260_v60, %v2751_v63  ;;  %v2682_v26 = vld [vmem:[#allocation2 + $0x70] sm:$0xff] }
 0x9a7   : > { %v2805_v18 = vadd.f32 %v5128_v10, %v2785_v42 }
 0x9a9   : > { %v2821_v53 = vpack.c.bf16 %v2805_v18, %v2805_v18 }
 0x9ab   : > { %2838 = vst.msk [vmem:[%s5137_s19 + $0x10] sm:$0xf] %vm2833_vm10, %v2821_v53  ;;  %v2634_v44 = vpop.permute.xlu1 %2633 }
 0x9ac   : > { %v2753_v31 = vpop.f32.mrf.mxu2  ;;  %2667 = vst.msk [vmem:[#allocation2 + $0x78] sm:$0xff] %vm2651_vm9, %v2634_v44 }
 0x9ad   : > { %v2786_v29 = vadd.f32 %v5261_v59, %v2753_v31 }
 0x9af   : > { %v2806_v46 = vadd.f32 %v5128_v10, %v2786_v29 }
 0x9b1   : > { %v2822_v0 = vpack.c.bf16 %v2806_v46, %v2806_v46 }
 0x9b3   : > { %2839 = vst.msk [vmem:[%s5137_s19 + $0x14] sm:$0xf] %vm2833_vm10, %v2822_v0  ;;  %v2683_v13 = vld [vmem:[#allocation2 + $0x78] sm:$0xff] }
 0x9b4   : > { %v2756_v55 = vpop.f32.mrf.mxu2  ;;  %v2691_v30 = vpack.c.bf16 %v2683_v13, %v2682_v26 }
 0x9b5   : > { %v2787_v39 = vadd.f32 %v5262_v3, %v2756_v55 }
 0x9b6   : > { %2977 = vmatmul.msk.bf16.gmra.mxu2 %vm314_vm0, %v2691_v30 }
 0x9b7   : > { %v2807_v38 = vadd.f32 %v5128_v10, %v2787_v39 }
 0x9b9   : > { %v2823_v48 = vpack.c.bf16 %v2807_v38, %v2807_v38 }
 0x9bb   : > { %2840 = vst.msk [vmem:[%s5137_s19 + $0x18] sm:$0xf] %vm2833_vm10, %v2823_v48 }
 0x9bc   : > { %v2758_v12 = vpop.f32.mrf.mxu2 }
 0x9bd   : > { %v2788_v16 = vadd.f32 %v5263_v34, %v2758_v12 }
 0x9bf   : > { %v2808_v9 = vadd.f32 %v5128_v10, %v2788_v16 }
 0x9c1   : > { %v2824_v43 = vpack.c.bf16 %v2808_v9, %v2808_v9 }
 0x9c3   : > { %2841 = vst.msk [vmem:[%s5137_s19 + $0x1c] sm:$0xf] %vm2833_vm10, %v2824_v43 }
 0x9c5   : > { %v2761_v17 = vpop.f32.mrf.mxu2 }
 0x9c6   : > { %v2789_v36 = vadd.f32 %v5264_v21, %v2761_v17 }
 0x9c8   : > { %v2809_v51 = vadd.f32 %v5128_v10, %v2789_v36 }
 0x9ca   : > { %v2825_v7 = vpack.c.bf16 %v2809_v51, %v2809_v51 }
 0x9cc   : > { %2842 = vst.msk [vmem:[%s5137_s19 + $0x20] sm:$0xf] %vm2833_vm10, %v2825_v7 }
 0x9cd   : > { %v2763_v62 = vpop.f32.mrf.mxu2 }
 0x9ce   : > { %v2790_v58 = vadd.f32 %v5265_v15, %v2763_v62 }
 0x9d0   : > { %v2810_v25 = vadd.f32 %v5128_v10, %v2790_v58 }
 0x9d2   : > { %v2826_v5 = vpack.c.bf16 %v2810_v25, %v2810_v25 }
 0x9d4   : > { %2843 = vst.msk [vmem:[%s5137_s19 + $0x24] sm:$0xf] %vm2833_vm10, %v2826_v5 }
 0x9d5   : > { %v2766_v52 = vpop.f32.mrf.mxu2 }
 0x9d6   : > { %v2791_v40 = vadd.f32 %v5266_v57, %v2766_v52 }
 0x9d8   : > { %v2811_v2 = vadd.f32 %v5128_v10, %v2791_v40 }
 0x9da   : > { %v2827_v4 = vpack.c.bf16 %v2811_v2, %v2811_v2 }
 0x9dc   : > { %2844 = vst.msk [vmem:[%s5137_s19 + $0x28] sm:$0xf] %vm2833_vm10, %v2827_v4 }
 0x9dd   : > { %v2768_v49 = vpop.f32.mrf.mxu2 }
 0x9de   : > { %v2792_v35 = vadd.f32 %v5267_v47, %v2768_v49 }
 0x9e0   : > { %v2812_v45 = vadd.f32 %v5128_v10, %v2792_v35 }
 0x9e2   : > { %v2828_v37 = vpack.c.bf16 %v2812_v45, %v2812_v45 }
 0x9e4   : > { %2845 = vst.msk [vmem:[%s5137_s19 + $0x2c] sm:$0xf] %vm2833_vm10, %v2828_v37 }
 0xa22   : > { %v2771_v24 = vpop.f32.mrf.mxu2 }
 0xa23   : > { %v2793_v22 = vadd.f32 %v5268_v41, %v2771_v24 }
 0xa25   : > { %v2813_v32 = vadd.f32 %v5128_v10, %v2793_v22 }
 0xa27   : > { %v2829_v28 = vpack.c.bf16 %v2813_v32, %v2813_v32 }
 0xa29   : > { %2846 = vst.msk [vmem:[%s5137_s19 + $0x30] sm:$0xf] %vm2833_vm10, %v2829_v28 }
 0xa2a   : > { %v2773_v27 = vpop.f32.mrf.mxu2 }
 0xa2b   : > { %v2794_v50 = vadd.f32 %v5269_v11, %v2773_v27 }
 0xa2d   : > { %v2814_v23 = vadd.f32 %v5128_v10, %v2794_v50 }
 0xa2f   : > { %v2830_v33 = vpack.c.bf16 %v2814_v23, %v2814_v23 }
 0xa31   : > { %2847 = vst.msk [vmem:[%s5137_s19 + $0x34] sm:$0xf] %vm2833_vm10, %v2830_v33 }
 0xa39   : > { %v2776_v20 = vpop.f32.mrf.mxu2 }
 0xa3a   : > { %v2795_v1 = vadd.f32 %v5270_v19, %v2776_v20 }
 0xa3c   : > { %v2815_v8 = vadd.f32 %v5128_v10, %v2795_v1 }
 0xa3e   : > { %v2831_v54 = vpack.c.bf16 %v2815_v8, %v2815_v8 }
 0xa40   : > { %2848 = vst.msk [vmem:[%s5137_s19 + $0x38] sm:$0xf] %vm2833_vm10, %v2831_v54 }
 0xa41   : > { %v2778_v56 = vpop.f32.mrf.mxu2 }
 0xa42   : > { %v2796_v6 = vadd.f32 %v5271_v14, %v2778_v56 }
 0xa44   : > { %v2816_v61 = vadd.f32 %v5128_v10, %v2796_v6 }
 0xa46   : > { %v2832_v63 = vpack.c.bf16 %v2816_v61, %v2816_v61 }
 0xa48   : > { %2849 = vst.msk [vmem:[%s5137_s19 + $0x3c] sm:$0xf] %vm2833_vm10, %v2832_v63 }
 0xa49 PF: > { %s17_s24 = sadd.s32 1, %s3366_s24  }
 0xa4a   : > { %p14_p4 = scmp.ge.s32.totalorder %s17_s24, 4  }
 0xa4c   :  { %16 = sbr.rel (!%p14_p4) target bundleno = 1 (0x1), region = 78 }

// kernel: gausskey_l2p_forward.21
= control target key start
LH: loop header
LB: loop body
LE: loop exit
PB: predicated region body
PF: predicated region fallthrough
CT: control target
= control target key end

     0   :  { %vm40_vm0 = vcmask 261120   ;;  %s656_s0 = inlined_call_operand.vmem [shape: bf16[2,25,32], index: 0, kind: input, shape index: {}]   ;;  %s657_s1 = inlined_call_operand.vmem [shape: f32[1,32], index: 1, kind: input, shape index: {}]   ;;  %s658_s2 = inlined_call_operand.vmem [shape: f32[1,32], index: 2, kind: input, shape index: {}]   ;;  %s659_s3 = inlined_call_operand.vmem [shape: bf16[32,128], index: 3, kind: input, shape index: {}]   ;;  %s660_s4 = inlined_call_operand.vmem [shape: f32[1,128], index: 4, kind: input, shape index: {}]   ;;  %s661_s5 = inlined_call_operand.hbm [shape: f32[2,128], index: 5, kind: output, shape index: {}]  }
   0x1   :  { %v363_v0 = vld [vmem:[%s656_s0 + $0x10] sm:$0xff]   ;;  %v455_v1 = vld [vmem:[%s656_s0 + $0x8] sm:$0xf]  ;;  %v356_v2 = vld [vmem:[%s656_s0] sm:$0xff]  }
   0x2   :  { %v361_v3 = vunpack.c.l.bf16 %v363_v0  ;;  %v32_v4 = vunpack.c.l.bf16 %v455_v1  ;;  %v357_v5 = vunpack.c.l.bf16 %v356_v2  ;;  %v28_v6 = vld [vmem:[%s656_s0 + $0x18] sm:$0xf] }
   0x4   :  { %v54_v7 = vsel %vm40_vm0, %v361_v3, 0.0  ;;  %v47_v8 = vsel %vm40_vm0, %v32_v4, 0.0  ;;  %v41_v9 = vsel %vm40_vm0, %v357_v5, 0.0 }
   0x5   :  { %10 = vsyncpa [#allocation3], 0  ;;  %55 = vadd.xlane.f32.xlu1 %v54_v7  ;;  %48 = vadd.xlane.f32.xlu2 %v47_v8  ;;  %v362_v10 = vunpack.c.h.bf16 %v363_v0  ;;  %v36_v11 = vunpack.c.l.bf16 %v28_v6  ;;  %v358_v12 = vunpack.c.h.bf16 %v356_v2  ;;  %v29_v16 = vld [vmem:[%s656_s0 + $0x1c] sm:$0x1]  ;;  %v25_v17 = vld [vmem:[%s656_s0 + $0xc] sm:$0x1] }
   0x6   :  { %42 = vadd.xlane.f32.xlu0 %v41_v9  ;;  %v37_v18 = vunpack.c.l.bf16 %v29_v16  ;;  %v33_v19 = vunpack.c.l.bf16 %v25_v17  ;;  %vm50_vm1 = vcmask 253952   ;;  %v416_v22 = vmov 32.0   ;;  %s418_s11 = smov [#allocation2]   ;;  %s335_s15 = sshll.u32 %s661_s5, 4  ;;  %s336_s15 = int_to_ptr.hbm [resolvable:$true] %s335_s15 }
   0x7   :  { %v57_v13 = vsel %vm40_vm0, %v362_v10, 0.0  ;;  %v60_v14 = vsel %vm40_vm0, %v36_v11, 0.0  ;;  %v44_v15 = vsel %vm40_vm0, %v358_v12, 0.0  ;;  %370 = vrcp.f32 %v416_v22  ;;  %s333_s12 = sshll.u32 %s418_s11, 4  ;;  %s334_s12 = int_to_ptr.vmem [resolvable:$true] %s333_s12 }
   0x8   :  { %v63_v20 = vsel %vm50_vm1, %v37_v18, 0.0  ;;  %v51_v21 = vsel %vm50_vm1, %v33_v19, 0.0 }
   0xd   :  { %58 = vadd.xlane.f32.xlu1 %v57_v13  ;;  %61 = vadd.xlane.f32.xlu2 %v60_v14  ;;  %v371_v23 = vpop.eup %370 }
   0xe   :  { %45 = vadd.xlane.f32.xlu0 %v44_v15  ;;  %v67_v24 = vmul.f32 32.0, %v371_v23  ;;  %vm71_vm2 = vweird.f32 %v371_v23 }
  0x10   :  { %v68_v25 = vsub.f32 1.0, %v67_v24 }
  0x12   :  { %v69_v26 = vmul.f32 %v371_v23, %v68_v25 }
  0x14   :  { %v70_v27 = vadd.f32 %v371_v23, %v69_v26 }
  0x15   :  { %64 = vadd.xlane.f32.xlu1 %v63_v20 }
  0x16   :  { %52 = vadd.xlane.f32.xlu0 %v51_v21  ;;  %v480_v28 = vsel %vm71_vm2, %v371_v23, %v70_v27 }
  0x78   :  { %v56_v29 = vpop.xlane.xlu1 %55  ;;  %v49_v30 = vpop.xlane.xlu2 %48 }
  0x79   :  { %v77_v31 = vmul.f32 %v480_v28, %v56_v29  ;;  %v43_v32 = vpop.xlane.xlu0 %42  ;;  %v75_v48 = vmul.f32 %v480_v28, %v49_v30 }
  0x7a   :  { %v73_v33 = vmul.f32 %v480_v28, %v43_v32 }
  0x7b   :  { %v484_v34 = vsub.f32 %v361_v3, %v77_v31  ;;  %v514_v55 = vsub.f32 %v32_v4, %v75_v48 }
  0x7c   :  { %v486_v35 = vsub.f32 %v357_v5, %v73_v33 }
  0x7d   :  { %v93_v36 = vmul.f32 %v484_v34, %v484_v34  ;;  %v91_v62 = vmul.f32 %v514_v55, %v514_v55 }
  0x7e   :  { %v89_v37 = vmul.f32 %v486_v35, %v486_v35 }
  0x7f   :  { %v109_v38 = vsel %vm40_vm0, %v93_v36, 0.0  ;;  %v103_v1 = vsel %vm40_vm0, %v91_v62, 0.0 }
  0x80   :  { %110 = vadd.xlane.f32.xlu1 %v109_v38  ;;  %v59_v39 = vpop.xlane.xlu1 %58  ;;  %v62_v40 = vpop.xlane.xlu2 %61  ;;  %v97_v41 = vsel %vm40_vm0, %v89_v37, 0.0 }
  0x81   :  { %v78_v42 = vmul.f32 %v480_v28, %v59_v39  ;;  %v79_v43 = vmul.f32 %v480_v28, %v62_v40  ;;  %98 = vadd.xlane.f32.xlu2 %v97_v41  ;;  %v46_v44 = vpop.xlane.xlu0 %45 }
  0x82   :  { %v74_v45 = vmul.f32 %v480_v28, %v46_v44 }
  0x83   :  { %v497_v46 = vsub.f32 %v362_v10, %v78_v42  ;;  %v499_v47 = vsub.f32 %v36_v11, %v79_v43 }
  0x84   :  { %v502_v49 = vsub.f32 %v358_v12, %v74_v45 }
  0x85   :  { %v95_v50 = vmul.f32 %v499_v47, %v499_v47  ;;  %v94_v51 = vmul.f32 %v497_v46, %v497_v46 }
  0x86   :  { %v90_v52 = vmul.f32 %v502_v49, %v502_v49 }
  0x87   :  { %v115_v53 = vsel %vm40_vm0, %v95_v50, 0.0  ;;  %v112_v54 = vsel %vm40_vm0, %v94_v51, 0.0  ;;  %v354_v50 = vld [vmem:[%s659_s3 + $0x8] sm:$0xff] }
  0x88   :  { %116 = vadd.xlane.f32.xlu1 %v115_v53  ;;  %v100_v56 = vsel %vm40_vm0, %v90_v52, 0.0  ;;  %v65_v57 = vpop.xlane.xlu1 %64  ;;  %320 = vmatpush.bf16.msra.mxu0 %v354_v50 }
  0x89   :  { %113 = vadd.xlane.f32.xlu2 %v112_v54  ;;  %101 = vadd.xlane.f32.xlu0 %v100_v56  ;;  %v53_v58 = vpop.xlane.xlu0 %52  ;;  %v80_v60 = vmul.f32 %v480_v28, %v65_v57 }
  0x8a   :  { %v76_v59 = vmul.f32 %v480_v28, %v53_v58  ;;  %v353_v58 = vld [vmem:[%s659_s3] sm:$0xff] }
  0x8b   :  { %v523_v63 = vsub.f32 %v37_v18, %v80_v60 }
  0x8c   :  { %v519_v61 = vsub.f32 %v33_v19, %v76_v59  ;;  %321 = vmatpush.bf16.msra.mxu0 %v353_v58 }
  0x8d   :  { %v96_v3 = vmul.f32 %v523_v63, %v523_v63 }
  0x8e   :  { %v92_v0 = vmul.f32 %v519_v61, %v519_v61 }
  0x8f   :  { %v118_v4 = vsel %vm50_vm1, %v96_v3, 0.0 }
  0x90   :  { %v106_v2 = vsel %vm50_vm1, %v92_v0, 0.0 }
  0x91   :  { %104 = vadd.xlane.f32.xlu0 %v103_v1  ;;  %107 = vadd.xlane.f32.xlu2 %v106_v2 }
  0x99   :  { %119 = vadd.xlane.f32.xlu0 %v118_v4 }
  0xf3   :  { %v111_v5 = vpop.xlane.xlu1 %110 }
  0xf4   :  { %v125_v6 = vmul.f32 %v111_v5, %v480_v28  ;;  %v99_v7 = vpop.xlane.xlu2 %98 }
  0xf5   :  { %v121_v8 = vmul.f32 %v99_v7, %v480_v28 }
  0xf6   :  { %v534_v9 = vadd.f32 1e-06, %v125_v6 }
  0xf7   :  { %v129_v10 = vadd.f32 1e-06, %v121_v8 }
  0xf8   :  { %372 = vrsqrt.f32 %v534_v9  ;;  %vm183_vm8 = vweird.f32 %v534_v9 }
  0xf9   :  { %374 = vrsqrt.f32 %v129_v10  ;;  %vm143_vm6 = vweird.f32 %v129_v10 }
  0xfb   :  { %v117_v11 = vpop.xlane.xlu1 %116 }
  0xfc   :  { %v127_v12 = vmul.f32 %v117_v11, %v480_v28  ;;  %v114_v13 = vpop.xlane.xlu2 %113  ;;  %v102_v14 = vpop.xlane.xlu0 %101 }
  0xfd   :  { %v126_v15 = vmul.f32 %v114_v13, %v480_v28  ;;  %v122_v16 = vmul.f32 %v102_v14, %v480_v28 }
  0xfe   :  { %v540_v17 = vpop.eup %372  ;;  %v542_v18 = vadd.f32 1e-06, %v127_v12 }
  0xff   :  { %v544_v19 = vpop.eup %374  ;;  %v134_v20 = vadd.f32 1e-06, %v126_v15  ;;  %v130_v21 = vadd.f32 1e-06, %v122_v16  ;;  %v178_v23 = vmul.f32 %v540_v17, %v534_v9  ;;  %vm184_vm9 = vweird.f32 %v540_v17 }
 0x100   :  { %v138_v22 = vmul.f32 %v544_v19, %v129_v10  ;;  %376 = vrsqrt.f32 %v542_v18  ;;  %vm144_vm3 = vweird.f32 %v544_v19  ;;  %vm203_vm13 = vweird.f32 %v542_v18  ;;  %vm185_vm2 = vmor %vm183_vm8, %vm184_vm9 }
 0x101   :  { %378 = vrsqrt.f32 %v134_v20  ;;  %v179_v27 = vmul.f32 %v540_v17, %v178_v23  ;;  %vm193_vm4 = vweird.f32 %v134_v20  ;;  %vm585_vm10 = vmor %vm143_vm6, %vm144_vm3  ;;  %vm153_vm12 = vweird.f32 %v130_v21 }
 0x102   :  { %v139_v24 = vmul.f32 %v544_v19, %v138_v22  ;;  %380 = vrsqrt.f32 %v130_v21  ;;  %v367_v22 = vld [vmem:[%s657_s1] ss:$0 sm:$0xff] }
 0x103   :  { %v180_v41 = vmul.f32 0.5, %v179_v27 }
 0x104   :  { %v108_v25 = vpop.xlane.xlu2 %107  ;;  %v105_v26 = vpop.xlane.xlu0 %104  ;;  %v140_v32 = vmul.f32 0.5, %v139_v24 }
 0x105   :  { %v124_v29 = vmul.f32 %v108_v25, %v480_v28  ;;  %v123_v30 = vmul.f32 %v105_v26, %v480_v28  ;;  %v181_v54 = vsub.f32 1.5, %v180_v41 }
 0x106   :  { %v554_v31 = vpop.eup %376  ;;  %v141_v44 = vsub.f32 1.5, %v140_v32 }
 0x107   :  { %v556_v33 = vpop.eup %378  ;;  %v198_v36 = vmul.f32 %v554_v31, %v542_v18  ;;  %v560_v37 = vadd.f32 1e-06, %v124_v29  ;;  %v563_v40 = vadd.f32 1e-06, %v123_v30  ;;  %v182_v4 = vmul.f32 %v540_v17, %v181_v54 }
 0x108   :  { %v381_v38 = vpop.eup %380  ;;  %v188_v39 = vmul.f32 %v556_v33, %v134_v20  ;;  %v142_v59 = vmul.f32 %v544_v19, %v141_v44  ;;  %vm194_vm5 = vweird.f32 %v556_v33  ;;  %vm204_vm14 = vweird.f32 %v554_v31 }
 0x109   :  { %v199_v42 = vmul.f32 %v554_v31, %v198_v36  ;;  %v148_v43 = vmul.f32 %v381_v38, %v130_v21  ;;  %382 = vrsqrt.f32 %v560_v37  ;;  %vm154_vm7 = vweird.f32 %v381_v38  ;;  %vm591_vm11 = vmor %vm193_vm4, %vm194_vm5 }
 0x10a   :  { %v189_v45 = vmul.f32 %v556_v33, %v188_v39  ;;  %384 = vrsqrt.f32 %v563_v40  ;;  %v146_v10 = vsel %vm585_vm10, %v544_v19, %v142_v59  ;;  %vm155_vm15 = vmor %vm153_vm12, %vm154_vm7  ;;  %v186_v18 = vsel %vm185_vm2, %v540_v17, %v182_v4 }
 0x10b   :  { %v149_v48 = vmul.f32 %v381_v38, %v148_v43  ;;  %v200_v51 = vmul.f32 0.5, %v199_v42  ;;  %vm614_vm3 = vmor %vm203_vm13, %vm204_vm14  ;;  %v217_v23 = vmul.f32 %v146_v10, %v486_v35  ;;  %vm173_vm4 = vweird.f32 %v560_v37 }
 0x10c   :  { %v190_v52 = vmul.f32 0.5, %v189_v45  ;;  %v120_v53 = vpop.xlane.xlu0 %119  ;;  %v221_v25 = vmul.f32 %v186_v18, %v484_v34  ;;  %v417_v29 = vmov 25.0   ;;  %vm163_vm8 = vweird.f32 %v563_v40 }
 0x10d   :  { %v150_v56 = vmul.f32 0.5, %v149_v48  ;;  %v128_v57 = vmul.f32 %v120_v53, %v480_v28  ;;  %v201_v2 = vsub.f32 1.5, %v200_v51 }
 0x10e   :  { %v191_v60 = vsub.f32 1.5, %v190_v52  ;;  %v232_v39 = vmul.f32 %v367_v22, %v221_v25 }
 0x10f   :  { %v151_v62 = vsub.f32 1.5, %v150_v56  ;;  %v579_v0 = vadd.f32 1e-06, %v128_v57  ;;  %v383_v1 = vpop.eup %382  ;;  %v202_v15 = vmul.f32 %v554_v31, %v201_v2 }
 0x110   :  { %v192_v3 = vmul.f32 %v556_v33, %v191_v60  ;;  %v168_v7 = vmul.f32 %v383_v1, %v560_v37  ;;  %v385_v8 = vpop.eup %384  ;;  %vm174_vm5 = vweird.f32 %v383_v1 }
 0x111   :  { %v152_v6 = vmul.f32 %v381_v38, %v151_v62  ;;  %386 = vrsqrt.f32 %v579_v0  ;;  %v158_v14 = vmul.f32 %v385_v8, %v563_v40  ;;  %v206_v26 = vsel %vm614_vm3, %v554_v31, %v202_v15  ;;  %vm175_vm7 = vmor %vm173_vm4, %vm174_vm5 }
 0x112   :  { %v196_v11 = vsel %vm591_vm11, %v556_v33, %v192_v3  ;;  %v169_v13 = vmul.f32 %v383_v1, %v168_v7  ;;  %388 = vrcp.f32 %v417_v29  ;;  %vm164_vm6 = vweird.f32 %v385_v8 }
 0x113   :  { %v156_v12 = vsel %vm155_vm15, %v381_v38, %v152_v6  ;;  %v159_v21 = vmul.f32 %v385_v8, %v158_v14  ;;  %v222_v9 = vmul.f32 %v196_v11, %v497_v46  ;;  %v368_v46 = vld [vmem:[%s658_s2] ss:$0 sm:$0xff]  ;;  %v228_v33 = vmul.f32 %v367_v22, %v217_v23  ;;  %vm165_vm9 = vmor %vm163_vm8, %vm164_vm6 }
 0x114   :  { %v218_v16 = vmul.f32 %v156_v12, %v502_v49  ;;  %v170_v20 = vmul.f32 0.5, %v169_v13  ;;  %v223_v41 = vmul.f32 %v206_v26, %v499_v47  ;;  %v243_v54 = vadd.f32 %v368_v46, %v232_v39 }
 0x115   :  { %v160_v49 = vmul.f32 0.5, %v159_v21  ;;  %v233_v36 = vmul.f32 %v367_v22, %v222_v9  ;;  %v239_v50 = vadd.f32 %v368_v46, %v228_v33  ;;  %vm213_vm11 = vweird.f32 %v579_v0 }
 0x116   :  { %v171_v24 = vsub.f32 1.5, %v170_v20  ;;  %v229_v27 = vmul.f32 %v367_v22, %v218_v16  ;;  %v234_v40 = vmul.f32 %v367_v22, %v223_v41  ;;  %v260_v28 = vsel %vm40_vm0, %v243_v54, 0.0 }
 0x117   :  { %v387_v17 = vpop.eup %386  ;;  %v161_v32 = vsub.f32 1.5, %v160_v49  ;;  %v244_v51 = vadd.f32 %v368_v46, %v233_v36  ;;  %v247_v58 = vsel %vm40_vm0, %v239_v50, 0.0 }
 0x118   :  { %v172_v30 = vmul.f32 %v383_v1, %v171_v24  ;;  %v208_v35 = vmul.f32 %v387_v17, %v579_v0  ;;  %v240_v42 = vadd.f32 %v368_v46, %v229_v27  ;;  %v389_v48 = vpop.eup %388  ;;  %vm214_vm10 = vweird.f32 %v387_v17 }
 0x119   :  { %v162_v31 = vmul.f32 %v385_v8, %v161_v32  ;;  %v261_v59 = vsel %vm40_vm0, %v244_v51, 0.0  ;;  %vm215_vm12 = vmor %vm213_vm11, %vm214_vm10  ;;  %v245_v2 = vadd.f32 %v368_v46, %v234_v40  ;;  %vm278_vm13 = vweird.f32 %v389_v48 }
 0x11a   :  { %v176_v34 = vsel %vm175_vm7, %v383_v1, %v172_v30  ;;  %v209_v38 = vmul.f32 %v387_v17, %v208_v35  ;;  %v248_v56 = vsel %vm40_vm0, %v240_v42, 0.0  ;;  %v262_v5 = vadd.f32 %v261_v59, %v260_v28 }
 0x11b   :  { %v220_v43 = vmul.f32 %v176_v34, %v519_v61  ;;  %v166_v44 = vsel %vm165_vm9, %v385_v8, %v162_v31  ;;  %v274_v61 = vmul.f32 25.0, %v389_v48  ;;  %v249_v1 = vadd.f32 %v248_v56, %v247_v58  ;;  %v369_v31 = vld [vmem:[%s660_s4] ss:$0 sm:$0xff] }
 0x11c   :  { %v210_v45 = vmul.f32 0.5, %v209_v38  ;;  %v219_v37 = vmul.f32 %v166_v44, %v514_v55  ;;  %v263_v11 = vsel %vm40_vm0, %v245_v2, 0.0 }
 0x11d   :  { %v231_v52 = vmul.f32 %v367_v22, %v220_v43  ;;  %v275_v8 = vsub.f32 1.0, %v274_v61  ;;  %v264_v13 = vadd.f32 %v263_v11, %v262_v5 }
 0x11e   :  { %v211_v53 = vsub.f32 1.5, %v210_v45  ;;  %v230_v57 = vmul.f32 %v367_v22, %v219_v37 }
 0x11f   :  { %v242_v60 = vadd.f32 %v368_v46, %v231_v52  ;;  %v276_v16 = vmul.f32 %v389_v48, %v275_v8 }
 0x120   :  { %v212_v47 = vmul.f32 %v387_v17, %v211_v53  ;;  %v241_v62 = vadd.f32 %v368_v46, %v230_v57 }
 0x121   :  { %v252_v0 = vsel %vm50_vm1, %v242_v60, 0.0 }
 0x122   :  { %v216_v55 = vsel %vm215_vm12, %v387_v17, %v212_v47  ;;  %v250_v3 = vsel %vm40_vm0, %v241_v62, 0.0 }
 0x123   :  { %v224_v4 = vmul.f32 %v216_v55, %v523_v63  ;;  %v251_v6 = vadd.f32 %v250_v3, %v249_v1  ;;  %v277_v63 = vadd.f32 %v389_v48, %v276_v16 }
 0x125   :  { %v235_v7 = vmul.f32 %v367_v22, %v224_v4  ;;  %v253_v10 = vadd.f32 %v252_v0, %v251_v6  ;;  %v279_v49 = vsel %vm278_vm13, %v389_v48, %v277_v63 }
 0x127   :  { %v246_v12 = vadd.f32 %v368_v46, %v235_v7  ;;  %v254_v14 = vrot.slane %v253_v10, 4 }
 0x129   :  { %v265_v15 = vsel %vm50_vm1, %v246_v12, 0.0  ;;  %v255_v19 = vadd.f32 %v254_v14, %v253_v10  ;;  %vm296_vm1 = vcmask 1041409  }
 0x12a   :  { %v266_v18 = vadd.f32 %v265_v15, %v264_v13 }
 0x12b   :  { %v256_v20 = vrot.slane %v255_v19, 2 }
 0x12c   :  { %v267_v21 = vrot.slane %v266_v18, 4 }
 0x12d   :  { %v257_v23 = vadd.f32 %v256_v20, %v255_v19 }
 0x12e   :  { %v268_v9 = vadd.f32 %v267_v21, %v266_v18 }
 0x12f   :  { %v258_v24 = vrot.slane %v257_v23, 1 }
 0x130   :  { %v269_v22 = vrot.slane %v268_v9, 2 }
 0x131   :  { %v259_v17 = vadd.f32 %v258_v24, %v257_v23 }
 0x132   :  { %v270_v25 = vadd.f32 %v269_v22, %v268_v9 }
 0x133   :  { %v280_v27 = vmul.f32 %v279_v49, %v259_v17 }
 0x134   :  { %v271_v26 = vrot.slane %v270_v25, 1 }
 0x135   :  { %v282_v32 = vpack.c.bf16 %v280_v27, %v280_v27 }
 0x136   :  { %v272_v29 = vadd.f32 %v271_v26, %v270_v25 }
 0x137   :  { %v294_v46 = vunpack.c.l.b16 %v282_v32 }
 0x138   :  { %v281_v30 = vmul.f32 %v279_v49, %v272_v29 }
 0x13a   :  { %v283_v35 = vpack.c.bf16 %v281_v30, %v281_v30 }
 0x13c   :  { %v295_v33 = vunpack.c.l.b16 %v283_v35 }
 0x13e   :  { %v297_v36 = vsel %vm296_vm1, %v295_v33, %v294_v46 }
 0x13f   :  { %v298_v34 = vpack.c.b16 %v297_v36, %v297_v36 }
 0x141   :  { %352 = vmatmul.msk.bf16.vlgmr.msra.gmra.mxu0 %vm40_vm0, %v298_v34 }
 0x1be   :  { %v323_v38 = vpop.f32.mrf.mxu0 }
 0x1bf   :  { %v324_v39 = vadd.f32 %v369_v31, %v323_v38 }
 0x1c1   :  { %327 = vst [vmem:[#allocation2] sm:$0x3] %v324_v39 }
 0x1c2   :  { %338 = dma.vmem_to_hbm [thread:$0]  %s334_s12, 32, %s336_s15, [#allocation3]  }
 0x1c6   :  { %v325_v41 = vpop.f32.mrf.mxu0 }
 0x1c7   :  { %414 = dma.done.wait [#allocation3], 32  }
 0x1c8   :  { %415 = vsyncadd [#allocation3], 4294967264 }
 0x1c9   :  { %343 = vsyncpa [#allocation3], 1 }

// kernel: gausskey_l2p_forward.17
= control target key start
LH: loop header
LB: loop body
LE: loop exit
PB: predicated region body
PF: predicated region fallthrough
CT: control target
= control target key end

     0   :  { %s3423_s24 = smov 0   ;;  %s5216_s0 = inlined_call_operand.vmem [shape: bf16[2,128,32], index: 0, kind: input, shape index: {}]   ;;  %s5217_s1 = inlined_call_operand.vmem [shape: f32[1,32], index: 1, kind: input, shape index: {}]   ;;  %s5218_s2 = inlined_call_operand.vmem [shape: f32[1,32], index: 2, kind: input, shape index: {}]   ;;  %s5219_s3 = inlined_call_operand.vmem [shape: bf16[32,96], index: 3, kind: input, shape index: {}]   ;;  %s5220_s4 = inlined_call_operand.vmem [shape: f32[1,96], index: 4, kind: input, shape index: {}]   ;;  %s5221_s5 = inlined_call_operand.vmem [shape: bf16[32,32], index: 5, kind: input, shape index: {}]   ;;  %s5222_s6 = inlined_call_operand.vmem [shape: f32[1,32], index: 6, kind: input, shape index: {}]   ;;  %s5223_s7 = inlined_call_operand.vmem [shape: bf16[2,128,32], index: 7, kind: output, shape index: {}]  }
   0x1 LB: > { %s2905_s25 = sadd.s32 4294967295, %s3366_s24   ;;  %p2909_p0 = scmp.ge.s32.totalorder %s3366_s24, 1  ;;  %s3366_s24 = sphi %s3423_s24, %s17_s24  }
   0x2   : > { %p237_p1 = scmp.lt.s32.totalorder %s3366_s24, 3 }
   0x4   : > { %p238_p2 = pnand %p2909_p0, %p237_p1 }
   0x6   : > { %241 = sbr.rel (%p238_p2) target bundleno = 2633 (0xa49), region = 48 }
   0xb   : > { %p269_p3 = scmp.lt.s32.totalorder %s2905_s25, 1  ;;  %vm314_vm0 = vcmask 261120   ;;  %v3368_v18 = vmov 32.0   ;;  %s3369_s17 = smov 96  }
   0xc   : > { %3070 = vrcp.f32 %v3368_v18  ;;  %s3370_s18 = smov 88   ;;  %s3371_s19 = smov 64  }
   0xd   : > { %s5273_s25 = smov (!%p269_p3, %s2905_s25), 1  ;;  %s3372_s20 = smov 120  }
   0xe   : > { %s2980_s26 = sshll.u32 %s5273_s25, 6  ;;  %s3373_s21 = smov 72  }
   0xf   : > { %s3439_s29 = scalar_lea.vmem %s5216_s0, %s2980_s26  ;;  %s3374_s22 = smov 80  }
  0x10   : > { %v3020_v0 = vld [vmem:[%s3439_s29 + $0x18] sm:$0xff]   ;;  %v3019_v1 = vld [vmem:[%s3439_s29 + $0x10] sm:$0xff]   ;;  %v3021_v2 = vld [vmem:[%s3439_s29 + $0x20] sm:$0xff]   ;;  %s3375_s23 = smov 112   ;;  %s3376_s27 = smov 56  }
  0x11   : > { %v3444_v3 = vunpack.c.l.bf16 %v3020_v0  ;;  %v3446_v4 = vunpack.c.l.bf16 %v3019_v1  ;;  %v3448_v5 = vunpack.c.l.bf16 %v3021_v2  ;;  %v3456_v9 = vunpack.c.h.bf16 %v3020_v0  ;;  %v3022_v15 = vld [vmem:[%s3439_s29 + $0x28] sm:$0xff]   ;;  %v3023_v47 = vld [vmem:[%s3439_s29 + $0x30] sm:$0xff]   ;;  %v3024_v59 = vld [vmem:[%s3439_s29 + $0x38] sm:$0xff]   ;;  %s3377_s28 = smov 104   ;;  %s3379_s30 = smov 48  }
  0x12   : > { %v3458_v10 = vunpack.c.h.bf16 %v3019_v1  ;;  %v3460_v11 = vunpack.c.h.bf16 %v3021_v2  ;;  %v3469_v16 = vunpack.c.l.bf16 %v3022_v15  ;;  %v3071_v19 = vpop.eup %3070  ;;  %v3485_v37 = vunpack.c.h.bf16 %v3022_v15  ;;  %v2983_v15 = vld [vmem:[%s5219_s3 + $0x8] sm:$0xff]  ;;  %s3380_s8 = smov 8   ;;  %s3381_s9 = smov 16  }
  0x13   : > { %5238 = vst [vmem:[#allocation3_spill] sm:$0xff] %v3444_v3  ;;  %v333_v6 = vsel %vm314_vm0, %v3444_v3, 0.0  ;;  %v327_v7 = vsel %vm314_vm0, %v3446_v4, 0.0  ;;  %v339_v8 = vsel %vm314_vm0, %v3448_v5, 0.0  ;;  %v336_v12 = vsel %vm314_vm0, %v3456_v9, 0.0  ;;  %3025 = vmatpush.bf16.msra.mxu3 %v2983_v15  ;;  %770 = vmatpush.bf16.msra.mxu0 %v2983_v15  ;;  %s3382_s10 = smov 24  }
  0x14   : > { %5239 = vst [vmem:[#allocation4_spill] sm:$0xff] %v3446_v4  ;;  %334 = vadd.xlane.f32.xlu1 %v333_v6  ;;  %328 = vadd.xlane.f32.xlu0 %v327_v7  ;;  %v330_v13 = vsel %vm314_vm0, %v3458_v10, 0.0  ;;  %v342_v14 = vsel %vm314_vm0, %v3460_v11, 0.0  ;;  %v345_v17 = vsel %vm314_vm0, %v3469_v16, 0.0  ;;  %v364_v20 = vmul.f32 32.0, %v3071_v19 }
  0x15   : > { %5240 = vst [vmem:[#allocation5_spill] sm:$0xff] %v3448_v5  ;;  %340 = vadd.xlane.f32.xlu2 %v339_v8  ;;  %vm368_vm1 = vweird.f32 %v3071_v19  ;;  %v348_v44 = vsel %vm314_vm0, %v3485_v37, 0.0  ;;  %v3512_v52 = vunpack.c.l.bf16 %v3023_v47  ;;  %v3525_v61 = vunpack.c.h.bf16 %v3024_v59 }
  0x16   : > { %5241 = vst [vmem:[#allocation6_spill] sm:$0xff] %v3456_v9  ;;  %v365_v21 = vsub.f32 1.0, %v364_v20  ;;  %v3529_v63 = vunpack.c.h.bf16 %v3023_v47  ;;  %v3541_v8 = vunpack.c.l.bf16 %v3024_v59 }
  0x17   : > { %5242 = vst [vmem:[#allocation7_spill] sm:$0xff] %v3458_v10  ;;  %v351_v56 = vsel %vm314_vm0, %v3512_v52, 0.0  ;;  %v360_v1 = vsel %vm314_vm0, %v3525_v61, 0.0 }
  0x18   : > { %5243 = vst [vmem:[#allocation8_spill] sm:$0xff] %v3460_v11  ;;  %v366_v22 = vmul.f32 %v3071_v19, %v365_v21  ;;  %v354_v6 = vsel %vm314_vm0, %v3529_v63, 0.0 }
  0x19   : > { %5244 = vst [vmem:[#allocation9_spill] sm:$0xff] %v3469_v16 }
  0x1a   : > { %v367_v23 = vadd.f32 %v3071_v19, %v366_v22  ;;  %5245 = vst [vmem:[#allocation10_spill] sm:$0xff] %v3485_v37 }
  0x1b   : > { %5246 = vst [vmem:[#allocation11_spill] sm:$0xff] %v3512_v52 }
  0x1c   : > { %337 = vadd.xlane.f32.xlu1 %v336_v12  ;;  %331 = vadd.xlane.f32.xlu0 %v330_v13  ;;  %v3473_v24 = vsel %vm368_vm1, %v3071_v19, %v367_v23  ;;  %5247 = vst [vmem:[#allocation12_spill] sm:$0xff] %v3525_v61  ;;  %v357_v13 = vsel %vm314_vm0, %v3541_v8, 0.0  ;;  %v2982_v19 = vld [vmem:[%s5219_s3] sm:$0xff] }
  0x1d   : > { %343 = vadd.xlane.f32.xlu2 %v342_v14  ;;  %5248 = vst [vmem:[#allocation13_spill] sm:$0xff] %v3529_v63  ;;  %3026 = vmatpush.bf16.msra.mxu3 %v2982_v19 }
  0x1e   : > { %5249 = vst [vmem:[#allocation14_spill] sm:$0xff] %v3541_v8  ;;  %771 = vmatpush.bf16.msra.mxu0 %v2982_v19 }
  0x25   : > { %346 = vadd.xlane.f32.xlu2 %v345_v17 }
  0x87   : > { %v335_v25 = vpop.xlane.xlu1 %334  ;;  %v329_v26 = vpop.xlane.xlu0 %328 }
  0x88   : > { %v374_v27 = vmul.f32 %v3473_v24, %v329_v26  ;;  %v341_v28 = vpop.xlane.xlu2 %340  ;;  %v376_v38 = vmul.f32 %v3473_v24, %v335_v25 }
  0x89   : > { %v378_v36 = vmul.f32 %v3473_v24, %v341_v28 }
  0x8a   : > { %v3477_v29 = vsub.f32 %v3446_v4, %v374_v27  ;;  %v3504_v46 = vsub.f32 %v3444_v3, %v376_v38 }
  0x8b   : > { %v3495_v42 = vsub.f32 %v3448_v5, %v378_v36 }
  0x8c   : > { %v406_v30 = vmul.f32 %v3477_v29, %v3477_v29  ;;  %v408_v53 = vmul.f32 %v3504_v46, %v3504_v46 }
  0x8d   : > { %v410_v51 = vmul.f32 %v3495_v42, %v3495_v42 }
  0x8e   : > { %v430_v31 = vsel %vm314_vm0, %v406_v30, 0.0  ;;  %v436_v57 = vsel %vm314_vm0, %v408_v53, 0.0 }
  0x8f   : > { %v338_v32 = vpop.xlane.xlu1 %337  ;;  %431 = vadd.xlane.f32.xlu0 %v430_v31  ;;  %v332_v33 = vpop.xlane.xlu0 %331  ;;  %v442_v55 = vsel %vm314_vm0, %v410_v51, 0.0 }
  0x90   : > { %v377_v34 = vmul.f32 %v3473_v24, %v338_v32  ;;  %v375_v35 = vmul.f32 %v3473_v24, %v332_v33  ;;  %v344_v41 = vpop.xlane.xlu2 %343 }
  0x91   : > { %v379_v50 = vmul.f32 %v3473_v24, %v344_v41 }
  0x92   : > { %v3489_v39 = vsub.f32 %v3456_v9, %v377_v34  ;;  %v3492_v40 = vsub.f32 %v3458_v10, %v375_v35  ;;  %v2987_v35 = vld [vmem:[%s3439_s29] sm:$0xff]  }
  0x93   : > { %v3517_v54 = vsub.f32 %v3460_v11, %v379_v50  ;;  %v3567_v47 = vunpack.c.l.bf16 %v2987_v35 }
  0x94   : > { %v409_v43 = vmul.f32 %v3489_v39, %v3489_v39  ;;  %v407_v45 = vmul.f32 %v3492_v40, %v3492_v40 }
  0x95   : > { %v411_v62 = vmul.f32 %v3517_v54, %v3517_v54 }
  0x96   : > { %v439_v48 = vsel %vm314_vm0, %v409_v43, 0.0  ;;  %v433_v49 = vsel %vm314_vm0, %v407_v45, 0.0 }
  0x97   : > { %440 = vadd.xlane.f32.xlu2 %v439_v48  ;;  %349 = vadd.xlane.f32.xlu0 %v348_v44  ;;  %v445_v2 = vsel %vm314_vm0, %v411_v62, 0.0 }
  0x98   : > { %434 = vadd.xlane.f32.xlu1 %v433_v49  ;;  %v347_v58 = vpop.xlane.xlu2 %346 }
  0x99   : > { %v380_v60 = vmul.f32 %v3473_v24, %v347_v58  ;;  %v315_v58 = vsel %vm314_vm0, %v3567_v47, 0.0 }
  0x9b   : > { %v3532_v0 = vsub.f32 %v3469_v16, %v380_v60 }
  0x9d   : > { %v412_v7 = vmul.f32 %v3532_v0, %v3532_v0 }
  0x9f   : > { %443 = vadd.xlane.f32.xlu2 %v442_v55  ;;  %352 = vadd.xlane.f32.xlu0 %v351_v56  ;;  %v448_v12 = vsel %vm314_vm0, %v412_v7, 0.0 }
  0xa0   : > { %437 = vadd.xlane.f32.xlu1 %v436_v57 }
  0xa7   : > { %361 = vadd.xlane.f32.xlu2 %v360_v1  ;;  %446 = vadd.xlane.f32.xlu0 %v445_v2 }
  0xa8   : > { %355 = vadd.xlane.f32.xlu1 %v354_v6 }
  0xaf   : > { %449 = vadd.xlane.f32.xlu0 %v448_v12 }
  0xb0   : > { %358 = vadd.xlane.f32.xlu1 %v357_v13 }
 0x102   : > { %v432_v14 = vpop.xlane.xlu0 %431 }
 0x103   : > { %v470_v17 = vmul.f32 %v432_v14, %v3473_v24 }
 0x105   : > { %v486_v18 = vadd.f32 1e-06, %v470_v17 }
 0x107   : > { %3072 = vrsqrt.f32 %v486_v18  ;;  %vm544_vm3 = vweird.f32 %v486_v18 }
 0x10a   : > { %v441_v20 = vpop.xlane.xlu2 %440  ;;  %v350_v21 = vpop.xlane.xlu0 %349 }
 0x10b   : > { %v473_v22 = vmul.f32 %v441_v20, %v3473_v24  ;;  %v435_v23 = vpop.xlane.xlu1 %434  ;;  %v381_v25 = vmul.f32 %v3473_v24, %v350_v21 }
 0x10c   : > { %v471_v26 = vmul.f32 %v435_v23, %v3473_v24 }
 0x10d   : > { %v3073_v27 = vpop.eup %3072  ;;  %v3556_v28 = vadd.f32 1e-06, %v473_v22  ;;  %v3559_v30 = vsub.f32 %v3485_v37, %v381_v25  ;;  %v3598_v22 = vunpack.c.h.bf16 %v2987_v35 }
 0x10e   : > { %v539_v31 = vmul.f32 %v3073_v27, %v486_v18  ;;  %v487_v32 = vadd.f32 1e-06, %v471_v26  ;;  %vm545_vm2 = vweird.f32 %v3073_v27 }
 0x10f   : > { %3074 = vrsqrt.f32 %v3556_v28  ;;  %v413_v33 = vmul.f32 %v3559_v30, %v3559_v30  ;;  %vm3587_vm4 = vmor %vm544_vm3, %vm545_vm2  ;;  %vm574_vm8 = vweird.f32 %v3556_v28 }
 0x110   : > { %v540_v34 = vmul.f32 %v3073_v27, %v539_v31  ;;  %3076 = vrsqrt.f32 %v487_v32  ;;  %vm554_vm6 = vweird.f32 %v487_v32 }
 0x111   : > { %v451_v36 = vsel %vm314_vm0, %v413_v33, 0.0 }
 0x112   : > { %v541_v38 = vmul.f32 0.5, %v540_v34  ;;  %v444_v41 = vpop.xlane.xlu2 %443  ;;  %452 = vadd.xlane.f32.xlu1 %v451_v36  ;;  %v353_v43 = vpop.xlane.xlu0 %352  ;;  %v3615_v36 = vld [vmem:[%s5217_s1] ss:$0 sm:$0xff] }
 0x113   : > { %v438_v44 = vpop.xlane.xlu1 %437  ;;  %v382_v45 = vmul.f32 %v3473_v24, %v353_v43  ;;  %v474_v55 = vmul.f32 %v444_v41, %v3473_v24 }
 0x114   : > { %v542_v48 = vsub.f32 1.5, %v541_v38  ;;  %v472_v49 = vmul.f32 %v438_v44, %v3473_v24  ;;  %v318_v44 = vsel %vm314_vm0, %v3598_v22, 0.0 }
 0x115   : > { %v3570_v50 = vpop.eup %3074  ;;  %v3573_v51 = vsub.f32 %v3512_v52, %v382_v45  ;;  %v3585_v2 = vadd.f32 1e-06, %v474_v55 }
 0x116   : > { %v3077_v53 = vpop.eup %3076  ;;  %v3576_v56 = vadd.f32 1e-06, %v472_v49  ;;  %v543_v59 = vmul.f32 %v3073_v27, %v542_v48  ;;  %v569_v60 = vmul.f32 %v3570_v50, %v3556_v28  ;;  %v3018_v49 = vld [vmem:[%s3439_s29 + $0x8] sm:$0xff]   ;;  %vm575_vm9 = vweird.f32 %v3570_v50  ;;  %s3378_s29 = smov 40  }
 0x117   : > { %v549_v57 = vmul.f32 %v3077_v53, %v487_v32  ;;  %v414_v1 = vmul.f32 %v3573_v51, %v3573_v51  ;;  %vm555_vm5 = vweird.f32 %v3077_v53  ;;  %v3637_v12 = vunpack.c.l.bf16 %v3018_v49  ;;  %vm3646_vm11 = vmor %vm574_vm8, %vm575_vm9 }
 0x118   : > { %3078 = vrsqrt.f32 %v3576_v56  ;;  %v547_v18 = vsel %vm3587_vm4, %v3073_v27, %v543_v59  ;;  %v570_v20 = vmul.f32 %v3570_v50, %v569_v60  ;;  %vm556_vm7 = vmor %vm554_vm6, %vm555_vm5  ;;  %vm564_vm12 = vweird.f32 %v3576_v56 }
 0x119   : > { %v550_v62 = vmul.f32 %v3077_v53, %v549_v57  ;;  %v454_v17 = vsel %vm314_vm0, %v414_v1, 0.0  ;;  %3080 = vrsqrt.f32 %v3585_v2  ;;  %v662_v35 = vmul.f32 %v547_v18, %v3477_v29  ;;  %5252 = vst [vmem:[#allocation15_spill] sm:$0xff] %v3637_v12 }
 0x11a   : > { %v362_v6 = vpop.xlane.xlu2 %361  ;;  %v447_v7 = vpop.xlane.xlu0 %446  ;;  %316 = vadd.xlane.f32.xlu1 %v315_v58  ;;  %455 = vadd.xlane.f32.xlu2 %v454_v17  ;;  %v571_v38 = vmul.f32 0.5, %v570_v20  ;;  %vm584_vm1 = vweird.f32 %v3585_v2 }
 0x11b   : > { %v551_v13 = vmul.f32 0.5, %v550_v62  ;;  %v385_v14 = vmul.f32 %v3473_v24, %v362_v6  ;;  %v356_v15 = vpop.xlane.xlu1 %355  ;;  %v475_v19 = vmul.f32 %v447_v7, %v3473_v24  ;;  %v681_v59 = vmul.f32 %v3615_v36, %v662_v35 }
 0x11c   : > { %v383_v21 = vmul.f32 %v3473_v24, %v356_v15  ;;  %v572_v62 = vsub.f32 1.5, %v571_v38 }
 0x11d   : > { %v552_v23 = vsub.f32 1.5, %v551_v13  ;;  %v3601_v25 = vsub.f32 %v3525_v61, %v385_v14  ;;  %v3603_v26 = vadd.f32 1e-06, %v475_v19 }
 0x11e   : > { %v3079_v31 = vpop.eup %3078  ;;  %v3607_v27 = vsub.f32 %v3529_v63, %v383_v21  ;;  %v573_v18 = vmul.f32 %v3570_v50, %v572_v62 }
 0x11f   : > { %v553_v33 = vmul.f32 %v3077_v53, %v552_v23  ;;  %v559_v34 = vmul.f32 %v3079_v31, %v3576_v56  ;;  %3082 = vrsqrt.f32 %v3603_v26  ;;  %v417_v45 = vmul.f32 %v3601_v25, %v3601_v25  ;;  %v3081_v60 = vpop.eup %3080 }
 0x120   : > { %v415_v32 = vmul.f32 %v3607_v27, %v3607_v27  ;;  %vm565_vm10 = vweird.f32 %v3079_v31  ;;  %v579_v20 = vmul.f32 %v3081_v60, %v3585_v2  ;;  %vm594_vm14 = vweird.f32 %v3603_v26 }
 0x121   : > { %v557_v41 = vsel %vm556_vm7, %v3077_v53, %v553_v33  ;;  %v560_v43 = vmul.f32 %v3079_v31, %v559_v34  ;;  %v463_v58 = vsel %vm314_vm0, %v417_v45, 0.0  ;;  %v3631_v53 = vld [vmem:[%s5218_s2] ss:$0 sm:$0xff]  ;;  %vm566_vm13 = vmor %vm564_vm12, %vm565_vm10  ;;  %v321_v33 = vsel %vm314_vm0, %v3637_v12, 0.0 }
 0x122   : > { %v457_v29 = vsel %vm314_vm0, %v415_v32, 0.0  ;;  %v663_v48 = vmul.f32 %v557_v41, %v3492_v40  ;;  %319 = vadd.xlane.f32.xlu2 %v318_v44  ;;  %464 = vadd.xlane.f32.xlu1 %v463_v58  ;;  %v700_v17 = vadd.f32 %v3631_v53, %v681_v59  ;;  %v577_v32 = vsel %vm3646_vm11, %v3570_v50, %v573_v18 }
 0x123   : > { %v561_v55 = vmul.f32 0.5, %v560_v43  ;;  %458 = vadd.xlane.f32.xlu0 %v457_v29  ;;  %v359_v57 = vpop.xlane.xlu1 %358  ;;  %v580_v56 = vmul.f32 %v3081_v60, %v579_v20  ;;  %v3661_v41 = vunpack.c.h.bf16 %v3018_v49  ;;  %v665_v45 = vmul.f32 %v577_v32, %v3489_v39 }
 0x124   : > { %v384_v1 = vmul.f32 %v3473_v24, %v359_v57  ;;  %v682_v40 = vmul.f32 %v3615_v36, %v663_v48  ;;  %vm585_vm2 = vweird.f32 %v3081_v60 }
 0x125   : > { %v3083_v6 = vpop.eup %3082  ;;  %v562_v7 = vsub.f32 1.5, %v561_v55  ;;  %5255 = vst [vmem:[#allocation16_spill] sm:$0xff] %v3661_v41  ;;  %v324_v29 = vsel %vm314_vm0, %v3661_v41, 0.0  ;;  %v684_v57 = vmul.f32 %v3615_v36, %v665_v45  ;;  %vm586_vm4 = vmor %vm584_vm1, %vm585_vm2 }
 0x126   : > { %v589_v13 = vmul.f32 %v3083_v6, %v3603_v26  ;;  %v3641_v14 = vsub.f32 %v3541_v8, %v384_v1  ;;  %v701_v19 = vadd.f32 %v3631_v53, %v682_v40  ;;  %vm595_vm15 = vweird.f32 %v3083_v6 }
 0x127   : > { %v563_v15 = vmul.f32 %v3079_v31, %v562_v7  ;;  %vm596_vm3 = vmor %vm594_vm14, %vm595_vm15 }
 0x128   : > { %v416_v21 = vmul.f32 %v3641_v14, %v3641_v14  ;;  %v714_v23 = vpack.c.bf16 %v701_v19, %v700_v17  ;;  %v590_v35 = vmul.f32 %v3083_v6, %v589_v13  ;;  %v450_v19 = vpop.xlane.xlu0 %449 }
 0x129   : > { %v567_v34 = vsel %vm566_vm13, %v3079_v31, %v563_v15  ;;  %v581_v31 = vmul.f32 0.5, %v580_v56 }
 0x12a   : > { %v460_v38 = vsel %vm314_vm0, %v416_v21, 0.0  ;;  %2924 = vmatmul.msk.bf16.vlgmr.msra.gmra.mxu3 %vm314_vm0, %v714_v23  ;;  %322 = vadd.xlane.f32.xlu2 %v321_v33  ;;  %v664_v43 = vmul.f32 %v567_v34, %v3504_v46  ;;  %v591_v44 = vmul.f32 0.5, %v590_v35  ;;  %v703_v46 = vadd.f32 %v3631_v53, %v684_v57 }
 0x12b   : > { %461 = vadd.xlane.f32.xlu0 %v460_v38  ;;  %v582_v50 = vsub.f32 1.5, %v581_v31 }
 0x12c   : > { %v683_v48 = vmul.f32 %v3615_v36, %v664_v43  ;;  %v592_v55 = vsub.f32 1.5, %v591_v44 }
 0x12d   : > { %v583_v58 = vmul.f32 %v3081_v60, %v582_v50 }
 0x12e   : > { %v702_v49 = vadd.f32 %v3631_v53, %v683_v48  ;;  %v593_v39 = vmul.f32 %v3083_v6, %v592_v55 }
 0x12f   : > { %v587_v1 = vsel %vm586_vm4, %v3081_v60, %v583_v58 }
 0x130   : > { %v715_v59 = vpack.c.bf16 %v703_v46, %v702_v49  ;;  %v597_v62 = vsel %vm596_vm3, %v3083_v6, %v593_v39  ;;  %v666_v26 = vmul.f32 %v587_v1, %v3495_v42  ;;  %v476_v6 = vmul.f32 %v450_v19, %v3473_v24 }
 0x131   : > { %v667_v40 = vmul.f32 %v597_v62, %v3517_v54 }
 0x132   : > { %v685_v2 = vmul.f32 %v3615_v36, %v666_v26  ;;  %v492_v18 = vadd.f32 1e-06, %v476_v6 }
 0x133   : > { %325 = vadd.xlane.f32.xlu0 %v324_v29  ;;  %v686_v7 = vmul.f32 %v3615_v36, %v667_v40 }
 0x134   : > { %v704_v15 = vadd.f32 %v3631_v53, %v685_v2  ;;  %3084 = vrsqrt.f32 %v492_v18  ;;  %vm604_vm5 = vweird.f32 %v492_v18 }
 0x135   : > { %v705_v13 = vadd.f32 %v3631_v53, %v686_v7 }
 0x137   : > { %v716_v17 = vpack.c.bf16 %v705_v13, %v704_v15 }
 0x13a   : > { %2925 = vmatmul.msk.bf16.gmra.mxu3 %vm314_vm0, %v715_v59  ;;  %v3085_v60 = vpop.eup %3084 }
 0x13b   : > { %v599_v54 = vmul.f32 %v3085_v60, %v492_v18  ;;  %vm605_vm6 = vweird.f32 %v3085_v60 }
 0x13c   : > { %vm3690_vm7 = vmor %vm604_vm5, %vm605_vm6 }
 0x13d   : > { %v600_v20 = vmul.f32 %v3085_v60, %v599_v54 }
 0x13f   : > { %v601_v23 = vmul.f32 0.5, %v600_v20 }
 0x141   : > { %v602_v35 = vsub.f32 1.5, %v601_v23 }
 0x143   : > { %v603_v29 = vmul.f32 %v3085_v60, %v602_v35 }
 0x145   : > { %v607_v39 = vsel %vm3690_vm7, %v3085_v60, %v603_v29 }
 0x14a   : > { %2926 = vmatmul.msk.bf16.gmra.mxu3 %vm314_vm0, %v716_v17  ;;  %v668_v17 = vmul.f32 %v607_v39, %v3532_v0 }
 0x14c   : > { %v687_v20 = vmul.f32 %v3615_v36, %v668_v17 }
 0x14e   : > { %v706_v29 = vadd.f32 %v3631_v53, %v687_v20 }
 0x185   : > { %v453_v28 = vpop.xlane.xlu1 %452 }
 0x186   : > { %v477_v42 = vmul.f32 %v453_v28, %v3473_v24 }
 0x188   : > { %v493_v21 = vadd.f32 1e-06, %v477_v42 }
 0x18a   : > { %3086 = vrsqrt.f32 %v493_v21  ;;  %vm614_vm9 = vweird.f32 %v493_v21 }
 0x18d   : > { %v317_v33 = vpop.xlane.xlu1 %316  ;;  %v456_v38 = vpop.xlane.xlu2 %455 }
 0x18e   : > { %v370_v34 = vmul.f32 %v3473_v24, %v317_v33  ;;  %v478_v56 = vmul.f32 %v456_v38, %v3473_v24 }
 0x190   : > { %v3087_v32 = vpop.eup %3086  ;;  %v3686_v43 = vsub.f32 %v3567_v47, %v370_v34  ;;  %v494_v45 = vadd.f32 1e-06, %v478_v56 }
 0x191   : > { %v609_v44 = vmul.f32 %v3087_v32, %v493_v21  ;;  %vm615_vm8 = vweird.f32 %v3087_v32 }
 0x192   : > { %v402_v31 = vmul.f32 %v3686_v43, %v3686_v43  ;;  %3088 = vrsqrt.f32 %v494_v45  ;;  %vm616_vm10 = vmor %vm614_vm9, %vm615_vm8  ;;  %vm624_vm12 = vweird.f32 %v494_v45 }
 0x193   : > { %v610_v48 = vmul.f32 %v3087_v32, %v609_v44 }
 0x194   : > { %v418_v57 = vsel %vm314_vm0, %v402_v31, 0.0 }
 0x195   : > { %v611_v50 = vmul.f32 0.5, %v610_v48  ;;  %419 = vadd.xlane.f32.xlu1 %v418_v57  ;;  %v320_v59 = vpop.xlane.xlu2 %319  ;;  %v465_v62 = vpop.xlane.xlu1 %464 }
 0x196   : > { %v459_v49 = vpop.xlane.xlu0 %458  ;;  %v371_v1 = vmul.f32 %v3473_v24, %v320_v59  ;;  %v481_v40 = vmul.f32 %v465_v62, %v3473_v24 }
 0x197   : > { %v612_v46 = vsub.f32 1.5, %v611_v50  ;;  %v479_v58 = vmul.f32 %v459_v49, %v3473_v24 }
 0x198   : > { %v3089_v2 = vpop.eup %3088  ;;  %v3701_v13 = vsub.f32 %v3598_v22, %v371_v1  ;;  %v3703_v15 = vadd.f32 1e-06, %v481_v40 }
 0x199   : > { %v613_v26 = vmul.f32 %v3087_v32, %v612_v46  ;;  %v495_v7 = vadd.f32 1e-06, %v479_v58  ;;  %v619_v6 = vmul.f32 %v3089_v2, %v494_v45  ;;  %vm625_vm11 = vweird.f32 %v3089_v2 }
 0x19a   : > { %v403_v18 = vmul.f32 %v3701_v13, %v3701_v13  ;;  %vm626_vm13 = vmor %vm624_vm12, %vm625_vm11  ;;  %vm654_vm2 = vweird.f32 %v3703_v15 }
 0x19b   : > { %v617_v19 = vsel %vm616_vm10, %v3087_v32, %v613_v26  ;;  %3090 = vrsqrt.f32 %v495_v7  ;;  %v620_v60 = vmul.f32 %v3089_v2, %v619_v6  ;;  %vm634_vm15 = vweird.f32 %v495_v7 }
 0x19c   : > { %3092 = vrsqrt.f32 %v3703_v15  ;;  %v669_v54 = vmul.f32 %v617_v19, %v3559_v30  ;;  %v421_v42 = vsel %vm314_vm0, %v403_v18, 0.0 }
 0x19d   : > { %v621_v21 = vmul.f32 0.5, %v620_v60  ;;  %422 = vadd.xlane.f32.xlu2 %v421_v42  ;;  %v323_v0 = vpop.xlane.xlu2 %322 }
 0x19e   : > { %v462_v28 = vpop.xlane.xlu0 %461  ;;  %v688_v33 = vmul.f32 %v3615_v36, %v669_v54  ;;  %v372_v34 = vmul.f32 %v3473_v24, %v323_v0 }
 0x19f   : > { %v480_v23 = vmul.f32 %v462_v28, %v3473_v24  ;;  %v622_v38 = vsub.f32 1.5, %v621_v21  ;;  %v3739_v28 = vld [vmem:[%s5220_s4] ss:$0 sm:$0xff] }
 0x1a0   : > { %v707_v56 = vadd.f32 %v3631_v53, %v688_v33  ;;  %v3719_v31 = vsub.f32 %v3637_v12, %v372_v34 }
 0x1a1   : > { %v3091_v35 = vpop.eup %3090  ;;  %v496_v32 = vadd.f32 1e-06, %v480_v23  ;;  %v623_v48 = vmul.f32 %v3089_v2, %v622_v38 }
 0x1a2   : > { %v3716_v30 = vpop.eup %3092  ;;  %v629_v44 = vmul.f32 %v3091_v35, %v495_v7  ;;  %v717_v50 = vpack.c.bf16 %v707_v56, %v706_v29  ;;  %v404_v49 = vmul.f32 %v3719_v31, %v3719_v31  ;;  %vm635_vm14 = vweird.f32 %v3091_v35 }
 0x1a3   : > { %v649_v55 = vmul.f32 %v3716_v30, %v3703_v15  ;;  %3094 = vrsqrt.f32 %v496_v32  ;;  %v627_v39 = vsel %vm626_vm13, %v3089_v2, %v623_v48  ;;  %vm636_vm1 = vmor %vm634_vm15, %vm635_vm14  ;;  %vm655_vm3 = vweird.f32 %v3716_v30 }
 0x1a4   : > { %v630_v57 = vmul.f32 %v3091_v35, %v629_v44  ;;  %2927 = vmatmul.msk.bf16.gmra.mxu3 %vm314_vm0, %v717_v50  ;;  %v424_v59 = vsel %vm314_vm0, %v404_v49, 0.0  ;;  %v670_v17 = vmul.f32 %v627_v39, %v3573_v51  ;;  %vm656_vm5 = vmor %vm654_vm2, %vm655_vm3  ;;  %vm644_vm6 = vweird.f32 %v496_v32 }
 0x1a5   : > { %v650_v62 = vmul.f32 %v3716_v30, %v649_v55  ;;  %425 = vadd.xlane.f32.xlu0 %v424_v59 }
 0x1a6   : > { %v631_v46 = vmul.f32 0.5, %v630_v57  ;;  %v326_v58 = vpop.xlane.xlu0 %325  ;;  %v689_v51 = vmul.f32 %v3615_v36, %v670_v17 }
 0x1a7   : > { %v373_v1 = vmul.f32 %v3473_v24, %v326_v58  ;;  %v651_v6 = vmul.f32 0.5, %v650_v62 }
 0x1a8   : > { %v632_v40 = vsub.f32 1.5, %v631_v46 }
 0x1a9   : > { %v3095_v45 = vpop.eup %3094  ;;  %v3731_v26 = vsub.f32 %v3661_v41, %v373_v1  ;;  %v652_v23 = vsub.f32 1.5, %v651_v6 }
 0x1aa   : > { %v633_v2 = vmul.f32 %v3091_v35, %v632_v40  ;;  %v639_v19 = vmul.f32 %v3095_v45, %v496_v32  ;;  %vm645_vm4 = vweird.f32 %v3095_v45 }
 0x1ab   : > { %v405_v18 = vmul.f32 %v3731_v26, %v3731_v26  ;;  %v653_v56 = vmul.f32 %v3716_v30, %v652_v23  ;;  %vm646_vm7 = vmor %vm644_vm6, %vm645_vm4 }
 0x1ac   : > { %v637_v60 = vsel %vm636_vm1, %v3091_v35, %v633_v2  ;;  %v640_v54 = vmul.f32 %v3095_v45, %v639_v19  ;;  %v708_v35 = vadd.f32 %v3631_v53, %v689_v51 }
 0x1ad   : > { %v427_v42 = vsel %vm314_vm0, %v405_v18, 0.0  ;;  %v671_v20 = vmul.f32 %v637_v60, %v3607_v27  ;;  %v783_v21 = vpop.f32.mrf.mxu3  ;;  %v657_v55 = vsel %vm656_vm5, %v3716_v30, %v653_v56  ;;  %vm960_vm5 = vcmask 64512  }
 0x1ae   : > { %v641_v7 = vmul.f32 0.5, %v640_v54  ;;  %428 = vadd.xlane.f32.xlu1 %v427_v42  ;;  %v3748_v34 = vadd.f32 %v3739_v28, %v783_v21  ;;  %v673_v32 = vmul.f32 %v657_v55, %v3601_v25 }
 0x1af   : > { %v690_v0 = vmul.f32 %v3615_v36, %v671_v20 }
 0x1b0   : > { %v642_v33 = vsub.f32 1.5, %v641_v7  ;;  %v817_v15 = vmul.f32 0.35355338, %v3748_v34  ;;  %v692_v40 = vmul.f32 %v3615_v36, %v673_v32 }
 0x1b1   : > { %v709_v27 = vadd.f32 %v3631_v53, %v690_v0 }
 0x1b2   : > { %v643_v38 = vmul.f32 %v3095_v45, %v642_v33  ;;  %v833_v49 = vpack.c.bf16 %v817_v15, %v817_v15 }
 0x1b3   : > { %v718_v44 = vpack.c.bf16 %v709_v27, %v708_v35 }
 0x1b4   : > { %v647_v29 = vsel %vm646_vm7, %v3095_v45, %v643_v38  ;;  %v884_v59 = vunpack.c.l.b16 %v833_v49  ;;  %vm1749_vm7 = vcmask 130112  }
 0x1b5   : > { %v785_v48 = vpop.f32.mrf.mxu3  ;;  %2928 = vmatmul.msk.bf16.gmra.mxu3 %vm314_vm0, %v718_v44  ;;  %v672_v50 = vmul.f32 %v647_v29, %v3641_v14  ;;  %v711_v14 = vadd.f32 %v3631_v53, %v692_v40 }
 0x1b6   : > { %v3757_v57 = vadd.f32 %v3739_v28, %v785_v48 }
 0x1b7   : > { %v691_v58 = vmul.f32 %v3615_v36, %v672_v50 }
 0x1b8   : > { %v818_v39 = vmul.f32 0.35355338, %v3757_v57 }
 0x1b9   : > { %v710_v30 = vadd.f32 %v3631_v53, %v691_v58 }
 0x1ba   : > { %v834_v46 = vpack.c.bf16 %v818_v39, %v818_v39 }
 0x1bb   : > { %v719_v2 = vpack.c.bf16 %v711_v14, %v710_v30 }
 0x1bc   : > { %v885_v62 = vunpack.c.l.b16 %v834_v46 }
 0x1bd   : > { %v788_v1 = vpop.f32.mrf.mxu3 }
 0x1be   : > { %v3764_v45 = vpack.c.b16 %v885_v62, %v884_v59  ;;  %v3768_v17 = vadd.f32 %v3739_v28, %v788_v1 }
 0x1c0   : > { %v819_v25 = vmul.f32 0.35355338, %v3768_v17 }
 0x1c2   : > { %v835_v18 = vpack.c.bf16 %v819_v25, %v819_v25 }
 0x1c4   : > { %v886_v42 = vunpack.c.l.b16 %v835_v18 }
 0x1c5   : > { %v790_v19 = vpop.f32.mrf.mxu3  ;;  %2929 = vmatmul.msk.bf16.gmra.mxu3 %vm314_vm0, %v719_v2 }
 0x1c6   : > { %v3774_v6 = vadd.f32 %v3739_v28, %v790_v19 }
 0x1c8   : > { %v820_v60 = vmul.f32 0.35355338, %v3774_v6 }
 0x1ca   : > { %v836_v54 = vpack.c.bf16 %v820_v60, %v820_v60 }
 0x1cc   : > { %v887_v20 = vunpack.c.l.b16 %v836_v54 }
 0x1cd   : > { %v793_v51 = vpop.f32.mrf.mxu3 }
 0x1ce   : > { %v3777_v7 = vpack.c.b16 %v887_v20, %v886_v42  ;;  %v3780_v21 = vadd.f32 %v3739_v28, %v793_v51 }
 0x1d0   : > { %v821_v23 = vmul.f32 0.35355338, %v3780_v21 }
 0x1d2   : > { %v837_v35 = vpack.c.bf16 %v821_v23, %v821_v23 }
 0x1d4   : > { %v888_v56 = vunpack.c.l.b16 %v837_v35 }
 0x1d5   : > { %v795_v0 = vpop.f32.mrf.mxu3 }
 0x1d6   : > { %v3784_v33 = vadd.f32 %v3739_v28, %v795_v0 }
 0x1d8   : > { %v822_v27 = vmul.f32 0.35355338, %v3784_v33 }
 0x1da   : > { %v838_v38 = vpack.c.bf16 %v822_v27, %v822_v27 }
 0x1dc   : > { %v889_v44 = vunpack.c.l.b16 %v838_v38 }
 0x1de   : > { %v3787_v29 = vpack.c.b16 %v889_v44, %v888_v56 }
 0x208   : > { %v420_v15 = vpop.xlane.xlu1 %419 }
 0x209   : > { %v466_v48 = vmul.f32 %v420_v15, %v3473_v24 }
 0x20b   : > { %v482_v55 = vadd.f32 1e-06, %v466_v48 }
 0x20d   : > { %3096 = vrsqrt.f32 %v482_v55  ;;  %vm504_vm8 = vweird.f32 %v482_v55 }
 0x210   : > { %v423_v50 = vpop.xlane.xlu2 %422 }
 0x211   : > { %v467_v39 = vmul.f32 %v423_v50, %v3473_v24 }
 0x213   : > { %v3097_v49 = vpop.eup %3096  ;;  %v483_v46 = vadd.f32 1e-06, %v467_v39 }
 0x214   : > { %v499_v32 = vmul.f32 %v3097_v49, %v482_v55  ;;  %vm505_vm9 = vweird.f32 %v3097_v49 }
 0x215   : > { %3098 = vrsqrt.f32 %v483_v46  ;;  %vm506_vm10 = vmor %vm504_vm8, %vm505_vm9  ;;  %vm514_vm12 = vweird.f32 %v483_v46  ;;  %vm2200_vm8 = vcmask 195712   ;;  %vm2651_vm9 = vcmask 261312  }
 0x216   : > { %v500_v58 = vmul.f32 %v3097_v49, %v499_v32 }
 0x218   : > { %v501_v59 = vmul.f32 0.5, %v500_v58  ;;  %v426_v1 = vpop.xlane.xlu0 %425 }
 0x219   : > { %v468_v40 = vmul.f32 %v426_v1, %v3473_v24 }
 0x21a   : > { %v502_v62 = vsub.f32 1.5, %v501_v59 }
 0x21b   : > { %v3099_v30 = vpop.eup %3098  ;;  %v484_v14 = vadd.f32 1e-06, %v468_v40 }
 0x21c   : > { %v503_v2 = vmul.f32 %v3097_v49, %v502_v62  ;;  %v509_v25 = vmul.f32 %v3099_v30, %v483_v46  ;;  %vm515_vm11 = vweird.f32 %v3099_v30 }
 0x21d   : > { %3100 = vrsqrt.f32 %v484_v14  ;;  %vm516_vm13 = vmor %vm514_vm12, %vm515_vm11  ;;  %vm524_vm14 = vweird.f32 %v484_v14 }
 0x21e   : > { %v510_v19 = vmul.f32 %v3099_v30, %v509_v25  ;;  %v507_v60 = vsel %vm506_vm10, %v3097_v49, %v503_v2  ;;  %vm2833_vm10 = vcmask 257024  }
 0x21f   : > { %v658_v0 = vmul.f32 %v507_v60, %v3686_v43 }
 0x220   : > { %v511_v54 = vmul.f32 0.5, %v510_v19 }
 0x221   : > { %v429_v18 = vpop.xlane.xlu1 %428  ;;  %v677_v48 = vmul.f32 %v3615_v36, %v658_v0 }
 0x222   : > { %v469_v42 = vmul.f32 %v429_v18, %v3473_v24  ;;  %v512_v20 = vsub.f32 1.5, %v511_v54 }
 0x223   : > { %v3101_v23 = vpop.eup %3100  ;;  %v696_v32 = vadd.f32 %v3631_v53, %v677_v48 }
 0x224   : > { %v485_v51 = vadd.f32 1e-06, %v469_v42  ;;  %v513_v35 = vmul.f32 %v3099_v30, %v512_v20  ;;  %v519_v27 = vmul.f32 %v3101_v23, %v484_v14  ;;  %vm525_vm15 = vweird.f32 %v3101_v23 }
 0x225   : > { %vm526_vm1 = vmor %vm524_vm14, %vm525_vm15 }
 0x226   : > { %3102 = vrsqrt.f32 %v485_v51  ;;  %v517_v38 = vsel %vm516_vm13, %v3099_v30, %v513_v35  ;;  %v520_v56 = vmul.f32 %v3101_v23, %v519_v27  ;;  %vm534_vm3 = vweird.f32 %v485_v51 }
 0x227   : > { %v798_v44 = vpop.f32.mrf.mxu3  ;;  %v659_v15 = vmul.f32 %v517_v38, %v3701_v13 }
 0x228   : > { %v521_v55 = vmul.f32 0.5, %v520_v56  ;;  %v799_v24 = vadd.f32 %v3739_v28, %v798_v44 }
 0x229   : > { %v678_v50 = vmul.f32 %v3615_v36, %v659_v15 }
 0x22a   : > { %v522_v39 = vsub.f32 1.5, %v521_v55  ;;  %v823_v62 = vmul.f32 0.35355338, %v799_v24  ;;  %v855_v2 = vpack.c.bf16 %v799_v24, %v799_v24 }
 0x22b   : > { %v697_v46 = vadd.f32 %v3631_v53, %v678_v50 }
 0x22c   : > { %v3103_v49 = vpop.eup %3102  ;;  %v523_v58 = vmul.f32 %v3101_v23, %v522_v39  ;;  %v839_v19 = vpack.c.bf16 %v823_v62, %v823_v62  ;;  %v930_v20 = vunpack.c.l.b16 %v855_v2 }
 0x22d   : > { %v529_v43 = vmul.f32 %v3103_v49, %v485_v51  ;;  %v712_v13 = vpack.c.bf16 %v697_v46, %v696_v32  ;;  %vm535_vm2 = vweird.f32 %v3103_v49 }
 0x22e   : > { %v527_v1 = vsel %vm526_vm1, %v3101_v23, %v523_v58  ;;  %vm536_vm4 = vmor %vm534_vm3, %vm535_vm2  ;;  %v890_v27 = vunpack.c.l.b16 %v839_v19 }
 0x22f   : > { %v530_v59 = vmul.f32 %v3103_v49, %v529_v43  ;;  %2922 = vmatmul.msk.bf16.vlgmr.msra.gmra.mxu0 %vm314_vm0, %v712_v13  ;;  %v800_v30 = vpop.f32.mrf.mxu3  ;;  %v660_v54 = vmul.f32 %v527_v1, %v3719_v31  ;;  %v852_v1 = vpack.c.bf16 %v3774_v6, %v3774_v6 }
 0x230   : > { %v801_v25 = vadd.f32 %v3739_v28, %v800_v30 }
 0x231   : > { %v531_v40 = vmul.f32 0.5, %v530_v59  ;;  %v679_v15 = vmul.f32 %v3615_v36, %v660_v54  ;;  %v927_v19 = vunpack.c.l.b16 %v852_v1 }
 0x232   : > { %v824_v18 = vmul.f32 0.35355338, %v801_v25  ;;  %v856_v60 = vpack.c.bf16 %v801_v25, %v801_v25  ;;  %v851_v25 = vpack.c.bf16 %v3768_v17, %v3768_v17 }
 0x233   : > { %v532_v14 = vsub.f32 1.5, %v531_v40  ;;  %v698_v24 = vadd.f32 %v3631_v53, %v679_v15  ;;  %v854_v15 = vpack.c.bf16 %v3784_v33, %v3784_v33  ;;  %v849_v33 = vpack.c.bf16 %v3748_v34, %v3748_v34 }
 0x234   : > { %v840_v0 = vpack.c.bf16 %v824_v18, %v824_v18  ;;  %v931_v23 = vunpack.c.l.b16 %v856_v60  ;;  %v926_v60 = vunpack.c.l.b16 %v851_v25 }
 0x235   : > { %v533_v42 = vmul.f32 %v3103_v49, %v532_v14 }
 0x236   : > { %v891_v38 = vunpack.c.l.b16 %v840_v0  ;;  %v3803_v56 = vpack.c.b16 %v931_v23, %v930_v20  ;;  %v3828_v54 = vpack.c.b16 %v927_v19, %v926_v60 }
 0x237   : > { %v537_v35 = vsel %vm536_vm4, %v3103_v49, %v533_v42 }
 0x238   : > { %v661_v44 = vmul.f32 %v537_v35, %v3731_v26  ;;  %v803_v48 = vpop.f32.mrf.mxu3  ;;  %v3807_v55 = vpack.c.b16 %v891_v38, %v890_v27  ;;  %954 = vrot.lane.b32.xlu1 %v3803_v56, %s3369_s17 }
 0x239   : > { %v804_v51 = vadd.f32 %v3739_v28, %v803_v48 }
 0x23a   : > { %v680_v31 = vmul.f32 %v3615_v36, %v661_v44 }
 0x23b   : > { %v825_v39 = vmul.f32 0.35355338, %v804_v51  ;;  %v857_v43 = vpack.c.bf16 %v804_v51, %v804_v51 }
 0x23c   : > { %v699_v50 = vadd.f32 %v3631_v53, %v680_v31 }
 0x23d   : > { %v841_v46 = vpack.c.bf16 %v825_v39, %v825_v39  ;;  %v932_v62 = vunpack.c.l.b16 %v857_v43 }
 0x23e   : > { %v713_v49 = vpack.c.bf16 %v699_v50, %v698_v24  ;;  %v853_v24 = vpack.c.bf16 %v3780_v21, %v3780_v21  ;;  %v924_v21 = vunpack.c.l.b16 %v849_v33 }
 0x23f   : > { %v892_v40 = vunpack.c.l.b16 %v841_v46 }
 0x240   : > { %2923 = vmatmul.msk.bf16.gmra.mxu0 %vm314_vm0, %v713_v49  ;;  %v805_v26 = vpop.f32.mrf.mxu3  ;;  %v929_v49 = vunpack.c.l.b16 %v854_v15  ;;  %v928_v39 = vunpack.c.l.b16 %v853_v24 }
 0x241   : > { %v806_v32 = vadd.f32 %v3739_v28, %v805_v26  ;;  %v850_v26 = vpack.c.bf16 %v3757_v57, %v3757_v57 }
 0x242   : > { %v3845_v43 = vpack.c.b16 %v929_v49, %v928_v39 }
 0x243   : > { %v826_v58 = vmul.f32 0.35355338, %v806_v32  ;;  %v858_v59 = vpack.c.bf16 %v806_v32, %v806_v32  ;;  %v925_v32 = vunpack.c.l.b16 %v850_v26 }
 0x245   : > { %v842_v13 = vpack.c.bf16 %v826_v58, %v826_v58  ;;  %v933_v36 = vunpack.c.l.b16 %v858_v59  ;;  %v3851_v46 = vpack.c.b16 %v925_v32, %v924_v21 }
 0x247   : > { %v893_v30 = vunpack.c.l.b16 %v842_v13  ;;  %v3819_v53 = vpack.c.b16 %v933_v36, %v932_v62 }
 0x248   : > { %v808_v2 = vpop.f32.mrf.mxu3 }
 0x249   : > { %v3823_v14 = vpack.c.b16 %v893_v30, %v892_v40  ;;  %956 = vrot.lane.b32.xlu0 %v3819_v53, %s3369_s17  ;;  %v809_v18 = vadd.f32 %v3739_v28, %v808_v2 }
 0x24b   : > { %v827_v6 = vmul.f32 0.35355338, %v809_v18  ;;  %v859_v20 = vpack.c.bf16 %v809_v18, %v809_v18 }
 0x24d   : > { %v843_v17 = vpack.c.bf16 %v827_v6, %v827_v6  ;;  %v934_v27 = vunpack.c.l.b16 %v859_v20 }
 0x24f   : > { %v894_v48 = vunpack.c.l.b16 %v843_v17 }
 0x250   : > { %v810_v42 = vpop.f32.mrf.mxu3 }
 0x251   : > { %v811_v0 = vadd.f32 %v3739_v28, %v810_v42  ;;  %950 = vrot.lane.b32.xlu0 %v3828_v54, %s3369_s17 }
 0x253   : > { %v828_v23 = vmul.f32 0.35355338, %v811_v0  ;;  %v860_v35 = vpack.c.bf16 %v811_v0, %v811_v0 }
 0x255   : > { %v844_v38 = vpack.c.bf16 %v828_v23, %v828_v23  ;;  %v935_v44 = vunpack.c.l.b16 %v860_v35 }
 0x257   : > { %v895_v31 = vunpack.c.l.b16 %v844_v38  ;;  %v3835_v51 = vpack.c.b16 %v935_v44, %v934_v27 }
 0x259   : > { %v3839_v50 = vpack.c.b16 %v895_v31, %v894_v48  ;;  %958 = vrot.lane.b32.xlu2 %v3835_v51, %s3369_s17 }
 0x261   : > { %952 = vrot.lane.b32.xlu2 %v3845_v43, %s3369_s17 }
 0x269   : > { %948 = vrot.lane.b32.xlu2 %v3851_v46, %s3369_s17 }
 0x271   : > { %1339 = vrot.lane.b32.xlu2 %v3845_v43, %s3370_s18 }
 0x2aa   : > { %v955_v60 = vpop.permute.xlu1 %954 }
 0x2ab   : > { %v1001_v42 = vsel %vm960_vm5, %v955_v60, 0 }
 0x2ac   : > { %v773_v57 = vpop.f32.mrf.mxu0 }
 0x2ad   : > { %v774_v58 = vadd.f32 %v3739_v28, %v773_v57 }
 0x2af   : > { %v845_v13 = vpack.c.bf16 %v774_v58, %v774_v58 }
 0x2b1   : > { %v920_v40 = vunpack.c.l.b16 %v845_v13 }
 0x2b3   : > { %v959_v59 = vpop.permute.xlu2 %958 }
 0x2b4   : > { %v1007_v34 = vsel %vm960_vm5, %v959_v59, 0  ;;  %v775_v62 = vpop.f32.mrf.mxu0 }
 0x2b5   : > { %1009 = vmatpush.bf16.xpose.msra.mxu1 %v1007_v34  ;;  %v776_v36 = vadd.f32 %v3739_v28, %v775_v62  ;;  %v813_v34 = vmul.f32 0.35355338, %v774_v58 }
 0x2b7   : > { %v846_v1 = vpack.c.bf16 %v776_v36, %v776_v36  ;;  %v814_v59 = vmul.f32 0.35355338, %v776_v36  ;;  %v829_v13 = vpack.c.bf16 %v813_v34, %v813_v34 }
 0x2b9   : > { %v921_v30 = vunpack.c.l.b16 %v846_v1  ;;  %v830_v62 = vpack.c.bf16 %v814_v59, %v814_v59 }
 0x2bb   : > { %v957_v2 = vpop.permute.xlu0 %956  ;;  %v3860_v25 = vpack.c.b16 %v921_v30, %v920_v40  ;;  %v953_v27 = vpop.permute.xlu2 %952  ;;  %v881_v1 = vunpack.c.l.b16 %v830_v62  ;;  %v880_v40 = vunpack.c.l.b16 %v829_v13 }
 0x2bc   : > { %v1004_v19 = vsel %vm960_vm5, %v957_v2, 0  ;;  %v998_v24 = vsel %vm960_vm5, %v953_v27, 0 }
 0x2bd   : > { %v778_v18 = vpop.f32.mrf.mxu0  ;;  %1010 = vmatpush.bf16.xpose.msra.mxu1 %v1004_v19  ;;  %944 = vrot.lane.b32.xlu0 %v3860_v25, %s3369_s17  ;;  %v896_v30 = vpack.c.b16 %v881_v1, %v880_v40 }
 0x2be   : > { %v779_v6 = vadd.f32 %v3739_v28, %v778_v18 }
 0x2c0   : > { %v847_v0 = vpack.c.bf16 %v779_v6, %v779_v6  ;;  %v815_v38 = vmul.f32 0.35355338, %v779_v6 }
 0x2c2   : > { %v922_v44 = vunpack.c.l.b16 %v847_v0  ;;  %v831_v49 = vpack.c.bf16 %v815_v38, %v815_v38 }
 0x2c3   : > { %v951_v39 = vpop.permute.xlu0 %950  ;;  %v949_v21 = vpop.permute.xlu2 %948 }
 0x2c4   : > { %v882_v26 = vunpack.c.l.b16 %v831_v49  ;;  %v995_v32 = vsel %vm960_vm5, %v951_v39, 0  ;;  %v992_v57 = vsel %vm960_vm5, %v949_v21, 0 }
 0x2c5   : > { %v780_v20 = vpop.f32.mrf.mxu0  ;;  %1011 = vmatpush.bf16.xpose.msra.mxu1 %v1001_v42  ;;  %1341 = vrot.lane.b32.xlu0 %v3803_v56, %s3370_s18 }
 0x2c6   : > { %v781_v17 = vadd.f32 %v3739_v28, %v780_v20 }
 0x2c8   : > { %v816_v23 = vmul.f32 0.35355338, %v781_v17  ;;  %v848_v35 = vpack.c.bf16 %v781_v17, %v781_v17 }
 0x2ca   : > { %v923_v15 = vunpack.c.l.b16 %v848_v35  ;;  %v832_v48 = vpack.c.bf16 %v816_v23, %v816_v23 }
 0x2cb   : > { %v3941_v58 = vpop.permute.xlu2 %1339 }
 0x2cc   : > { %v3870_v31 = vpack.c.b16 %v923_v15, %v922_v44  ;;  %v883_v28 = vunpack.c.l.b16 %v832_v48 }
 0x2cd   : > { %1012 = vmatpush.bf16.xpose.msra.mxu1 %v998_v24  ;;  %1335 = vrot.lane.b32.xlu0 %v3851_v46, %s3370_s18 }
 0x2ce   : > { %1333 = vrot.lane.b32.xlu2 %v3870_v31, %s3370_s18  ;;  %946 = vrot.lane.b32.xlu1 %v3870_v31, %s3369_s17  ;;  %v3879_v33 = vpack.c.b16 %v883_v28, %v882_v26 }
 0x2d5   : > { %1013 = vmatpush.bf16.xpose.msra.mxu1 %v995_v32  ;;  %1234 = vrot.lane.b32.xlu0 %v3845_v43, %s3371_s19 }
 0x2d6   : > { %1317 = vrot.lane.b32.xlu2 %v3879_v33, %s3372_s20  ;;  %1343 = vrot.lane.b32.xlu1 %v3819_v53, %s3370_s18 }
 0x2dd   : > { %1014 = vmatpush.bf16.xpose.msra.mxu1 %v992_v57  ;;  %1230 = vrot.lane.b32.xlu0 %v3851_v46, %s3371_s19 }
 0x2de   : > { %1238 = vrot.lane.b32.xlu2 %v3819_v53, %s3371_s19  ;;  %1337 = vrot.lane.b32.xlu1 %v3828_v54, %s3370_s18 }
 0x2e5   : > { %1323 = vrot.lane.b32.xlu0 %v3787_v29, %s3372_s20 }
 0x2e6   : > { %1236 = vrot.lane.b32.xlu2 %v3803_v56, %s3371_s19  ;;  %1331 = vrot.lane.b32.xlu1 %v3860_v25, %s3370_s18 }
 0x2ed   : > { %2241 = vrot.lane.b32.xlu0 %v3845_v43, %s3373_s21 }
 0x2ee   : > { %1228 = vrot.lane.b32.xlu2 %v3870_v31, %s3371_s19  ;;  %1315 = vrot.lane.b32.xlu1 %v896_v30, %s3372_s20 }
 0x2f5   : > { %1782 = vrot.lane.b32.xlu0 %v3860_v25, %s3374_s22 }
 0x2f6   : > { %1788 = vrot.lane.b32.xlu2 %v3828_v54, %s3374_s22  ;;  %1319 = vrot.lane.b32.xlu1 %v3764_v45, %s3372_s20 }
 0x2fd   : > { %1770 = vrot.lane.b32.xlu0 %v3764_v45, %s3375_s23 }
 0x2fe   : > { %1786 = vrot.lane.b32.xlu2 %v3851_v46, %s3374_s22  ;;  %1232 = vrot.lane.b32.xlu1 %v3828_v54, %s3371_s19 }
 0x305   : > { %1774 = vrot.lane.b32.xlu0 %v3787_v29, %s3375_s23 }
 0x306   : > { %2237 = vrot.lane.b32.xlu2 %v3851_v46, %s3373_s21  ;;  %1321 = vrot.lane.b32.xlu1 %v3777_v7, %s3372_s20 }
 0x30d   : > { %1622 = vrot.lane.b32.xlu0 %v3803_v56, %s3376_s27 }
 0x30e   : > { %1784 = vrot.lane.b32.xlu2 %v3870_v31, %s3374_s22  ;;  %1226 = vrot.lane.b32.xlu1 %v3860_v25, %s3371_s19 }
 0x315   : > { %1614 = vrot.lane.b32.xlu0 %v3870_v31, %s3376_s27 }
 0x316   : > { %2235 = vrot.lane.b32.xlu2 %v3870_v31, %s3373_s21  ;;  %1794 = vrot.lane.b32.xlu1 %v3819_v53, %s3374_s22 }
 0x31d   : > { %1240 = vrot.lane.b32.xlu0 %v3835_v51, %s3371_s19  ;;  %s5137_s19 = scalar_lea.vmem %s5223_s7, %s2980_s26 }
 0x31e   : > { %1766 = vrot.lane.b32.xlu2 %v896_v30, %s3375_s23  ;;  %2245 = vrot.lane.b32.xlu1 %v3819_v53, %s3373_s21 }
 0x325   : > { %1796 = vrot.lane.b32.xlu0 %v3835_v51, %s3374_s22 }
 0x326   : > { %2217 = vrot.lane.b32.xlu2 %v896_v30, %s3377_s28  ;;  %1792 = vrot.lane.b32.xlu1 %v3803_v56, %s3374_s22 }
 0x328   : > { %v3948_v36 = vpop.permute.xlu2 %1333 }
 0x32e   : > { %2221 = vrot.lane.b32.xlu2 %v3764_v45, %s3377_s28  ;;  %1325 = vrot.lane.b32.xlu1 %v3807_v55, %s3372_s20 }
 0x32f   : > { %v945_v2 = vpop.permute.xlu0 %944 }
 0x330   : > { %v3954_v19 = vpop.permute.xlu2 %1317  ;;  %v986_v27 = vsel %vm960_vm5, %v945_v2, 0 }
 0x336   : > { %2223 = vrot.lane.b32.xlu2 %v3777_v7, %s3377_s28  ;;  %2243 = vrot.lane.b32.xlu1 %v3803_v56, %s3373_s21 }
 0x337   : > { %v3960_v18 = vpop.permute.xlu0 %1341 }
 0x338   : > { %v3962_v60 = vpop.permute.xlu2 %1238 }
 0x33e   : > { %2225 = vrot.lane.b32.xlu2 %v3787_v29, %s3377_s28  ;;  %1790 = vrot.lane.b32.xlu1 %v3845_v43, %s3374_s22 }
 0x33f   : > { %v3968_v6 = vpop.permute.xlu0 %1335 }
 0x340   : > { %v3970_v42 = vpop.permute.xlu2 %1236  ;;  %v947_v20 = vpop.permute.xlu1 %946 }
 0x341   : > { %v989_v0 = vsel %vm960_vm5, %v947_v20, 0 }
 0x342   : > { %1015 = vmatpush.bf16.xpose.msra.mxu1 %v989_v0 }
 0x346   : > { %1778 = vrot.lane.b32.xlu2 %v3823_v14, %s3375_s23  ;;  %1327 = vrot.lane.b32.xlu1 %v3823_v14, %s3372_s20 }
 0x347   : > { %v3977_v17 = vpop.permute.xlu0 %1234 }
 0x348   : > { %v3979_v23 = vpop.permute.xlu2 %1228  ;;  %v3981_v35 = vpop.permute.xlu1 %1343 }
 0x34a   : > { %1016 = vmatpush.bf16.xpose.msra.mxu1 %v986_v27 }
 0x34e   : > { %1618 = vrot.lane.b32.xlu2 %v3828_v54, %s3376_s27  ;;  %2239 = vrot.lane.b32.xlu1 %v3828_v54, %s3373_s21 }
 0x34f   : > { %v3988_v38 = vpop.permute.xlu0 %1230 }
 0x350   : > { %v3990_v44 = vpop.permute.xlu2 %1788  ;;  %v3992_v15 = vpop.permute.xlu1 %1337 }
 0x351   : > { %2930 = vmatmul.msk.bf16.vlgmr.msra.gmra.mxu1 %vm960_vm5, %v896_v30 }
 0x356   : > { %1345 = vrot.lane.b32.xlu2 %v3835_v51, %s3370_s18  ;;  %2233 = vrot.lane.b32.xlu1 %v3860_v25, %s3373_s21 }
 0x357   : > { %v3999_v48 = vpop.permute.xlu0 %1323 }
 0x358   : > { %v4001_v24 = vpop.permute.xlu2 %1786  ;;  %v4003_v49 = vpop.permute.xlu1 %1331 }
 0x35e   : > { %2247 = vrot.lane.b32.xlu2 %v3835_v51, %s3373_s21  ;;  %1768 = vrot.lane.b32.xlu1 %v3879_v33, %s3375_s23 }
 0x35f   : > { %v4009_v28 = vpop.permute.xlu0 %2241 }
 0x360   : > { %v4011_v39 = vpop.permute.xlu2 %2237  ;;  %v4013_v26 = vpop.permute.xlu1 %1315 }
 0x361   : > { %2931 = vmatmul.msk.bf16.gmra.mxu1 %vm960_vm5, %v3879_v33 }
 0x366   : > { %1329 = vrot.lane.b32.xlu2 %v3839_v50, %s3372_s20  ;;  %2219 = vrot.lane.b32.xlu1 %v3879_v33, %s3377_s28 }
 0x367   : > { %v4021_v32 = vpop.permute.xlu0 %1782 }
 0x368   : > { %v4023_v21 = vpop.permute.xlu2 %1784  ;;  %v4025_v57 = vpop.permute.xlu1 %1319 }
 0x36e   : > { %1772 = vrot.lane.b32.xlu1 %v3777_v7, %s3375_s23 }
 0x36f   : > { %v4029_v59 = vpop.permute.xlu0 %1770 }
 0x370   : > { %v4031_v34 = vpop.permute.xlu2 %2235  ;;  %v1233_v62 = vpop.permute.xlu1 %1232 }
 0x371   : > { %2932 = vmatmul.msk.bf16.gmra.mxu1 %vm960_vm5, %v3764_v45 }
 0x376   : > { %1776 = vrot.lane.b32.xlu1 %v3807_v55, %s3375_s23 }
 0x377   : > { %v4037_v33 = vpop.permute.xlu0 %1774 }
 0x378   : > { %v4039_v13 = vpop.permute.xlu2 %1766  ;;  %v4041_v1 = vpop.permute.xlu1 %1321 }
 0x37e   : > { %2227 = vrot.lane.b32.xlu1 %v3807_v55, %s3377_s28 }
 0x37f   : > { %v4045_v40 = vpop.permute.xlu0 %1622 }
 0x380   : > { %v4047_v30 = vpop.permute.xlu2 %2217  ;;  %v1227_v2 = vpop.permute.xlu1 %1226 }
 0x381   : > { %2933 = vmatmul.msk.bf16.gmra.mxu1 %vm960_vm5, %v3777_v7 }
 0x386   : > { %1624 = vrot.lane.b32.xlu1 %v3819_v53, %s3376_s27 }
 0x387   : > { %v4053_v45 = vpop.permute.xlu0 %1614 }
 0x388   : > { %v4055_v20 = vpop.permute.xlu2 %2221  ;;  %v1795_v0 = vpop.permute.xlu1 %1794 }
 0x389   : > { %v1841_v37 = vsel %vm960_vm5, %v1795_v0, 0 }
 0x38e   : > { %1620 = vrot.lane.b32.xlu1 %v3845_v43, %s3376_s27 }
 0x38f   : > { %v1241_v27 = vpop.permute.xlu0 %1240 }
 0x390   : > { %v4059_v61 = vpop.permute.xlu2 %2223  ;;  %v4061_v8 = vpop.permute.xlu1 %2245  ;;  %1250 = vmatpush.bf16.msrb.mxu0 %v1241_v27  ;;  %3027 = vmatpush.bf16.msrb.mxu1 %v1241_v27 }
 0x391   : > { %2934 = vmatmul.msk.bf16.gmra.mxu1 %vm960_vm5, %v3787_v29  ;;  %3028 = vmatpush.bf16.msra.mxu2 %v1241_v27 }
 0x394   : > { %1251 = vmatpush.bf16.msrb.mxu0 %v3962_v60  ;;  %3029 = vmatpush.bf16.msrb.mxu1 %v3962_v60 }
 0x395   : > { %3030 = vmatpush.bf16.msra.mxu2 %v3962_v60 }
 0x396   : > { %2229 = vrot.lane.b32.xlu1 %v3823_v14, %s3377_s28 }
 0x398   : > { %v4070_v7 = vpop.permute.xlu2 %2225  ;;  %v1793_v63 = vpop.permute.xlu1 %1792  ;;  %1252 = vmatpush.bf16.msrb.mxu0 %v3970_v42  ;;  %3031 = vmatpush.bf16.msrb.mxu1 %v3970_v42 }
 0x399   : > { %3032 = vmatpush.bf16.msra.mxu2 %v3970_v42 }
 0x39c   : > { %1253 = vmatpush.bf16.msrb.mxu0 %v3977_v17  ;;  %3033 = vmatpush.bf16.msrb.mxu1 %v3977_v17 }
 0x39d   : > { %3034 = vmatpush.bf16.msra.mxu2 %v3977_v17 }
 0x39e   : > { %1616 = vrot.lane.b32.xlu1 %v3851_v46, %s3376_s27 }
 0x3a0   : > { %v4080_v29 = vpop.permute.xlu2 %1778  ;;  %v4082_v60 = vpop.permute.xlu1 %1325  ;;  %1254 = vmatpush.bf16.msrb.mxu0 %v1233_v62  ;;  %3035 = vmatpush.bf16.msrb.mxu1 %v1233_v62 }
 0x3a1   : > { %2935 = vmatmul.msk.bf16.gmra.mxu1 %vm960_vm5, %v3807_v55  ;;  %3036 = vmatpush.bf16.msra.mxu2 %v1233_v62  ;;  %v1797_v55 = vpop.permute.xlu0 %1796 }
 0x3a2   : > { %v1844_v62 = vsel %vm960_vm5, %v1797_v55, 0 }
 0x3a4   : > { %1255 = vmatpush.bf16.msrb.mxu0 %v3988_v38  ;;  %3037 = vmatpush.bf16.msrb.mxu1 %v3988_v38 }
 0x3a5   : > { %3038 = vmatpush.bf16.msra.mxu2 %v3988_v38 }
 0x3a6   : > { %1626 = vrot.lane.b32.xlu1 %v3835_v51, %s3376_s27 }
 0x3a8   : > { %v4091_v42 = vpop.permute.xlu2 %1618  ;;  %v4093_v17 = vpop.permute.xlu1 %2243  ;;  %1256 = vmatpush.bf16.msrb.mxu0 %v3979_v23  ;;  %3039 = vmatpush.bf16.msrb.mxu1 %v3979_v23 }
 0x3a9   : > { %3040 = vmatpush.bf16.msra.mxu2 %v3979_v23  ;;  %v1390_v23 = vsel %vm960_vm5, %v3981_v35, 0  ;;  %v1384_v35 = vsel %vm960_vm5, %v3941_v58, 0  ;;  %v1381_v58 = vsel %vm960_vm5, %v3992_v15, 0  ;;  %v1826_v15 = vsel %vm960_vm5, %v4023_v21, 0 }
 0x3ac   : > { %1257 = vmatpush.bf16.msrb.mxu0 %v1227_v2  ;;  %3041 = vmatpush.bf16.msrb.mxu1 %v1227_v2 }
 0x3ad   : > { %3042 = vmatpush.bf16.msra.mxu2 %v1227_v2  ;;  %v1838_v2 = vsel %vm960_vm5, %v1793_v63, 0  ;;  %v1832_v63 = vsel %vm960_vm5, %v3990_v44, 0 }
 0x3b0   : > { %v1346_v38 = vpop.permute.xlu2 %1345  ;;  %v1791_v27 = vpop.permute.xlu1 %1790 }
 0x3b1   : > { %1846 = vmatpush.bf16.xpose.msrb.mxu2 %v1844_v62  ;;  %v1393_v52 = vsel %vm960_vm5, %v1346_v38, 0  ;;  %2936 = vmatmul.msk.bf16.gmra.mxu1 %vm960_vm5, %v3823_v14  ;;  %v1387_v62 = vsel %vm960_vm5, %v3960_v18, 0 }
 0x3b2   : > { %1395 = vmatpush.bf16.xpose.msrb.mxu3 %v1393_v52  ;;  %v861_v52 = vlaneseq }
 0x3b4   : > { %v4115_v0 = vand.u32 127, %v861_v52  ;;  %v1378_v52 = vsel %vm960_vm5, %v3968_v6, 0  ;;  %v1372_v6 = vsel %vm960_vm5, %v4003_v49, 0  ;;  %v2286_v49 = vsel %vm960_vm5, %v4009_v28, 0 }
 0x3b6   : > { %vm863_vm6 = vcmp.lt.s32.totalorder %v4115_v0, 30 }
 0x3b8   : > { %v4103_v16 = vpop.permute.xlu1 %1327 }
 0x3b9   : > { %1847 = vmatpush.bf16.xpose.msrb.mxu2 %v1841_v37  ;;  %v1835_v37 = vsel %vm960_vm5, %v1791_v27, 0 }
 0x3ba   : > { %1396 = vmatpush.bf16.xpose.msrb.mxu3 %v1390_v23  ;;  %v1829_v23 = vsel %vm960_vm5, %v4001_v24, 0  ;;  %v1375_v24 = vsel %vm960_vm5, %v3948_v36, 0  ;;  %v2292_v36 = vsel %vm960_vm5, %v4061_v8, 0 }
 0x3c0   : > { %v2240_v55 = vpop.permute.xlu1 %2239 }
 0x3c1   : > { %1848 = vmatpush.bf16.xpose.msrb.mxu2 %v1838_v2  ;;  %2937 = vmatmul.msk.bf16.gmra.mxu1 %vm960_vm5, %v3839_v50 }
 0x3c2   : > { %1397 = vmatpush.bf16.xpose.msrb.mxu3 %v1387_v62 }
 0x3c8   : > { %v2234_v14 = vpop.permute.xlu1 %2233 }
 0x3c9   : > { %1849 = vmatpush.bf16.xpose.msrb.mxu2 %v1835_v37  ;;  %v2274_v28 = vsel %vm960_vm5, %v2234_v14, 0 }
 0x3ca   : > { %1398 = vmatpush.bf16.xpose.msrb.mxu3 %v1384_v35  ;;  %v1823_v35 = vsel %vm960_vm5, %v4021_v32, 0 }
 0x3ce   : > { %v1018_v18 = vpop.f32.mrf.mxu1 }
 0x3cf   : > { %v4122_v38 = vsel %vm863_vm6, %v1018_v18, -1e+30 }
 0x3d0   : > { %1074 = vmax.xlane.f32.xlu2 %v4122_v38  ;;  %v4125_v27 = vpop.permute.xlu1 %1768 }
 0x3d1   : > { %1850 = vmatpush.bf16.xpose.msrb.mxu2 %v1832_v63  ;;  %v2248_v63 = vpop.permute.xlu2 %2247 }
 0x3d2   : > { %1399 = vmatpush.bf16.xpose.msrb.mxu3 %v1381_v58  ;;  %v2295_v58 = vsel %vm960_vm5, %v2248_v63, 0 }
 0x3d6   : > { %v1020_v2 = vpop.f32.mrf.mxu1 }
 0x3d7   : > { %v4133_v44 = vsel %vm863_vm6, %v1020_v2, -1e+30 }
 0x3d8   : > { %1076 = vmax.xlane.f32.xlu0 %v4133_v44  ;;  %v4136_v62 = vpop.permute.xlu1 %2219 }
 0x3d9   : > { %1851 = vmatpush.bf16.xpose.msrb.mxu2 %v1829_v23  ;;  %v2289_v23 = vsel %vm960_vm5, %v4093_v17, 0  ;;  %v2280_v17 = vsel %vm960_vm5, %v4011_v39, 0 }
 0x3da   : > { %1400 = vmatpush.bf16.xpose.msrb.mxu3 %v1378_v52 }
 0x3de   : > { %v1023_v39 = vpop.f32.mrf.mxu1 }
 0x3e0   : > { %v4142_v37 = vpop.permute.xlu1 %1772 }
 0x3e1   : > { %1852 = vmatpush.bf16.xpose.msrb.mxu2 %v1826_v15 }
 0x3e2   : > { %1401 = vmatpush.bf16.xpose.msrb.mxu3 %v1375_v24 }
 0x3e8   : > { %v4148_v18 = vpop.permute.xlu1 %1776 }
 0x3e9   : > { %1853 = vmatpush.bf16.xpose.msrb.mxu2 %v1823_v35 }
 0x3ea   : > { %1402 = vmatpush.bf16.xpose.msrb.mxu3 %v1372_v6  ;;  %v4212_v6 = vsel %vm863_vm6, %v1023_v39, -1e+30 }
 0x3f0   : > { %v4153_v21 = vpop.permute.xlu1 %2227 }
 0x3f1   : > { %2938 = vmatmul.msk.bf16.vlgmr.msrb.gmra.mxu3 %vm960_vm5, %v4013_v26  ;;  %v2283_v26 = vsel %vm960_vm5, %v2240_v55, 0  ;;  %v1330_v55 = vpop.permute.xlu2 %1329 }
 0x3f2   : > { %2297 = vmatpush.bf16.xpose.msra.mxu3 %v2295_v58 }
 0x3f8   : > { %v1625_v32 = vpop.permute.xlu1 %1624 }
 0x3fa   : > { %2298 = vmatpush.bf16.xpose.msra.mxu3 %v2292_v36 }
 0x400   : > { %v1621_v2 = vpop.permute.xlu1 %1620 }
 0x401   : > { %2939 = vmatmul.msk.bf16.gmra.mxu3 %vm960_vm5, %v3954_v19  ;;  %v2277_v19 = vsel %vm960_vm5, %v4031_v34, 0 }
 0x402   : > { %2299 = vmatpush.bf16.xpose.msra.mxu3 %v2289_v23 }
 0x408   : > { %v4165_v52 = vpop.permute.xlu1 %2229 }
 0x40a   : > { %2300 = vmatpush.bf16.xpose.msra.mxu3 %v2286_v49 }
 0x410   : > { %v1617_v8 = vpop.permute.xlu1 %1616 }
 0x411   : > { %2940 = vmatmul.msk.bf16.gmra.mxu3 %vm960_vm5, %v4025_v57  ;;  %v1025_v57 = vpop.f32.mrf.mxu1 }
 0x412   : > { %2301 = vmatpush.bf16.xpose.msra.mxu3 %v2283_v26  ;;  %v4200_v24 = vsel %vm863_vm6, %v1025_v57, -1e+30 }
 0x418   : > { %v1627_v15 = vpop.permute.xlu1 %1626 }
 0x419   : > { %1636 = vmatpush.bf16.msra.mxu0 %v1627_v15  ;;  %v1028_v34 = vpop.f32.mrf.mxu1 }
 0x41a   : > { %2302 = vmatpush.bf16.xpose.msra.mxu3 %v2280_v17  ;;  %v4233_v49 = vsel %vm863_vm6, %v1028_v34, -1e+30 }
 0x41d   : > { %1637 = vmatpush.bf16.msra.mxu0 %v1625_v32 }
 0x421   : > { %2941 = vmatmul.msk.bf16.gmra.mxu3 %vm960_vm5, %v4041_v1  ;;  %1638 = vmatpush.bf16.msra.mxu0 %v4045_v40  ;;  %v1030_v1 = vpop.f32.mrf.mxu1 }
 0x422   : > { %2303 = vmatpush.bf16.xpose.msra.mxu3 %v2277_v19 }
 0x425   : > { %1639 = vmatpush.bf16.msra.mxu0 %v1621_v2  ;;  %v4229_v2 = vsel %vm863_vm6, %v1030_v1, -1e+30 }
 0x429   : > { %1640 = vmatpush.bf16.msra.mxu0 %v4091_v42  ;;  %v4186_v40 = vpop.f32.mrf.mxu1 }
 0x42a   : > { %2304 = vmatpush.bf16.xpose.msra.mxu3 %v2274_v28 }
 0x42d   : > { %1641 = vmatpush.bf16.msra.mxu0 %v1617_v8 }
 0x431   : > { %2942 = vmatmul.msk.bf16.gmra.mxu3 %vm960_vm5, %v3999_v48  ;;  %1642 = vmatpush.bf16.msra.mxu0 %v4053_v45  ;;  %v4189_v42 = vpop.f32.mrf.mxu1 }
 0x439   : > { %v1038_v48 = vpop.f32.mrf.mxu1 }
 0x441   : > { %2943 = vmatmul.msk.bf16.gmra.mxu3 %vm960_vm5, %v4082_v60  ;;  %v1040_v14 = vpop.f32.mrf.mxu1 }
 0x442   : > { %v4251_v28 = vsel %vm863_vm6, %v1040_v14, -1e+30 }
 0x443   : > { %v1075_v14 = vpop.xlane.xlu2 %1074 }
 0x451   : > { %2944 = vmatmul.msk.bf16.gmra.mxu3 %vm960_vm5, %v4103_v16 }
 0x461   : > { %2945 = vmatmul.msk.bf16.gmra.mxu3 %vm960_vm5, %v1330_v55 }
 0x471   : > { %2954 = vmatmul.msk.bf16.vlgmr.msra.gmra.mxu3 %vm960_vm5, %v4047_v30  ;;  %v1043_v30 = vpop.f32.mrf.mxu1 }
 0x474   : > { %v1404_v45 = vpop.f32.mrf.mxu3 }
 0x475   : > { %v4195_v60 = vsel %vm863_vm6, %v1404_v45, -1e+30 }
 0x476   : > { %1460 = vmax.xlane.f32.xlu2 %v4195_v60 }
 0x479   : > { %v1045_v58 = vpop.f32.mrf.mxu1 }
 0x47a   : > { %v4278_v45 = vsel %vm863_vm6, %v1045_v58, -1e+30 }
 0x47c   : > { %v1406_v16 = vpop.f32.mrf.mxu3 }
 0x47d   : > { %v4204_v35 = vsel %vm863_vm6, %v1406_v16, -1e+30 }
 0x47e   : > { %1080 = vmax.xlane.f32.xlu2 %v4200_v24  ;;  %1462 = vmax.xlane.f32.xlu1 %v4204_v35 }
 0x481   : > { %2955 = vmatmul.msk.bf16.gmra.mxu3 %vm960_vm5, %v4136_v62  ;;  %v1048_v26 = vpop.f32.mrf.mxu1 }
 0x482   : > { %v4288_v16 = vsel %vm863_vm6, %v1048_v26, -1e+30 }
 0x484   : > { %v1409_v63 = vpop.f32.mrf.mxu3 }
 0x485   : > { %v4217_v32 = vsel %vm863_vm6, %v1409_v63, -1e+30  ;;  %v1106_v63 = vsub.f32 %v4122_v38, %v1075_v14 }
 0x486   : > { %1078 = vmax.xlane.f32.xlu1 %v4212_v6 }
 0x487   : > { %v1122_v58 = vmul.f32 1.442695, %v1106_v63 }
 0x489   : > { %v1050_v15 = vpop.f32.mrf.mxu1  ;;  %3104 = vpow2.f32 %v1122_v58 }
 0x48c   : > { %v1411_v36 = vpop.f32.mrf.mxu3 }
 0x48d   : > { %v4221_v23 = vsel %vm863_vm6, %v1411_v36, -1e+30  ;;  %v1077_v36 = vpop.xlane.xlu0 %1076 }
 0x48e   : > { %1464 = vmax.xlane.f32.xlu1 %v4217_v32  ;;  %1466 = vmax.xlane.f32.xlu0 %v4221_v23  ;;  %v1107_v26 = vsub.f32 %v4133_v44, %v1077_v36 }
 0x491   : > { %2956 = vmatmul.msk.bf16.gmra.mxu3 %vm960_vm5, %v4055_v20  ;;  %v1053_v57 = vpop.f32.mrf.mxu1 }
 0x492   : > { %v4261_v1 = vsel %vm863_vm6, %v1053_v57, -1e+30 }
 0x494   : > { %v1414_v62 = vpop.f32.mrf.mxu3 }
 0x495   : > { %v4239_v17 = vsel %vm863_vm6, %v1414_v62, -1e+30 }
 0x496   : > { %1084 = vmax.xlane.f32.xlu1 %v4229_v2  ;;  %1082 = vmax.xlane.f32.xlu0 %v4233_v49 }
 0x49c   : > { %v1416_v8 = vpop.f32.mrf.mxu3 }
 0x49d   : > { %v4243_v20 = vsel %vm863_vm6, %v1416_v8, -1e+30  ;;  %v1124_v8 = vmul.f32 1.442695, %v1107_v26 }
 0x49e   : > { %1468 = vmax.xlane.f32.xlu0 %v4239_v17  ;;  %1470 = vmax.xlane.f32.xlu2 %v4243_v20 }
 0x49f   : > { %3106 = vpow2.f32 %v1124_v8 }
 0x4a1   : > { %2957 = vmatmul.msk.bf16.gmra.mxu3 %vm960_vm5, %v4059_v61  ;;  %v4265_v61 = vsel %vm863_vm6, %v1038_v48, -1e+30  ;;  %v4283_v48 = vsel %vm863_vm6, %v1043_v30, -1e+30  ;;  %v1055_v30 = vpop.f32.mrf.mxu1 }
 0x4a2   : > { %v4301_v62 = vsel %vm863_vm6, %v1055_v30, -1e+30 }
 0x4a4   : > { %v1419_v19 = vpop.f32.mrf.mxu3 }
 0x4a5   : > { %v4255_v39 = vsel %vm863_vm6, %v1419_v19, -1e+30 }
 0x4a6   : > { %1092 = vmax.xlane.f32.xlu2 %v4251_v28  ;;  %1472 = vmax.xlane.f32.xlu0 %v4255_v39 }
 0x4ac   : > { %v1421_v34 = vpop.f32.mrf.mxu3 }
 0x4ad   : > { %v4269_v55 = vsel %vm863_vm6, %v1421_v34, -1e+30 }
 0x4ae   : > { %1102 = vmax.xlane.f32.xlu2 %v4261_v1  ;;  %1090 = vmax.xlane.f32.xlu0 %v4265_v61 }
 0x4af   : > { %1474 = vmax.xlane.f32.xlu1 %v4269_v55 }
 0x4b1   : > { %2958 = vmatmul.msk.bf16.gmra.mxu3 %vm960_vm5, %v4070_v7  ;;  %v4293_v7 = vsel %vm863_vm6, %v1050_v15, -1e+30  ;;  %v4305_v15 = vpop.eup %3104 }
 0x4b2   : > { %v4310_v38 = vpop.eup %3106 }
 0x4b6   : > { %1096 = vmax.xlane.f32.xlu0 %v4278_v45 }
 0x4b7   : > { %1094 = vmax.xlane.f32.xlu1 %v4283_v48 }
 0x4be   : > { %1098 = vmax.xlane.f32.xlu0 %v4288_v16 }
 0x4bf   : > { %1100 = vmax.xlane.f32.xlu1 %v4293_v7 }
 0x4c1   : > { %2959 = vmatmul.msk.bf16.gmra.mxu3 %vm960_vm5, %v4153_v21 }
 0x4c6   : > { %1104 = vmax.xlane.f32.xlu0 %v4301_v62 }
 0x4ce   : > { %1154 = vadd.xlane.f32.xlu0 %v4305_v15 }
 0x4d1   : > { %2960 = vmatmul.msk.bf16.gmra.mxu3 %vm960_vm5, %v4165_v52 }
 0x4d6   : > { %1156 = vadd.xlane.f32.xlu0 %v4310_v38 }
 0x4e9   : > { %v1461_v21 = vpop.xlane.xlu2 %1460 }
 0x4ea   : > { %v1492_v19 = vsub.f32 %v4195_v60, %v1461_v21 }
 0x4ec   : > { %v1508_v57 = vmul.f32 1.442695, %v1492_v19 }
 0x4ee   : > { %3108 = vpow2.f32 %v1508_v57 }
 0x4f1   : > { %v1081_v34 = vpop.xlane.xlu2 %1080  ;;  %v1463_v44 = vpop.xlane.xlu1 %1462 }
 0x4f2   : > { %v1109_v14 = vsub.f32 %v4200_v24, %v1081_v34  ;;  %v1493_v63 = vsub.f32 %v4204_v35, %v1463_v44 }
 0x4f4   : > { %v4316_v30 = vpop.eup %3108  ;;  %v1128_v58 = vmul.f32 1.442695, %v1109_v14  ;;  %v1510_v36 = vmul.f32 1.442695, %v1493_v63 }
 0x4f5   : > { %1540 = vadd.xlane.f32.xlu2 %v4316_v30 }
 0x4f6   : > { %3110 = vpow2.f32 %v1128_v58 }
 0x4f7   : > { %3112 = vpow2.f32 %v1510_v36 }
 0x4f9   : > { %v1079_v52 = vpop.xlane.xlu1 %1078 }
 0x4fa   : > { %v1108_v26 = vsub.f32 %v4212_v6, %v1079_v52 }
 0x4fc   : > { %v4320_v60 = vpop.eup %3110  ;;  %v1126_v8 = vmul.f32 1.442695, %v1108_v26 }
 0x4fd   : > { %v4322_v21 = vpop.eup %3112  ;;  %1160 = vadd.xlane.f32.xlu1 %v4320_v60 }
 0x4fe   : > { %3114 = vpow2.f32 %v1126_v8  ;;  %1542 = vadd.xlane.f32.xlu0 %v4322_v21 }
 0x501   : > { %v4326_v24 = vpop.xlane.xlu0 %1466  ;;  %v4328_v35 = vpop.xlane.xlu1 %1464 }
 0x504   : > { %v4330_v19 = vpop.eup %3114 }
 0x505   : > { %1158 = vadd.xlane.f32.xlu2 %v4330_v19 }
 0x509   : > { %v1083_v57 = vpop.xlane.xlu0 %1082  ;;  %v1085_v6 = vpop.xlane.xlu1 %1084 }
 0x50a   : > { %v1110_v34 = vsub.f32 %v4233_v49, %v1083_v57  ;;  %v1111_v44 = vsub.f32 %v4229_v2, %v1085_v6 }
 0x50c   : > { %v1130_v14 = vmul.f32 1.442695, %v1110_v34  ;;  %v1132_v63 = vmul.f32 1.442695, %v1111_v44 }
 0x50e   : > { %3116 = vpow2.f32 %v1130_v14 }
 0x50f   : > { %3118 = vpow2.f32 %v1132_v63 }
 0x511   : > { %v4335_v58 = vpop.xlane.xlu0 %1468  ;;  %v4337_v36 = vpop.xlane.xlu2 %1470 }
 0x514   : > { %v4339_v52 = vpop.eup %3116 }
 0x515   : > { %v4341_v26 = vpop.eup %3118  ;;  %1162 = vadd.xlane.f32.xlu0 %v4339_v52 }
 0x516   : > { %1164 = vadd.xlane.f32.xlu2 %v4341_v26 }
 0x519   : > { %v1093_v8 = vpop.xlane.xlu2 %1092  ;;  %v4345_v49 = vpop.xlane.xlu0 %1472 }
 0x51a   : > { %v1115_v2 = vsub.f32 %v4251_v28, %v1093_v8 }
 0x51c   : > { %v1140_v57 = vmul.f32 1.442695, %v1115_v2 }
 0x51e   : > { %3120 = vpow2.f32 %v1140_v57 }
 0x521   : > { %v1091_v6 = vpop.xlane.xlu0 %1090 }
 0x522   : > { %v1114_v34 = vsub.f32 %v4265_v61, %v1091_v6  ;;  %v4349_v44 = vpop.xlane.xlu1 %1474 }
 0x524   : > { %v4351_v14 = vpop.eup %3120  ;;  %v1138_v63 = vmul.f32 1.442695, %v1114_v34 }
 0x525   : > { %1172 = vadd.xlane.f32.xlu2 %v4351_v14 }
 0x526   : > { %3122 = vpow2.f32 %v1138_v63 }
 0x529   : > { %v1097_v11 = vpop.xlane.xlu0 %1096 }
 0x52a   : > { %v1117_v5 = vsub.f32 %v4278_v45, %v1097_v11  ;;  %v1095_v9 = vpop.xlane.xlu1 %1094 }
 0x52b   : > { %v1116_v3 = vsub.f32 %v4283_v48, %v1095_v9 }
 0x52c   : > { %v1144_v28 = vmul.f32 1.442695, %v1117_v5  ;;  %v4356_v8 = vpop.eup %3122 }
 0x52d   : > { %v1142_v2 = vmul.f32 1.442695, %v1116_v3  ;;  %1170 = vadd.xlane.f32.xlu1 %v4356_v8 }
 0x52e   : > { %3124 = vpow2.f32 %v1144_v28 }
 0x52f   : > { %3126 = vpow2.f32 %v1142_v2 }
 0x531   : > { %v1099_v61 = vpop.xlane.xlu0 %1098 }
 0x532   : > { %v1118_v57 = vsub.f32 %v4288_v16, %v1099_v61  ;;  %v1101_v6 = vpop.xlane.xlu1 %1100  ;;  %v1424_v16 = vpop.f32.mrf.mxu3 }
 0x533   : > { %v1119_v34 = vsub.f32 %v4293_v7, %v1101_v6 }
 0x534   : > { %v4361_v63 = vpop.eup %3124  ;;  %v1146_v11 = vmul.f32 1.442695, %v1118_v57 }
 0x535   : > { %v4363_v45 = vpop.eup %3126  ;;  %v1148_v9 = vmul.f32 1.442695, %v1119_v34  ;;  %1176 = vadd.xlane.f32.xlu2 %v4361_v63 }
 0x536   : > { %3128 = vpow2.f32 %v1146_v11  ;;  %1174 = vadd.xlane.f32.xlu0 %v4363_v45 }
 0x537   : > { %3130 = vpow2.f32 %v1148_v9 }
 0x539   : > { %v4367_v3 = vpop.xlane.xlu0 %1104 }
 0x53a   : > { %v1426_v28 = vpop.f32.mrf.mxu3 }
 0x53c   : > { %v4369_v5 = vpop.eup %3128 }
 0x53d   : > { %v4371_v48 = vpop.eup %3130 }
 0x53e   : > { %1178 = vadd.xlane.f32.xlu0 %v4369_v5  ;;  %1180 = vadd.xlane.f32.xlu2 %v4371_v48 }
 0x541   : > { %v1155_v7 = vpop.xlane.xlu0 %1154 }
 0x542   : > { %3132 = vrcp.f32 %v1155_v7  ;;  %v1429_v6 = vpop.f32.mrf.mxu3  ;;  %v4383_v7 = vpop.xlane.xlu2 %1102 }
 0x546   : > { %1612 = vrot.lane.b32.xlu1 %v3860_v25, %s3376_s27 }
 0x548   : > { %v3133_v61 = vpop.eup %3132 }
 0x549   : > { %v1157_v2 = vpop.xlane.xlu0 %1156  ;;  %v1202_v34 = vmul.f32 %v3133_v61, %v4305_v15  ;;  %v4389_v15 = vsel %vm863_vm6, %v1424_v16, -1e+30 }
 0x54a   : > { %3134 = vrcp.f32 %v1157_v2  ;;  %v1431_v10 = vpop.f32.mrf.mxu3  ;;  %v1495_v2 = vsub.f32 %v4221_v23, %v4326_v24 }
 0x54c   : > { %v1514_v41 = vmul.f32 1.442695, %v1495_v2 }
 0x54e   : > { %3136 = vpow2.f32 %v1514_v41  ;;  %v4405_v41 = vsel %vm863_vm6, %v1426_v28, -1e+30 }
 0x550   : > { %v3135_v57 = vpop.eup %3134 }
 0x551   : > { %v1203_v11 = vmul.f32 %v3135_v57, %v4310_v38  ;;  %v1494_v38 = vsub.f32 %v4217_v32, %v4328_v35 }
 0x552   : > { %2231 = vrot.lane.b32.xlu0 %v3839_v50, %s3377_s28  ;;  %v1434_v4 = vpop.f32.mrf.mxu3 }
 0x553   : > { %v1218_v9 = vpack.c.bf16 %v1203_v11, %v1202_v34  ;;  %v1512_v57 = vmul.f32 1.442695, %v1494_v38 }
 0x554   : > { %v4398_v24 = vpop.eup %3136 }
 0x555   : > { %1258 = vmatmul.bf16.vlgmr.msrb.gmra.mxu0 %v1218_v9 }
 0x556   : > { %1780 = vrot.lane.b32.xlu2 %v3839_v50, %s3375_s23  ;;  %v1496_v50 = vsub.f32 %v4239_v17, %v4335_v58  ;;  %v1497_v17 = vsub.f32 %v4243_v20, %v4337_v36  ;;  %v4422_v20 = vsel %vm863_vm6, %v1429_v6, -1e+30  ;;  %v1498_v36 = vsub.f32 %v4255_v39, %v4345_v49 }
 0x557   : > { %v1499_v6 = vsub.f32 %v4269_v55, %v4349_v44  ;;  %v1121_v39 = vsub.f32 %v4301_v62, %v4367_v3  ;;  %v4448_v55 = vsel %vm863_vm6, %v1434_v4, -1e+30  ;;  %v4454_v62 = vsel %vm863_vm6, %v4186_v40, -1e+30 }
 0x558   : > { %v1516_v23 = vmul.f32 1.442695, %v1496_v50  ;;  %v1518_v50 = vmul.f32 1.442695, %v1497_v17 }
 0x559   : > { %v1522_v49 = vmul.f32 1.442695, %v1499_v6  ;;  %v1152_v44 = vmul.f32 1.442695, %v1121_v39 }
 0x55a   : > { %v1436_v12 = vpop.f32.mrf.mxu3 }
 0x562   : > { %v4400_v11 = vpop.f32.mrf.mxu3 }
 0x568   : > { %v4393_v61 = vpop.xlane.xlu2 %1540 }
 0x570   : > { %1476 = vmax.xlane.f32.xlu1 %v4389_v15  ;;  %v1161_v34 = vpop.xlane.xlu1 %1160 }
 0x571   : > { %3138 = vrcp.f32 %v1161_v34  ;;  %v4415_v2 = vpop.xlane.xlu0 %1542  ;;  %v1441_v34 = vpop.f32.mrf.mxu3 }
 0x572   : > { %3140 = vpow2.f32 %v1512_v57  ;;  %v4484_v6 = vsel %vm863_vm6, %v1441_v34, -1e+30 }
 0x577   : > { %v3139_v32 = vpop.eup %3138 }
 0x578   : > { %v1159_v16 = vpop.xlane.xlu2 %1158  ;;  %1546 = vadd.xlane.f32.xlu1 %v4398_v24  ;;  %v4410_v35 = vpop.eup %3140  ;;  %v1205_v28 = vmul.f32 %v3139_v32, %v4320_v60  ;;  %v4434_v60 = vsel %vm863_vm6, %v1436_v12, -1e+30 }
 0x579   : > { %3142 = vrcp.f32 %v1159_v16  ;;  %v1520_v16 = vmul.f32 1.442695, %v1498_v36  ;;  %v4444_v12 = vpop.f32.mrf.mxu3 }
 0x57a   : > { %3144 = vpow2.f32 %v1516_v23 }
 0x57b   : > { %3146 = vpow2.f32 %v1518_v50  ;;  %v1120_v50 = vsub.f32 %v4261_v1, %v4383_v7  ;;  %v4479_v7 = vsel %vm863_vm6, %v4400_v11, -1e+30 }
 0x57c   : > { %1478 = vmax.xlane.f32.xlu0 %v4405_v41 }
 0x57d   : > { %v1150_v36 = vmul.f32 1.442695, %v1120_v50 }
 0x57f   : > { %v3143_v58 = vpop.eup %3142  ;;  %1544 = vadd.xlane.f32.xlu2 %v4410_v35 }
 0x580   : > { %v4413_v9 = vpop.eup %3144  ;;  %v1204_v38 = vmul.f32 %v3143_v58, %v4330_v19  ;;  %v4429_v19 = vsel %vm863_vm6, %v1431_v10, -1e+30 }
 0x581   : > { %1548 = vadd.xlane.f32.xlu1 %v4413_v9  ;;  %v4441_v10 = vpop.eup %3146  ;;  %v2308_v40 = vpop.f32.mrf.mxu3 }
 0x582   : > { %v1219_v57 = vpack.c.bf16 %v1205_v28, %v1204_v38  ;;  %v4494_v39 = vsel %vm863_vm6, %v2308_v40, -1e+30 }
 0x584   : > { %1480 = vmax.xlane.f32.xlu0 %v4422_v20  ;;  %1263 = vmatmul.bf16.gmra.mxu0 %v1219_v57 }
 0x587   : > { %1482 = vmax.xlane.f32.xlu2 %v4429_v19 }
 0x588   : > { %v1163_v23 = vpop.xlane.xlu0 %1162 }
 0x589   : > { %1486 = vmax.xlane.f32.xlu1 %v4434_v60  ;;  %3148 = vrcp.f32 %v1163_v23  ;;  %v1165_v32 = vpop.xlane.xlu2 %1164  ;;  %v4486_v23 = vpop.f32.mrf.mxu3 }
 0x58a   : > { %3150 = vrcp.f32 %v1165_v32 }
 0x58b   : > { %3152 = vpow2.f32 %v1520_v16 }
 0x58c   : > { %1550 = vadd.xlane.f32.xlu0 %v4441_v10  ;;  %3154 = vpow2.f32 %v1522_v49 }
 0x58d   : > { %3156 = vpow2.f32 %v1152_v44 }
 0x58e   : > { %3158 = vpow2.f32 %v1150_v36 }
 0x58f   : > { %v3149_v17 = vpop.eup %3148  ;;  %1484 = vmax.xlane.f32.xlu2 %v4448_v55 }
 0x590   : > { %v3151_v58 = vpop.eup %3150  ;;  %v1206_v3 = vmul.f32 %v3149_v17, %v4339_v52 }
 0x591   : > { %1086 = vmax.xlane.f32.xlu1 %v4454_v62  ;;  %v1207_v38 = vmul.f32 %v3151_v58, %v4341_v26  ;;  %v4459_v4 = vpop.eup %3152  ;;  %v4473_v26 = vsel %vm863_vm6, %v4189_v42, -1e+30  ;;  %v2313_v17 = vpop.f32.mrf.mxu3 }
 0x592   : > { %v4464_v57 = vpop.eup %3154 }
 0x593   : > { %v1220_v28 = vpack.c.bf16 %v1207_v38, %v1206_v3  ;;  %v4467_v52 = vpop.eup %3156  ;;  %v4502_v38 = vsel %vm863_vm6, %v2313_v17, -1e+30 }
 0x594   : > { %1552 = vadd.xlane.f32.xlu0 %v4459_v4  ;;  %v4489_v16 = vpop.eup %3158 }
 0x595   : > { %1268 = vmatmul.bf16.gmra.mxu0 %v1220_v28 }
 0x597   : > { %1554 = vadd.xlane.f32.xlu2 %v4464_v57 }
 0x598   : > { %v1173_v1 = vpop.xlane.xlu2 %1172 }
 0x599   : > { %1184 = vadd.xlane.f32.xlu1 %v4467_v52  ;;  %3160 = vrcp.f32 %v1173_v1  ;;  %v2316_v50 = vpop.f32.mrf.mxu3 }
 0x59c   : > { %1088 = vmax.xlane.f32.xlu0 %v4473_v26 }
 0x59f   : > { %1488 = vmax.xlane.f32.xlu2 %v4479_v7  ;;  %v3161_v32 = vpop.eup %3160 }
 0x5a0   : > { %v1171_v42 = vpop.xlane.xlu1 %1170  ;;  %v1211_v49 = vmul.f32 %v3161_v32, %v4351_v14 }
 0x5a1   : > { %1490 = vmax.xlane.f32.xlu1 %v4484_v6  ;;  %3162 = vrcp.f32 %v1171_v42  ;;  %v4511_v42 = vsel %vm863_vm6, %v2316_v50, -1e+30 }
 0x5a2   : > { %3164 = vrcp.f32 %v4415_v2 }
 0x5a4   : > { %1182 = vadd.xlane.f32.xlu0 %v4489_v16 }
 0x5a7   : > { %v3163_v11 = vpop.eup %3162 }
 0x5a8   : > { %v1210_v34 = vmul.f32 %v3163_v11, %v4356_v8  ;;  %v1177_v44 = vpop.xlane.xlu2 %1176  ;;  %v3165_v8 = vpop.eup %3164 }
 0x5a9   : > { %2364 = vmax.xlane.f32.xlu1 %v4494_v39  ;;  %v1175_v58 = vpop.xlane.xlu0 %1174  ;;  %3166 = vrcp.f32 %v1177_v44  ;;  %v1589_v36 = vmul.f32 %v3165_v8, %v4322_v21 }
 0x5aa   : > { %v1222_v3 = vpack.c.bf16 %v1211_v49, %v1210_v34  ;;  %3168 = vrcp.f32 %v1175_v58 }
 0x5ab   : > { %3170 = vrcp.f32 %v4393_v61 }
 0x5ac   : > { %1278 = vmatmul.bf16.vlgmr.msra.gmra.mxu2 %v1222_v3 }
 0x5af   : > { %v3167_v28 = vpop.eup %3166 }
 0x5b0   : > { %v3169_v14 = vpop.eup %3168  ;;  %v1213_v1 = vmul.f32 %v3167_v28, %v4361_v63 }
 0x5b1   : > { %2368 = vmax.xlane.f32.xlu1 %v4502_v38  ;;  %v3171_v40 = vpop.eup %3170  ;;  %v1212_v2 = vmul.f32 %v3169_v14, %v4363_v45  ;;  %v1179_v11 = vpop.xlane.xlu0 %1178 }
 0x5b2   : > { %v1588_v32 = vmul.f32 %v3171_v40, %v4316_v30  ;;  %v1181_v34 = vpop.xlane.xlu2 %1180  ;;  %3172 = vrcp.f32 %v1179_v11 }
 0x5b3   : > { %v1223_v49 = vpack.c.bf16 %v1213_v1, %v1212_v2  ;;  %3174 = vrcp.f32 %v1181_v34 }
 0x5b4   : > { %v1604_v44 = vpack.c.bf16 %v1589_v36, %v1588_v32 }
 0x5b8   : > { %v1613_v61 = vpop.permute.xlu1 %1612  ;;  %v3173_v21 = vpop.eup %3172 }
 0x5b9   : > { %2370 = vmax.xlane.f32.xlu1 %v4511_v42  ;;  %1643 = vmatpush.bf16.msra.mxu0 %v1613_v61  ;;  %v3175_v63 = vpop.eup %3174  ;;  %v1214_v17 = vmul.f32 %v3173_v21, %v4369_v5 }
 0x5ba   : > { %v1215_v30 = vmul.f32 %v3175_v63, %v4371_v48  ;;  %v4527_v14 = vpop.permute.xlu2 %1780 }
 0x5bc   : > { %1283 = vmatmul.bf16.gmra.mxu2 %v1223_v49  ;;  %1644 = vmatmul.bf16.vlgmr.msra.gmra.mxu0 %v1604_v44  ;;  %v1224_v58 = vpack.c.bf16 %v1215_v30, %v1214_v17 }
 0x5c4   : > { %v2232_v45 = vpop.permute.xlu0 %2231 }
 0x5c5   : > { %2961 = vmatmul.msk.bf16.gmra.mxu3 %vm960_vm5, %v2232_v45 }
 0x5cc   : > { %1288 = vmatmul.bf16.gmra.mxu2 %v1224_v58 }
 0x5d2   : > { %2528 = vrot.lane.b32.xlu1 %v3835_v51, %s3378_s29  ;;  %v1259_v3 = vpop.f32.mrf.mxu0 }
 0x5d3   : > { %1299 = vst.msk [vmem:[#allocation2] sm:$0xff] %vm960_vm5, %v1259_v3 }
 0x5da   : > { %2526 = vrot.lane.b32.xlu1 %v3819_v53, %s3378_s29  ;;  %v1261_v8 = vpop.f32.mrf.mxu0 }
 0x5db   : > { %1300 = vst.msk [vmem:[#allocation2 + $0x8] sm:$0xff] %vm960_vm5, %v1261_v8 }
 0x5e2   : > { %2073 = vrot.lane.b32.xlu1 %v3803_v56, %s3379_s30 }
 0x5e3   : > { %v1477_v5 = vpop.xlane.xlu1 %1476 }
 0x5e4   : > { %v1500_v48 = vsub.f32 %v4389_v15, %v1477_v5 }
 0x5e6   : > { %v1524_v28 = vmul.f32 1.442695, %v1500_v48 }
 0x5e8   : > { %3176 = vpow2.f32 %v1524_v28 }
 0x5ea   : > { %2524 = vrot.lane.b32.xlu1 %v3803_v56, %s3378_s29 }
 0x5eb   : > { %v1547_v50 = vpop.xlane.xlu1 %1546 }
 0x5ec   : > { %3178 = vrcp.f32 %v1547_v50 }
 0x5ee   : > { %v4531_v40 = vpop.eup %3176 }
 0x5ef   : > { %v1479_v36 = vpop.xlane.xlu0 %1478  ;;  %1556 = vadd.xlane.f32.xlu0 %v4531_v40 }
 0x5f0   : > { %v1501_v2 = vsub.f32 %v4405_v41, %v1479_v36 }
 0x5f2   : > { %v1526_v1 = vmul.f32 1.442695, %v1501_v2  ;;  %2522 = vrot.lane.b32.xlu1 %v3845_v43, %s3378_s29  ;;  %v1545_v15 = vpop.xlane.xlu2 %1544  ;;  %v3179_v61 = vpop.eup %3178 }
 0x5f3   : > { %3180 = vrcp.f32 %v1545_v15  ;;  %v1591_v63 = vmul.f32 %v3179_v61, %v4398_v24  ;;  %v2318_v15 = vpop.f32.mrf.mxu3 }
 0x5f4   : > { %3182 = vpow2.f32 %v1526_v1  ;;  %v1549_v32 = vpop.xlane.xlu1 %1548 }
 0x5f7   : > { %v1481_v11 = vpop.xlane.xlu0 %1480 }
 0x5f8   : > { %v1502_v56 = vsub.f32 %v4422_v20, %v1481_v11 }
 0x5f9   : > { %v3181_v34 = vpop.eup %3180 }
 0x5fa   : > { %v4538_v49 = vpop.eup %3182  ;;  %v1528_v44 = vmul.f32 1.442695, %v1502_v56  ;;  %2069 = vrot.lane.b32.xlu1 %v3828_v54, %s3379_s30  ;;  %v1483_v41 = vpop.xlane.xlu2 %1482  ;;  %v1590_v21 = vmul.f32 %v3181_v34, %v4410_v35  ;;  %v4551_v35 = vsel %vm863_vm6, %v4444_v12, -1e+30 }
 0x5fb   : > { %1558 = vadd.xlane.f32.xlu2 %v4538_v49  ;;  %v1503_v45 = vsub.f32 %v4429_v19, %v1483_v41 }
 0x5fc   : > { %3184 = vpow2.f32 %v1528_v44  ;;  %v1605_v17 = vpack.c.bf16 %v1591_v63, %v1590_v21  ;;  %v1487_v20 = vpop.xlane.xlu1 %1486 }
 0x5fd   : > { %v1530_v58 = vmul.f32 1.442695, %v1503_v45  ;;  %v4579_v45 = vpop.f32.mrf.mxu3 }
 0x5fe   : > { %1649 = vmatmul.bf16.gmra.mxu0 %v1605_v17 }
 0x5ff   : > { %v1551_v30 = vpop.xlane.xlu0 %1550 }
 0x600   : > { %3186 = vrcp.f32 %v1551_v30 }
 0x601   : > { %3188 = vrcp.f32 %v1549_v32  ;;  %v1264_v3 = vpop.f32.mrf.mxu0  ;;  %v1505_v32 = vsub.f32 %v4434_v60, %v1487_v20 }
 0x602   : > { %v4546_v8 = vpop.eup %3184  ;;  %v1485_v24 = vpop.xlane.xlu2 %1484  ;;  %1301 = vst.msk [vmem:[#allocation2 + $0x10] sm:$0xff] %vm960_vm5, %v1264_v3  ;;  %3190 = vpow2.f32 %v1530_v58 }
 0x603   : > { %v1504_v19 = vsub.f32 %v4448_v55, %v1485_v24  ;;  %2362 = vmax.xlane.f32.xlu2 %v4551_v35  ;;  %1560 = vadd.xlane.f32.xlu0 %v4546_v8  ;;  %v1534_v44 = vmul.f32 1.442695, %v1505_v32 }
 0x604   : > { %v1087_v2 = vpop.xlane.xlu1 %1086 }
 0x605   : > { %v1532_v5 = vmul.f32 1.442695, %v1504_v19 }
 0x606   : > { %v3187_v48 = vpop.eup %3186 }
 0x607   : > { %v3189_v28 = vpop.eup %3188  ;;  %3192 = vpow2.f32 %v1532_v5  ;;  %v1553_v50 = vpop.xlane.xlu0 %1552  ;;  %v1593_v36 = vmul.f32 %v3187_v48, %v4441_v10  ;;  %v1112_v10 = vsub.f32 %v4454_v62, %v1087_v2  ;;  %v4577_v62 = vsel %vm863_vm6, %v2318_v15, -1e+30 }
 0x608   : > { %v4558_v1 = vpop.eup %3190  ;;  %v1592_v55 = vmul.f32 %v3189_v28, %v4413_v9  ;;  %v4571_v9 = vsel %vm863_vm6, %v4486_v23, -1e+30 }
 0x609   : > { %v1266_v12 = vpop.f32.mrf.mxu0  ;;  %v1134_v60 = vmul.f32 1.442695, %v1112_v10 }
 0x60a   : > { %1302 = vst.msk [vmem:[#allocation2 + $0x18] sm:$0xff] %vm960_vm5, %v1266_v12  ;;  %v1555_v61 = vpop.xlane.xlu2 %1554  ;;  %v1606_v11 = vpack.c.bf16 %v1593_v36, %v1592_v55 }
 0x60b   : > { %1562 = vadd.xlane.f32.xlu2 %v4558_v1  ;;  %3194 = vrcp.f32 %v1555_v61 }
 0x60c   : > { %3196 = vrcp.f32 %v1553_v50  ;;  %v1185_v21 = vpop.xlane.xlu1 %1184 }
 0x60d   : > { %v4564_v56 = vpop.eup %3192  ;;  %3198 = vpow2.f32 %v1534_v44 }
 0x60e   : > { %1564 = vadd.xlane.f32.xlu0 %v4564_v56  ;;  %1654 = vmatmul.bf16.gmra.mxu0 %v1606_v11  ;;  %3200 = vrcp.f32 %v1185_v21  ;;  %v4639_v21 = vsel %vm863_vm6, %v4579_v45, -1e+30 }
 0x60f   : > { %v1089_v34 = vpop.xlane.xlu0 %1088  ;;  %3202 = vpow2.f32 %v1134_v60 }
 0x610   : > { %v1113_v17 = vsub.f32 %v4473_v26, %v1089_v34 }
 0x611   : > { %v3195_v63 = vpop.eup %3194 }
 0x612   : > { %v1269_v41 = vpop.f32.mrf.mxu0  ;;  %v3197_v23 = vpop.eup %3196  ;;  %v1595_v30 = vmul.f32 %v3195_v63, %v4464_v57  ;;  %v1136_v19 = vmul.f32 1.442695, %v1113_v17 }
 0x613   : > { %1303 = vst.msk [vmem:[#allocation2 + $0x20] sm:$0xff] %vm960_vm5, %v1269_v41  ;;  %2366 = vmax.xlane.f32.xlu2 %v4571_v9  ;;  %v4584_v58 = vpop.eup %3198  ;;  %v1594_v24 = vmul.f32 %v3197_v23, %v4459_v4  ;;  %v2323_v4 = vpop.f32.mrf.mxu3 }
 0x614   : > { %v3201_v5 = vpop.eup %3200  ;;  %v1491_v26 = vpop.xlane.xlu1 %1490  ;;  %v4596_v12 = vsel %vm863_vm6, %v2323_v4, -1e+30 }
 0x615   : > { %v1607_v48 = vpack.c.bf16 %v1595_v30, %v1594_v24  ;;  %v4589_v28 = vpop.eup %3202  ;;  %v1217_v36 = vmul.f32 %v3201_v5, %v4467_v52  ;;  %v1489_v10 = vpop.xlane.xlu2 %1488  ;;  %v1507_v63 = vsub.f32 %v4484_v6, %v1491_v26 }
 0x616   : > { %2372 = vmax.xlane.f32.xlu0 %v4577_v62  ;;  %v1506_v34 = vsub.f32 %v4479_v7, %v1489_v10 }
 0x617   : > { %v1183_v20 = vpop.xlane.xlu0 %1182  ;;  %v1538_v17 = vmul.f32 1.442695, %v1507_v63 }
 0x618   : > { %3204 = vrcp.f32 %v1183_v20  ;;  %v1536_v41 = vmul.f32 1.442695, %v1506_v34 }
 0x619   : > { %3206 = vpow2.f32 %v1136_v19 }
 0x61a   : > { %v1271_v3 = vpop.f32.mrf.mxu0  ;;  %3208 = vpow2.f32 %v1536_v41 }
 0x61b   : > { %1304 = vst.msk [vmem:[#allocation2 + $0x28] sm:$0xff] %vm960_vm5, %v1271_v3  ;;  %1566 = vadd.xlane.f32.xlu2 %v4584_v58 }
 0x61c   : > { %v4602_v15 = vpop.xlane.xlu1 %2364 }
 0x61e   : > { %v3205_v50 = vpop.eup %3204  ;;  %1659 = vmatmul.bf16.gmra.mxu0 %v1607_v48  ;;  %1166 = vadd.xlane.f32.xlu0 %v4589_v28 }
 0x61f   : > { %v1216_v57 = vmul.f32 %v3205_v50, %v4489_v16  ;;  %v4599_v55 = vpop.eup %3206  ;;  %v2395_v50 = vsub.f32 %v4494_v39, %v4602_v15 }
 0x620   : > { %v4633_v60 = vpop.eup %3208 }
 0x621   : > { %v1225_v2 = vpack.c.bf16 %v1217_v36, %v1216_v57 }
 0x623   : > { %1293 = vmatmul.bf16.gmra.mxu2 %v1225_v2 }
 0x624   : > { %2376 = vmax.xlane.f32.xlu1 %v4596_v12  ;;  %v4605_v16 = vpop.xlane.xlu1 %2368 }
 0x626   : > { %1168 = vadd.xlane.f32.xlu0 %v4599_v55 }
 0x62c   : > { %v4614_v61 = vpop.xlane.xlu1 %2370 }
 0x62f   : > { %v1279_v32 = vpop.f32.mrf.mxu2 }
 0x630   : > { %1307 = vst.msk [vmem:[#allocation2 + $0x40] sm:$0xff] %vm960_vm5, %v1279_v32 }
 0x633   : > { %2077 = vrot.lane.b32.xlu2 %v3835_v51, %s3379_s30  ;;  %2946 = vmatmul.msk.bf16.vlgmr.msrb.gmra.mxu2 %vm960_vm5, %v4039_v13 }
 0x637   : > { %v1281_v52 = vpop.f32.mrf.mxu2 }
 0x638   : > { %1308 = vst.msk [vmem:[#allocation2 + $0x48] sm:$0xff] %vm960_vm5, %v1281_v52 }
 0x63a   : > { %2075 = vrot.lane.b32.xlu0 %v3819_v53, %s3379_s30 }
 0x63f   : > { %v1284_v11 = vpop.f32.mrf.mxu2 }
 0x640   : > { %1309 = vst.msk [vmem:[#allocation2 + $0x50] sm:$0xff] %vm960_vm5, %v1284_v11 }
 0x642   : > { %2071 = vrot.lane.b32.xlu0 %v3845_v43, %s3379_s30 }
 0x643   : > { %2947 = vmatmul.msk.bf16.gmra.mxu2 %vm960_vm5, %v4125_v27 }
 0x644   : > { %v2529_v51 = vpop.permute.xlu1 %2528 }
 0x645   : > { %2538 = vmatpush.bf16.msrb.mxu0 %v2529_v51 }
 0x647   : > { %v1286_v13 = vpop.f32.mrf.mxu2 }
 0x648   : > { %1310 = vst.msk [vmem:[#allocation2 + $0x58] sm:$0xff] %vm960_vm5, %v1286_v13 }
 0x64a   : > { %2067 = vrot.lane.b32.xlu0 %v3851_v46, %s3379_s30 }
 0x64c   : > { %v2527_v53 = vpop.permute.xlu1 %2526 }
 0x64d   : > { %2539 = vmatpush.bf16.msrb.mxu0 %v2527_v53 }
 0x64f   : > { %v1289_v44 = vpop.f32.mrf.mxu2 }
 0x650   : > { %1311 = vst.msk [vmem:[#allocation2 + $0x60] sm:$0xff] %vm960_vm5, %v1289_v44 }
 0x652   : > { %2518 = vrot.lane.b32.xlu0 %v3851_v46, %s3378_s29 }
 0x653   : > { %2948 = vmatmul.msk.bf16.gmra.mxu2 %vm960_vm5, %v4029_v59 }
 0x654   : > { %v4630_v43 = vpop.permute.xlu1 %2073 }
 0x657   : > { %v1291_v27 = vpop.f32.mrf.mxu2 }
 0x658   : > { %1312 = vst.msk [vmem:[#allocation2 + $0x68] sm:$0xff] %vm960_vm5, %v1291_v27 }
 0x65c   : > { %1568 = vadd.xlane.f32.xlu2 %v4633_v60  ;;  %v2525_v7 = vpop.permute.xlu1 %2524 }
 0x65d   : > { %2540 = vmatpush.bf16.msrb.mxu0 %v2525_v7 }
 0x662   : > { %v1557_v59 = vpop.xlane.xlu0 %1556 }
 0x663   : > { %2949 = vmatmul.msk.bf16.gmra.mxu2 %vm960_vm5, %v4142_v37  ;;  %3210 = vrcp.f32 %v1557_v59 }
 0x664   : > { %2374 = vmax.xlane.f32.xlu2 %v4639_v21  ;;  %v2523_v46 = vpop.permute.xlu1 %2522 }
 0x665   : > { %2541 = vmatpush.bf16.msrb.mxu0 %v2523_v46 }
 0x669   : > { %v3211_v20 = vpop.eup %3210 }
 0x66a   : > { %v1596_v37 = vmul.f32 %v3211_v20, %v4531_v40  ;;  %v2412_v40 = vmul.f32 1.442695, %v2395_v50 }
 0x66c   : > { %v2070_v59 = vpop.permute.xlu1 %2069 }
 0x66e   : > { %v1559_v23 = vpop.xlane.xlu2 %1558 }
 0x66f   : > { %3212 = vrcp.f32 %v1559_v23 }
 0x670   : > { %3214 = vpow2.f32 %v1538_v17 }
 0x673   : > { %2950 = vmatmul.msk.bf16.gmra.mxu2 %vm960_vm5, %v4037_v33 }
 0x675   : > { %v3213_v45 = vpop.eup %3212 }
 0x676   : > { %v2363_v30 = vpop.xlane.xlu2 %2362  ;;  %v1597_v3 = vmul.f32 %v3213_v45, %v4538_v49  ;;  %v1561_v6 = vpop.xlane.xlu0 %1560 }
 0x677   : > { %v2394_v24 = vsub.f32 %v4551_v35, %v2363_v30  ;;  %v4650_v48 = vpop.eup %3214 }
 0x678   : > { %v1608_v19 = vpack.c.bf16 %v1597_v3, %v1596_v37 }
 0x679   : > { %v2410_v5 = vmul.f32 1.442695, %v2394_v24 }
 0x67a   : > { %1664 = vmatmul.bf16.gmra.mxu0 %v1608_v19 }
 0x67b   : > { %3216 = vpow2.f32 %v2410_v5 }
 0x67c   : > { %2520 = vrot.lane.b32.xlu2 %v3828_v54, %s3378_s29  ;;  %1570 = vadd.xlane.f32.xlu0 %v4650_v48  ;;  %3218 = vrcp.f32 %v1561_v6 }
 0x67e   : > { %v1563_v33 = vpop.xlane.xlu2 %1562 }
 0x67f   : > { %3220 = vrcp.f32 %v1563_v33 }
 0x680   : > { %3222 = vpow2.f32 %v2412_v40 }
 0x681   : > { %v4657_v49 = vpop.eup %3216  ;;  %v1565_v35 = vpop.xlane.xlu0 %1564 }
 0x682   : > { %2442 = vadd.xlane.f32.xlu1 %v4657_v49  ;;  %v3219_v26 = vpop.eup %3218  ;;  %3224 = vrcp.f32 %v1565_v35 }
 0x683   : > { %2951 = vmatmul.msk.bf16.gmra.mxu2 %vm960_vm5, %v4148_v18  ;;  %v1598_v57 = vmul.f32 %v3219_v26, %v4546_v8 }
 0x684   : > { %2063 = vrot.lane.b32.xlu2 %v3860_v25, %s3379_s30 }
 0x685   : > { %v3221_v54 = vpop.eup %3220 }
 0x686   : > { %v4664_v39 = vpop.xlane.xlu2 %2366  ;;  %v1599_v36 = vmul.f32 %v3221_v54, %v4558_v1  ;;  %v4668_v2 = vpop.eup %3222 }
 0x688   : > { %v1609_v4 = vpack.c.bf16 %v1599_v36, %v1598_v57  ;;  %v3225_v52 = vpop.eup %3224 }
 0x689   : > { %v4670_v15 = vpop.xlane.xlu0 %2372  ;;  %v1600_v1 = vmul.f32 %v3225_v52, %v4564_v56 }
 0x68a   : > { %1669 = vmatmul.bf16.gmra.mxu0 %v1609_v4  ;;  %2444 = vadd.xlane.f32.xlu1 %v4668_v2  ;;  %v2396_v4 = vsub.f32 %v4571_v9, %v4664_v39 }
 0x68e   : > { %v1567_v18 = vpop.xlane.xlu2 %1566 }
 0x68f   : > { %3226 = vrcp.f32 %v1567_v18 }
 0x691   : > { %v1167_v32 = vpop.xlane.xlu0 %1166 }
 0x692   : > { %3228 = vrcp.f32 %v1167_v32  ;;  %v2414_v32 = vmul.f32 1.442695, %v2396_v4 }
 0x693   : > { %2952 = vmatmul.msk.bf16.gmra.mxu2 %vm960_vm5, %v4080_v29 }
 0x695   : > { %v3227_v11 = vpop.eup %3226 }
 0x696   : > { %v2078_v8 = vpop.permute.xlu2 %2077  ;;  %v1601_v51 = vmul.f32 %v3227_v11, %v4584_v58  ;;  %v2326_v58 = vpop.f32.mrf.mxu3 }
 0x697   : > { %2087 = vmatpush.bf16.msra.mxu1 %v2078_v8  ;;  %v4684_v27 = vsel %vm863_vm6, %v2326_v58, -1e+30  ;;  %v4736_v9 = vpop.xlane.xlu1 %2376 }
 0x698   : > { %v1610_v13 = vpack.c.bf16 %v1601_v51, %v1600_v1  ;;  %v3229_v53 = vpop.eup %3228 }
 0x699   : > { %v1169_v10 = vpop.xlane.xlu0 %1168  ;;  %v1208_v44 = vmul.f32 %v3229_v53, %v4589_v28 }
 0x69a   : > { %3230 = vrcp.f32 %v1169_v10  ;;  %1674 = vmatmul.bf16.gmra.mxu0 %v1610_v13 }
 0x69e   : > { %v2328_v36 = vpop.f32.mrf.mxu3 }
 0x69f   : > { %v4723_v18 = vsel %vm863_vm6, %v2328_v36, -1e+30 }
 0x6a0   : > { %v3231_v34 = vpop.eup %3230 }
 0x6a1   : > { %v1209_v41 = vmul.f32 %v3231_v34, %v4599_v55 }
 0x6a3   : > { %2953 = vmatmul.msk.bf16.gmra.mxu2 %vm960_vm5, %v4527_v14  ;;  %v1221_v29 = vpack.c.bf16 %v1209_v41, %v1208_v44 }
 0x6a5   : > { %1273 = vmatmul.bf16.vlgmr.msrb.gmra.mxu1 %v1221_v29 }
 0x6a6   : > { %v1294_v56 = vpop.f32.mrf.mxu2 }
 0x6a7   : > { %1313 = vst.msk [vmem:[#allocation2 + $0x70] sm:$0xff] %vm960_vm5, %v1294_v56 }
 0x6ac   : > { %v2076_v7 = vpop.permute.xlu0 %2075 }
 0x6ad   : > { %2378 = vmax.xlane.f32.xlu2 %v4684_v27  ;;  %2088 = vmatpush.bf16.msra.mxu1 %v2076_v7 }
 0x6ae   : > { %v1296_v28 = vpop.f32.mrf.mxu2 }
 0x6af   : > { %1314 = vst.msk [vmem:[#allocation2 + $0x78] sm:$0xff] %vm960_vm5, %v1296_v28 }
 0x6b1   : > { %2089 = vmatpush.bf16.msra.mxu1 %v4630_v43 }
 0x6b4   : > { %v2072_v14 = vpop.permute.xlu0 %2071 }
 0x6b5   : > { %2090 = vmatpush.bf16.msra.mxu1 %v2072_v14  ;;  %v2397_v14 = vsub.f32 %v4502_v38, %v4605_v16  ;;  %v2399_v16 = vsub.f32 %v4577_v62, %v4670_v15 }
 0x6b6   : > { %v1855_v55 = vpop.f32.mrf.mxu2 }
 0x6b7   : > { %v4691_v46 = vsel %vm863_vm6, %v1855_v55, -1e+30  ;;  %v2416_v55 = vmul.f32 1.442695, %v2397_v14 }
 0x6b8   : > { %1911 = vmax.xlane.f32.xlu1 %v4691_v46 }
 0x6b9   : > { %2091 = vmatpush.bf16.msra.mxu1 %v2070_v59 }
 0x6bc   : > { %v2068_v63 = vpop.permute.xlu0 %2067 }
 0x6bd   : > { %2092 = vmatpush.bf16.msra.mxu1 %v2068_v63 }
 0x6be   : > { %v1857_v23 = vpop.f32.mrf.mxu2 }
 0x6bf   : > { %v4696_v17 = vsel %vm863_vm6, %v1857_v23, -1e+30 }
 0x6c0   : > { %1913 = vmax.xlane.f32.xlu0 %v4696_v17 }
 0x6c4   : > { %v2519_v5 = vpop.permute.xlu0 %2518 }
 0x6c6   : > { %v1860_v43 = vpop.f32.mrf.mxu2 }
 0x6c7   : > { %v4701_v20 = vsel %vm863_vm6, %v1860_v43, -1e+30 }
 0x6c8   : > { %1915 = vmax.xlane.f32.xlu1 %v4701_v20 }
 0x6ce   : > { %v1862_v45 = vpop.f32.mrf.mxu2 }
 0x6cf   : > { %v1569_v30 = vpop.xlane.xlu2 %1568 }
 0x6d0   : > { %3232 = vrcp.f32 %v1569_v30 }
 0x6d4   : > { %2516 = vrot.lane.b32.xlu0 %v3870_v31, %s3378_s29 }
 0x6d6   : > { %v1865_v37 = vpop.f32.mrf.mxu2  ;;  %v3233_v40 = vpop.eup %3232 }
 0x6d7   : > { %v4706_v3 = vpop.xlane.xlu2 %2374  ;;  %v1602_v26 = vmul.f32 %v3233_v40, %v4633_v60  ;;  %v4728_v52 = vsel %vm863_vm6, %v1865_v37, -1e+30 }
 0x6dc   : > { %2514 = vrot.lane.b32.xlu0 %v3860_v25, %s3378_s29 }
 0x6de   : > { %v1867_v24 = vpop.f32.mrf.mxu2 }
 0x6df   : > { %v2521_v19 = vpop.permute.xlu2 %2520  ;;  %v4743_v8 = vsel %vm863_vm6, %v1867_v24, -1e+30 }
 0x6e0   : > { %2542 = vmatpush.bf16.msrb.mxu0 %v2521_v19  ;;  %v2420_v19 = vmul.f32 1.442695, %v2399_v16 }
 0x6e1   : > { %2065 = vrot.lane.b32.xlu1 %v3870_v31, %s3379_s30 }
 0x6e4   : > { %2543 = vmatpush.bf16.msrb.mxu0 %v2519_v5 }
 0x6e6   : > { %v1870_v6 = vpop.f32.mrf.mxu2 }
 0x6e7   : > { %v4714_v50 = vsel %vm863_vm6, %v1870_v6, -1e+30 }
 0x6e8   : > { %1923 = vmax.xlane.f32.xlu2 %v4714_v50 }
 0x6ee   : > { %v1872_v35 = vpop.f32.mrf.mxu2 }
 0x6ef   : > { %v1571_v33 = vpop.xlane.xlu0 %1570  ;;  %v4753_v13 = vsel %vm863_vm6, %v1872_v35, -1e+30 }
 0x6f0   : > { %3234 = vrcp.f32 %v1571_v33 }
 0x6f1   : > { %3236 = vpow2.f32 %v2414_v32 }
 0x6f5   : > { %v2443_v1 = vpop.xlane.xlu1 %2442 }
 0x6f6   : > { %v3235_v25 = vpop.eup %3234  ;;  %v1875_v57 = vpop.f32.mrf.mxu2 }
 0x6f7   : > { %v1603_v54 = vmul.f32 %v3235_v25, %v4650_v48  ;;  %v4733_v48 = vsel %vm863_vm6, %v1862_v45, -1e+30  ;;  %v4738_v39 = vpop.eup %3236  ;;  %v4764_v41 = vsel %vm863_vm6, %v1875_v57, -1e+30 }
 0x6f9   : > { %v1611_v31 = vpack.c.bf16 %v1603_v54, %v1602_v26 }
 0x6fb   : > { %1679 = vmatmul.bf16.gmra.mxu0 %v1611_v31 }
 0x6fd   : > { %v2445_v44 = vpop.xlane.xlu1 %2444 }
 0x6fe   : > { %v1877_v60 = vpop.f32.mrf.mxu2 }
 0x6ff   : > { %v4748_v51 = vsel %vm863_vm6, %v1877_v60, -1e+30 }
 0x706   : > { %2380 = vmax.xlane.f32.xlu0 %v4723_v18  ;;  %v1880_v11 = vpop.f32.mrf.mxu2 }
 0x707   : > { %v4771_v7 = vsel %vm863_vm6, %v1880_v11, -1e+30 }
 0x70b   : > { %1919 = vmax.xlane.f32.xlu1 %v4728_v52 }
 0x70e   : > { %1917 = vmax.xlane.f32.xlu0 %v4733_v48  ;;  %v1882_v10 = vpop.f32.mrf.mxu2 }
 0x70f   : > { %v4758_v53 = vsel %vm863_vm6, %v1882_v10, -1e+30 }
 0x713   : > { %2446 = vadd.xlane.f32.xlu1 %v4738_v39 }
 0x716   : > { %1921 = vmax.xlane.f32.xlu0 %v4743_v8  ;;  %v1885_v25 = vpop.f32.mrf.mxu2 }
 0x717   : > { %v4808_v31 = vsel %vm863_vm6, %v1885_v25, -1e+30 }
 0x71b   : > { %1929 = vmax.xlane.f32.xlu1 %v4748_v51 }
 0x71e   : > { %1925 = vmax.xlane.f32.xlu0 %v4753_v13 }
 0x722   : > { %v1274_v34 = vpop.f32.mrf.mxu1 }
 0x723   : > { %1305 = vst.msk [vmem:[#allocation2 + $0x30] sm:$0xff] %vm960_vm5, %v1274_v34  ;;  %1933 = vmax.xlane.f32.xlu1 %v4758_v53  ;;  %v2398_v34 = vsub.f32 %v4511_v42, %v4614_v61 }
 0x726   : > { %1927 = vmax.xlane.f32.xlu0 %v4764_v41 }
 0x72a   : > { %v1276_v29 = vpop.f32.mrf.mxu1 }
 0x72b   : > { %1306 = vst.msk [vmem:[#allocation2 + $0x38] sm:$0xff] %vm960_vm5, %v1276_v29  ;;  %v1912_v56 = vpop.xlane.xlu1 %1911  ;;  %v2418_v29 = vmul.f32 1.442695, %v2398_v34 }
 0x72c   : > { %v1943_v58 = vsub.f32 %v4691_v46, %v1912_v56  ;;  %v2331_v46 = vpop.f32.mrf.mxu3 }
 0x72d   : > { %v4797_v33 = vsel %vm863_vm6, %v2331_v46, -1e+30  ;;  %v1887_v46 = vpop.f32.mrf.mxu2 }
 0x72e   : > { %v1959_v28 = vmul.f32 1.442695, %v1943_v58  ;;  %1931 = vmax.xlane.f32.xlu0 %v4771_v7 }
 0x730   : > { %3238 = vpow2.f32 %v1959_v28 }
 0x731   : > { %3240 = vpow2.f32 %v2416_v55 }
 0x733   : > { %v1914_v59 = vpop.xlane.xlu0 %1913 }
 0x734   : > { %v1944_v63 = vsub.f32 %v4696_v17, %v1914_v59  ;;  %v2333_v17 = vpop.f32.mrf.mxu3 }
 0x736   : > { %v4777_v23 = vpop.eup %3238  ;;  %v1961_v43 = vmul.f32 1.442695, %v1944_v63 }
 0x737   : > { %1991 = vadd.xlane.f32.xlu2 %v4777_v23  ;;  %v4781_v37 = vpop.eup %3240 }
 0x738   : > { %3242 = vpow2.f32 %v1961_v43  ;;  %v2401_v43 = vsub.f32 %v4596_v12, %v4736_v9  ;;  %v4849_v12 = vsel %vm863_vm6, %v1887_v46, -1e+30  ;;  %v1890_v9 = vpop.f32.mrf.mxu2 }
 0x73b   : > { %v1916_v45 = vpop.xlane.xlu1 %1915 }
 0x73c   : > { %v1945_v30 = vsub.f32 %v4701_v20, %v1916_v45  ;;  %v4793_v20 = vsel %vm863_vm6, %v2333_v17, -1e+30  ;;  %v2336_v14 = vpop.f32.mrf.mxu3  ;;  %v2400_v45 = vsub.f32 %v4639_v21, %v4706_v3 }
 0x73d   : > { %v4827_v42 = vsel %vm863_vm6, %v2336_v14, -1e+30 }
 0x73e   : > { %v4783_v24 = vpop.eup %3242  ;;  %v1963_v38 = vmul.f32 1.442695, %v1945_v30  ;;  %v2422_v16 = vmul.f32 1.442695, %v2400_v45 }
 0x73f   : > { %1993 = vadd.xlane.f32.xlu0 %v4783_v24  ;;  %2448 = vadd.xlane.f32.xlu2 %v4781_v37 }
 0x740   : > { %3244 = vpow2.f32 %v1963_v38  ;;  %v2424_v38 = vmul.f32 1.442695, %v2401_v43 }
 0x741   : > { %3246 = vrcp.f32 %v2445_v44 }
 0x742   : > { %3248 = vrcp.f32 %v2443_v1 }
 0x743   : > { %3250 = vpow2.f32 %v2420_v19 }
 0x746   : > { %v4789_v5 = vpop.eup %3244  ;;  %v2517_v6 = vpop.permute.xlu0 %2516 }
 0x747   : > { %2384 = vmax.xlane.f32.xlu0 %v4793_v20  ;;  %2544 = vmatpush.bf16.msrb.mxu0 %v2517_v6  ;;  %v3247_v62 = vpop.eup %3246 }
 0x748   : > { %2382 = vmax.xlane.f32.xlu2 %v4797_v33  ;;  %1995 = vadd.xlane.f32.xlu1 %v4789_v5  ;;  %v3249_v15 = vpop.eup %3248  ;;  %v2491_v40 = vmul.f32 %v3247_v62, %v4668_v2  ;;  %v2064_v2 = vpop.permute.xlu2 %2063 }
 0x749   : > { %v2490_v35 = vmul.f32 %v3249_v15, %v4657_v49  ;;  %v4804_v54 = vpop.eup %3250 }
 0x74b   : > { %v2506_v57 = vpack.c.bf16 %v2491_v40, %v2490_v35 }
 0x74e   : > { %v2515_v26 = vpop.permute.xlu0 %2514 }
 0x74f   : > { %2545 = vmatpush.bf16.msrb.mxu0 %v2515_v26  ;;  %v4861_v26 = vsel %vm863_vm6, %v1890_v9, -1e+30 }
 0x750   : > { %1935 = vmax.xlane.f32.xlu2 %v4808_v31  ;;  %2452 = vadd.xlane.f32.xlu1 %v4804_v54  ;;  %v2379_v55 = vpop.xlane.xlu2 %2378 }
 0x752   : > { %2546 = vmatmul.bf16.vlgmr.msrb.gmra.mxu0 %v2506_v57  ;;  %v2402_v57 = vsub.f32 %v4684_v27, %v2379_v55 }
 0x753   : > { %v2066_v36 = vpop.permute.xlu1 %2065 }
 0x754   : > { %2093 = vmatpush.bf16.msra.mxu1 %v2066_v36 }
 0x758   : > { %2094 = vmatpush.bf16.msra.mxu1 %v2064_v2  ;;  %v1892_v2 = vpop.f32.mrf.mxu2 }
 0x75b   : > { %v1924_v17 = vpop.xlane.xlu2 %1923 }
 0x75c   : > { %v1949_v21 = vsub.f32 %v4714_v50, %v1924_v17 }
 0x75e   : > { %v1971_v15 = vmul.f32 1.442695, %v1949_v21 }
 0x779   : > { %v4812_v4 = vpop.xlane.xlu0 %2380 }
 0x77a   : > { %v2403_v27 = vsub.f32 %v4723_v18, %v4812_v4 }
 0x77e   : > { %v1920_v49 = vpop.xlane.xlu1 %1919 }
 0x77f   : > { %v1947_v32 = vsub.f32 %v4728_v52, %v1920_v49 }
 0x781   : > { %v1967_v60 = vmul.f32 1.442695, %v1947_v32  ;;  %v1918_v11 = vpop.xlane.xlu0 %1917 }
 0x782   : > { %v1946_v1 = vsub.f32 %v4733_v48, %v1918_v11  ;;  %v2426_v11 = vmul.f32 1.442695, %v2402_v57 }
 0x783   : > { %3252 = vpow2.f32 %v1967_v60 }
 0x784   : > { %v1965_v10 = vmul.f32 1.442695, %v1946_v1 }
 0x786   : > { %3254 = vpow2.f32 %v1965_v10  ;;  %v2447_v30 = vpop.xlane.xlu1 %2446  ;;  %v4872_v10 = vsel %vm863_vm6, %v1892_v2, -1e+30 }
 0x787   : > { %3256 = vpow2.f32 %v2418_v29 }
 0x789   : > { %v4818_v44 = vpop.eup %3252  ;;  %v1922_v56 = vpop.xlane.xlu0 %1921 }
 0x78a   : > { %v1948_v58 = vsub.f32 %v4743_v8, %v1922_v56  ;;  %1999 = vadd.xlane.f32.xlu1 %v4818_v44 }
 0x78c   : > { %v4822_v28 = vpop.eup %3254  ;;  %v1969_v52 = vmul.f32 1.442695, %v1948_v58  ;;  %v4885_v58 = vpop.f32.mrf.mxu0 }
 0x78d   : > { %1997 = vadd.xlane.f32.xlu0 %v4822_v28  ;;  %v4831_v8 = vpop.eup %3256 }
 0x78e   : > { %3258 = vpow2.f32 %v1969_v52  ;;  %v1930_v40 = vpop.xlane.xlu1 %1929  ;;  %v2428_v52 = vmul.f32 1.442695, %v2403_v27 }
 0x78f   : > { %v1952_v29 = vsub.f32 %v4748_v51, %v1930_v40 }
 0x791   : > { %v1926_v61 = vpop.xlane.xlu0 %1925  ;;  %v1977_v14 = vmul.f32 1.442695, %v1952_v29 }
 0x792   : > { %v1950_v48 = vsub.f32 %v4753_v13, %v1926_v61  ;;  %2386 = vmax.xlane.f32.xlu1 %v4827_v42  ;;  %v2338_v13 = vpop.f32.mrf.mxu3 }
 0x793   : > { %v4845_v6 = vsel %vm863_vm6, %v2338_v13, -1e+30 }
 0x794   : > { %v4833_v59 = vpop.eup %3258  ;;  %v1973_v63 = vmul.f32 1.442695, %v1950_v48  ;;  %v4899_v45 = vpop.f32.mrf.mxu0 }
 0x795   : > { %2450 = vadd.xlane.f32.xlu0 %v4831_v8  ;;  %2001 = vadd.xlane.f32.xlu2 %v4833_v59 }
 0x796   : > { %3260 = vpow2.f32 %v1973_v63  ;;  %v1934_v34 = vpop.xlane.xlu1 %1933 }
 0x797   : > { %3262 = vpow2.f32 %v2424_v38  ;;  %v1954_v56 = vsub.f32 %v4758_v53, %v1934_v34 }
 0x798   : > { %3264 = vpow2.f32 %v2422_v16 }
 0x799   : > { %v1928_v62 = vpop.xlane.xlu0 %1927  ;;  %3266 = vpow2.f32 %v1971_v15  ;;  %v1981_v4 = vmul.f32 1.442695, %v1954_v56 }
 0x79a   : > { %v2341_v3 = vpop.f32.mrf.mxu3  ;;  %v1951_v50 = vsub.f32 %v4764_v41, %v1928_v62 }
 0x79b   : > { %v4891_v51 = vsel %vm863_vm6, %v2341_v3, -1e+30 }
 0x79c   : > { %v4841_v19 = vpop.eup %3260  ;;  %v1975_v49 = vmul.f32 1.442695, %v1951_v50 }
 0x79d   : > { %1937 = vmax.xlane.f32.xlu0 %v4849_v12  ;;  %2388 = vmax.xlane.f32.xlu2 %v4845_v6  ;;  %v4855_v25 = vpop.eup %3262 }
 0x79e   : > { %2005 = vadd.xlane.f32.xlu1 %v4841_v19  ;;  %v4857_v35 = vpop.eup %3264  ;;  %3268 = vpow2.f32 %v1975_v49 }
 0x79f   : > { %v4868_v1 = vpop.eup %3266  ;;  %3270 = vpow2.f32 %v2426_v11 }
 0x7a1   : > { %v1932_v32 = vpop.xlane.xlu0 %1931 }
 0x7a2   : > { %v2343_v36 = vpop.f32.mrf.mxu3  ;;  %v1953_v53 = vsub.f32 %v4771_v7, %v1932_v32 }
 0x7a3   : > { %v4876_v41 = vsel %vm863_vm6, %v2343_v36, -1e+30 }
 0x7a4   : > { %v4887_v48 = vpop.eup %3268  ;;  %v1979_v13 = vmul.f32 1.442695, %v1953_v53 }
 0x7a5   : > { %2456 = vadd.xlane.f32.xlu0 %v4855_v25  ;;  %2454 = vadd.xlane.f32.xlu2 %v4857_v35  ;;  %v4893_v55 = vpop.eup %3270 }
 0x7a6   : > { %1939 = vmax.xlane.f32.xlu1 %v4861_v26 }
 0x7aa   : > { %v1992_v60 = vpop.xlane.xlu2 %1991 }
 0x7ab   : > { %3272 = vrcp.f32 %v1992_v60 }
 0x7ac   : > { %3274 = vrcp.f32 %v2447_v30 }
 0x7ad   : > { %2003 = vadd.xlane.f32.xlu0 %v4868_v1  ;;  %1941 = vmax.xlane.f32.xlu2 %v4872_v10 }
 0x7ae   : > { %2392 = vmax.xlane.f32.xlu1 %v4876_v41 }
 0x7b1   : > { %v3273_v63 = vpop.eup %3272 }
 0x7b2   : > { %v1994_v61 = vpop.xlane.xlu0 %1993  ;;  %v2449_v18 = vpop.xlane.xlu2 %2448  ;;  %v2039_v30 = vmul.f32 %v3273_v63, %v4777_v23 }
 0x7b3   : > { %3276 = vrcp.f32 %v1994_v61  ;;  %v3275_v43 = vpop.eup %3274 }
 0x7b4   : > { %3278 = vrcp.f32 %v2449_v18  ;;  %v2492_v7 = vmul.f32 %v3275_v43, %v4738_v39 }
 0x7b5   : > { %3280 = vpow2.f32 %v2428_v52  ;;  %2390 = vmax.xlane.f32.xlu0 %v4891_v51  ;;  %2007 = vadd.xlane.f32.xlu2 %v4887_v48 }
 0x7b6   : > { %3282 = vpow2.f32 %v1977_v14  ;;  %2458 = vadd.xlane.f32.xlu1 %v4893_v55 }
 0x7b7   : > { %3284 = vpow2.f32 %v1981_v4 }
 0x7b8   : > { %3286 = vpow2.f32 %v1979_v13 }
 0x7b9   : > { %v3277_v46 = vpop.eup %3276 }
 0x7ba   : > { %v3279_v0 = vpop.eup %3278  ;;  %v2040_v38 = vmul.f32 %v3277_v46, %v4783_v24  ;;  %v2385_v17 = vpop.xlane.xlu0 %2384 }
 0x7bb   : > { %v4903_v16 = vpop.eup %3280  ;;  %v2383_v21 = vpop.xlane.xlu2 %2382  ;;  %v2493_v3 = vmul.f32 %v3279_v0, %v4781_v37  ;;  %v2405_v24 = vsub.f32 %v4793_v20, %v2385_v17 }
 0x7bc   : > { %v4907_v9 = vpop.eup %3282  ;;  %v2404_v62 = vsub.f32 %v4797_v33, %v2383_v21  ;;  %v2055_v15 = vpack.c.bf16 %v2040_v38, %v2039_v30  ;;  %v4916_v37 = vpop.f32.mrf.mxu0 }
 0x7bd   : > { %v4910_v40 = vpop.eup %3284  ;;  %2460 = vadd.xlane.f32.xlu2 %v4903_v16  ;;  %2009 = vadd.xlane.f32.xlu0 %v4907_v9  ;;  %v2507_v23 = vpack.c.bf16 %v2493_v3, %v2492_v7  ;;  %v2432_v39 = vmul.f32 1.442695, %v2405_v24  ;;  %v1996_v27 = vpop.xlane.xlu1 %1995 }
 0x7be   : > { %v2430_v50 = vmul.f32 1.442695, %v2404_v62  ;;  %2013 = vadd.xlane.f32.xlu1 %v4910_v40  ;;  %2095 = vmatmul.bf16.vlgmr.msra.gmra.mxu1 %v2055_v15  ;;  %v4918_v57 = vpop.eup %3286 }
 0x7bf   : > { %2551 = vmatmul.bf16.gmra.mxu0 %v2507_v23 }
 0x7c0   : > { %3288 = vpow2.f32 %v2430_v50 }
 0x7c1   : > { %3290 = vpow2.f32 %v2432_v39 }
 0x7c3   : > { %v1936_v33 = vpop.xlane.xlu2 %1935 }
 0x7c4   : > { %v1955_v36 = vsub.f32 %v4808_v31, %v1936_v33  ;;  %v4927_v32 = vpop.f32.mrf.mxu0 }
 0x7c5   : > { %2011 = vadd.xlane.f32.xlu0 %v4918_v57  ;;  %v2453_v56 = vpop.xlane.xlu1 %2452 }
 0x7c6   : > { %v4922_v2 = vpop.eup %3288  ;;  %v1983_v20 = vmul.f32 1.442695, %v1955_v36 }
 0x7c7   : > { %2462 = vadd.xlane.f32.xlu2 %v4922_v2  ;;  %v4925_v49 = vpop.eup %3290 }
 0x7c8   : > { %3292 = vpow2.f32 %v1983_v20 }
 0x7c9   : > { %3294 = vrcp.f32 %v1996_v27 }
 0x7cc   : > { %v4933_v31 = vpop.f32.mrf.mxu0 }
 0x7cd   : > { %2464 = vadd.xlane.f32.xlu0 %v4925_v49 }
 0x7ce   : > { %v4930_v60 = vpop.eup %3292 }
 0x7cf   : > { %2015 = vadd.xlane.f32.xlu1 %v4930_v60  ;;  %v3295_v18 = vpop.eup %3294 }
 0x7d0   : > { %v2041_v30 = vmul.f32 %v3295_v18, %v4789_v5 }
 0x7d4   : > { %v4935_v11 = vpop.f32.mrf.mxu0 }
 0x7dc   : > { %v4937_v34 = vpop.f32.mrf.mxu0 }
 0x7e4   : > { %v4939_v29 = vpop.f32.mrf.mxu0 }
 0x7ec   : > { %v4941_v52 = vpop.f32.mrf.mxu0 }
 0x7f4   : > { %v4944_v43 = vpop.f32.mrf.mxu0 }
 0x7fc   : > { %v4952_v24 = vpop.f32.mrf.mxu0 }
 0x7fd   : > { %v2000_v14 = vpop.xlane.xlu1 %1999 }
 0x800   : > { %v1998_v61 = vpop.xlane.xlu0 %1997 }
 0x801   : > { %3296 = vrcp.f32 %v1998_v61 }
 0x802   : > { %3298 = vrcp.f32 %v2453_v56 }
 0x805   : > { %v2387_v4 = vpop.xlane.xlu1 %2386 }
 0x806   : > { %v2406_v53 = vsub.f32 %v4827_v42, %v2387_v4  ;;  %v4962_v4 = vpop.f32.mrf.mxu0 }
 0x807   : > { %v3297_v63 = vpop.eup %3296 }
 0x808   : > { %v2434_v46 = vmul.f32 1.442695, %v2406_v53  ;;  %v2451_v0 = vpop.xlane.xlu0 %2450  ;;  %v2002_v13 = vpop.xlane.xlu2 %2001  ;;  %v2042_v38 = vmul.f32 %v3297_v63, %v4822_v28 }
 0x809   : > { %3300 = vrcp.f32 %v2451_v0  ;;  %v3299_v21 = vpop.eup %3298 }
 0x80a   : > { %3302 = vpow2.f32 %v2434_v46  ;;  %v2056_v17 = vpack.c.bf16 %v2042_v38, %v2041_v30  ;;  %v2495_v23 = vmul.f32 %v3299_v21, %v4804_v54 }
 0x80b   : > { %3304 = vrcp.f32 %v2002_v13 }
 0x80c   : > { %2100 = vmatmul.bf16.gmra.mxu1 %v2056_v17  ;;  %3306 = vrcp.f32 %v2000_v14 }
 0x80f   : > { %v3301_v7 = vpop.eup %3300 }
 0x810   : > { %v4948_v42 = vpop.eup %3302  ;;  %v1938_v3 = vpop.xlane.xlu0 %1937  ;;  %v2494_v15 = vmul.f32 %v3301_v7, %v4831_v8 }
 0x811   : > { %v2389_v62 = vpop.xlane.xlu2 %2388  ;;  %v1956_v5 = vsub.f32 %v4849_v12, %v1938_v3  ;;  %v2006_v50 = vpop.xlane.xlu1 %2005  ;;  %2466 = vadd.xlane.f32.xlu0 %v4948_v42 }
 0x812   : > { %v2407_v28 = vsub.f32 %v4845_v6, %v2389_v62  ;;  %v2508_v39 = vpack.c.bf16 %v2495_v23, %v2494_v15  ;;  %v3305_v33 = vpop.eup %3304  ;;  %v4974_v23 = vpop.f32.mrf.mxu0 }
 0x813   : > { %v1985_v36 = vmul.f32 1.442695, %v1956_v5  ;;  %v3307_v27 = vpop.eup %3306  ;;  %v2044_v8 = vmul.f32 %v3305_v33, %v4833_v59 }
 0x814   : > { %v2436_v20 = vmul.f32 1.442695, %v2407_v28  ;;  %2556 = vmatmul.bf16.gmra.mxu0 %v2508_v39  ;;  %v2043_v14 = vmul.f32 %v3307_v27, %v4818_v44 }
 0x815   : > { %3308 = vpow2.f32 %v1985_v36 }
 0x816   : > { %3310 = vpow2.f32 %v2436_v20  ;;  %v2057_v61 = vpack.c.bf16 %v2044_v8, %v2043_v14 }
 0x818   : > { %v2457_v54 = vpop.xlane.xlu0 %2456 }
 0x819   : > { %v2455_v56 = vpop.xlane.xlu2 %2454  ;;  %3312 = vrcp.f32 %v2457_v54  ;;  %v1940_v12 = vpop.xlane.xlu1 %1939 }
 0x81a   : > { %3314 = vrcp.f32 %v2455_v56  ;;  %v1957_v6 = vsub.f32 %v4861_v26, %v1940_v12  ;;  %v4986_v27 = vpop.f32.mrf.mxu0 }
 0x81b   : > { %v4960_v18 = vpop.eup %3308 }
 0x81c   : > { %v4964_v53 = vpop.eup %3310  ;;  %v1987_v63 = vmul.f32 1.442695, %v1957_v6  ;;  %2017 = vadd.xlane.f32.xlu2 %v4960_v18  ;;  %2105 = vmatmul.bf16.gmra.mxu1 %v2057_v61 }
 0x81d   : > { %2468 = vadd.xlane.f32.xlu1 %v4964_v53 }
 0x81e   : > { %3316 = vpow2.f32 %v1987_v63 }
 0x81f   : > { %v3313_v44 = vpop.eup %3312  ;;  %3318 = vrcp.f32 %v2006_v50 }
 0x820   : > { %v3315_v59 = vpop.eup %3314  ;;  %v2004_v46 = vpop.xlane.xlu0 %2003  ;;  %v2497_v26 = vmul.f32 %v3313_v44, %v4855_v25 }
 0x821   : > { %v1942_v0 = vpop.xlane.xlu2 %1941  ;;  %3320 = vrcp.f32 %v2004_v46  ;;  %v2393_v30 = vpop.xlane.xlu1 %2392  ;;  %v2496_v38 = vmul.f32 %v3315_v59, %v4857_v35 }
 0x822   : > { %v1958_v13 = vsub.f32 %v4872_v10, %v1942_v0  ;;  %v2409_v17 = vsub.f32 %v4876_v41, %v2393_v30  ;;  %v4991_v12 = vpop.f32.mrf.mxu0 }
 0x823   : > { %v2509_v7 = vpack.c.bf16 %v2497_v26, %v2496_v38 }
 0x824   : > { %v1989_v21 = vmul.f32 1.442695, %v1958_v13  ;;  %v4972_v3 = vpop.eup %3316  ;;  %v2440_v62 = vmul.f32 1.442695, %v2409_v17 }
 0x825   : > { %v3319_v15 = vpop.eup %3318  ;;  %2561 = vmatmul.bf16.gmra.mxu0 %v2509_v7  ;;  %2019 = vadd.xlane.f32.xlu2 %v4972_v3 }
 0x826   : > { %3322 = vpow2.f32 %v1989_v21  ;;  %v2046_v41 = vmul.f32 %v3319_v15, %v4841_v19 }
 0x827   : > { %3324 = vpow2.f32 %v2440_v62  ;;  %v3321_v25 = vpop.eup %3320 }
 0x828   : > { %v2391_v10 = vpop.xlane.xlu0 %2390  ;;  %v2045_v35 = vmul.f32 %v3321_v25, %v4868_v1 }
 0x829   : > { %v2008_v5 = vpop.xlane.xlu2 %2007  ;;  %v2408_v28 = vsub.f32 %v4891_v51, %v2391_v10  ;;  %v2459_v20 = vpop.xlane.xlu1 %2458 }
 0x82a   : > { %v2058_v50 = vpack.c.bf16 %v2046_v41, %v2045_v35 }
 0x82b   : > { %v2438_v33 = vmul.f32 1.442695, %v2408_v28 }
 0x82c   : > { %v4980_v39 = vpop.eup %3322  ;;  %2110 = vmatmul.bf16.gmra.mxu1 %v2058_v50 }
 0x82d   : > { %v4982_v36 = vpop.eup %3324  ;;  %2021 = vadd.xlane.f32.xlu0 %v4980_v39  ;;  %3326 = vpow2.f32 %v2438_v33 }
 0x82e   : > { %2472 = vadd.xlane.f32.xlu2 %v4982_v36  ;;  %3328 = vrcp.f32 %v2459_v20 }
 0x82f   : > { %3330 = vrcp.f32 %v2008_v5 }
 0x830   : > { %v2010_v1 = vpop.xlane.xlu0 %2009 }
 0x831   : > { %v2461_v19 = vpop.xlane.xlu2 %2460  ;;  %v2014_v13 = vpop.xlane.xlu1 %2013 }
 0x832   : > { %3332 = vrcp.f32 %v2461_v19 }
 0x833   : > { %3334 = vrcp.f32 %v2010_v1  ;;  %v4988_v51 = vpop.eup %3326 }
 0x834   : > { %2470 = vadd.xlane.f32.xlu1 %v4988_v51  ;;  %v3329_v8 = vpop.eup %3328 }
 0x835   : > { %v3331_v54 = vpop.eup %3330  ;;  %v2498_v61 = vmul.f32 %v3329_v8, %v4893_v55  ;;  %v4999_v55 = vpop.f32.mrf.mxu0 }
 0x836   : > { %v2047_v44 = vmul.f32 %v3331_v54, %v4887_v48 }
 0x838   : > { %v3333_v56 = vpop.eup %3332  ;;  %v2012_v6 = vpop.xlane.xlu0 %2011 }
 0x839   : > { %v3335_v14 = vpop.eup %3334  ;;  %v2499_v63 = vmul.f32 %v3333_v56, %v4903_v16  ;;  %3336 = vrcp.f32 %v2012_v6 }
 0x83a   : > { %v2048_v59 = vmul.f32 %v3335_v14, %v4907_v9  ;;  %v2463_v26 = vpop.xlane.xlu2 %2462 }
 0x83b   : > { %v2510_v46 = vpack.c.bf16 %v2499_v63, %v2498_v61  ;;  %v2096_v30 = vpop.f32.mrf.mxu1  ;;  %3338 = vrcp.f32 %v2463_v26 }
 0x83c   : > { %v2059_v0 = vpack.c.bf16 %v2048_v59, %v2047_v44  ;;  %3340 = vrcp.f32 %v2014_v13 }
 0x83d   : > { %2566 = vmatmul.bf16.gmra.mxu0 %v2510_v46  ;;  %v2547_v25 = vpop.f32.mrf.mxu0 }
 0x83e   : > { %2115 = vmatmul.bf16.gmra.mxu1 %v2059_v0 }
 0x83f   : > { %v3337_v48 = vpop.eup %3336 }
 0x840   : > { %v2465_v38 = vpop.xlane.xlu0 %2464  ;;  %v2049_v7 = vmul.f32 %v3337_v48, %v4918_v57 }
 0x841   : > { %1701 = vrot.lane.b32.xlu0 %v4885_v58, %s3380_s8  ;;  %3342 = vrcp.f32 %v2465_v38  ;;  %v3339_v16 = vpop.eup %3338 }
 0x842   : > { %v3341_v9 = vpop.eup %3340  ;;  %v2500_v62 = vmul.f32 %v3339_v16, %v4922_v2  ;;  %v2016_v2 = vpop.xlane.xlu1 %2015 }
 0x843   : > { %v2098_v21 = vpop.f32.mrf.mxu1  ;;  %v2050_v58 = vmul.f32 %v3341_v9, %v4910_v40  ;;  %3344 = vrcp.f32 %v2016_v2 }
 0x845   : > { %v2060_v5 = vpack.c.bf16 %v2050_v58, %v2049_v7  ;;  %v2549_v57 = vpop.f32.mrf.mxu0 }
 0x846   : > { %2152 = vrot.lane.b32.xlu2 %v2096_v30, %s3381_s9  ;;  %v2985_v30 = vld [vmem:[%s5221_s5 + $0x8] sm:$0xff] }
 0x847   : > { %v3343_v17 = vpop.eup %3342  ;;  %2738 = vmatpush.bf16.msra.mxu2 %v2985_v30 }
 0x848   : > { %v2501_v15 = vmul.f32 %v3343_v17, %v4925_v49 }
 0x849   : > { %2154 = vrot.lane.b32.xlu0 %v2098_v21, %s3381_s9 }
 0x84a   : > { %v2511_v10 = vpack.c.bf16 %v2501_v15, %v2500_v62 }
 0x84d   : > { %2571 = vmatmul.bf16.gmra.mxu0 %v2511_v10  ;;  %1703 = vrot.lane.b32.xlu1 %v4899_v45, %s3380_s8  ;;  %v2552_v40 = vpop.f32.mrf.mxu0 }
 0x84e   : > { %2603 = vrot.lane.b32.xlu2 %v2547_v25, %s3382_s10  ;;  %2120 = vmatmul.bf16.gmra.mxu1 %v2060_v5 }
 0x851   : > { %1705 = vrot.lane.b32.xlu0 %v4916_v37, %s3380_s8 }
 0x855   : > { %2605 = vrot.lane.b32.xlu1 %v2549_v57, %s3382_s10  ;;  %v2554_v49 = vpop.f32.mrf.mxu0 }
 0x856   : > { %1707 = vrot.lane.b32.xlu2 %v4927_v32, %s3380_s8 }
 0x85e   : > { %2607 = vrot.lane.b32.xlu2 %v2552_v40, %s3382_s10 }
 0x866   : > { %1711 = vrot.lane.b32.xlu2 %v4935_v11, %s3380_s8  ;;  %v3345_v11 = vpop.eup %3344 }
 0x867   : > { %v2051_v19 = vmul.f32 %v3345_v11, %v4930_v60 }
 0x884   : > { %v2467_v45 = vpop.xlane.xlu0 %2466 }
 0x885   : > { %3346 = vrcp.f32 %v2467_v45 }
 0x889   : > { %v2101_v35 = vpop.f32.mrf.mxu1 }
 0x88a   : > { %2156 = vrot.lane.b32.xlu1 %v2101_v35, %s3381_s9 }
 0x88b   : > { %v3347_v50 = vpop.eup %3346 }
 0x88c   : > { %v2502_v54 = vmul.f32 %v3347_v50, %v4948_v42 }
 0x88f   : > { %v2018_v37 = vpop.xlane.xlu2 %2017 }
 0x890   : > { %3348 = vrcp.f32 %v2018_v37  ;;  %v2469_v41 = vpop.xlane.xlu1 %2468 }
 0x891   : > { %3350 = vrcp.f32 %v2469_v41  ;;  %v2103_v32 = vpop.f32.mrf.mxu1  ;;  %v2557_v28 = vpop.f32.mrf.mxu0 }
 0x892   : > { %2609 = vrot.lane.b32.xlu1 %v2554_v49, %s3382_s10  ;;  %2158 = vrot.lane.b32.xlu0 %v2103_v32, %s3381_s9 }
 0x893   : > { %2611 = vrot.lane.b32.xlu2 %v2557_v28, %s3382_s10 }
 0x896   : > { %v3349_v33 = vpop.eup %3348 }
 0x897   : > { %v3351_v20 = vpop.eup %3350  ;;  %v2052_v1 = vmul.f32 %v3349_v33, %v4960_v18 }
 0x898   : > { %v2020_v8 = vpop.xlane.xlu2 %2019  ;;  %v2503_v56 = vmul.f32 %v3351_v20, %v4964_v53 }
 0x899   : > { %v2106_v14 = vpop.f32.mrf.mxu1  ;;  %v2559_v6 = vpop.f32.mrf.mxu0  ;;  %v2061_v61 = vpack.c.bf16 %v2052_v1, %v2051_v19  ;;  %3352 = vrcp.f32 %v2020_v8 }
 0x89a   : > { %2160 = vrot.lane.b32.xlu1 %v2106_v14, %s3381_s9  ;;  %1709 = vrot.lane.b32.xlu0 %v4933_v31, %s3380_s8  ;;  %v2512_v63 = vpack.c.bf16 %v2503_v56, %v2502_v54 }
 0x89b   : > { %1715 = vrot.lane.b32.xlu2 %v4939_v29, %s3380_s8  ;;  %2125 = vmatmul.bf16.gmra.mxu1 %v2061_v61 }
 0x89c   : > { %2576 = vmatmul.bf16.gmra.mxu0 %v2512_v63 }
 0x89f   : > { %v3353_v44 = vpop.eup %3352 }
 0x8a0   : > { %v2022_v60 = vpop.xlane.xlu0 %2021  ;;  %v2053_v29 = vmul.f32 %v3353_v44, %v4972_v3 }
 0x8a1   : > { %3354 = vrcp.f32 %v2022_v60  ;;  %v2473_v42 = vpop.xlane.xlu2 %2472  ;;  %v2108_v18 = vpop.f32.mrf.mxu1 }
 0x8a2   : > { %v2562_v53 = vpop.f32.mrf.mxu0  ;;  %2613 = vrot.lane.b32.xlu1 %v2559_v6, %s3382_s10  ;;  %2162 = vrot.lane.b32.xlu0 %v2108_v18, %s3381_s9  ;;  %3356 = vrcp.f32 %v2473_v42 }
 0x8a3   : > { %2615 = vrot.lane.b32.xlu2 %v2562_v53, %s3382_s10 }
 0x8a7   : > { %v3355_v31 = vpop.eup %3354  ;;  %v2471_v59 = vpop.xlane.xlu1 %2470 }
 0x8a8   : > { %v2054_v46 = vmul.f32 %v3355_v31, %v4980_v39  ;;  %3358 = vrcp.f32 %v2471_v59  ;;  %v3357_v3 = vpop.eup %3356  ;;  %v2984_v39 = vld [vmem:[%s5221_s5] sm:$0xff] }
 0x8a9   : > { %v2153_v0 = vpop.permute.xlu2 %2152  ;;  %v2111_v26 = vpop.f32.mrf.mxu1  ;;  %2739 = vmatpush.bf16.msra.mxu2 %v2984_v39 }
 0x8aa   : > { %v2062_v13 = vpack.c.bf16 %v2054_v46, %v2053_v29  ;;  %1713 = vrot.lane.b32.xlu0 %v4937_v34, %s3380_s8  ;;  %2164 = vrot.lane.b32.xlu1 %v2111_v26, %s3381_s9  ;;  %v2505_v34 = vmul.f32 %v3357_v3, %v4982_v36  ;;  %v2564_v9 = vpop.f32.mrf.mxu0 }
 0x8ab   : > { %1719 = vrot.lane.b32.xlu2 %v4944_v43, %s3380_s8 }
 0x8ac   : > { %2130 = vmatmul.bf16.gmra.mxu1 %v2062_v13 }
 0x8ae   : > { %v3359_v38 = vpop.eup %3358 }
 0x8af   : > { %v2504_v48 = vmul.f32 %v3359_v38, %v4988_v51 }
 0x8b1   : > { %v2604_v16 = vpop.permute.xlu2 %2603  ;;  %v2113_v43 = vpop.f32.mrf.mxu1  ;;  %v2513_v17 = vpack.c.bf16 %v2505_v34, %v2504_v48 }
 0x8b2   : > { %2617 = vrot.lane.b32.xlu1 %v2564_v9, %s3382_s10  ;;  %2166 = vrot.lane.b32.xlu0 %v2113_v43, %s3381_s9 }
 0x8b3   : > { %v1702_v21 = vpop.permute.xlu0 %1701  ;;  %2581 = vmatmul.bf16.gmra.mxu0 %v2513_v17 }
 0x8b4   : > { %1750 = vst.msk [vmem:[#allocation2] sm:$0xff] %vm1749_vm7, %v1702_v21 }
 0x8b5   : > { %2201 = vst.msk [vmem:[#allocation2] sm:$0xff] %vm2200_vm8, %v2153_v0 }
 0x8b6   : > { %2652 = vst.msk [vmem:[#allocation2] sm:$0xff] %vm2651_vm9, %v2604_v16 }
 0x8b9   : > { %v1708_v36 = vpop.permute.xlu2 %1707 }
 0x8ba   : > { %1753 = vst.msk [vmem:[#allocation2 + $0x18] sm:$0xff] %vm1749_vm7, %v1708_v36  ;;  %v2567_v51 = vpop.f32.mrf.mxu0  ;;  %1717 = vrot.lane.b32.xlu0 %v4941_v52, %s3380_s8 }
 0x8bb   : > { %v2116_v7 = vpop.f32.mrf.mxu1  ;;  %v2155_v62 = vpop.permute.xlu0 %2154  ;;  %2619 = vrot.lane.b32.xlu2 %v2567_v51, %s3382_s10 }
 0x8bc   : > { %2168 = vrot.lane.b32.xlu1 %v2116_v7, %s3381_s9 }
 0x8bd   : > { %v2668_v49 = vld [vmem:[#allocation2] sm:$0xff] }
 0x8bf   : > { %v1704_v58 = vpop.permute.xlu1 %1703 }
 0x8c0   : > { %1751 = vst.msk [vmem:[#allocation2 + $0x8] sm:$0xff] %vm1749_vm7, %v1704_v58 }
 0x8c1   : > { %v2608_v15 = vpop.permute.xlu2 %2607  ;;  %2202 = vst.msk [vmem:[#allocation2 + $0x8] sm:$0xff] %vm2200_vm8, %v2155_v62 }
 0x8c2   : > { %v2569_v25 = vpop.f32.mrf.mxu0 }
 0x8c3   : > { %v2118_v10 = vpop.f32.mrf.mxu1  ;;  %v1706_v5 = vpop.permute.xlu0 %1705  ;;  %1723 = vrot.lane.b32.xlu2 %v4962_v4, %s3380_s8 }
 0x8c4   : > { %1752 = vst.msk [vmem:[#allocation2 + $0x10] sm:$0xff] %vm1749_vm7, %v1706_v5  ;;  %2170 = vrot.lane.b32.xlu0 %v2118_v10, %s3381_s9  ;;  %2621 = vrot.lane.b32.xlu1 %v2569_v25, %s3382_s10  ;;  %v5128_v10 = vld [vmem:[%s5222_s6] ss:$0 sm:$0xff] }
 0x8c7   : > { %v2606_v57 = vpop.permute.xlu1 %2605 }
 0x8c8   : > { %2653 = vst.msk [vmem:[#allocation2 + $0x8] sm:$0xff] %vm2651_vm9, %v2606_v57 }
 0x8c9   : > { %v1712_v52 = vpop.permute.xlu2 %1711 }
 0x8ca   : > { %1755 = vst.msk [vmem:[#allocation2 + $0x28] sm:$0xff] %vm1749_vm7, %v1712_v52  ;;  %v2572_v40 = vpop.f32.mrf.mxu0 }
 0x8cb   : > { %v2121_v2 = vpop.f32.mrf.mxu1  ;;  %2623 = vrot.lane.b32.xlu2 %v2572_v40, %s3382_s10 }
 0x8cc   : > { %1721 = vrot.lane.b32.xlu0 %v4952_v24, %s3380_s8  ;;  %2172 = vrot.lane.b32.xlu1 %v2121_v2, %s3381_s9 }
 0x8cf   : > { %v2669_v35 = vld [vmem:[#allocation2 + $0x8] sm:$0xff] }
 0x8d0   : > { %v2684_v37 = vpack.c.bf16 %v2669_v35, %v2668_v49 }
 0x8d2   : > { %v2574_v4 = vpop.f32.mrf.mxu0  ;;  %2970 = vmatmul.msk.bf16.vlgmr.msra.gmra.mxu2 %vm314_vm0, %v2684_v37 }
 0x8d3   : > { %v2123_v45 = vpop.f32.mrf.mxu1  ;;  %1727 = vrot.lane.b32.xlu2 %v4986_v27, %s3380_s8 }
 0x8d4   : > { %2625 = vrot.lane.b32.xlu1 %v2574_v4, %s3382_s10  ;;  %2174 = vrot.lane.b32.xlu0 %v2123_v45, %s3381_s9 }
 0x8dc   : > { %1725 = vrot.lane.b32.xlu0 %v4974_v23, %s3380_s8 }
 0x8ed   : > { %v2612_v24 = vpop.permute.xlu2 %2611 }
 0x8f5   : > { %v1716_v41 = vpop.permute.xlu2 %1715 }
 0x8f6   : > { %1757 = vst.msk [vmem:[#allocation2 + $0x38] sm:$0xff] %vm1749_vm7, %v1716_v41 }
 0x8fc   : > { %v2157_v32 = vpop.permute.xlu1 %2156 }
 0x8fd   : > { %v2616_v28 = vpop.permute.xlu2 %2615  ;;  %2203 = vst.msk [vmem:[#allocation2 + $0x10] sm:$0xff] %vm2200_vm8, %v2157_v32  ;;  %v5258_v32 = vld [vmem:[#allocation15_spill] sm:$0xff] }
 0x8fe   : > { %2654 = vst.msk [vmem:[#allocation2 + $0x10] sm:$0xff] %vm2651_vm9, %v2608_v15 }
 0x904   : > { %v2159_v27 = vpop.permute.xlu0 %2158  ;;  %v2610_v11 = vpop.permute.xlu1 %2609 }
 0x905   : > { %2204 = vst.msk [vmem:[#allocation2 + $0x18] sm:$0xff] %vm2200_vm8, %v2159_v27  ;;  %v1720_v50 = vpop.permute.xlu2 %1719  ;;  %v2670_v20 = vld [vmem:[#allocation2 + $0x10] sm:$0xff] }
 0x906   : > { %1759 = vst.msk [vmem:[#allocation2 + $0x48] sm:$0xff] %vm1749_vm7, %v1720_v50 }
 0x907   : > { %2655 = vst.msk [vmem:[#allocation2 + $0x18] sm:$0xff] %vm2651_vm9, %v2610_v11 }
 0x90c   : > { %v1710_v23 = vpop.permute.xlu0 %1709  ;;  %v2161_v33 = vpop.permute.xlu1 %2160 }
 0x90d   : > { %1754 = vst.msk [vmem:[#allocation2 + $0x20] sm:$0xff] %vm1749_vm7, %v1710_v23 }
 0x90e   : > { %2205 = vst.msk [vmem:[#allocation2 + $0x20] sm:$0xff] %vm2200_vm8, %v2161_v33  ;;  %v2671_v19 = vld [vmem:[#allocation2 + $0x18] sm:$0xff] }
 0x90f   : > { %2656 = vst.msk [vmem:[#allocation2 + $0x20] sm:$0xff] %vm2651_vm9, %v2612_v24  ;;  %v2685_v1 = vpack.c.bf16 %v2671_v19, %v2670_v20 }
 0x911   : > { %2971 = vmatmul.msk.bf16.gmra.mxu2 %vm314_vm0, %v2685_v1 }
 0x914   : > { %v2163_v8 = vpop.permute.xlu0 %2162  ;;  %v2614_v56 = vpop.permute.xlu1 %2613 }
 0x915   : > { %v2620_v54 = vpop.permute.xlu2 %2619  ;;  %2206 = vst.msk [vmem:[#allocation2 + $0x28] sm:$0xff] %vm2200_vm8, %v2163_v8  ;;  %v5259_v8 = vld [vmem:[#allocation16_spill] sm:$0xff] }
 0x916   : > { %2657 = vst.msk [vmem:[#allocation2 + $0x28] sm:$0xff] %vm2651_vm9, %v2614_v56  ;;  %v2672_v42 = vld [vmem:[#allocation2 + $0x20] sm:$0xff] }
 0x918   : > { %v2126_v14 = vpop.f32.mrf.mxu1 }
 0x919   : > { %v2577_v6 = vpop.f32.mrf.mxu0  ;;  %2176 = vrot.lane.b32.xlu1 %v2126_v14, %s3381_s9 }
 0x91a   : > { %2627 = vrot.lane.b32.xlu2 %v2577_v6, %s3382_s10 }
 0x91c   : > { %v1714_v61 = vpop.permute.xlu0 %1713  ;;  %v2165_v60 = vpop.permute.xlu1 %2164 }
 0x91d   : > { %v1724_v63 = vpop.permute.xlu2 %1723  ;;  %1756 = vst.msk [vmem:[#allocation2 + $0x30] sm:$0xff] %vm1749_vm7, %v1714_v61  ;;  %v2673_v18 = vld [vmem:[#allocation2 + $0x28] sm:$0xff] }
 0x91e   : > { %1761 = vst.msk [vmem:[#allocation2 + $0x58] sm:$0xff] %vm1749_vm7, %v1724_v63  ;;  %v2686_v53 = vpack.c.bf16 %v2673_v18, %v2672_v42 }
 0x91f   : > { %2207 = vst.msk [vmem:[#allocation2 + $0x30] sm:$0xff] %vm2200_vm8, %v2165_v60  ;;  %v5260_v60 = vld [vmem:[#allocation4_spill] sm:$0xff] }
 0x920   : > { %2658 = vst.msk [vmem:[#allocation2 + $0x30] sm:$0xff] %vm2651_vm9, %v2616_v28  ;;  %v2128_v44 = vpop.f32.mrf.mxu1 }
 0x921   : > { %v2579_v31 = vpop.f32.mrf.mxu0  ;;  %2972 = vmatmul.msk.bf16.gmra.mxu2 %vm314_vm0, %v2686_v53  ;;  %2178 = vrot.lane.b32.xlu0 %v2128_v44, %s3381_s9 }
 0x922   : > { %1731 = vrot.lane.b32.xlu2 %v4999_v55, %s3380_s8  ;;  %2629 = vrot.lane.b32.xlu1 %v2579_v31, %s3382_s10 }
 0x924   : > { %v2167_v59 = vpop.permute.xlu0 %2166  ;;  %v2618_v46 = vpop.permute.xlu1 %2617 }
 0x925   : > { %v2624_v29 = vpop.permute.xlu2 %2623  ;;  %2208 = vst.msk [vmem:[#allocation2 + $0x38] sm:$0xff] %vm2200_vm8, %v2167_v59  ;;  %v5261_v59 = vld [vmem:[#allocation7_spill] sm:$0xff] }
 0x926   : > { %2659 = vst.msk [vmem:[#allocation2 + $0x38] sm:$0xff] %vm2651_vm9, %v2618_v46 }
 0x927   : > { %v2674_v30 = vld [vmem:[#allocation2 + $0x30] sm:$0xff] }
 0x929   : > { %v2131_v0 = vpop.f32.mrf.mxu1  ;;  %1729 = vrot.lane.b32.xlu0 %v4991_v12, %s3380_s8 }
 0x92a   : > { %2180 = vrot.lane.b32.xlu1 %v2131_v0, %s3381_s9 }
 0x92c   : > { %v1718_v26 = vpop.permute.xlu0 %1717 }
 0x92d   : > { %v1728_v13 = vpop.permute.xlu2 %1727  ;;  %1758 = vst.msk [vmem:[#allocation2 + $0x40] sm:$0xff] %vm1749_vm7, %v1718_v26  ;;  %v2675_v3 = vld [vmem:[#allocation2 + $0x38] sm:$0xff] }
 0x92e   : > { %v2169_v55 = vpop.permute.xlu1 %2168  ;;  %1763 = vst.msk [vmem:[#allocation2 + $0x68] sm:$0xff] %vm1749_vm7, %v1728_v13  ;;  %v2687_v39 = vpack.c.bf16 %v2675_v3, %v2674_v30  ;;  %v5262_v3 = vld [vmem:[#allocation3_spill] sm:$0xff] }
 0x92f   : > { %2209 = vst.msk [vmem:[#allocation2 + $0x40] sm:$0xff] %vm2200_vm8, %v2169_v55 }
 0x930   : > { %2660 = vst.msk [vmem:[#allocation2 + $0x40] sm:$0xff] %vm2651_vm9, %v2620_v54  ;;  %v2582_v48 = vpop.f32.mrf.mxu0 }
 0x931   : > { %v2133_v38 = vpop.f32.mrf.mxu1  ;;  %2973 = vmatmul.msk.bf16.gmra.mxu2 %vm314_vm0, %v2687_v39  ;;  %2631 = vrot.lane.b32.xlu2 %v2582_v48, %s3382_s10 }
 0x932   : > { %2182 = vrot.lane.b32.xlu0 %v2133_v38, %s3381_s9 }
 0x936   : > { %v2171_v12 = vpop.permute.xlu0 %2170  ;;  %v2622_v34 = vpop.permute.xlu1 %2621 }
 0x937   : > { %2210 = vst.msk [vmem:[#allocation2 + $0x48] sm:$0xff] %vm2200_vm8, %v2171_v12  ;;  %v2676_v17 = vld [vmem:[#allocation2 + $0x40] sm:$0xff] }
 0x938   : > { %2661 = vst.msk [vmem:[#allocation2 + $0x48] sm:$0xff] %vm2651_vm9, %v2622_v34  ;;  %v2584_v16 = vpop.f32.mrf.mxu0  ;;  %v5263_v34 = vld [vmem:[#allocation6_spill] sm:$0xff] }
 0x939   : > { %2633 = vrot.lane.b32.xlu1 %v2584_v16, %s3382_s10 }
 0x93e   : > { %v1722_v9 = vpop.permute.xlu0 %1721  ;;  %v2173_v43 = vpop.permute.xlu1 %2172 }
 0x93f   : > { %1760 = vst.msk [vmem:[#allocation2 + $0x50] sm:$0xff] %vm1749_vm7, %v1722_v9  ;;  %v2677_v21 = vld [vmem:[#allocation2 + $0x48] sm:$0xff] }
 0x940   : > { %2211 = vst.msk [vmem:[#allocation2 + $0x50] sm:$0xff] %vm2200_vm8, %v2173_v43  ;;  %v2688_v36 = vpack.c.bf16 %v2677_v21, %v2676_v17  ;;  %v5264_v21 = vld [vmem:[#allocation5_spill] sm:$0xff] }
 0x941   : > { %2662 = vst.msk [vmem:[#allocation2 + $0x50] sm:$0xff] %vm2651_vm9, %v2624_v29 }
 0x942   : > { %2974 = vmatmul.msk.bf16.gmra.mxu2 %vm314_vm0, %v2688_v36 }
 0x946   : > { %v2175_v51 = vpop.permute.xlu0 %2174  ;;  %v2626_v7 = vpop.permute.xlu1 %2625 }
 0x947   : > { %2212 = vst.msk [vmem:[#allocation2 + $0x58] sm:$0xff] %vm2200_vm8, %v2175_v51 }
 0x948   : > { %2663 = vst.msk [vmem:[#allocation2 + $0x58] sm:$0xff] %vm2651_vm9, %v2626_v7  ;;  %v2678_v15 = vld [vmem:[#allocation2 + $0x50] sm:$0xff] }
 0x94e   : > { %v1726_v62 = vpop.permute.xlu0 %1725 }
 0x94f   : > { %1762 = vst.msk [vmem:[#allocation2 + $0x60] sm:$0xff] %vm1749_vm7, %v1726_v62  ;;  %v2679_v58 = vld [vmem:[#allocation2 + $0x58] sm:$0xff] }
 0x950   : > { %v2689_v25 = vpack.c.bf16 %v2679_v58, %v2678_v15  ;;  %v5265_v15 = vld [vmem:[#allocation8_spill] sm:$0xff] }
 0x952   : > { %2975 = vmatmul.msk.bf16.gmra.mxu2 %vm314_vm0, %v2689_v25 }
 0x955   : > { %v2741_v5 = vpop.f32.mrf.mxu2 }
 0x956   : > { %v2781_v52 = vadd.f32 %v3567_v47, %v2741_v5 }
 0x958   : > { %v2801_v57 = vadd.f32 %v5128_v10, %v2781_v52 }
 0x95a   : > { %v2817_v40 = vpack.c.bf16 %v2801_v57, %v2801_v57  ;;  %v5266_v57 = vld [vmem:[#allocation9_spill] sm:$0xff] }
 0x95c   : > { %2834 = vst.msk [vmem:[%s5137_s19] sm:$0xf] %vm2833_vm10, %v2817_v40 }
 0x95d   : > { %v2743_v2 = vpop.f32.mrf.mxu2 }
 0x95e   : > { %v2782_v4 = vadd.f32 %v3598_v22, %v2743_v2 }
 0x960   : > { %v2802_v49 = vadd.f32 %v5128_v10, %v2782_v4 }
 0x962   : > { %v2818_v47 = vpack.c.bf16 %v2802_v49, %v2802_v49 }
 0x964   : > { %2835 = vst.msk [vmem:[%s5137_s19 + $0x4] sm:$0xf] %vm2833_vm10, %v2818_v47  ;;  %v5267_v47 = vld [vmem:[#allocation10_spill] sm:$0xff] }
 0x974   : > { %v2628_v35 = vpop.permute.xlu2 %2627 }
 0x97c   : > { %v1732_v45 = vpop.permute.xlu2 %1731 }
 0x97d   : > { %1765 = vst.msk [vmem:[#allocation2 + $0x78] sm:$0xff] %vm1749_vm7, %v1732_v45 }
 0x98b   : > { %v2177_v37 = vpop.permute.xlu1 %2176  ;;  %v2632_v1 = vpop.permute.xlu2 %2631 }
 0x98c   : > { %2213 = vst.msk [vmem:[#allocation2 + $0x60] sm:$0xff] %vm2200_vm8, %v2177_v37 }
 0x98d   : > { %2664 = vst.msk [vmem:[#allocation2 + $0x60] sm:$0xff] %vm2651_vm9, %v2628_v35 }
 0x993   : > { %v2179_v24 = vpop.permute.xlu0 %2178 }
 0x994   : > { %2214 = vst.msk [vmem:[#allocation2 + $0x68] sm:$0xff] %vm2200_vm8, %v2179_v24  ;;  %v2746_v41 = vpop.f32.mrf.mxu2  ;;  %v2630_v22 = vpop.permute.xlu1 %2629  ;;  %v2680_v20 = vld [vmem:[#allocation2 + $0x60] sm:$0xff] }
 0x995   : > { %v2783_v28 = vadd.f32 %v5258_v32, %v2746_v41  ;;  %2665 = vst.msk [vmem:[#allocation2 + $0x68] sm:$0xff] %vm2651_vm9, %v2630_v22  ;;  %v5268_v41 = vld [vmem:[#allocation11_spill] sm:$0xff] }
 0x997   : > { %v2803_v27 = vadd.f32 %v5128_v10, %v2783_v28 }
 0x999   : > { %v2819_v11 = vpack.c.bf16 %v2803_v27, %v2803_v27 }
 0x99b   : > { %2836 = vst.msk [vmem:[%s5137_s19 + $0x8] sm:$0xf] %vm2833_vm10, %v2819_v11  ;;  %v1730_v50 = vpop.permute.xlu0 %1729  ;;  %v5269_v11 = vld [vmem:[#allocation13_spill] sm:$0xff] }
 0x99c   : > { %1764 = vst.msk [vmem:[#allocation2 + $0x70] sm:$0xff] %vm1749_vm7, %v1730_v50  ;;  %v2748_v23 = vpop.f32.mrf.mxu2  ;;  %v2181_v33 = vpop.permute.xlu1 %2180  ;;  %v2681_v19 = vld [vmem:[#allocation2 + $0x68] sm:$0xff] }
 0x99d   : > { %v2784_v54 = vadd.f32 %v5259_v8, %v2748_v23  ;;  %2215 = vst.msk [vmem:[#allocation2 + $0x70] sm:$0xff] %vm2200_vm8, %v2181_v33  ;;  %v2690_v56 = vpack.c.bf16 %v2681_v19, %v2680_v20  ;;  %v5270_v19 = vld [vmem:[#allocation14_spill] sm:$0xff] }
 0x99e   : > { %2666 = vst.msk [vmem:[#allocation2 + $0x70] sm:$0xff] %vm2651_vm9, %v2632_v1 }
 0x99f   : > { %v2804_v14 = vadd.f32 %v5128_v10, %v2784_v54  ;;  %2976 = vmatmul.msk.bf16.gmra.mxu2 %vm314_vm0, %v2690_v56 }
 0x9a1   : > { %v2820_v6 = vpack.c.bf16 %v2804_v14, %v2804_v14  ;;  %v5271_v14 = vld [vmem:[#allocation12_spill] sm:$0xff] }
 0x9a3   : > { %2837 = vst.msk [vmem:[%s5137_s19 + $0xc] sm:$0xf] %vm2833_vm10, %v2820_v6 }
 0x9a4   : > { %v2183_v61 = vpop.permute.xlu0 %2182  ;;  %v2751_v63 = vpop.f32.mrf.mxu2 }
 0x9a5   : > { %2216 = vst.msk [vmem:[#allocation2 + $0x78] sm:$0xff] %vm2200_vm8, %v2183_v61  ;;  %v2785_v42 = vadd.f32 %v5260_v60, %v2751_v63  ;;  %v2682_v26 = vld [vmem:[#allocation2 + $0x70] sm:$0xff] }
 0x9a7   : > { %v2805_v18 = vadd.f32 %v5128_v10, %v2785_v42 }
 0x9a9   : > { %v2821_v53 = vpack.c.bf16 %v2805_v18, %v2805_v18 }
 0x9ab   : > { %2838 = vst.msk [vmem:[%s5137_s19 + $0x10] sm:$0xf] %vm2833_vm10, %v2821_v53  ;;  %v2634_v44 = vpop.permute.xlu1 %2633 }
 0x9ac   : > { %v2753_v31 = vpop.f32.mrf.mxu2  ;;  %2667 = vst.msk [vmem:[#allocation2 + $0x78] sm:$0xff] %vm2651_vm9, %v2634_v44 }
 0x9ad   : > { %v2786_v29 = vadd.f32 %v5261_v59, %v2753_v31 }
 0x9af   : > { %v2806_v46 = vadd.f32 %v5128_v10, %v2786_v29 }
 0x9b1   : > { %v2822_v0 = vpack.c.bf16 %v2806_v46, %v2806_v46 }
 0x9b3   : > { %2839 = vst.msk [vmem:[%s5137_s19 + $0x14] sm:$0xf] %vm2833_vm10, %v2822_v0  ;;  %v2683_v13 = vld [vmem:[#allocation2 + $0x78] sm:$0xff] }
 0x9b4   : > { %v2756_v55 = vpop.f32.mrf.mxu2  ;;  %v2691_v30 = vpack.c.bf16 %v2683_v13, %v2682_v26 }
 0x9b5   : > { %v2787_v39 = vadd.f32 %v5262_v3, %v2756_v55 }
 0x9b6   : > { %2977 = vmatmul.msk.bf16.gmra.mxu2 %vm314_vm0, %v2691_v30 }
 0x9b7   : > { %v2807_v38 = vadd.f32 %v5128_v10, %v2787_v39 }
 0x9b9   : > { %v2823_v48 = vpack.c.bf16 %v2807_v38, %v2807_v38 }
 0x9bb   : > { %2840 = vst.msk [vmem:[%s5137_s19 + $0x18] sm:$0xf] %vm2833_vm10, %v2823_v48 }
 0x9bc   : > { %v2758_v12 = vpop.f32.mrf.mxu2 }
 0x9bd   : > { %v2788_v16 = vadd.f32 %v5263_v34, %v2758_v12 }
 0x9bf   : > { %v2808_v9 = vadd.f32 %v5128_v10, %v2788_v16 }
 0x9c1   : > { %v2824_v43 = vpack.c.bf16 %v2808_v9, %v2808_v9 }
 0x9c3   : > { %2841 = vst.msk [vmem:[%s5137_s19 + $0x1c] sm:$0xf] %vm2833_vm10, %v2824_v43 }
 0x9c5   : > { %v2761_v17 = vpop.f32.mrf.mxu2 }
 0x9c6   : > { %v2789_v36 = vadd.f32 %v5264_v21, %v2761_v17 }
 0x9c8   : > { %v2809_v51 = vadd.f32 %v5128_v10, %v2789_v36 }
 0x9ca   : > { %v2825_v7 = vpack.c.bf16 %v2809_v51, %v2809_v51 }
 0x9cc   : > { %2842 = vst.msk [vmem:[%s5137_s19 + $0x20] sm:$0xf] %vm2833_vm10, %v2825_v7 }
 0x9cd   : > { %v2763_v62 = vpop.f32.mrf.mxu2 }
 0x9ce   : > { %v2790_v58 = vadd.f32 %v5265_v15, %v2763_v62 }
 0x9d0   : > { %v2810_v25 = vadd.f32 %v5128_v10, %v2790_v58 }
 0x9d2   : > { %v2826_v5 = vpack.c.bf16 %v2810_v25, %v2810_v25 }
 0x9d4   : > { %2843 = vst.msk [vmem:[%s5137_s19 + $0x24] sm:$0xf] %vm2833_vm10, %v2826_v5 }
 0x9d5   : > { %v2766_v52 = vpop.f32.mrf.mxu2 }
 0x9d6   : > { %v2791_v40 = vadd.f32 %v5266_v57, %v2766_v52 }
 0x9d8   : > { %v2811_v2 = vadd.f32 %v5128_v10, %v2791_v40 }
 0x9da   : > { %v2827_v4 = vpack.c.bf16 %v2811_v2, %v2811_v2 }
 0x9dc   : > { %2844 = vst.msk [vmem:[%s5137_s19 + $0x28] sm:$0xf] %vm2833_vm10, %v2827_v4 }
 0x9dd   : > { %v2768_v49 = vpop.f32.mrf.mxu2 }
 0x9de   : > { %v2792_v35 = vadd.f32 %v5267_v47, %v2768_v49 }
 0x9e0   : > { %v2812_v45 = vadd.f32 %v5128_v10, %v2792_v35 }
 0x9e2   : > { %v2828_v37 = vpack.c.bf16 %v2812_v45, %v2812_v45 }
 0x9e4   : > { %2845 = vst.msk [vmem:[%s5137_s19 + $0x2c] sm:$0xf] %vm2833_vm10, %v2828_v37 }
 0xa22   : > { %v2771_v24 = vpop.f32.mrf.mxu2 }
 0xa23   : > { %v2793_v22 = vadd.f32 %v5268_v41, %v2771_v24 }
 0xa25   : > { %v2813_v32 = vadd.f32 %v5128_v10, %v2793_v22 }
 0xa27   : > { %v2829_v28 = vpack.c.bf16 %v2813_v32, %v2813_v32 }
 0xa29   : > { %2846 = vst.msk [vmem:[%s5137_s19 + $0x30] sm:$0xf] %vm2833_vm10, %v2829_v28 }
 0xa2a   : > { %v2773_v27 = vpop.f32.mrf.mxu2 }
 0xa2b   : > { %v2794_v50 = vadd.f32 %v5269_v11, %v2773_v27 }
 0xa2d   : > { %v2814_v23 = vadd.f32 %v5128_v10, %v2794_v50 }
 0xa2f   : > { %v2830_v33 = vpack.c.bf16 %v2814_v23, %v2814_v23 }
 0xa31   : > { %2847 = vst.msk [vmem:[%s5137_s19 + $0x34] sm:$0xf] %vm2833_vm10, %v2830_v33 }
 0xa39   : > { %v2776_v20 = vpop.f32.mrf.mxu2 }
 0xa3a   : > { %v2795_v1 = vadd.f32 %v5270_v19, %v2776_v20 }
 0xa3c   : > { %v2815_v8 = vadd.f32 %v5128_v10, %v2795_v1 }
 0xa3e   : > { %v2831_v54 = vpack.c.bf16 %v2815_v8, %v2815_v8 }
 0xa40   : > { %2848 = vst.msk [vmem:[%s5137_s19 + $0x38] sm:$0xf] %vm2833_vm10, %v2831_v54 }
 0xa41   : > { %v2778_v56 = vpop.f32.mrf.mxu2 }
 0xa42   : > { %v2796_v6 = vadd.f32 %v5271_v14, %v2778_v56 }
 0xa44   : > { %v2816_v61 = vadd.f32 %v5128_v10, %v2796_v6 }
 0xa46   : > { %v2832_v63 = vpack.c.bf16 %v2816_v61, %v2816_v61 }
 0xa48   : > { %2849 = vst.msk [vmem:[%s5137_s19 + $0x3c] sm:$0xf] %vm2833_vm10, %v2832_v63 }
 0xa49 PF: > { %s17_s24 = sadd.s32 1, %s3366_s24  }
 0xa4a   : > { %p14_p4 = scmp.ge.s32.totalorder %s17_s24, 4  }
 0xa4c   :  { %16 = sbr.rel (!%p14_p4) target bundleno = 1 (0x1), region = 78 }

</bundles_post_ra>
